<compile_context>
chip_gen: v5e
topology: v5e:2x2
jax: 0.10.0
libtpu: 0.0.40
codegen_flags: <defaults>
</compile_context>

<pallas_src>
import functools
import math

import jax
import jax.numpy as jnp
import numpy as np
from jax import lax
from jax.experimental import pallas as pl
from jax.experimental.pallas import tpu as pltpu


# ------------------------------ fused kernel ---------------------------------
def _fused_kernel(x_ref, ws_ref, bsp_ref, g_ref, beta_ref, wt_ref, bt_ref,
                  o_ref, *, N, T, H, W, Cin, Ho, Wo, kh, kw, ph, pw,
                  Cmid, Cout, kt, pt, T_out, eps):
    f32 = jnp.float32
    xf = x_ref[...]                                    # (N,T,H,W*Cin), lane = w*Cin + c

    # ---- in-kernel zero padding: W (lane axis) then H (sublane axis) ----
    if pw > 0:
        zw = jnp.zeros((N, T, H, pw * Cin), f32)
        xf = jnp.concatenate([zw, xf, zw], axis=3)     # (N,T,H, Wp*Cin)
    if ph > 0:
        zh = jnp.zeros((N, T, ph, (W + 2 * pw) * Cin), f32)
        xf = jnp.concatenate([zh, xf, zh], axis=2)     # (N,T,Hp, Wp*Cin)

    # ---- spatial conv: im2col via lane slices, ONE MXU matmul (K = kh*kw*Wo*Cin) ----
    taps = [xf[:, :, ki:ki + Ho, kj * Cin: kj * Cin + Wo * Cin]
            for ki in range(kh) for kj in range(kw)]   # each (N,T,Ho, Wo*Cin)
    patches = jnp.concatenate(taps, axis=-1)           # (N,T,Ho, kh*kw*Wo*Cin)
    patches = patches.reshape(N * T * Ho, kh * kw * Wo * Cin)
    y = jnp.dot(patches, ws_ref[...],
                preferred_element_type=f32) + bsp_ref[...]     # (N*T*Ho, Wo*Cmid)

    # ---- BatchNorm (training-mode batch statistics), single traversal ----
    M = N * T * Ho * Wo
    s1 = jnp.sum(y, axis=0, keepdims=True)             # (1, Wo*Cmid)
    s2 = jnp.sum(y * y, axis=0, keepdims=True)
    g1 = s1[:, 0:Cmid]                                 # fold Wo lane-groups -> per-channel
    g2 = s2[:, 0:Cmid]
    for ow in range(1, Wo):
        g1 = g1 + s1[:, ow * Cmid:(ow + 1) * Cmid]
        g2 = g2 + s2[:, ow * Cmid:(ow + 1) * Cmid]
    mean = g1 * (1.0 / M)                              # (1, Cmid)
    var = g2 * (1.0 / M) - mean * mean                 # biased (train-mode) variance
    sc14 = lax.rsqrt(var + eps) * g_ref[...]           # scale  = inv_std * gamma
    of14 = beta_ref[...] - mean * sc14                 # offset = beta - mean * scale
    sc = jnp.concatenate([sc14] * Wo, axis=-1)         # tile back to (1, Wo*Cmid)
    of = jnp.concatenate([of14] * Wo, axis=-1)
    a = jnp.maximum(y * sc + of, 0.0)                  # BN + ReLU, (N*T*Ho, Wo*Cmid)

    # ---- temporal conv: pad T, fold kt taps into lanes, ONE matmul, single store ----
    a4 = a.reshape(N, T, Ho, Wo * Cmid)
    if pt > 0:
        zt = jnp.zeros((N, pt, Ho, Wo * Cmid), f32)
        a4 = jnp.concatenate([zt, a4, zt], axis=1)     # (N, T+2pt, Ho, Wo*Cmid)
    ttaps = [a4[:, dt:dt + T_out] for dt in range(kt)]
    ct = jnp.concatenate(ttaps, axis=-1)               # (N, T_out, Ho, kt*Wo*Cmid)
    ct = ct.reshape(N * T_out * Ho, kt * Wo * Cmid)
    z = jnp.dot(ct, wt_ref[...],
                preferred_element_type=f32) + bt_ref[...]      # (N*T_out*Ho, Wo*Cout)
    o_ref[...] = z.reshape(N, T_out, Ho, Wo * Cout)    # lane-dense single write


# --------------------------------- wrapper ------------------------------------
def spatio_temporal_conv(x, params, *, kernel_size, padding, eps=1e-5):
    """x: (N, T, H, W, Cin) float32 (NTHWC). stride fixed to 1."""
    kt, kh, kw = kernel_size
    pt, ph, pw = padding
    w_sp, b_sp, gamma, beta, w_t, b_t = params
    N, T, H, W, Cin = x.shape
    Cmid = w_sp.shape[-1]
    Cout = w_t.shape[-1]
    Ho = H + 2 * ph - kh + 1
    Wo = W + 2 * pw - kw + 1
    T_out = T + 2 * pt - kt + 1
    KS = kh * kw * Wo * Cin                            # spatial contraction depth
    KT = kt * Wo * Cmid                                # temporal contraction depth

    # --- one-time weight packing: block-diagonal over output-W => lane-dense matmuls ---
    eye_w = jnp.eye(Wo, dtype=jnp.float32)
    w_taps = w_sp.reshape(kh * kw, Cin, Cmid)
    ws_big = jnp.einsum('tcm,vu->tvcum', w_taps, eye_w).reshape(KS, Wo * Cmid)
    wt_big = jnp.einsum('dmo,vu->dvmuo', w_t, eye_w).reshape(KT, Wo * Cout)
    bsp_d = jnp.tile(b_sp, (1, Wo))                    # (1, Wo*Cmid)
    bt_d = jnp.tile(b_t, (1, Wo))                      # (1, Wo*Cout)

    xf = x.reshape(N, T, H, W * Cin)                   # free (contiguous) reshape

    out = pl.pallas_call(
        functools.partial(_fused_kernel, N=N, T=T, H=H, W=W, Cin=Cin,
                          Ho=Ho, Wo=Wo, kh=kh, kw=kw, ph=ph, pw=pw,
                          Cmid=Cmid, Cout=Cout, kt=kt, pt=pt, T_out=T_out,
                          eps=eps),
        out_shape=jax.ShapeDtypeStruct((N, T_out, Ho, Wo * Cout), jnp.float32),
        grid=(1,),
        in_specs=[
            pl.BlockSpec((N, T, H, W * Cin), lambda i: (0, 0, 0, 0)),
            pl.BlockSpec((KS, Wo * Cmid), lambda i: (0, 0)),
            pl.BlockSpec((1, Wo * Cmid), lambda i: (0, 0)),
            pl.BlockSpec((1, Cmid), lambda i: (0, 0)),
            pl.BlockSpec((1, Cmid), lambda i: (0, 0)),
            pl.BlockSpec((KT, Wo * Cout), lambda i: (0, 0)),
            pl.BlockSpec((1, Wo * Cout), lambda i: (0, 0)),
        ],
        out_specs=pl.BlockSpec((N, T_out, Ho, Wo * Cout),
                               lambda i: (0, 0, 0, 0)),
        compiler_params=pltpu.CompilerParams(
            dimension_semantics=("arbitrary",),
            vmem_limit_bytes=48 * 1024 * 1024),
    )(xf, ws_big, bsp_d, gamma, beta, wt_big, bt_d)
    return out.reshape(N, T_out, Ho, Wo, Cout)


# ---------------------- pure-JAX reference (PyTorch semantics) -----------------
def reference(x, params, kernel_size, padding, eps=1e-5):
    kt, kh, kw = kernel_size
    pt, ph, pw = padding
    w_sp, b_sp, gamma, beta, w_t, b_t = params
    x_nc = jnp.transpose(x, (0, 4, 1, 2, 3))                        # NCDHW
    w_sp_oi = jnp.transpose(w_sp, (3, 2, 0, 1))[:, :, None, :, :]    # (Cmid,Cin,1,kh,kw)
    y = lax.conv_general_dilated(x_nc, w_sp_oi, (1, 1, 1),
                                 [(0, 0), (ph, ph), (pw, pw)],
                                 dimension_numbers=('NCDHW', 'OIDHW', 'NCDHW'))
    y = y + b_sp.reshape(1, -1, 1, 1, 1)
    mean = jnp.mean(y, axis=(0, 2, 3, 4), keepdims=True)
    var = jnp.mean((y - mean) ** 2, axis=(0, 2, 3, 4), keepdims=True)
    y = (y - mean) / jnp.sqrt(var + eps)
    y = y * gamma.reshape(1, -1, 1, 1, 1) + beta.reshape(1, -1, 1, 1, 1)
    y = jnp.maximum(y, 0.0)
    w_t_oi = jnp.transpose(w_t, (2, 1, 0))[:, :, :, None, None]      # (Cout,Cmid,kt,1,1)
    z = lax.conv_general_dilated(y, w_t_oi, (1, 1, 1),
                                 [(pt, pt), (0, 0), (0, 0)],
                                 dimension_numbers=('NCDHW', 'OIDHW', 'NCDHW'))
    z = z + b_t.reshape(1, -1, 1, 1, 1)
    return jnp.transpose(z, (0, 2, 3, 4, 1))                         # back to NTHWC


if __name__ == "__main__":
    key = jax.random.PRNGKey(0)
    in_channels, out_channels = 4, 8
    kernel_size = (3, 3, 3)
    padding = (1, 1, 1)
    N, T, H, W = 2, 8, 16, 16
    kt, kh, kw = kernel_size

    # intermed_channels exactly as in the module's __init__
    Cmid = int(math.floor(kt * kh * kw * in_channels * out_channels /
                          (kh * kw * in_channels + kt * out_channels)))

    ks = jax.random.split(key, 7)
    x = jax.random.normal(ks[0], (N, T, H, W, in_channels), jnp.float32)
    s_sp = 1.0 / math.sqrt(kh * kw * in_channels)
    s_t = 1.0 / math.sqrt(kt * Cmid)
    w_sp = jax.random.uniform(ks[1], (kh, kw, in_channels, Cmid), jnp.float32, -s_sp, s_sp)
    b_sp = jax.random.uniform(ks[2], (1, Cmid), jnp.float32, -s_sp, s_sp)
    gamma = jax.random.uniform(ks[3], (1, Cmid), jnp.float32, 0.5, 1.5)
    beta = jax.random.uniform(ks[4], (1, Cmid), jnp.float32, -0.5, 0.5)
    w_t = jax.random.uniform(ks[5], (kt, Cmid, out_channels), jnp.float32, -s_t, s_t)
    b_t = jax.random.uniform(ks[6], (1, out_channels), jnp.float32, -s_t, s_t)
    params = (w_sp, b_sp, gamma, beta, w_t, b_t)

    out = spatio_temporal_conv(x, params, kernel_size=kernel_size, padding=padding)
    out = jax.block_until_ready(out)

    ref = reference(x, params, kernel_size, padding)
    np.testing.assert_allclose(np.asarray(out), np.asarray(ref), rtol=2e-3, atol=2e-4)
    print("KERNEL_OK")
</pallas_src>

<mosaic_0001>
module attributes {stable_mosaic.version = 11 : i64} {
  func.func @_fused_kernel(%arg0: i32, %arg1: memref<2x8x16x64xf32, #tpu.memory_space<vmem>>, %arg2: memref<576x224xf32, #tpu.memory_space<vmem>>, %arg3: memref<1x224xf32, #tpu.memory_space<vmem>>, %arg4: memref<1x14xf32, #tpu.memory_space<vmem>>, %arg5: memref<1x14xf32, #tpu.memory_space<vmem>>, %arg6: memref<672x128xf32, #tpu.memory_space<vmem>>, %arg7: memref<1x128xf32, #tpu.memory_space<vmem>>, %arg8: memref<2x8x16x128xf32, #tpu.memory_space<vmem>>) attributes {dimension_semantics = [#tpu.dimension_semantics<arbitrary>], iteration_bounds = array<i64: 1>, scalar_prefetch = 0 : i64, scratch_operands = 0 : i64, tpu.core_type = #tpu.core_type<tc>, window_params = [{pipeline_mode = #tpu.pipeline_mode<synchronous>, transform_indices = @transform_0, window_bounds = array<i64: 2, 8, 16, 64>}, {pipeline_mode = #tpu.pipeline_mode<synchronous>, transform_indices = @transform_1, window_bounds = array<i64: 576, 224>}, {pipeline_mode = #tpu.pipeline_mode<synchronous>, transform_indices = @transform_2, window_bounds = array<i64: 1, 224>}, {pipeline_mode = #tpu.pipeline_mode<synchronous>, transform_indices = @transform_3, window_bounds = array<i64: 1, 14>}, {pipeline_mode = #tpu.pipeline_mode<synchronous>, transform_indices = @transform_4, window_bounds = array<i64: 1, 14>}, {pipeline_mode = #tpu.pipeline_mode<synchronous>, transform_indices = @transform_5, window_bounds = array<i64: 672, 128>}, {pipeline_mode = #tpu.pipeline_mode<synchronous>, transform_indices = @transform_6, window_bounds = array<i64: 1, 128>}, {pipeline_mode = #tpu.pipeline_mode<synchronous>, transform_indices = @transform_7, window_bounds = array<i64: 2, 8, 16, 128>}]} {
    %c0 = arith.constant 0 : index
    %c0_0 = arith.constant 0 : index
    %c0_1 = arith.constant 0 : index
    %c0_2 = arith.constant 0 : index
    %0 = vector.load %arg1[%c0, %c0_0, %c0_1, %c0_2] : memref<2x8x16x64xf32, #tpu.memory_space<vmem>>, vector<2x8x16x64xf32>
    %cst = arith.constant 0.000000e+00 : f32
    %1 = vector.broadcast %cst : f32 to vector<2x8x16x4xf32>
    %2 = tpu.concatenate %1, %0, %1 in 3 : vector<2x8x16x4xf32>, vector<2x8x16x64xf32>, vector<2x8x16x4xf32> -> vector<2x8x16x72xf32>
    %cst_3 = arith.constant 0.000000e+00 : f32
    %3 = vector.broadcast %cst_3 : f32 to vector<2x8x1x72xf32>
    %4 = tpu.concatenate %3, %2, %3 in 2 : vector<2x8x1x72xf32>, vector<2x8x16x72xf32>, vector<2x8x1x72xf32> -> vector<2x8x18x72xf32>
    %5 = vector.extract_strided_slice %4 {offsets = [0, 0, 0, 0], sizes = [2, 8, 16, 64], strides = [1, 1, 1, 1]} : vector<2x8x18x72xf32> to vector<2x8x16x64xf32>
    %6 = vector.extract_strided_slice %4 {offsets = [0, 0, 0, 4], sizes = [2, 8, 16, 64], strides = [1, 1, 1, 1]} : vector<2x8x18x72xf32> to vector<2x8x16x64xf32>
    %7 = vector.extract_strided_slice %4 {offsets = [0, 0, 0, 8], sizes = [2, 8, 16, 64], strides = [1, 1, 1, 1]} : vector<2x8x18x72xf32> to vector<2x8x16x64xf32>
    %8 = vector.extract_strided_slice %4 {offsets = [0, 0, 1, 0], sizes = [2, 8, 16, 64], strides = [1, 1, 1, 1]} : vector<2x8x18x72xf32> to vector<2x8x16x64xf32>
    %9 = vector.extract_strided_slice %4 {offsets = [0, 0, 1, 4], sizes = [2, 8, 16, 64], strides = [1, 1, 1, 1]} : vector<2x8x18x72xf32> to vector<2x8x16x64xf32>
    %10 = vector.extract_strided_slice %4 {offsets = [0, 0, 1, 8], sizes = [2, 8, 16, 64], strides = [1, 1, 1, 1]} : vector<2x8x18x72xf32> to vector<2x8x16x64xf32>
    %11 = vector.extract_strided_slice %4 {offsets = [0, 0, 2, 0], sizes = [2, 8, 16, 64], strides = [1, 1, 1, 1]} : vector<2x8x18x72xf32> to vector<2x8x16x64xf32>
    %12 = vector.extract_strided_slice %4 {offsets = [0, 0, 2, 4], sizes = [2, 8, 16, 64], strides = [1, 1, 1, 1]} : vector<2x8x18x72xf32> to vector<2x8x16x64xf32>
    %13 = vector.extract_strided_slice %4 {offsets = [0, 0, 2, 8], sizes = [2, 8, 16, 64], strides = [1, 1, 1, 1]} : vector<2x8x18x72xf32> to vector<2x8x16x64xf32>
    %14 = tpu.concatenate %5, %6, %7, %8, %9, %10, %11, %12, %13 in 3 : vector<2x8x16x64xf32>, vector<2x8x16x64xf32>, vector<2x8x16x64xf32>, vector<2x8x16x64xf32>, vector<2x8x16x64xf32>, vector<2x8x16x64xf32>, vector<2x8x16x64xf32>, vector<2x8x16x64xf32>, vector<2x8x16x64xf32> -> vector<2x8x16x576xf32>
    %15 = vector.shape_cast %14 : vector<2x8x16x576xf32> to vector<256x576xf32>
    %c0_4 = arith.constant 0 : index
    %c0_5 = arith.constant 0 : index
    %16 = vector.load %arg2[%c0_4, %c0_5] : memref<576x224xf32, #tpu.memory_space<vmem>>, vector<576x224xf32>
    %cst_6 = arith.constant dense<0.000000e+00> : vector<256x224xf32>
    %17 = tpu.matmul %15, %16, %cst_6 {dimension_numbers = #tpu.dot_dimension_numbers<[1], [0], [0], [1], [0, 0, 1, 1], [], []>} : vector<256x576xf32>, vector<576x224xf32>, vector<256x224xf32> -> vector<256x224xf32>
    %c0_7 = arith.constant 0 : index
    %c0_8 = arith.constant 0 : index
    %18 = vector.load %arg3[%c0_7, %c0_8] : memref<1x224xf32, #tpu.memory_space<vmem>>, vector<1x224xf32>
    %19 = vector.broadcast %18 : vector<1x224xf32> to vector<256x224xf32>
    %20 = arith.addf %17, %19 : vector<256x224xf32>
    %cst_9 = arith.constant dense<0.000000e+00> : vector<224xf32>
    %21 = vector.multi_reduction <add>, %20, %cst_9 [0] : vector<256x224xf32> to vector<224xf32>
    %22 = vector.shape_cast %21 : vector<224xf32> to vector<1x224xf32>
    %23 = arith.mulf %20, %20 : vector<256x224xf32>
    %cst_10 = arith.constant dense<0.000000e+00> : vector<224xf32>
    %24 = vector.multi_reduction <add>, %23, %cst_10 [0] : vector<256x224xf32> to vector<224xf32>
    %25 = vector.shape_cast %24 : vector<224xf32> to vector<1x224xf32>
    %26 = vector.extract_strided_slice %22 {offsets = [0, 0], sizes = [1, 14], strides = [1, 1]} : vector<1x224xf32> to vector<1x14xf32>
    %27 = vector.extract_strided_slice %25 {offsets = [0, 0], sizes = [1, 14], strides = [1, 1]} : vector<1x224xf32> to vector<1x14xf32>
    %28 = vector.extract_strided_slice %22 {offsets = [0, 14], sizes = [1, 14], strides = [1, 1]} : vector<1x224xf32> to vector<1x14xf32>
    %29 = arith.addf %26, %28 : vector<1x14xf32>
    %30 = vector.extract_strided_slice %25 {offsets = [0, 14], sizes = [1, 14], strides = [1, 1]} : vector<1x224xf32> to vector<1x14xf32>
    %31 = arith.addf %27, %30 : vector<1x14xf32>
    %32 = vector.extract_strided_slice %22 {offsets = [0, 28], sizes = [1, 14], strides = [1, 1]} : vector<1x224xf32> to vector<1x14xf32>
    %33 = arith.addf %29, %32 : vector<1x14xf32>
    %34 = vector.extract_strided_slice %25 {offsets = [0, 28], sizes = [1, 14], strides = [1, 1]} : vector<1x224xf32> to vector<1x14xf32>
    %35 = arith.addf %31, %34 : vector<1x14xf32>
    %36 = vector.extract_strided_slice %22 {offsets = [0, 42], sizes = [1, 14], strides = [1, 1]} : vector<1x224xf32> to vector<1x14xf32>
    %37 = arith.addf %33, %36 : vector<1x14xf32>
    %38 = vector.extract_strided_slice %25 {offsets = [0, 42], sizes = [1, 14], strides = [1, 1]} : vector<1x224xf32> to vector<1x14xf32>
    %39 = arith.addf %35, %38 : vector<1x14xf32>
    %40 = vector.extract_strided_slice %22 {offsets = [0, 56], sizes = [1, 14], strides = [1, 1]} : vector<1x224xf32> to vector<1x14xf32>
    %41 = arith.addf %37, %40 : vector<1x14xf32>
    %42 = vector.extract_strided_slice %25 {offsets = [0, 56], sizes = [1, 14], strides = [1, 1]} : vector<1x224xf32> to vector<1x14xf32>
    %43 = arith.addf %39, %42 : vector<1x14xf32>
    %44 = vector.extract_strided_slice %22 {offsets = [0, 70], sizes = [1, 14], strides = [1, 1]} : vector<1x224xf32> to vector<1x14xf32>
    %45 = arith.addf %41, %44 : vector<1x14xf32>
    %46 = vector.extract_strided_slice %25 {offsets = [0, 70], sizes = [1, 14], strides = [1, 1]} : vector<1x224xf32> to vector<1x14xf32>
    %47 = arith.addf %43, %46 : vector<1x14xf32>
    %48 = vector.extract_strided_slice %22 {offsets = [0, 84], sizes = [1, 14], strides = [1, 1]} : vector<1x224xf32> to vector<1x14xf32>
    %49 = arith.addf %45, %48 : vector<1x14xf32>
    %50 = vector.extract_strided_slice %25 {offsets = [0, 84], sizes = [1, 14], strides = [1, 1]} : vector<1x224xf32> to vector<1x14xf32>
    %51 = arith.addf %47, %50 : vector<1x14xf32>
    %52 = vector.extract_strided_slice %22 {offsets = [0, 98], sizes = [1, 14], strides = [1, 1]} : vector<1x224xf32> to vector<1x14xf32>
    %53 = arith.addf %49, %52 : vector<1x14xf32>
    %54 = vector.extract_strided_slice %25 {offsets = [0, 98], sizes = [1, 14], strides = [1, 1]} : vector<1x224xf32> to vector<1x14xf32>
    %55 = arith.addf %51, %54 : vector<1x14xf32>
    %56 = vector.extract_strided_slice %22 {offsets = [0, 112], sizes = [1, 14], strides = [1, 1]} : vector<1x224xf32> to vector<1x14xf32>
    %57 = arith.addf %53, %56 : vector<1x14xf32>
    %58 = vector.extract_strided_slice %25 {offsets = [0, 112], sizes = [1, 14], strides = [1, 1]} : vector<1x224xf32> to vector<1x14xf32>
    %59 = arith.addf %55, %58 : vector<1x14xf32>
    %60 = vector.extract_strided_slice %22 {offsets = [0, 126], sizes = [1, 14], strides = [1, 1]} : vector<1x224xf32> to vector<1x14xf32>
    %61 = arith.addf %57, %60 : vector<1x14xf32>
    %62 = vector.extract_strided_slice %25 {offsets = [0, 126], sizes = [1, 14], strides = [1, 1]} : vector<1x224xf32> to vector<1x14xf32>
    %63 = arith.addf %59, %62 : vector<1x14xf32>
    %64 = vector.extract_strided_slice %22 {offsets = [0, 140], sizes = [1, 14], strides = [1, 1]} : vector<1x224xf32> to vector<1x14xf32>
    %65 = arith.addf %61, %64 : vector<1x14xf32>
    %66 = vector.extract_strided_slice %25 {offsets = [0, 140], sizes = [1, 14], strides = [1, 1]} : vector<1x224xf32> to vector<1x14xf32>
    %67 = arith.addf %63, %66 : vector<1x14xf32>
    %68 = vector.extract_strided_slice %22 {offsets = [0, 154], sizes = [1, 14], strides = [1, 1]} : vector<1x224xf32> to vector<1x14xf32>
    %69 = arith.addf %65, %68 : vector<1x14xf32>
    %70 = vector.extract_strided_slice %25 {offsets = [0, 154], sizes = [1, 14], strides = [1, 1]} : vector<1x224xf32> to vector<1x14xf32>
    %71 = arith.addf %67, %70 : vector<1x14xf32>
    %72 = vector.extract_strided_slice %22 {offsets = [0, 168], sizes = [1, 14], strides = [1, 1]} : vector<1x224xf32> to vector<1x14xf32>
    %73 = arith.addf %69, %72 : vector<1x14xf32>
    %74 = vector.extract_strided_slice %25 {offsets = [0, 168], sizes = [1, 14], strides = [1, 1]} : vector<1x224xf32> to vector<1x14xf32>
    %75 = arith.addf %71, %74 : vector<1x14xf32>
    %76 = vector.extract_strided_slice %22 {offsets = [0, 182], sizes = [1, 14], strides = [1, 1]} : vector<1x224xf32> to vector<1x14xf32>
    %77 = arith.addf %73, %76 : vector<1x14xf32>
    %78 = vector.extract_strided_slice %25 {offsets = [0, 182], sizes = [1, 14], strides = [1, 1]} : vector<1x224xf32> to vector<1x14xf32>
    %79 = arith.addf %75, %78 : vector<1x14xf32>
    %80 = vector.extract_strided_slice %22 {offsets = [0, 196], sizes = [1, 14], strides = [1, 1]} : vector<1x224xf32> to vector<1x14xf32>
    %81 = arith.addf %77, %80 : vector<1x14xf32>
    %82 = vector.extract_strided_slice %25 {offsets = [0, 196], sizes = [1, 14], strides = [1, 1]} : vector<1x224xf32> to vector<1x14xf32>
    %83 = arith.addf %79, %82 : vector<1x14xf32>
    %84 = vector.extract_strided_slice %22 {offsets = [0, 210], sizes = [1, 14], strides = [1, 1]} : vector<1x224xf32> to vector<1x14xf32>
    %85 = arith.addf %81, %84 : vector<1x14xf32>
    %86 = vector.extract_strided_slice %25 {offsets = [0, 210], sizes = [1, 14], strides = [1, 1]} : vector<1x224xf32> to vector<1x14xf32>
    %87 = arith.addf %83, %86 : vector<1x14xf32>
    %cst_11 = arith.constant 2.44140625E-4 : f32
    %88 = vector.broadcast %cst_11 : f32 to vector<1x14xf32>
    %89 = arith.mulf %85, %88 : vector<1x14xf32>
    %cst_12 = arith.constant 2.44140625E-4 : f32
    %90 = vector.broadcast %cst_12 : f32 to vector<1x14xf32>
    %91 = arith.mulf %87, %90 : vector<1x14xf32>
    %92 = arith.mulf %89, %89 : vector<1x14xf32>
    %93 = arith.subf %91, %92 : vector<1x14xf32>
    %cst_13 = arith.constant 9.99999974E-6 : f32
    %94 = vector.broadcast %cst_13 : f32 to vector<1x14xf32>
    %95 = arith.addf %93, %94 : vector<1x14xf32>
    %96 = math.rsqrt %95 : vector<1x14xf32>
    %c0_14 = arith.constant 0 : index
    %c0_15 = arith.constant 0 : index
    %97 = vector.load %arg4[%c0_14, %c0_15] : memref<1x14xf32, #tpu.memory_space<vmem>>, vector<1x14xf32>
    %98 = arith.mulf %96, %97 : vector<1x14xf32>
    %c0_16 = arith.constant 0 : index
    %c0_17 = arith.constant 0 : index
    %99 = vector.load %arg5[%c0_16, %c0_17] : memref<1x14xf32, #tpu.memory_space<vmem>>, vector<1x14xf32>
    %100 = arith.mulf %89, %98 : vector<1x14xf32>
    %101 = arith.subf %99, %100 : vector<1x14xf32>
    %102 = tpu.concatenate %98, %98, %98, %98, %98, %98, %98, %98, %98, %98, %98, %98, %98, %98, %98, %98 in 1 : vector<1x14xf32>, vector<1x14xf32>, vector<1x14xf32>, vector<1x14xf32>, vector<1x14xf32>, vector<1x14xf32>, vector<1x14xf32>, vector<1x14xf32>, vector<1x14xf32>, vector<1x14xf32>, vector<1x14xf32>, vector<1x14xf32>, vector<1x14xf32>, vector<1x14xf32>, vector<1x14xf32>, vector<1x14xf32> -> vector<1x224xf32>
    %103 = tpu.concatenate %101, %101, %101, %101, %101, %101, %101, %101, %101, %101, %101, %101, %101, %101, %101, %101 in 1 : vector<1x14xf32>, vector<1x14xf32>, vector<1x14xf32>, vector<1x14xf32>, vector<1x14xf32>, vector<1x14xf32>, vector<1x14xf32>, vector<1x14xf32>, vector<1x14xf32>, vector<1x14xf32>, vector<1x14xf32>, vector<1x14xf32>, vector<1x14xf32>, vector<1x14xf32>, vector<1x14xf32>, vector<1x14xf32> -> vector<1x224xf32>
    %104 = vector.broadcast %102 : vector<1x224xf32> to vector<256x224xf32>
    %105 = arith.mulf %20, %104 : vector<256x224xf32>
    %106 = vector.broadcast %103 : vector<1x224xf32> to vector<256x224xf32>
    %107 = arith.addf %105, %106 : vector<256x224xf32>
    %cst_18 = arith.constant 0.000000e+00 : f32
    %108 = vector.broadcast %cst_18 : f32 to vector<256x224xf32>
    %109 = arith.maximumf %107, %108 : vector<256x224xf32>
    %110 = vector.shape_cast %109 : vector<256x224xf32> to vector<2x8x16x224xf32>
    %cst_19 = arith.constant 0.000000e+00 : f32
    %111 = vector.broadcast %cst_19 : f32 to vector<2x1x16x224xf32>
    %112 = tpu.concatenate %111, %110, %111 in 1 : vector<2x1x16x224xf32>, vector<2x8x16x224xf32>, vector<2x1x16x224xf32> -> vector<2x10x16x224xf32>
    %113 = vector.extract_strided_slice %112 {offsets = [0, 0, 0, 0], sizes = [2, 8, 16, 224], strides = [1, 1, 1, 1]} : vector<2x10x16x224xf32> to vector<2x8x16x224xf32>
    %114 = vector.extract_strided_slice %112 {offsets = [0, 1, 0, 0], sizes = [2, 8, 16, 224], strides = [1, 1, 1, 1]} : vector<2x10x16x224xf32> to vector<2x8x16x224xf32>
    %115 = vector.extract_strided_slice %112 {offsets = [0, 2, 0, 0], sizes = [2, 8, 16, 224], strides = [1, 1, 1, 1]} : vector<2x10x16x224xf32> to vector<2x8x16x224xf32>
    %116 = tpu.concatenate %113, %114, %115 in 3 : vector<2x8x16x224xf32>, vector<2x8x16x224xf32>, vector<2x8x16x224xf32> -> vector<2x8x16x672xf32>
    %117 = vector.shape_cast %116 : vector<2x8x16x672xf32> to vector<256x672xf32>
    %c0_20 = arith.constant 0 : index
    %c0_21 = arith.constant 0 : index
    %118 = vector.load %arg6[%c0_20, %c0_21] : memref<672x128xf32, #tpu.memory_space<vmem>>, vector<672x128xf32>
    %cst_22 = arith.constant dense<0.000000e+00> : vector<256x128xf32>
    %119 = tpu.matmul %117, %118, %cst_22 {dimension_numbers = #tpu.dot_dimension_numbers<[1], [0], [0], [1], [0, 0, 1, 1], [], []>} : vector<256x672xf32>, vector<672x128xf32>, vector<256x128xf32> -> vector<256x128xf32>
    %c0_23 = arith.constant 0 : index
    %c0_24 = arith.constant 0 : index
    %120 = vector.load %arg7[%c0_23, %c0_24] : memref<1x128xf32, #tpu.memory_space<vmem>>, vector<1x128xf32>
    %121 = vector.broadcast %120 : vector<1x128xf32> to vector<256x128xf32>
    %122 = arith.addf %119, %121 : vector<256x128xf32>
    %123 = vector.shape_cast %122 : vector<256x128xf32> to vector<2x8x16x128xf32>
    %c0_25 = arith.constant 0 : index
    %c0_26 = arith.constant 0 : index
    %c0_27 = arith.constant 0 : index
    %c0_28 = arith.constant 0 : index
    %124 = vector.load %arg8[%c0_25, %c0_26, %c0_27, %c0_28] : memref<2x8x16x128xf32, #tpu.memory_space<vmem>>, vector<2x8x16x128xf32>
    tpu.vector_store %arg8[%c0_25, %c0_26, %c0_27, %c0_28], %123 {strides = array<i32>} : memref<2x8x16x128xf32, #tpu.memory_space<vmem>>, vector<2x8x16x128xf32>,
    return
  }
  func.func @transform_0(%arg0: i32) -> (i32, i32, i32, i32) {
    %c0_i32 = arith.constant 0 : i32
    %c0_i32_0 = arith.constant 0 : i32
    %c0_i32_1 = arith.constant 0 : i32
    %c0_i32_2 = arith.constant 0 : i32
    %c0_i32_3 = arith.constant 0 : i32
    return %c0_i32, %c0_i32_0, %c0_i32_1, %c0_i32_2 : i32, i32, i32, i32
  }
  func.func @transform_1(%arg0: i32) -> (i32, i32) {
    %c0_i32 = arith.constant 0 : i32
    %c0_i32_0 = arith.constant 0 : i32
    %c0_i32_1 = arith.constant 0 : i32
    return %c0_i32, %c0_i32_0 : i32, i32
  }
  func.func @transform_2(%arg0: i32) -> (i32, i32) {
    %c0_i32 = arith.constant 0 : i32
    %c0_i32_0 = arith.constant 0 : i32
    %c0_i32_1 = arith.constant 0 : i32
    return %c0_i32, %c0_i32_0 : i32, i32
  }
  func.func @transform_3(%arg0: i32) -> (i32, i32) {
    %c0_i32 = arith.constant 0 : i32
    %c0_i32_0 = arith.constant 0 : i32
    %c0_i32_1 = arith.constant 0 : i32
    return %c0_i32, %c0_i32_0 : i32, i32
  }
  func.func @transform_4(%arg0: i32) -> (i32, i32) {
    %c0_i32 = arith.constant 0 : i32
    %c0_i32_0 = arith.constant 0 : i32
    %c0_i32_1 = arith.constant 0 : i32
    return %c0_i32, %c0_i32_0 : i32, i32
  }
  func.func @transform_5(%arg0: i32) -> (i32, i32) {
    %c0_i32 = arith.constant 0 : i32
    %c0_i32_0 = arith.constant 0 : i32
    %c0_i32_1 = arith.constant 0 : i32
    return %c0_i32, %c0_i32_0 : i32, i32
  }
  func.func @transform_6(%arg0: i32) -> (i32, i32) {
    %c0_i32 = arith.constant 0 : i32
    %c0_i32_0 = arith.constant 0 : i32
    %c0_i32_1 = arith.constant 0 : i32
    return %c0_i32, %c0_i32_0 : i32, i32
  }
  func.func @transform_7(%arg0: i32) -> (i32, i32, i32, i32) {
    %c0_i32 = arith.constant 0 : i32
    %c0_i32_0 = arith.constant 0 : i32
    %c0_i32_1 = arith.constant 0 : i32
    %c0_i32_2 = arith.constant 0 : i32
    %c0_i32_3 = arith.constant 0 : i32
    return %c0_i32, %c0_i32_0, %c0_i32_1, %c0_i32_2 : i32, i32, i32, i32
  }
}

</mosaic_0001>

<bundles_post_ra>
// kernel: tpu_custom_call.1
= control target key start
LH: loop header
LB: loop body
LE: loop exit
PB: predicated region body
PF: predicated region fallthrough
CT: control target
= control target key end

     0   :  { %s5751_s28 = smov 4   ;;  %s11137_s0 = inlined_call_operand.vmem [shape: f32[2,8,16,64], index: 0, kind: input, shape index: {}]   ;;  %s11138_s1 = inlined_call_operand.vmem [shape: f32[576,224], index: 1, kind: input, shape index: {}]   ;;  %s11139_s2 = inlined_call_operand.vmem [shape: f32[1,224], index: 2, kind: input, shape index: {}]   ;;  %s11140_s3 = inlined_call_operand.vmem [shape: f32[1,14], index: 3, kind: input, shape index: {}]   ;;  %s11141_s4 = inlined_call_operand.vmem [shape: f32[1,14], index: 4, kind: input, shape index: {}]   ;;  %s11142_s5 = inlined_call_operand.vmem [shape: f32[672,128], index: 5, kind: input, shape index: {}]   ;;  %s11143_s6 = inlined_call_operand.vmem [shape: f32[1,128], index: 6, kind: input, shape index: {}]   ;;  %s11144_s7 = inlined_call_operand.hbm [shape: f32[2,8,16,128], index: 7, kind: output, shape index: {}]  }
   0x1   :  { %v27_v0 = vld [vmem:[%s11137_s0] sm:$0xff]  ;;  %v29_v1 = vld [vmem:[%s11137_s0 + $0x10] sm:$0xff] }
   0x2   :  { %91 = vrot.lane.b32.xlu0 %v27_v0, %s5751_s28  ;;  %95 = vrot.lane.b32.xlu1 %v29_v1, %s5751_s28  ;;  %v31_v2 = vld [vmem:[%s11137_s0 + $0x20] sm:$0xff] }
   0x3   :  { %99 = vrot.lane.b32.xlu2 %v31_v2, %s5751_s28 }
   0x4   :  { %12 = vsyncpa [#allocation3], 0  ;;  %v28_v3 = vld [vmem:[%s11137_s0 + $0x8] sm:$0xff]  ;;  %v30_v4 = vld [vmem:[%s11137_s0 + $0x18] sm:$0xff]  ;;  %vm187_vm0 = vcmask 31744   ;;  %vm220_vm1 = vcmask 556032  }
   0x5   :  { %v32_v5 = vld [vmem:[%s11137_s0 + $0x28] sm:$0xff]  ;;  %vm285_vm2 = vcmask 1040384   ;;  %vm638_vm3 = vcmask 1046528   ;;  %s5752_s14 = smov 120   ;;  %s5753_s15 = smov 60   ;;  %v1439_v37 = vld [vmem:[%s11138_s1 + $0xf0] sm:$0xff] }
   0x6   :  { %s5754_s16 = smov 64   ;;  %v1471_v38 = vld [vmem:[%s11138_s1 + $0x1f0] sm:$0xff]  ;;  %v1437_v39 = vld [vmem:[%s11138_s1 + $0xe0] sm:$0xff]  ;;  %v34_v41 = vld [vmem:[%s11137_s0 + $0x38] sm:$0xff]  ;;  %1623 = vmatpush.msra.mxu0 %v1439_v37  ;;  %vm1280_vm4 = vcmask 523264   ;;  %vm1007_vm5 = vcmask 1045504  }
   0x7   :  { %v33_v42 = vld [vmem:[%s11137_s0 + $0x30] sm:$0xff]  ;;  %1736 = vmatpush.msra.mxu1 %v1471_v38  ;;  %v1469_v45 = vld [vmem:[%s11138_s1 + $0x1e0] sm:$0xff]  ;;  %v36_v2 = vld [vmem:[%s11137_s0 + $0x48] sm:$0xff]  ;;  %s5755_s29 = smov 56   ;;  %s5756_s30 = smov 124   ;;  %vm2790_vm6 = vcmask 785408  }
   0x8   :  { %v1435_v46 = vld [vmem:[%s11138_s1 + $0xd0] sm:$0xff]  ;;  %1624 = vmatpush.msra.mxu0 %v1437_v39  ;;  %v1433_v51 = vld [vmem:[%s11138_s1 + $0xc0] sm:$0xff]  ;;  %s5759_s9 = smov 114   ;;  %s5760_s10 = smov 44   ;;  %vm3101_vm7 = vcmask 15360   ;;  %vm3227_vm11 = vcmask 113664  }
   0x9   :  { %v1467_v47 = vld [vmem:[%s11138_s1 + $0x1d0] sm:$0xff]  ;;  %1737 = vmatpush.msra.mxu1 %v1469_v45  ;;  %v1465_v52 = vld [vmem:[%s11138_s1 + $0x1c0] sm:$0xff]  ;;  %s5761_s11 = smov 58   ;;  %s5762_s12 = smov 72   ;;  %vm3229_vm12 = vcmask 228352   ;;  %vm3231_vm13 = vcmask 343040  }
   0xa   :  { %93 = vrot.lane.b32.xlu0 %v28_v3, %s5751_s28  ;;  %97 = vrot.lane.b32.xlu1 %v30_v4, %s5751_s28  ;;  %v35_v62 = vld [vmem:[%s11137_s0 + $0x40] sm:$0xff]  ;;  %v1411_v37 = vld [vmem:[%s11138_s1 + $0x10] sm:$0xff]  ;;  %s5763_s13 = smov 16   ;;  %s5764_s17 = smov 30   ;;  %vm3233_vm14 = vcmask 457728   ;;  %vm3235_vm15 = vcmask 572416  }
   0xb   :  { %101 = vrot.lane.b32.xlu2 %v32_v5, %s5751_s28  ;;  %1625 = vmatpush.msra.mxu0 %v1435_v46  ;;  %v1443_v38 = vld [vmem:[%s11138_s1 + $0x110] sm:$0xff]  ;;  %v1409_v39 = vld [vmem:[%s11138_s1] sm:$0xff]  ;;  %s5768_s18 = smov 102   ;;  %s5769_s19 = smov 74  }
   0xc   :  { %1738 = vmatpush.msra.mxu1 %v1467_v47  ;;  %s5770_s20 = smov 46   ;;  %s5779_s26 = smov 12  }
   0xd   :  { %1626 = vmatpush.msra.mxu0 %v1433_v51  ;;  %s5781_s27 = smov 40   ;;  %s5783_s8 = smov 54  }
   0xe   :  { %1739 = vmatpush.msra.mxu1 %v1465_v52  ;;  %s4961_s25 = sshll.u32 %s11144_s7, 4  ;;  %s4962_s25 = int_to_ptr.hbm [resolvable:$true] %s4961_s25 }
  0x5d   :  { %v100_v17 = vpop.permute.xlu2 %99 }
  0x5e   :  { %v192_v48 = vsel %vm187_vm0, 0.0, %v100_v17  ;;  %v1457_v17 = vld [vmem:[%s11138_s1 + $0x180] sm:$0xff] }
  0x5f   :  { %v225_v55 = vsel %vm220_vm1, %v192_v48, 0.0 }
  0x60   :  { %v292_v58 = vrot.slane %v225_v55, 7 }
  0x62   :  { %v5943_v60 = vsel %vm285_vm2, 0.0, %v292_v58 }
  0x63   :  { %v649_v3 = vrot.slane %v5943_v60, 1 }
  0x65   :  { %v102_v36 = vpop.permute.xlu2 %101 }
  0x66   :  { %v193_v49 = vsel %vm187_vm0, 0.0, %v102_v36  ;;  %v1445_v36 = vld [vmem:[%s11138_s1 + $0x120] sm:$0xff] }
  0x67   :  { %v226_v56 = vsel %vm220_vm1, %v193_v49, 0.0 }
  0x68   :  { %v293_v59 = vrot.slane %v226_v56, 7 }
  0x6a   :  { %v5946_v61 = vsel %vm285_vm2, %v292_v58, %v293_v59  ;;  %v5952_v63 = vsel %vm285_vm2, %v293_v59, 0.0 }
  0x6b   :  { %v5146_v0 = vpack.i.bf16 %v5946_v61, %v5943_v60  ;;  %v652_v1 = vrot.slane %v5952_v63, 1  ;;  %v650_v4 = vrot.slane %v5946_v61, 1 }
  0x6d   :  { %v651_v5 = vsel %vm638_vm3, %v649_v3, %v650_v4 }
  0x74   :  { %v92_v6 = vpop.permute.xlu0 %91  ;;  %v96_v7 = vpop.permute.xlu1 %95 }
  0x75   :  { %v188_v8 = vsel %vm187_vm0, 0.0, %v92_v6  ;;  %v190_v15 = vsel %vm187_vm0, 0.0, %v96_v7  ;;  %v653_v6 = vsel %vm638_vm3, %v650_v4, %v652_v1 }
  0x76   :  { %v221_v9 = vsel %vm220_vm1, %v188_v8, 0.0  ;;  %v223_v22 = vsel %vm220_vm1, %v190_v15, 0.0  ;;  %v5967_v7 = vpack.i.bf16 %v653_v6, %v651_v5  ;;  %v37_v8 = vld [vmem:[%s11137_s0 + $0x50] sm:$0xff] }
  0x77   :  { %v286_v10 = vrot.slane %v221_v9, 7  ;;  %v289_v28 = vrot.slane %v223_v22, 7  ;;  %v38_v9 = vld [vmem:[%s11137_s0 + $0x58] sm:$0xff]  ;;  %v1459_v15 = vld [vmem:[%s11138_s1 + $0x190] sm:$0xff] }
  0x78   :  { %v1455_v22 = vld [vmem:[%s11138_s1 + $0x170] sm:$0xff] }
  0x79   :  { %v5861_v19 = vsel %vm285_vm2, 0.0, %v286_v10  ;;  %v5886_v34 = vsel %vm285_vm2, 0.0, %v289_v28 }
  0x7a   :  { %v639_v26 = vrot.slane %v5861_v19, 1  ;;  %v644_v43 = vrot.slane %v5886_v34, 1 }
  0x7c   :  { %v94_v11 = vpop.permute.xlu0 %93  ;;  %v98_v12 = vpop.permute.xlu1 %97 }
  0x7d   :  { %v189_v13 = vsel %vm187_vm0, 0.0, %v94_v11  ;;  %v191_v16 = vsel %vm187_vm0, 0.0, %v98_v12  ;;  %v1463_v11 = vld [vmem:[%s11138_s1 + $0x1b0] sm:$0xff]  ;;  %v1429_v12 = vld [vmem:[%s11138_s1 + $0xa0] sm:$0xff] }
  0x7e   :  { %v222_v14 = vsel %vm220_vm1, %v189_v13, 0.0  ;;  %v224_v23 = vsel %vm220_vm1, %v191_v16, 0.0  ;;  %1740 = vmatpush.msra.mxu1 %v1463_v11  ;;  %v1461_v13 = vld [vmem:[%s11138_s1 + $0x1a0] sm:$0xff] }
  0x7f   :  { %v287_v18 = vrot.slane %v222_v14, 7  ;;  %v290_v29 = vrot.slane %v224_v23, 7  ;;  %v1427_v14 = vld [vmem:[%s11138_s1 + $0x90] sm:$0xff]  ;;  %v1425_v16 = vld [vmem:[%s11138_s1 + $0x80] sm:$0xff] }
  0x80   :  { %1741 = vmatpush.msra.mxu1 %v1461_v13  ;;  %v1421_v23 = vld [vmem:[%s11138_s1 + $0x60] sm:$0xff] }
  0x81   :  { %v5864_v20 = vsel %vm285_vm2, %v286_v10, %v287_v18  ;;  %v5867_v21 = vsel %vm285_vm2, %v287_v18, 0.0  ;;  %v5881_v32 = vsel %vm285_vm2, %v290_v29, 0.0  ;;  %v5889_v35 = vsel %vm285_vm2, %v289_v28, %v290_v29  ;;  %v1431_v10 = vld [vmem:[%s11138_s1 + $0xb0] sm:$0xff]  ;;  %v1449_v28 = vld [vmem:[%s11138_s1 + $0x140] sm:$0xff] }
  0x82   :  { %v642_v24 = vrot.slane %v5867_v21, 1  ;;  %v5121_v25 = vpack.i.bf16 %v5864_v20, %v5861_v19  ;;  %v640_v27 = vrot.slane %v5864_v20, 1  ;;  %v647_v40 = vrot.slane %v5881_v32, 1  ;;  %1627 = vmatpush.msra.mxu0 %v1431_v10  ;;  %1742 = vmatpush.msra.mxu1 %v1459_v15  ;;  %v1423_v18 = vld [vmem:[%s11138_s1 + $0x70] sm:$0xff] }
  0x83   :  { %v645_v44 = vrot.slane %v5889_v35, 1  ;;  %v5131_v50 = vpack.i.bf16 %v5889_v35, %v5886_v34  ;;  %v1415_v29 = vld [vmem:[%s11138_s1 + $0x30] sm:$0xff] }
  0x84   :  { %5122 = vrot.lane.b32.xlu1 %v5121_v25, %s5752_s14  ;;  %5117 = vrot.lane.b32.xlu0 %v5121_v25, %s5753_s15  ;;  %v641_v30 = vsel %vm638_vm3, %v639_v26, %v640_v27  ;;  %v643_v31 = vsel %vm638_vm3, %v640_v27, %v642_v24  ;;  %v1453_v24 = vld [vmem:[%s11138_s1 + $0x160] sm:$0xff]  ;;  %v1419_v25 = vld [vmem:[%s11138_s1 + $0x50] sm:$0xff] }
  0x85   :  { %v5883_v33 = vpack.i.bf16 %v643_v31, %v641_v30  ;;  %v646_v53 = vsel %vm638_vm3, %v644_v43, %v645_v44  ;;  %v648_v54 = vsel %vm638_vm3, %v645_v44, %v647_v40  ;;  %1628 = vmatpush.msra.mxu0 %v1429_v12  ;;  %1743 = vmatpush.msra.mxu1 %v1457_v17  ;;  %v1451_v26 = vld [vmem:[%s11138_s1 + $0x150] sm:$0xff]  ;;  %v1417_v27 = vld [vmem:[%s11138_s1 + $0x40] sm:$0xff] }
  0x86   :  { %v5937_v57 = vpack.i.bf16 %v648_v54, %v646_v53  ;;  %v1447_v30 = vld [vmem:[%s11138_s1 + $0x130] sm:$0xff]  ;;  %v1413_v31 = vld [vmem:[%s11138_s1 + $0x20] sm:$0xff] }
  0x87   :  { %5127 = vrot.lane.b32.xlu2 %v5883_v33, %s5754_s16  ;;  %1629 = vmatpush.msra.mxu0 %v1427_v14  ;;  %v1441_v40 = vld [vmem:[%s11138_s1 + $0x100] sm:$0xff] }
  0x88   :  { %1744 = vmatpush.msra.mxu1 %v1455_v22 }
  0x89   :  { %1630 = vmatpush.msra.mxu0 %v1425_v16 }
  0x8a   :  { %1745 = vmatpush.msra.mxu1 %v1453_v24 }
  0x8b   :  { %1631 = vmatpush.msra.mxu0 %v1423_v18 }
  0x8c   :  { %105 = vrot.lane.b32.xlu1 %v34_v41, %s5751_s28  ;;  %103 = vrot.lane.b32.xlu0 %v33_v42, %s5751_s28 }
  0x8d   :  { %1632 = vmatpush.msra.mxu0 %v1421_v23  ;;  %1746 = vmatpush.msra.mxu1 %v1451_v26 }
  0x8f   :  { %5132 = vrot.lane.b32.xlu2 %v5131_v50, %s5753_s15  ;;  %1633 = vmatpush.msra.mxu0 %v1419_v25 }
  0x90   :  { %1747 = vmatpush.msra.mxu1 %v1449_v28 }
  0x91   :  { %1634 = vmatpush.msra.mxu0 %v1417_v27 }
  0x92   :  { %1748 = vmatpush.msra.mxu1 %v1447_v30  ;;  %v40_v30 = vld [vmem:[%s11137_s0 + $0x68] sm:$0xff] }
  0x93   :  { %1635 = vmatpush.msra.mxu0 %v1415_v29 }
  0x94   :  { %5142 = vrot.lane.b32.xlu1 %v5937_v57, %s5754_s16  ;;  %5137 = vrot.lane.b32.xlu0 %v5131_v50, %s5752_s14 }
  0x95   :  { %1636 = vmatpush.msra.mxu0 %v1413_v31  ;;  %1749 = vmatpush.msra.mxu1 %v1445_v36  ;;  %v39_v31 = vld [vmem:[%s11137_s0 + $0x60] sm:$0xff] }
  0x97   :  { %107 = vrot.lane.b32.xlu2 %v35_v62, %s5751_s28  ;;  %1637 = vmatpush.msra.mxu0 %v1411_v37 }
  0x98   :  { %1750 = vmatpush.msra.mxu1 %v1443_v38 }
  0x99   :  { %1638 = vmatpush.msra.mxu0 %v1409_v39 }
  0x9a   :  { %1751 = vmatpush.msra.mxu1 %v1441_v40 }
  0x9c   :  { %5147 = vrot.lane.b32.xlu1 %v5146_v0, %s5753_s15  ;;  %109 = vrot.lane.b32.xlu0 %v36_v2, %s5751_s28 }
  0x9f   :  { %5152 = vrot.lane.b32.xlu2 %v5146_v0, %s5752_s14 }
  0xa4   :  { %5157 = vrot.lane.b32.xlu0 %v5967_v7, %s5754_s16  ;;  %111 = vrot.lane.b32.xlu1 %v37_v8, %s5751_s28 }
  0xa7   :  { %113 = vrot.lane.b32.xlu2 %v38_v9, %s5751_s28 }
  0xe1   :  { %v5128_v41 = vpop.permute.xlu2 %5127 }
  0xe2   :  { %v5129_v45 = vunpack.i.l.bf16 %v5128_v41  ;;  %v5130_v55 = vunpack.i.h.bf16 %v5128_v41 }
  0xe9   :  { %v6052_v42 = vpop.permute.xlu2 %5132 }
  0xea   :  { %v5134_v11 = vunpack.i.l.bf16 %v6052_v42  ;;  %v5135_v37 = vunpack.i.h.bf16 %v6052_v42 }
  0xec   :  { %v6103_v26 = vsel %vm1280_vm4, %v5886_v34, %v5134_v11 }
  0xed   :  { %11392 = vst [vmem:[#allocation9_spill] sm:$0xff] %v6103_v26 }
  0xf1   :  { %v108_v50 = vpop.permute.xlu2 %107 }
  0xf2   :  { %v196_v16 = vsel %vm187_vm0, 0.0, %v108_v50 }
  0xf3   :  { %v229_v25 = vsel %vm220_vm1, %v196_v16, 0.0 }
  0xf4   :  { %v298_v36 = vrot.slane %v229_v25, 7 }
  0xf6   :  { %v5123_v43 = vpop.permute.xlu1 %5122  ;;  %v5118_v44 = vpop.permute.xlu0 %5117 }
  0xf7   :  { %v5124_v46 = vunpack.i.l.bf16 %v5123_v43  ;;  %v5119_v47 = vunpack.i.l.bf16 %v5118_v44  ;;  %v5125_v51 = vunpack.i.h.bf16 %v5123_v43  ;;  %v5120_v52 = vunpack.i.h.bf16 %v5118_v44 }
  0xf8   :  { %v6126_v44 = vsel %vm285_vm2, 0.0, %v298_v36 }
  0xf9   :  { %v6056_v48 = vsel %vm1280_vm4, %v5861_v19, %v5119_v47  ;;  %v6059_v49 = vsel %vm1280_vm4, %v5124_v46, %v5129_v45  ;;  %v6069_v2 = vsel %vm1280_vm4, %v5864_v20, %v5120_v52  ;;  %v6072_v3 = vsel %vm1280_vm4, %v5125_v51, %v5130_v55  ;;  %v6085_v8 = vpop.permute.xlu2 %5152 }
  0xfa   :  { %11388 = vst [vmem:[#allocation5_spill] sm:$0xff] %v6056_v48  ;;  %1639 = vmatmul.f32.vlgmr.msra.gmra.mxu0 %v6056_v48  ;;  %1752 = vmatmul.f32.vlgmr.msra.gmra.mxu1 %v6059_v49  ;;  %v6132_v47 = vsel %vm1280_vm4, %v5889_v35, %v5135_v37  ;;  %v659_v52 = vrot.slane %v6126_v44, 1 }
  0xfb   :  { %11389 = vst [vmem:[#allocation6_spill] sm:$0xff] %v6059_v49 }
  0xfc   :  { %11390 = vst [vmem:[#allocation7_spill] sm:$0xff] %v6069_v2 }
  0xfd   :  { %11391 = vst [vmem:[#allocation8_spill] sm:$0xff] %v6072_v3 }
  0xfe   :  { %v106_v53 = vpop.permute.xlu1 %105  ;;  %v104_v54 = vpop.permute.xlu0 %103  ;;  %11395 = vst [vmem:[#allocation12_spill] sm:$0xff] %v6132_v47 }
  0xff   :  { %v195_v56 = vsel %vm187_vm0, 0.0, %v106_v53  ;;  %v194_v58 = vsel %vm187_vm0, 0.0, %v104_v54 }
 0x100   :  { %v228_v59 = vsel %vm220_vm1, %v195_v56, 0.0  ;;  %v227_v62 = vsel %vm220_vm1, %v194_v58, 0.0  ;;  %v5154_v58 = vunpack.i.l.bf16 %v6085_v8 }
 0x101   :  { %v296_v0 = vrot.slane %v228_v59, 7  ;;  %v295_v1 = vrot.slane %v227_v62, 7  ;;  %v114_v38 = vpop.permute.xlu2 %113 }
 0x102   :  { %1642 = vmatmul.f32.gmra.mxu0 %v6069_v2  ;;  %1755 = vmatmul.f32.gmra.mxu1 %v6072_v3  ;;  %v199_v46 = vsel %vm187_vm0, 0.0, %v114_v38 }
 0x103   :  { %v6077_v4 = vsel %vm285_vm2, %v296_v0, 0.0  ;;  %v6080_v5 = vsel %vm285_vm2, %v295_v1, %v296_v0  ;;  %v6083_v6 = vsel %vm285_vm2, 0.0, %v295_v1  ;;  %v232_v53 = vsel %vm220_vm1, %v199_v46, 0.0 }
 0x104   :  { %v657_v9 = vrot.slane %v6077_v4, 1  ;;  %v5166_v10 = vpack.i.bf16 %v6080_v5, %v6083_v6  ;;  %v654_v12 = vrot.slane %v6083_v6, 1  ;;  %v655_v13 = vrot.slane %v6080_v5, 1 }
 0x105   :  { %v302_v1 = vrot.slane %v232_v53, 7 }
 0x106   :  { %v5143_v14 = vpop.permute.xlu1 %5142  ;;  %5167 = vrot.lane.b32.xlu1 %v5166_v10, %s5752_s14  ;;  %5162 = vrot.lane.b32.xlu0 %v5166_v10, %s5753_s15  ;;  %v5138_v15 = vpop.permute.xlu0 %5137  ;;  %v656_v22 = vsel %vm638_vm3, %v654_v12, %v655_v13  ;;  %v658_v23 = vsel %vm638_vm3, %v655_v13, %v657_v9 }
 0x107   :  { %v5144_v17 = vunpack.i.l.bf16 %v5143_v14  ;;  %v5139_v18 = vunpack.i.l.bf16 %v5138_v15  ;;  %v6098_v24 = vpack.i.bf16 %v658_v23, %v656_v22  ;;  %v5145_v28 = vunpack.i.h.bf16 %v5143_v14 }
 0x108   :  { %v5140_v29 = vunpack.i.h.bf16 %v5138_v15  ;;  %v6156_v14 = vsel %vm285_vm2, %v302_v1, 0.0  ;;  %v5155_v22 = vunpack.i.h.bf16 %v6085_v8  ;;  %v42_v8 = vld [vmem:[%s11137_s0 + $0x78] sm:$0xff] }
 0x109   :  { %v6106_v27 = vsel %vm1280_vm4, %v5139_v18, %v5144_v17  ;;  %5172 = vrot.lane.b32.xlu2 %v6098_v24, %s5754_s16 }
 0x10a   :  { %11393 = vst [vmem:[#allocation10_spill] sm:$0xff] %v6106_v27  ;;  %1645 = vmatmul.f32.gmra.mxu0 %v6103_v26  ;;  %1758 = vmatmul.f32.gmra.mxu1 %v6106_v27  ;;  %v6123_v43 = vsel %vm1280_vm4, %v5140_v29, %v5145_v28  ;;  %v667_v29 = vrot.slane %v6156_v14, 1 }
 0x10b   :  { %11394 = vst [vmem:[#allocation11_spill] sm:$0xff] %v6123_v43 }
 0x10e   :  { %v5148_v39 = vpop.permute.xlu1 %5147  ;;  %117 = vrot.lane.b32.xlu1 %v40_v30, %s5751_s28  ;;  %115 = vrot.lane.b32.xlu0 %v39_v31, %s5751_s28  ;;  %v110_v40 = vpop.permute.xlu0 %109  ;;  %v41_v30 = vld [vmem:[%s11137_s0 + $0x70] sm:$0xff] }
 0x10f   :  { %v197_v41 = vsel %vm187_vm0, 0.0, %v110_v40  ;;  %v5149_v56 = vunpack.i.l.bf16 %v5148_v39  ;;  %v5150_v37 = vunpack.i.h.bf16 %v5148_v39 }
 0x110   :  { %v230_v45 = vsel %vm220_vm1, %v197_v41, 0.0 }
 0x111   :  { %v299_v42 = vrot.slane %v230_v45, 7  ;;  %v6162_v17 = vsel %vm1280_vm4, %v5943_v60, %v5149_v56  ;;  %v6198_v46 = vsel %vm1280_vm4, %v5946_v61, %v5150_v37 }
 0x112   :  { %1648 = vmatmul.f32.gmra.mxu0 %v6132_v47  ;;  %1761 = vmatmul.f32.gmra.mxu1 %v6123_v43  ;;  %11396 = vst [vmem:[#allocation13_spill] sm:$0xff] %v6162_v17 }
 0x113   :  { %v6137_v50 = vsel %vm285_vm2, %v298_v36, %v299_v42  ;;  %v6140_v51 = vsel %vm285_vm2, %v299_v42, 0.0  ;;  %11399 = vst [vmem:[#allocation16_spill] sm:$0xff] %v6198_v46  ;;  %v43_v42 = vld [vmem:[%s11137_s0 + $0x80] sm:$0xff] }
 0x114   :  { %v662_v54 = vrot.slane %v6140_v51, 1  ;;  %v5181_v55 = vpack.i.bf16 %v6137_v50, %v6126_v44  ;;  %v660_v59 = vrot.slane %v6137_v50, 1 }
 0x116   :  { %5182 = vrot.lane.b32.xlu0 %v5181_v55, %s5752_s14  ;;  %5177 = vrot.lane.b32.xlu2 %v5181_v55, %s5753_s15  ;;  %v5158_v62 = vpop.permute.xlu0 %5157  ;;  %v112_v0 = vpop.permute.xlu1 %111  ;;  %v661_v11 = vsel %vm638_vm3, %v659_v52, %v660_v59  ;;  %v663_v13 = vsel %vm638_vm3, %v660_v59, %v662_v54  ;;  %v44_v52 = vld [vmem:[%s11137_s0 + $0x88] sm:$0xff] }
 0x117   :  { %v5159_v9 = vunpack.i.l.bf16 %v5158_v62  ;;  %v198_v10 = vsel %vm187_vm0, 0.0, %v112_v0  ;;  %v6158_v16 = vpack.i.bf16 %v663_v13, %v661_v11  ;;  %v5160_v23 = vunpack.i.h.bf16 %v5158_v62 }
 0x118   :  { %v231_v12 = vsel %vm220_vm1, %v198_v10, 0.0 }
 0x119   :  { %v301_v15 = vrot.slane %v231_v12, 7  ;;  %v6165_v18 = vsel %vm1280_vm4, %v5154_v58, %v5159_v9  ;;  %5187 = vrot.lane.b32.xlu1 %v6158_v16, %s5754_s16  ;;  %v6192_v40 = vsel %vm1280_vm4, %v5155_v22, %v5160_v23 }
 0x11a   :  { %11397 = vst [vmem:[#allocation14_spill] sm:$0xff] %v6165_v18  ;;  %1651 = vmatmul.f32.gmra.mxu0 %v6162_v17  ;;  %1764 = vmatmul.f32.gmra.mxu1 %v6165_v18 }
 0x11b   :  { %v6171_v25 = vsel %vm285_vm2, 0.0, %v301_v15  ;;  %v6176_v28 = vsel %vm285_vm2, %v301_v15, %v302_v1  ;;  %11398 = vst [vmem:[#allocation15_spill] sm:$0xff] %v6192_v40 }
 0x11c   :  { %v664_v31 = vrot.slane %v6171_v25, 1  ;;  %v665_v36 = vrot.slane %v6176_v28, 1  ;;  %v5191_v38 = vpack.i.bf16 %v6176_v28, %v6171_v25 }
 0x11e   :  { %121 = vrot.lane.b32.xlu0 %v42_v8, %s5751_s28  ;;  %119 = vrot.lane.b32.xlu2 %v41_v30, %s5751_s28  ;;  %v666_v41 = vsel %vm638_vm3, %v664_v31, %v665_v36  ;;  %v668_v45 = vsel %vm638_vm3, %v665_v36, %v667_v29 }
 0x11f   :  { %v6202_v39 = vpack.i.bf16 %v668_v45, %v666_v41 }
 0x121   :  { %5192 = vrot.lane.b32.xlu1 %v5191_v38, %s5753_s15 }
 0x122   :  { %1654 = vmatmul.f32.gmra.mxu0 %v6198_v46  ;;  %1767 = vmatmul.f32.gmra.mxu1 %v6192_v40 }
 0x126   :  { %5202 = vrot.lane.b32.xlu0 %v6202_v39, %s5754_s16  ;;  %5197 = vrot.lane.b32.xlu2 %v5191_v38, %s5752_s14 }
 0x129   :  { %123 = vrot.lane.b32.xlu1 %v43_v42, %s5751_s28 }
 0x12e   :  { %125 = vrot.lane.b32.xlu2 %v44_v52, %s5751_s28 }
 0x163   :  { %v5173_v53 = vpop.permute.xlu2 %5172 }
 0x164   :  { %v5174_v58 = vunpack.i.l.bf16 %v5173_v53  ;;  %v5175_v15 = vunpack.i.h.bf16 %v5173_v53 }
 0x170   :  { %v6216_v54 = vpop.permute.xlu2 %5177 }
 0x171   :  { %v5179_v53 = vunpack.i.l.bf16 %v6216_v54 }
 0x178   :  { %v5168_v55 = vpop.permute.xlu1 %5167  ;;  %v5163_v56 = vpop.permute.xlu0 %5162 }
 0x179   :  { %v5169_v59 = vunpack.i.l.bf16 %v5168_v55  ;;  %v5164_v62 = vunpack.i.l.bf16 %v5163_v56  ;;  %v5170_v9 = vunpack.i.h.bf16 %v5168_v55  ;;  %v5165_v10 = vunpack.i.h.bf16 %v5163_v56  ;;  %v120_v11 = vpop.permute.xlu2 %119 }
 0x17b   :  { %v6220_v0 = vsel %vm1280_vm4, %v6083_v6, %v5164_v62  ;;  %v6223_v1 = vsel %vm1280_vm4, %v5169_v59, %v5174_v58  ;;  %v6233_v36 = vsel %vm1280_vm4, %v6080_v5, %v5165_v10  ;;  %v6236_v37 = vsel %vm1280_vm4, %v5170_v9, %v5175_v15 }
 0x17c   :  { %11400 = vst [vmem:[#allocation17_spill] sm:$0xff] %v6220_v0  ;;  %1657 = vmatmul.f32.gmra.mxu0 %v6220_v0  ;;  %1770 = vmatmul.f32.gmra.mxu1 %v6223_v1  ;;  %v202_v59 = vsel %vm187_vm0, 0.0, %v120_v11  ;;  %v6267_v15 = vsel %vm1280_vm4, %v6126_v44, %v5179_v53 }
 0x17d   :  { %11401 = vst [vmem:[#allocation18_spill] sm:$0xff] %v6223_v1 }
 0x17e   :  { %11402 = vst [vmem:[#allocation19_spill] sm:$0xff] %v6233_v36 }
 0x17f   :  { %11403 = vst [vmem:[#allocation20_spill] sm:$0xff] %v6236_v37 }
 0x180   :  { %v118_v12 = vpop.permute.xlu1 %117  ;;  %v116_v13 = vpop.permute.xlu0 %115  ;;  %11404 = vst [vmem:[#allocation21_spill] sm:$0xff] %v6267_v15 }
 0x181   :  { %v201_v22 = vsel %vm187_vm0, 0.0, %v118_v12  ;;  %v200_v23 = vsel %vm187_vm0, 0.0, %v116_v13  ;;  %v6260_v10 = vpop.permute.xlu2 %5197  ;;  %v235_v13 = vsel %vm220_vm1, %v202_v59, 0.0 }
 0x182   :  { %v234_v29 = vsel %vm220_vm1, %v201_v22, 0.0  ;;  %v233_v8 = vsel %vm220_vm1, %v200_v23, 0.0  ;;  %v46_v23 = vld [vmem:[%s11137_s0 + $0x98] sm:$0xff] }
 0x183   :  { %v305_v30 = vrot.slane %v234_v29, 7  ;;  %v304_v31 = vrot.slane %v233_v8, 7  ;;  %v45_v29 = vld [vmem:[%s11137_s0 + $0x90] sm:$0xff] }
 0x184   :  { %1660 = vmatmul.f32.gmra.mxu0 %v6233_v36  ;;  %1773 = vmatmul.f32.gmra.mxu1 %v6236_v37 }
 0x185   :  { %v6241_v38 = vsel %vm285_vm2, %v305_v30, 0.0  ;;  %v6244_v41 = vsel %vm285_vm2, %v304_v31, %v305_v30  ;;  %v6247_v45 = vsel %vm285_vm2, 0.0, %v304_v31  ;;  %v307_v30 = vrot.slane %v235_v13, 7 }
 0x186   :  { %v672_v42 = vrot.slane %v6241_v38, 1  ;;  %v5211_v52 = vpack.i.bf16 %v6244_v41, %v6247_v45  ;;  %v669_v55 = vrot.slane %v6247_v45, 1  ;;  %v670_v56 = vrot.slane %v6244_v41, 1 }
 0x187   :  { %v5180_v31 = vunpack.i.h.bf16 %v6216_v54  ;;  %v6287_v59 = vsel %vm285_vm2, 0.0, %v307_v30 }
 0x188   :  { %v5183_v58 = vpop.permute.xlu0 %5182  ;;  %5212 = vrot.lane.b32.xlu1 %v5211_v52, %s5752_s14  ;;  %5207 = vrot.lane.b32.xlu0 %v5211_v52, %s5753_s15  ;;  %v671_v62 = vsel %vm638_vm3, %v669_v55, %v670_v56  ;;  %v673_v9 = vsel %vm638_vm3, %v670_v56, %v672_v42 }
 0x189   :  { %v6262_v12 = vpack.i.bf16 %v673_v9, %v671_v62  ;;  %v5184_v22 = vunpack.i.l.bf16 %v5183_v58  ;;  %v5185_v55 = vunpack.i.h.bf16 %v5183_v58  ;;  %v6292_v9 = vsel %vm1280_vm4, %v6137_v50, %v5180_v31  ;;  %v126_v13 = vpop.permute.xlu2 %125 }
 0x18a   :  { %11406 = vst [vmem:[#allocation23_spill] sm:$0xff] %v6292_v9  ;;  %v205_v31 = vsel %vm187_vm0, 0.0, %v126_v13 }
 0x18b   :  { %5217 = vrot.lane.b32.xlu2 %v6262_v12, %s5754_s16  ;;  %v5188_v11 = vpop.permute.xlu1 %5187 }
 0x18c   :  { %1663 = vmatmul.f32.gmra.mxu0 %v6267_v15  ;;  %v5189_v8 = vunpack.i.l.bf16 %v5188_v11  ;;  %v5190_v56 = vunpack.i.h.bf16 %v5188_v11  ;;  %v674_v11 = vrot.slane %v6287_v59, 1 }
 0x18e   :  { %v6280_v42 = vsel %vm1280_vm4, %v5184_v22, %v5189_v8  ;;  %v6304_v8 = vsel %vm1280_vm4, %v5185_v55, %v5190_v56  ;;  %v238_v55 = vsel %vm220_vm1, %v205_v31, 0.0  ;;  %v5199_v56 = vunpack.i.l.bf16 %v6260_v10 }
 0x18f   :  { %11405 = vst [vmem:[#allocation22_spill] sm:$0xff] %v6280_v42  ;;  %1776 = vmatmul.f32.gmra.mxu1 %v6280_v42 }
 0x190   :  { %v122_v52 = vpop.permute.xlu0 %121  ;;  %129 = vrot.lane.b32.xlu1 %v46_v23, %s5751_s28  ;;  %127 = vrot.lane.b32.xlu0 %v45_v29, %s5751_s28  ;;  %11407 = vst [vmem:[#allocation24_spill] sm:$0xff] %v6304_v8 }
 0x191   :  { %v203_v53 = vsel %vm187_vm0, 0.0, %v122_v52 }
 0x192   :  { %v236_v62 = vsel %vm220_vm1, %v203_v53, 0.0 }
 0x193   :  { %v308_v54 = vrot.slane %v236_v62, 7  ;;  %v5193_v58 = vpop.permute.xlu1 %5192 }
 0x194   :  { %1666 = vmatmul.f32.gmra.mxu0 %v6292_v9  ;;  %v5194_v52 = vunpack.i.l.bf16 %v5193_v58 }
 0x195   :  { %v6296_v22 = vsel %vm285_vm2, %v307_v30, %v308_v54  ;;  %v6299_v23 = vsel %vm285_vm2, %v308_v54, 0.0 }
 0x196   :  { %v677_v29 = vrot.slane %v6299_v23, 1  ;;  %v5226_v53 = vpack.i.bf16 %v6296_v22, %v6287_v59  ;;  %v675_v30 = vrot.slane %v6296_v22, 1  ;;  %v6321_v1 = vsel %vm1280_vm4, %v6171_v25, %v5194_v52 }
 0x197   :  { %1779 = vmatmul.f32.gmra.mxu1 %v6304_v8  ;;  %11408 = vst [vmem:[#allocation25_spill] sm:$0xff] %v6321_v1  ;;  %v311_v8 = vrot.slane %v238_v55, 7  ;;  %v5195_v52 = vunpack.i.h.bf16 %v5193_v58 }
 0x198   :  { %v5203_v62 = vpop.permute.xlu0 %5202  ;;  %5227 = vrot.lane.b32.xlu0 %v5226_v53, %s5752_s14  ;;  %v676_v54 = vsel %vm638_vm3, %v674_v11, %v675_v30  ;;  %v678_v42 = vsel %vm638_vm3, %v675_v30, %v677_v29  ;;  %5222 = vrot.lane.b32.xlu2 %v5226_v53, %s5753_s15 }
 0x199   :  { %v5204_v13 = vunpack.i.l.bf16 %v5203_v62  ;;  %v6317_v37 = vpack.i.bf16 %v678_v42, %v676_v54  ;;  %v6328_v31 = vsel %vm285_vm2, %v311_v8, 0.0  ;;  %v48_v42 = vld [vmem:[%s11137_s0 + $0xa8] sm:$0xff]  ;;  %v47_v54 = vld [vmem:[%s11137_s0 + $0xa0] sm:$0xff]  ;;  %v5205_v40 = vunpack.i.h.bf16 %v5203_v62 }
 0x19b   :  { %5232 = vrot.lane.b32.xlu1 %v6317_v37, %s5754_s16  ;;  %v124_v11 = vpop.permute.xlu1 %123  ;;  %v6331_v53 = vsel %vm1280_vm4, %v5199_v56, %v5204_v13  ;;  %v5200_v56 = vunpack.i.h.bf16 %v6260_v10 }
 0x19c   :  { %1669 = vmatmul.f32.gmra.mxu0 %v6321_v1  ;;  %v204_v29 = vsel %vm187_vm0, 0.0, %v124_v11  ;;  %11409 = vst [vmem:[#allocation26_spill] sm:$0xff] %v6331_v53  ;;  %v682_v11 = vrot.slane %v6328_v31, 1 }
 0x19d   :  { %v237_v30 = vsel %vm220_vm1, %v204_v29, 0.0 }
 0x19e   :  { %v310_v55 = vrot.slane %v237_v30, 7  ;;  %v6355_v30 = vsel %vm1280_vm4, %v6176_v28, %v5195_v52  ;;  %v49_v52 = vld [vmem:[%s11137_s0 + $0xb0] sm:$0xff] }
 0x19f   :  { %1782 = vmatmul.f32.gmra.mxu1 %v6331_v53  ;;  %11410 = vst [vmem:[#allocation27_spill] sm:$0xff] %v6355_v30 }
 0x1a0   :  { %133 = vrot.lane.b32.xlu0 %v48_v42, %s5751_s28  ;;  %v6345_v13 = vsel %vm285_vm2, 0.0, %v310_v55  ;;  %v6348_v58 = vsel %vm285_vm2, %v310_v55, %v311_v8  ;;  %131 = vrot.lane.b32.xlu2 %v47_v54, %s5751_s28  ;;  %v6364_v54 = vsel %vm1280_vm4, %v5200_v56, %v5205_v40  ;;  %v50_v40 = vld [vmem:[%s11137_s0 + $0xb8] sm:$0xff] }
 0x1a1   :  { %v5236_v29 = vpack.i.bf16 %v6348_v58, %v6345_v13  ;;  %v679_v42 = vrot.slane %v6345_v13, 1  ;;  %v680_v10 = vrot.slane %v6348_v58, 1  ;;  %11411 = vst [vmem:[#allocation28_spill] sm:$0xff] %v6364_v54 }
 0x1a3   :  { %5237 = vrot.lane.b32.xlu1 %v5236_v29, %s5753_s15  ;;  %v681_v8 = vsel %vm638_vm3, %v679_v42, %v680_v10  ;;  %v683_v62 = vsel %vm638_vm3, %v680_v10, %v682_v11 }
 0x1a4   :  { %1672 = vmatmul.f32.gmra.mxu0 %v6355_v30  ;;  %v6366_v55 = vpack.i.bf16 %v683_v62, %v681_v8 }
 0x1a7   :  { %1785 = vmatmul.f32.gmra.mxu1 %v6364_v54 }
 0x1a8   :  { %5247 = vrot.lane.b32.xlu0 %v6366_v55, %s5754_s16  ;;  %5242 = vrot.lane.b32.xlu2 %v5236_v29, %s5752_s14 }
 0x1ab   :  { %135 = vrot.lane.b32.xlu1 %v49_v52, %s5751_s28 }
 0x1b0   :  { %137 = vrot.lane.b32.xlu2 %v50_v40, %s5751_s28 }
 0x1e5   :  { %v5218_v11 = vpop.permute.xlu2 %5217 }
 0x1e6   :  { %v5219_v8 = vunpack.i.l.bf16 %v5218_v11  ;;  %v5220_v3 = vunpack.i.h.bf16 %v5218_v11 }
 0x1f2   :  { %v6380_v56 = vpop.permute.xlu2 %5222 }
 0x1fa   :  { %v5213_v42 = vpop.permute.xlu1 %5212  ;;  %v5208_v10 = vpop.permute.xlu0 %5207 }
 0x1fb   :  { %v5214_v62 = vunpack.i.l.bf16 %v5213_v42  ;;  %v5209_v54 = vunpack.i.l.bf16 %v5208_v10  ;;  %v5215_v52 = vunpack.i.h.bf16 %v5213_v42  ;;  %v5210_v40 = vunpack.i.h.bf16 %v5208_v10  ;;  %v132_v18 = vpop.permute.xlu2 %131 }
 0x1fd   :  { %v6384_v53 = vsel %vm1280_vm4, %v6247_v45, %v5209_v54  ;;  %v6387_v29 = vsel %vm1280_vm4, %v5214_v62, %v5219_v8  ;;  %v6400_v42 = vsel %vm1280_vm4, %v5215_v52, %v5220_v3  ;;  %v5224_v3 = vunpack.i.l.bf16 %v6380_v56 }
 0x1fe   :  { %11412 = vst [vmem:[#allocation29_spill] sm:$0xff] %v6384_v53  ;;  %1675 = vmatmul.f32.gmra.mxu0 %v6384_v53  ;;  %1788 = vmatmul.f32.gmra.mxu1 %v6387_v29  ;;  %v6397_v53 = vsel %vm1280_vm4, %v6244_v41, %v5210_v40 }
 0x1ff   :  { %11413 = vst [vmem:[#allocation30_spill] sm:$0xff] %v6387_v29 }
 0x200   :  { %11414 = vst [vmem:[#allocation31_spill] sm:$0xff] %v6397_v53 }
 0x201   :  { %11415 = vst [vmem:[#allocation32_spill] sm:$0xff] %v6400_v42 }
 0x202   :  { %v130_v43 = vpop.permute.xlu1 %129  ;;  %v128_v27 = vpop.permute.xlu0 %127 }
 0x203   :  { %v207_v49 = vsel %vm187_vm0, 0.0, %v130_v43  ;;  %v206_v30 = vsel %vm187_vm0, 0.0, %v128_v27 }
 0x204   :  { %v240_v54 = vsel %vm220_vm1, %v207_v49, 0.0  ;;  %v239_v1 = vsel %vm220_vm1, %v206_v30, 0.0 }
 0x205   :  { %v314_v8 = vrot.slane %v240_v54, 7  ;;  %v313_v62 = vrot.slane %v239_v1, 7 }
 0x206   :  { %1678 = vmatmul.f32.gmra.mxu0 %v6397_v53  ;;  %1791 = vmatmul.f32.gmra.mxu1 %v6400_v42  ;;  %v6430_v53 = vsel %vm1280_vm4, %v6287_v59, %v5224_v3  ;;  %v5225_v3 = vunpack.i.h.bf16 %v6380_v56 }
 0x207   :  { %v6405_v43 = vsel %vm285_vm2, %v314_v8, 0.0  ;;  %v6408_v49 = vsel %vm285_vm2, %v313_v62, %v314_v8  ;;  %v6411_v27 = vsel %vm285_vm2, 0.0, %v313_v62  ;;  %v208_v8 = vsel %vm187_vm0, 0.0, %v132_v18  ;;  %v6424_v62 = vpop.permute.xlu2 %5242  ;;  %11416 = vst [vmem:[#allocation33_spill] sm:$0xff] %v6430_v53  ;;  %v52_v18 = vld [vmem:[%s11137_s0 + $0xc8] sm:$0xff] }
 0x208   :  { %v687_v1 = vrot.slane %v6405_v43, 1  ;;  %v5256_v30 = vpack.i.bf16 %v6408_v49, %v6411_v27  ;;  %v684_v11 = vrot.slane %v6411_v27, 1  ;;  %v685_v10 = vrot.slane %v6408_v49, 1 }
 0x20a   :  { %5257 = vrot.lane.b32.xlu1 %v5256_v30, %s5752_s14  ;;  %5252 = vrot.lane.b32.xlu0 %v5256_v30, %s5753_s15  ;;  %v5228_v52 = vpop.permute.xlu0 %5227  ;;  %v686_v40 = vsel %vm638_vm3, %v684_v11, %v685_v10  ;;  %v688_v54 = vsel %vm638_vm3, %v685_v10, %v687_v1  ;;  %v241_v30 = vsel %vm220_vm1, %v208_v8, 0.0  ;;  %v51_v11 = vld [vmem:[%s11137_s0 + $0xc0] sm:$0xff] }
 0x20b   :  { %v6426_v42 = vpack.i.bf16 %v688_v54, %v686_v40  ;;  %v5229_v29 = vunpack.i.l.bf16 %v5228_v52  ;;  %v316_v10 = vrot.slane %v241_v30, 7  ;;  %v5230_v54 = vunpack.i.h.bf16 %v5228_v52 }
 0x20d   :  { %v5233_v9 = vpop.permute.xlu1 %5232  ;;  %5262 = vrot.lane.b32.xlu2 %v6426_v42, %s5754_s16  ;;  %v6451_v36 = vsel %vm285_vm2, 0.0, %v316_v10 }
 0x20e   :  { %1681 = vmatmul.f32.gmra.mxu0 %v6430_v53  ;;  %v5234_v1 = vunpack.i.l.bf16 %v5233_v9  ;;  %v5235_v8 = vunpack.i.h.bf16 %v5233_v9  ;;  %11418 = vst [vmem:[#allocation35_spill] sm:$0xff] %v6451_v36 }
 0x20f   :  { %v138_v30 = vpop.permute.xlu2 %137 }
 0x210   :  { %v6444_v40 = vsel %vm1280_vm4, %v5229_v29, %v5234_v1  ;;  %v6456_v29 = vsel %vm1280_vm4, %v6296_v22, %v5225_v3  ;;  %v6460_v9 = vsel %vm1280_vm4, %v5230_v54, %v5235_v8 }
 0x211   :  { %11417 = vst [vmem:[#allocation34_spill] sm:$0xff] %v6444_v40  ;;  %1794 = vmatmul.f32.gmra.mxu1 %v6444_v40 }
 0x212   :  { %141 = vrot.lane.b32.xlu1 %v52_v18, %s5751_s28  ;;  %v134_v53 = vpop.permute.xlu0 %133  ;;  %139 = vrot.lane.b32.xlu0 %v51_v11, %s5751_s28  ;;  %11419 = vst [vmem:[#allocation36_spill] sm:$0xff] %v6456_v29  ;;  %v211_v11 = vsel %vm187_vm0, 0.0, %v138_v30 }
 0x213   :  { %v209_v15 = vsel %vm187_vm0, 0.0, %v134_v53  ;;  %11420 = vst [vmem:[#allocation37_spill] sm:$0xff] %v6460_v9 }
 0x214   :  { %v242_v56 = vsel %vm220_vm1, %v209_v15, 0.0  ;;  %v689_v15 = vrot.slane %v6451_v36, 1 }
 0x215   :  { %v317_v1 = vrot.slane %v242_v56, 7  ;;  %v5238_v52 = vpop.permute.xlu1 %5237 }
 0x216   :  { %1684 = vmatmul.f32.gmra.mxu0 %v6456_v29  ;;  %v5239_v40 = vunpack.i.l.bf16 %v5238_v52 }
 0x217   :  { %v6463_v18 = vsel %vm285_vm2, %v316_v10, %v317_v1  ;;  %v6466_v53 = vsel %vm285_vm2, %v317_v1, 0.0  ;;  %v5244_v10 = vunpack.i.l.bf16 %v6424_v62  ;;  %v244_v1 = vsel %vm220_vm1, %v211_v11, 0.0 }
 0x218   :  { %11421 = vst [vmem:[#allocation38_spill] sm:$0xff] %v6463_v18  ;;  %v692_v3 = vrot.slane %v6466_v53, 1  ;;  %v5271_v56 = vpack.i.bf16 %v6463_v18, %v6451_v36  ;;  %v690_v54 = vrot.slane %v6463_v18, 1  ;;  %v320_v17 = vrot.slane %v244_v1, 7 }
 0x219   :  { %11422 = vst [vmem:[#allocation39_spill] sm:$0xff] %v6466_v53  ;;  %1797 = vmatmul.f32.gmra.mxu1 %v6460_v9  ;;  %v6485_v9 = vsel %vm1280_vm4, %v6345_v13, %v5239_v40  ;;  %v53_v40 = vld [vmem:[%s11137_s0 + $0xd0] sm:$0xff] }
 0x21a   :  { %5272 = vrot.lane.b32.xlu0 %v5271_v56, %s5752_s14  ;;  %5267 = vrot.lane.b32.xlu2 %v5271_v56, %s5753_s15  ;;  %v5248_v8 = vpop.permute.xlu0 %5247  ;;  %v691_v29 = vsel %vm638_vm3, %v689_v15, %v690_v54  ;;  %v693_v0 = vsel %vm638_vm3, %v690_v54, %v692_v3  ;;  %11424 = vst [vmem:[#allocation41_spill] sm:$0xff] %v6485_v9  ;;  %v6495_v3 = vsel %vm285_vm2, %v320_v17, 0.0 }
 0x21b   :  { %v5249_v30 = vunpack.i.l.bf16 %v5248_v8  ;;  %v6481_v46 = vpack.i.bf16 %v693_v0, %v691_v29  ;;  %11426 = vst [vmem:[#allocation43_spill] sm:$0xff] %v6495_v3  ;;  %v54_v0 = vld [vmem:[%s11137_s0 + $0xd8] sm:$0xff]  ;;  %v5240_v29 = vunpack.i.h.bf16 %v5238_v52  ;;  %v697_v1 = vrot.slane %v6495_v3, 1 }
 0x21d   :  { %11423 = vst [vmem:[#allocation40_spill] sm:$0xff] %v6481_v46  ;;  %v136_v47 = vpop.permute.xlu1 %135  ;;  %5277 = vrot.lane.b32.xlu1 %v6481_v46, %s5754_s16  ;;  %v6491_v11 = vsel %vm1280_vm4, %v5244_v10, %v5249_v30  ;;  %v5245_v10 = vunpack.i.h.bf16 %v6424_v62 }
 0x21e   :  { %1687 = vmatmul.f32.gmra.mxu0 %v6485_v9  ;;  %11425 = vst [vmem:[#allocation42_spill] sm:$0xff] %v6491_v11  ;;  %v210_v15 = vsel %vm187_vm0, 0.0, %v136_v47  ;;  %v5250_v47 = vunpack.i.h.bf16 %v5248_v8 }
 0x21f   :  { %v243_v56 = vsel %vm220_vm1, %v210_v15, 0.0  ;;  %v6519_v15 = vsel %vm1280_vm4, %v6348_v58, %v5240_v29  ;;  %v55_v29 = vld [vmem:[%s11137_s0 + $0xe0] sm:$0xff] }
 0x220   :  { %v319_v54 = vrot.slane %v243_v56, 7  ;;  %11427 = vst [vmem:[#allocation44_spill] sm:$0xff] %v6519_v15 }
 0x221   :  { %1800 = vmatmul.f32.gmra.mxu1 %v6491_v11 }
 0x222   :  { %145 = vrot.lane.b32.xlu0 %v54_v0, %s5751_s28  ;;  %143 = vrot.lane.b32.xlu2 %v53_v40, %s5751_s28  ;;  %v6510_v30 = vsel %vm285_vm2, 0.0, %v319_v54  ;;  %v6513_v9 = vsel %vm285_vm2, %v319_v54, %v320_v17  ;;  %v6526_v0 = vsel %vm1280_vm4, %v5245_v10, %v5250_v47  ;;  %v56_v54 = vld [vmem:[%s11137_s0 + $0xe8] sm:$0xff] }
 0x223   :  { %v5281_v52 = vpack.i.bf16 %v6513_v9, %v6510_v30  ;;  %v694_v62 = vrot.slane %v6510_v30, 1  ;;  %v695_v8 = vrot.slane %v6513_v9, 1  ;;  %11428 = vst [vmem:[#allocation45_spill] sm:$0xff] %v6526_v0 }
 0x225   :  { %5282 = vrot.lane.b32.xlu1 %v5281_v52, %s5753_s15  ;;  %v696_v17 = vsel %vm638_vm3, %v694_v62, %v695_v8  ;;  %v698_v40 = vsel %vm638_vm3, %v695_v8, %v697_v1  ;;  %v1551_v1 = vld [vmem:[%s11138_s1 + $0x470] sm:$0xff] }
 0x226   :  { %1690 = vmatmul.f32.gmra.mxu0 %v6519_v15  ;;  %v6530_v56 = vpack.i.bf16 %v698_v40, %v696_v17 }
 0x227   :  { %2083 = vmatpush.msrb.mxu0 %v1551_v1 }
 0x228   :  { %11429 = vst [vmem:[#allocation46_spill] sm:$0xff] %v6530_v56 }
 0x229   :  { %1803 = vmatmul.f32.gmra.mxu1 %v6526_v0 }
 0x22a   :  { %5292 = vrot.lane.b32.xlu0 %v6530_v56, %s5754_s16  ;;  %5287 = vrot.lane.b32.xlu2 %v5281_v52, %s5752_s14  ;;  %v1440_v52 = vld [vmem:[%s11138_s1 + $0xf8] sm:$0xff] }
 0x22b   :  { %2188 = vmatpush.msrb.mxu1 %v1440_v52 }
 0x22d   :  { %147 = vrot.lane.b32.xlu1 %v55_v29, %s5751_s28 }
 0x232   :  { %149 = vrot.lane.b32.xlu2 %v56_v54, %s5751_s28 }
 0x267   :  { %v5263_v10 = vpop.permute.xlu2 %5262 }
 0x268   :  { %v5264_v17 = vunpack.i.l.bf16 %v5263_v10  ;;  %v5265_v1 = vunpack.i.h.bf16 %v5263_v10 }
 0x274   :  { %v6544_v47 = vpop.permute.xlu2 %5267 }
 0x27c   :  { %v5258_v62 = vpop.permute.xlu1 %5257  ;;  %v5253_v8 = vpop.permute.xlu0 %5252 }
 0x27d   :  { %v5259_v40 = vunpack.i.l.bf16 %v5258_v62  ;;  %v5254_v29 = vunpack.i.l.bf16 %v5253_v8  ;;  %v5260_v11 = vunpack.i.h.bf16 %v5258_v62  ;;  %v5255_v15 = vunpack.i.h.bf16 %v5253_v8  ;;  %v144_v26 = vpop.permute.xlu2 %143 }
 0x27f   :  { %v6554_v54 = vsel %vm1280_vm4, %v6411_v27, %v5254_v29  ;;  %v6557_v0 = vsel %vm1280_vm4, %v5259_v40, %v5264_v17  ;;  %v6567_v40 = vsel %vm1280_vm4, %v6408_v49, %v5255_v15  ;;  %v6570_v62 = vsel %vm1280_vm4, %v5260_v11, %v5265_v1 }
 0x280   :  { %11430 = vst [vmem:[#allocation47_spill] sm:$0xff] %v6554_v54  ;;  %1693 = vmatmul.f32.gmra.mxu0 %v6554_v54  ;;  %1806 = vmatmul.f32.gmra.mxu1 %v6557_v0 }
 0x281   :  { %11431 = vst [vmem:[#allocation48_spill] sm:$0xff] %v6557_v0 }
 0x282   :  { %11432 = vst [vmem:[#allocation49_spill] sm:$0xff] %v6567_v40 }
 0x283   :  { %11433 = vst [vmem:[#allocation50_spill] sm:$0xff] %v6570_v62 }
 0x284   :  { %v142_v56 = vpop.permute.xlu1 %141  ;;  %v140_v3 = vpop.permute.xlu0 %139 }
 0x285   :  { %v213_v52 = vsel %vm187_vm0, 0.0, %v142_v56  ;;  %v212_v29 = vsel %vm187_vm0, 0.0, %v140_v3  ;;  %v5269_v3 = vunpack.i.l.bf16 %v6544_v47  ;;  %v6597_v0 = vpop.permute.xlu2 %5287 }
 0x286   :  { %v246_v2 = vsel %vm220_vm1, %v213_v52, 0.0  ;;  %v245_v17 = vsel %vm220_vm1, %v212_v29, 0.0 }
 0x287   :  { %v323_v48 = vrot.slane %v246_v2, 7  ;;  %v322_v8 = vrot.slane %v245_v17, 7  ;;  %v1438_v2 = vld [vmem:[%s11138_s1 + $0xe8] sm:$0xff]  ;;  %v214_v17 = vsel %vm187_vm0, 0.0, %v144_v26 }
 0x288   :  { %1696 = vmatmul.f32.gmra.mxu0 %v6567_v40  ;;  %1809 = vmatmul.f32.gmra.mxu1 %v6570_v62  ;;  %v1436_v40 = vld [vmem:[%s11138_s1 + $0xd8] sm:$0xff] }
 0x289   :  { %v6575_v56 = vsel %vm285_vm2, %v323_v48, 0.0  ;;  %v6583_v10 = vsel %vm285_vm2, %v322_v8, %v323_v48  ;;  %v6586_v11 = vsel %vm285_vm2, 0.0, %v322_v8  ;;  %2189 = vmatpush.msrb.mxu1 %v1438_v2  ;;  %v1549_v2 = vld [vmem:[%s11138_s1 + $0x460] sm:$0xff] }
 0x28a   :  { %11434 = vst [vmem:[#allocation51_spill] sm:$0xff] %v6575_v56  ;;  %v702_v15 = vrot.slane %v6575_v56, 1  ;;  %v5301_v1 = vpack.i.bf16 %v6583_v10, %v6586_v11  ;;  %v699_v52 = vrot.slane %v6586_v11, 1  ;;  %v700_v29 = vrot.slane %v6583_v10, 1  ;;  %2084 = vmatpush.msrb.mxu0 %v1549_v2 }
 0x28b   :  { %11435 = vst [vmem:[#allocation52_spill] sm:$0xff] %v6583_v10  ;;  %2190 = vmatpush.msrb.mxu1 %v1436_v40  ;;  %v1432_v40 = vld [vmem:[%s11138_s1 + $0xb8] sm:$0xff] }
 0x28c   :  { %v5273_v62 = vpop.permute.xlu0 %5272  ;;  %5302 = vrot.lane.b32.xlu1 %v5301_v1, %s5752_s14  ;;  %5297 = vrot.lane.b32.xlu0 %v5301_v1, %s5753_s15  ;;  %v701_v48 = vsel %vm638_vm3, %v699_v52, %v700_v29  ;;  %v703_v8 = vsel %vm638_vm3, %v700_v29, %v702_v15  ;;  %v1434_v1 = vld [vmem:[%s11138_s1 + $0xc8] sm:$0xff]  ;;  %v1547_v15 = vld [vmem:[%s11138_s1 + $0x450] sm:$0xff]  ;;  %v247_v52 = vsel %vm220_vm1, %v214_v17, 0.0  ;;  %v6616_v29 = vsel %vm1280_vm4, %v6451_v36, %v5269_v3 }
 0x28d   :  { %v6605_v26 = vpack.i.bf16 %v703_v8, %v701_v48  ;;  %11437 = vst [vmem:[#allocation54_spill] sm:$0xff] %v6616_v29  ;;  %v5274_v54 = vunpack.i.l.bf16 %v5273_v62  ;;  %2191 = vmatpush.msrb.mxu1 %v1434_v1  ;;  %2085 = vmatpush.msrb.mxu0 %v1547_v15  ;;  %v325_v2 = vrot.slane %v247_v52, 7  ;;  %v58_v3 = vld [vmem:[%s11137_s0 + $0xf8] sm:$0xff]  ;;  %v5270_v17 = vunpack.i.h.bf16 %v6544_v47 }
 0x28e   :  { %v5275_v52 = vunpack.i.h.bf16 %v5273_v62 }
 0x28f   :  { %11436 = vst [vmem:[#allocation53_spill] sm:$0xff] %v6605_v26  ;;  %5307 = vrot.lane.b32.xlu2 %v6605_v26, %s5754_s16  ;;  %v5278_v48 = vpop.permute.xlu1 %5277  ;;  %v57_v26 = vld [vmem:[%s11137_s0 + $0xf0] sm:$0xff]  ;;  %2192 = vmatpush.msrb.mxu1 %v1432_v40  ;;  %v6640_v47 = vsel %vm285_vm2, 0.0, %v325_v2  ;;  %s5765_s0 = smov 2  }
 0x290   :  { %1699 = vmatmul.f32.gmra.mxu0 %v6616_v29  ;;  %v5279_v8 = vunpack.i.l.bf16 %v5278_v48  ;;  %v1430_v29 = vld [vmem:[%s11138_s1 + $0xa8] sm:$0xff]  ;;  %v5280_v56 = vunpack.i.h.bf16 %v5278_v48  ;;  %v704_v48 = vrot.slane %v6640_v47, 1 }
 0x291   :  { %2193 = vmatpush.msrb.mxu1 %v1430_v29 }
 0x292   :  { %v6635_v1 = vsel %vm1280_vm4, %v5274_v54, %v5279_v8  ;;  %v6647_v54 = vsel %vm1280_vm4, %v6463_v18, %v5270_v17  ;;  %v150_v8 = vpop.permute.xlu2 %149  ;;  %v5289_v18 = vunpack.i.l.bf16 %v6597_v0 }
 0x293   :  { %11438 = vst [vmem:[#allocation55_spill] sm:$0xff] %v6635_v1  ;;  %1812 = vmatmul.f32.gmra.mxu1 %v6635_v1 }
 0x294   :  { %v146_v15 = vpop.permute.xlu0 %145  ;;  %153 = vrot.lane.b32.xlu1 %v58_v3, %s5751_s28  ;;  %151 = vrot.lane.b32.xlu0 %v57_v26, %s5751_s28  ;;  %11439 = vst [vmem:[#allocation56_spill] sm:$0xff] %v6647_v54  ;;  %v6658_v26 = vsel %vm1280_vm4, %v5275_v52, %v5280_v56  ;;  %s5767_s28 = smov 88  }
 0x295   :  { %v215_v46 = vsel %vm187_vm0, 0.0, %v146_v15  ;;  %11441 = vst [vmem:[#allocation58_spill] sm:$0xff] %v6658_v26 }
 0x296   :  { %v248_v40 = vsel %vm220_vm1, %v215_v46, 0.0  ;;  %v217_v46 = vsel %vm187_vm0, 0.0, %v150_v8 }
 0x297   :  { %v326_v1 = vrot.slane %v248_v40, 7  ;;  %v5283_v62 = vpop.permute.xlu1 %5282  ;;  %v250_v8 = vsel %vm220_vm1, %v217_v46, 0.0 }
 0x298   :  { %1702 = vmatmul.f32.gmra.mxu0 %v6647_v54  ;;  %v5284_v17 = vunpack.i.l.bf16 %v5283_v62  ;;  %v329_v53 = vrot.slane %v250_v8, 7 }
 0x299   :  { %v6652_v3 = vsel %vm285_vm2, %v325_v2, %v326_v1  ;;  %v6655_v15 = vsel %vm285_vm2, %v326_v1, 0.0 }
 0x29a   :  { %11440 = vst [vmem:[#allocation57_spill] sm:$0xff] %v6655_v15  ;;  %v707_v29 = vrot.slane %v6655_v15, 1  ;;  %v5311_v40 = vpack.i.bf16 %v6652_v3, %v6640_v47  ;;  %v705_v54 = vrot.slane %v6652_v3, 1  ;;  %v6676_v36 = vsel %vm1280_vm4, %v6510_v30, %v5284_v17 }
 0x29b   :  { %1815 = vmatmul.f32.gmra.mxu1 %v6658_v26  ;;  %11443 = vst [vmem:[#allocation60_spill] sm:$0xff] %v6676_v36 }
 0x29c   :  { %5312 = vrot.lane.b32.xlu2 %v5311_v40, %s5753_s15  ;;  %v5293_v2 = vpop.permute.xlu0 %5292  ;;  %5317 = vrot.lane.b32.xlu0 %v5311_v40, %s5752_s14  ;;  %v706_v56 = vsel %vm638_vm3, %v704_v48, %v705_v54  ;;  %v708_v52 = vsel %vm638_vm3, %v705_v54, %v707_v29  ;;  %v5285_v54 = vunpack.i.h.bf16 %v5283_v62  ;;  %v6687_v29 = vsel %vm285_vm2, %v329_v53, 0.0 }
 0x29d   :  { %v5294_v1 = vunpack.i.l.bf16 %v5293_v2  ;;  %v6672_v15 = vpack.i.bf16 %v708_v52, %v706_v56  ;;  %11445 = vst [vmem:[#allocation62_spill] sm:$0xff] %v6687_v29  ;;  %v5290_v56 = vunpack.i.h.bf16 %v6597_v0  ;;  %v5295_v8 = vunpack.i.h.bf16 %v5293_v2 }
 0x29f   :  { %11442 = vst [vmem:[#allocation59_spill] sm:$0xff] %v6672_v15  ;;  %v148_v26 = vpop.permute.xlu1 %147  ;;  %5322 = vrot.lane.b32.xlu1 %v6672_v15, %s5754_s16  ;;  %v6683_v48 = vsel %vm1280_vm4, %v5289_v18, %v5294_v1  ;;  %v712_v18 = vrot.slane %v6687_v29, 1  ;;  %v6702_v1 = vsel %vm1280_vm4, %v6513_v9, %v5285_v54  ;;  %v1545_v54 = vld [vmem:[%s11138_s1 + $0x440] sm:$0xff] }
 0x2a0   :  { %1705 = vmatmul.f32.gmra.mxu0 %v6676_v36  ;;  %v216_v40 = vsel %vm187_vm0, 0.0, %v148_v26  ;;  %11444 = vst [vmem:[#allocation61_spill] sm:$0xff] %v6683_v48 }
 0x2a1   :  { %v249_v46 = vsel %vm220_vm1, %v216_v40, 0.0  ;;  %11446 = vst [vmem:[#allocation63_spill] sm:$0xff] %v6702_v1  ;;  %2086 = vmatpush.msrb.mxu0 %v1545_v54 }
 0x2a2   :  { %v328_v17 = vrot.slane %v249_v46, 7 }
 0x2a3   :  { %1818 = vmatmul.f32.gmra.mxu1 %v6683_v48 }
 0x2a4   :  { %v6692_v52 = vsel %vm285_vm2, 0.0, %v328_v17  ;;  %v6695_v26 = vsel %vm285_vm2, %v328_v17, %v329_v53  ;;  %v6710_v53 = vsel %vm1280_vm4, %v5290_v56, %v5295_v8  ;;  %v1428_v56 = vld [vmem:[%s11138_s1 + $0x98] sm:$0xff]  ;;  %v6725_v8 = vpop.f32.mrf.mxu0 }
 0x2a5   :  { %v5326_v62 = vpack.i.bf16 %v6695_v26, %v6692_v52  ;;  %v709_v0 = vrot.slane %v6692_v52, 1  ;;  %v710_v40 = vrot.slane %v6695_v26, 1  ;;  %11447 = vst [vmem:[#allocation64_spill] sm:$0xff] %v6710_v53  ;;  %2194 = vmatpush.msrb.mxu1 %v1428_v56  ;;  %v1424_v56 = vld [vmem:[%s11138_s1 + $0x78] sm:$0xff] }
 0x2a6   :  { %11449 = vst [vmem:[#allocation66_spill] sm:$0xff] %v6725_v8 }
 0x2a7   :  { %5327 = vrot.lane.b32.xlu2 %v5326_v62, %s5753_s15  ;;  %5332 = vrot.lane.b32.xlu0 %v5326_v62, %s5752_s14  ;;  %v711_v2 = vsel %vm638_vm3, %v709_v0, %v710_v40  ;;  %v713_v46 = vsel %vm638_vm3, %v710_v40, %v712_v18  ;;  %v1426_v62 = vld [vmem:[%s11138_s1 + $0x88] sm:$0xff]  ;;  %v6734_v40 = vpop.f32.mrf.mxu1 }
 0x2a8   :  { %1708 = vmatmul.f32.gmra.mxu0 %v6702_v1  ;;  %v6714_v17 = vpack.i.bf16 %v713_v46, %v711_v2  ;;  %2195 = vmatpush.msrb.mxu1 %v1426_v62  ;;  %11452 = vst [vmem:[#allocation69_spill] sm:$0xff] %v6734_v40  ;;  %v1543_v46 = vld [vmem:[%s11138_s1 + $0x430] sm:$0xff] }
 0x2a9   :  { %2087 = vmatpush.msrb.mxu0 %v1543_v46 }
 0x2aa   :  { %11448 = vst [vmem:[#allocation65_spill] sm:$0xff] %v6714_v17  ;;  %5337 = vrot.lane.b32.xlu1 %v6714_v17, %s5754_s16  ;;  %2196 = vmatpush.msrb.mxu1 %v1424_v56 }
 0x2ab   :  { %1821 = vmatmul.f32.gmra.mxu1 %v6710_v53 }
 0x2ac   :  { %v6727_v18 = vpop.f32.mrf.mxu0 }
 0x2ad   :  { %11450 = vst [vmem:[#allocation67_spill] sm:$0xff] %v6727_v18 }
 0x2af   :  { %v6741_v54 = vpop.f32.mrf.mxu1 }
 0x2b0   :  { %11454 = vst [vmem:[#allocation71_spill] sm:$0xff] %v6741_v54 }
 0x2b4   :  { %v6732_v0 = vpop.f32.mrf.mxu0 }
 0x2b5   :  { %11451 = vst [vmem:[#allocation68_spill] sm:$0xff] %v6732_v0 }
 0x2b7   :  { %v6746_v0 = vpop.f32.mrf.mxu1 }
 0x2b8   :  { %11455 = vst [vmem:[#allocation72_spill] sm:$0xff] %v6746_v0 }
 0x2bc   :  { %v6736_v2 = vpop.f32.mrf.mxu0 }
 0x2bd   :  { %11453 = vst [vmem:[#allocation70_spill] sm:$0xff] %v6736_v2 }
 0x2c4   :  { %v6748_v18 = vpop.f32.mrf.mxu0 }
 0x2c5   :  { %11456 = vst [vmem:[#allocation73_spill] sm:$0xff] %v6748_v18 }
 0x2e9   :  { %v5308_v53 = vpop.permute.xlu2 %5307 }
 0x2ea   :  { %v5309_v62 = vunpack.i.l.bf16 %v5308_v53  ;;  %v5310_v17 = vunpack.i.h.bf16 %v5308_v53 }
 0x2f6   :  { %v5313_v53 = vpop.permute.xlu2 %5312 }
 0x2fe   :  { %v5303_v48 = vpop.permute.xlu1 %5302  ;;  %v5298_v1 = vpop.permute.xlu0 %5297 }
 0x2ff   :  { %v5304_v36 = vunpack.i.l.bf16 %v5303_v48  ;;  %v5299_v2 = vunpack.i.l.bf16 %v5298_v1  ;;  %v5305_v56 = vunpack.i.h.bf16 %v5303_v48  ;;  %v5300_v54 = vunpack.i.h.bf16 %v5298_v1  ;;  %v1422_v1 = vld [vmem:[%s11138_s1 + $0x68] sm:$0xff] }
 0x300   :  { %2197 = vmatpush.msrb.mxu1 %v1422_v1 }
 0x301   :  { %v6751_v40 = vsel %vm1280_vm4, %v5304_v36, %v5309_v62  ;;  %v6755_v46 = vsel %vm1280_vm4, %v6586_v11, %v5299_v2  ;;  %v6764_v2 = vsel %vm1280_vm4, %v5305_v56, %v5310_v17  ;;  %v6770_v48 = vsel %vm1280_vm4, %v6583_v10, %v5300_v54 }
 0x302   :  { %11457 = vst [vmem:[#allocation74_spill] sm:$0xff] %v6751_v40  ;;  %1824 = vmatmul.f32.gmra.mxu1 %v6751_v40  ;;  %1711 = vmatmul.f32.gmra.mxu0 %v6755_v46  ;;  %v6766_v40 = vpop.f32.mrf.mxu1  ;;  %v5314_v56 = vunpack.i.l.bf16 %v5313_v53 }
 0x303   :  { %11458 = vst [vmem:[#allocation75_spill] sm:$0xff] %v6755_v46 }
 0x304   :  { %11459 = vst [vmem:[#allocation76_spill] sm:$0xff] %v6764_v2 }
 0x305   :  { %11460 = vst [vmem:[#allocation77_spill] sm:$0xff] %v6766_v40 }
 0x306   :  { %v154_v8 = vpop.permute.xlu1 %153  ;;  %v152_v29 = vpop.permute.xlu0 %151  ;;  %11461 = vst [vmem:[#allocation78_spill] sm:$0xff] %v6770_v48 }
 0x307   :  { %v219_v0 = vsel %vm187_vm0, 0.0, %v154_v8  ;;  %v218_v36 = vsel %vm187_vm0, 0.0, %v152_v29  ;;  %v6776_v29 = vpop.f32.mrf.mxu0  ;;  %vm3237_vm0 = vcmask 687104  }
 0x308   :  { %v252_v18 = vsel %vm220_vm1, %v219_v0, 0.0  ;;  %v251_v15 = vsel %vm220_vm1, %v218_v36, 0.0  ;;  %11462 = vst [vmem:[#allocation79_spill] sm:$0xff] %v6776_v29  ;;  %v1011_v29 = vrot.slane %v5867_v21, 2  ;;  %v1008_v21 = vrot.slane %v5861_v19, 2  ;;  %v1541_v19 = vld [vmem:[%s11138_s1 + $0x420] sm:$0xff] }
 0x309   :  { %v332_v62 = vrot.slane %v252_v18, 7  ;;  %v331_v46 = vrot.slane %v251_v15, 7  ;;  %2088 = vmatpush.msrb.mxu0 %v1541_v19 }
 0x30a   :  { %1827 = vmatmul.f32.gmra.mxu1 %v6764_v2  ;;  %1714 = vmatmul.f32.gmra.mxu0 %v6770_v48 }
 0x30b   :  { %v6779_v8 = vsel %vm285_vm2, %v332_v62, 0.0  ;;  %v6784_v17 = vsel %vm285_vm2, %v331_v46, %v332_v62  ;;  %v6787_v18 = vsel %vm285_vm2, 0.0, %v331_v46  ;;  %vm3239_vm2 = vcmask 801792  }
 0x30c   :  { %11463 = vst [vmem:[#allocation80_spill] sm:$0xff] %v6779_v8  ;;  %v717_v15 = vrot.slane %v6779_v8, 1  ;;  %v5346_v0 = vpack.i.bf16 %v6784_v17, %v6787_v18  ;;  %v714_v54 = vrot.slane %v6787_v18, 1  ;;  %v715_v36 = vrot.slane %v6784_v17, 1 }
 0x30d   :  { %v6808_v8 = vsel %vm1280_vm4, %v6640_v47, %v5314_v56  ;;  %v5315_v56 = vunpack.i.h.bf16 %v5313_v53  ;;  %v1420_v53 = vld [vmem:[%s11138_s1 + $0x58] sm:$0xff] }
 0x30e   :  { %5347 = vrot.lane.b32.xlu0 %v5346_v0, %s5752_s14  ;;  %5342 = vrot.lane.b32.xlu2 %v5346_v0, %s5753_s15  ;;  %v5318_v1 = vpop.permute.xlu0 %5317  ;;  %v6796_v2 = vsel %vm638_vm3, %v714_v54, %v715_v36  ;;  %v6799_v62 = vsel %vm638_vm3, %v715_v36, %v717_v15  ;;  %v1009_v0 = vrot.slane %v5864_v20, 2  ;;  %v6816_v15 = vpop.f32.mrf.mxu1  ;;  %vm3241_vm3 = vcmask 916480  }
 0x30f   :  { %11464 = vst [vmem:[#allocation81_spill] sm:$0xff] %v6796_v2  ;;  %v5319_v46 = vunpack.i.l.bf16 %v5318_v1  ;;  %v6803_v48 = vpack.i.bf16 %v6799_v62, %v6796_v2  ;;  %v6811_v10 = vpop.f32.mrf.mxu0  ;;  %2198 = vmatpush.msrb.mxu1 %v1420_v53  ;;  %v1013_v53 = vrot.slane %v5886_v34, 2 }
 0x310   :  { %11465 = vst [vmem:[#allocation82_spill] sm:$0xff] %v6799_v62  ;;  %v6824_v20 = vsel %vm1007_vm5, %v1008_v21, %v1009_v0  ;;  %v5320_v62 = vunpack.i.h.bf16 %v5318_v1  ;;  %v5328_v1 = vpop.permute.xlu2 %5327 }
 0x311   :  { %v5323_v40 = vpop.permute.xlu1 %5322  ;;  %11466 = vst [vmem:[#allocation83_spill] sm:$0xff] %v6811_v10  ;;  %5352 = vrot.lane.b32.xlu1 %v6803_v48, %s5754_s16  ;;  %v6827_v10 = vsel %vm1007_vm5, %v1009_v0, %v1011_v29  ;;  %v6843_v29 = vsel %vm1280_vm4, %v6652_v3, %v5315_v56  ;;  %v5329_v19 = vunpack.i.l.bf16 %v5328_v1 }
 0x312   :  { %v5324_v54 = vunpack.i.l.bf16 %v5323_v40  ;;  %1717 = vmatmul.f32.gmra.mxu0 %v6808_v8  ;;  %v5325_v2 = vunpack.i.h.bf16 %v5323_v40  ;;  %v5366_v40 = vpack.i.bf16 %v6827_v10, %v6824_v20  ;;  %11468 = vst [vmem:[#allocation85_spill] sm:$0xff] %v6843_v29 }
 0x314   :  { %v6820_v36 = vsel %vm1280_vm4, %v5319_v46, %v5324_v54  ;;  %v1016_v54 = vrot.slane %v5881_v32, 2  ;;  %v6864_v32 = vsel %vm1280_vm4, %v6692_v52, %v5329_v19  ;;  %v5330_v19 = vunpack.i.h.bf16 %v5328_v1 }
 0x315   :  { %11467 = vst [vmem:[#allocation84_spill] sm:$0xff] %v6820_v36  ;;  %1830 = vmatmul.f32.gmra.mxu1 %v6820_v36 }
 0x316   :  { %5362 = vrot.lane.b32.xlu0 %v5883_v33, %s5755_s29  ;;  %5357 = vrot.lane.b32.xlu2 %v5883_v33, %s5756_s30  ;;  %v6848_v33 = vsel %vm1280_vm4, %v5320_v62, %v5325_v2  ;;  %v6853_v21 = vpop.f32.mrf.mxu1  ;;  %11470 = vst [vmem:[#allocation87_spill] sm:$0xff] %v6864_v32  ;;  %v6894_v1 = vsel %vm1280_vm4, %v6695_v26, %v5330_v19 }
 0x317   :  { %11469 = vst [vmem:[#allocation86_spill] sm:$0xff] %v6848_v33  ;;  %v6850_v0 = vpop.f32.mrf.mxu0 }
 0x318   :  { %11472 = vst [vmem:[#allocation89_spill] sm:$0xff] %v6894_v1 }
 0x319   :  { %5367 = vrot.lane.b32.xlu1 %v5366_v40, %s5753_s15  ;;  %v5333_v46 = vpop.permute.xlu0 %5332  ;;  %v1014_v40 = vrot.slane %v5889_v35, 2 }
 0x31a   :  { %1720 = vmatmul.f32.gmra.mxu0 %v6843_v29  ;;  %v5334_v2 = vunpack.i.l.bf16 %v5333_v46 }
 0x31b   :  { %v6867_v36 = vsel %vm1007_vm5, %v1013_v53, %v1014_v40 }
 0x31c   :  { %v5338_v56 = vpop.permute.xlu1 %5337 }
 0x31d   :  { %1833 = vmatmul.f32.gmra.mxu1 %v6848_v33  ;;  %v5339_v62 = vunpack.i.l.bf16 %v5338_v56  ;;  %v6870_v33 = vsel %vm1007_vm5, %v1014_v40, %v1016_v54  ;;  %v5335_v54 = vunpack.i.h.bf16 %v5333_v46  ;;  %v5340_v40 = vunpack.i.h.bf16 %v5338_v56 }
 0x31e   :  { %5372 = vrot.lane.b32.xlu0 %v5937_v57, %s5756_s30  ;;  %1216 = vrot.lane.b32.xlu2 %v6824_v20, %s5752_s14  ;;  %v5381_v35 = vpack.i.bf16 %v6870_v33, %v6867_v36  ;;  %v6880_v29 = vpop.f32.mrf.mxu1  ;;  %v1019_v46 = vrot.slane %v5946_v61, 2 }
 0x31f   :  { %v6876_v34 = vsel %vm1280_vm4, %v5334_v2, %v5339_v62  ;;  %v6883_v53 = vpop.f32.mrf.mxu0  ;;  %v1021_v2 = vrot.slane %v5952_v63, 2  ;;  %v1018_v62 = vrot.slane %v5943_v60, 2  ;;  %v6902_v56 = vsel %vm1280_vm4, %v5335_v54, %v5340_v40 }
 0x320   :  { %11471 = vst [vmem:[#allocation88_spill] sm:$0xff] %v6876_v34  ;;  %v1026_v54 = vrot.slane %v6077_v4, 2  ;;  %v1023_v40 = vrot.slane %v6083_v6, 2 }
 0x321   :  { %5377 = vrot.lane.b32.xlu1 %v5937_v57, %s5755_s29  ;;  %v1418_v57 = vld [vmem:[%s11138_s1 + $0x48] sm:$0xff]  ;;  %11473 = vst [vmem:[#allocation90_spill] sm:$0xff] %v6902_v56  ;;  %v6906_v63 = vsel %vm1007_vm5, %v1018_v62, %v1019_v46 }
 0x322   :  { %1723 = vmatmul.f32.gmra.mxu0 %v6864_v32  ;;  %2199 = vmatpush.msrb.mxu1 %v1418_v57  ;;  %v1024_v57 = vrot.slane %v6080_v5, 2  ;;  %v1039_v32 = vrot.slane %v6244_v41, 2 }
 0x324   :  { %v6938_v4 = vsel %vm1007_vm5, %v1023_v40, %v1024_v57  ;;  %v6941_v5 = vsel %vm1007_vm5, %v1024_v57, %v1026_v54  ;;  %v1031_v40 = vrot.slane %v6140_v51, 2  ;;  %v1028_v57 = vrot.slane %v6126_v44, 2  ;;  %v1414_v51 = vld [vmem:[%s11138_s1 + $0x28] sm:$0xff] }
 0x325   :  { %1836 = vmatmul.f32.gmra.mxu1 %v6876_v34  ;;  %v1493_v34 = vld [vmem:[%s11138_s1 + $0x2a0] sm:$0xff] }
 0x326   :  { %1218 = vrot.lane.b32.xlu0 %v6827_v10, %s5752_s14  ;;  %5382 = vrot.lane.b32.xlu2 %v5381_v35, %s5753_s15  ;;  %v6909_v35 = vsel %vm1007_vm5, %v1019_v46, %v1021_v2  ;;  %v6915_v60 = vpop.f32.mrf.mxu1  ;;  %v1416_v2 = vld [vmem:[%s11138_s1 + $0x38] sm:$0xff]  ;;  %v5411_v46 = vpack.i.bf16 %v6941_v5, %v6938_v4 }
 0x327   :  { %v6917_v61 = vpop.f32.mrf.mxu0  ;;  %v5396_v19 = vpack.i.bf16 %v6909_v35, %v6906_v63  ;;  %2200 = vmatpush.msrb.mxu1 %v1416_v2 }
 0x329   :  { %1220 = vrot.lane.b32.xlu1 %v6867_v36, %s5752_s14  ;;  %2201 = vmatpush.msrb.mxu1 %v1414_v51  ;;  %v1033_v51 = vrot.slane %v6171_v25, 2  ;;  %v1531_v25 = vld [vmem:[%s11138_s1 + $0x3d0] sm:$0xff] }
 0x32a   :  { %1726 = vmatmul.f32.gmra.mxu0 %v6894_v1  ;;  %v1038_v1 = vrot.slane %v6247_v45, 2 }
 0x32c   :  { %v7079_v45 = vsel %vm1007_vm5, %v1038_v1, %v1039_v32  ;;  %v1517_v1 = vld [vmem:[%s11138_s1 + $0x360] sm:$0xff] }
 0x32d   :  { %1839 = vmatmul.f32.gmra.mxu1 %v6902_v56  ;;  %v1533_v56 = vld [vmem:[%s11138_s1 + $0x3e0] sm:$0xff] }
 0x32e   :  { %5392 = vrot.lane.b32.xlu0 %v5967_v7, %s5755_s29  ;;  %5387 = vrot.lane.b32.xlu2 %v5967_v7, %s5756_s30  ;;  %v1539_v7 = vld [vmem:[%s11138_s1 + $0x410] sm:$0xff]  ;;  %v6935_v62 = vpop.f32.mrf.mxu1 }
 0x32f   :  { %2089 = vmatpush.msrb.mxu0 %v1539_v7  ;;  %v6943_v6 = vpop.f32.mrf.mxu0  ;;  %v1029_v7 = vrot.slane %v6137_v50, 2 }
 0x331   :  { %5397 = vrot.lane.b32.xlu1 %v5396_v19, %s5753_s15  ;;  %v6969_v2 = vsel %vm1007_vm5, %v1029_v7, %v1031_v40  ;;  %v1503_v40 = vld [vmem:[%s11138_s1 + $0x2f0] sm:$0xff] }
 0x332   :  { %1849 = vmatpush.msra.mxu2 %v1503_v40  ;;  %v1034_v40 = vrot.slane %v6176_v28, 2  ;;  %v1495_v28 = vld [vmem:[%s11138_s1 + $0x2b0] sm:$0xff] }
 0x336   :  { %1224 = vrot.lane.b32.xlu0 %v6906_v63, %s5752_s14  ;;  %1222 = vrot.lane.b32.xlu2 %v6870_v33, %s5752_s14  ;;  %v6952_v19 = vpop.f32.mrf.mxu1 }
 0x337   :  { %v6956_v54 = vpop.f32.mrf.mxu0 }
 0x339   :  { %5402 = vrot.lane.b32.xlu1 %v6098_v24, %s5756_s30 }
 0x33e   :  { %5412 = vrot.lane.b32.xlu0 %v5411_v46, %s5753_s15  ;;  %5407 = vrot.lane.b32.xlu2 %v6098_v24, %s5755_s29  ;;  %v6966_v24 = vsel %vm1007_vm5, %v1028_v57, %v1029_v7  ;;  %v6976_v44 = vpop.f32.mrf.mxu1  ;;  %v1535_v57 = vld [vmem:[%s11138_s1 + $0x3f0] sm:$0xff]  ;;  %v1036_v7 = vrot.slane %v6156_v14, 2  ;;  %v1497_v14 = vld [vmem:[%s11138_s1 + $0x2c0] sm:$0xff] }
 0x33f   :  { %v6978_v50 = vpop.f32.mrf.mxu0  ;;  %v5426_v46 = vpack.i.bf16 %v6969_v2, %v6966_v24  ;;  %1962 = vmatpush.msra.mxu3 %v1535_v57 }
 0x341   :  { %1226 = vrot.lane.b32.xlu1 %v6909_v35, %s5752_s14  ;;  %1963 = vmatpush.msra.mxu3 %v1533_v56  ;;  %v7023_v56 = vsel %vm1007_vm5, %v1034_v40, %v1036_v7  ;;  %v1527_v7 = vld [vmem:[%s11138_s1 + $0x3b0] sm:$0xff] }
 0x343   :  { %1964 = vmatpush.msra.mxu3 %v1531_v25  ;;  %v1412_v25 = vld [vmem:[%s11138_s1 + $0x18] sm:$0xff] }
 0x344   :  { %2202 = vmatpush.msrb.mxu1 %v1412_v25 }
 0x346   :  { %5417 = vrot.lane.b32.xlu0 %v6158_v16, %s5756_s30  ;;  %1228 = vrot.lane.b32.xlu2 %v6938_v4, %s5752_s14  ;;  %v7017_v57 = vpop.f32.mrf.mxu1 }
 0x349   :  { %5422 = vrot.lane.b32.xlu1 %v6158_v16, %s5755_s29  ;;  %v1501_v16 = vld [vmem:[%s11138_s1 + $0x2e0] sm:$0xff] }
 0x34a   :  { %1850 = vmatpush.msra.mxu2 %v1501_v16  ;;  %v1529_v16 = vld [vmem:[%s11138_s1 + $0x3c0] sm:$0xff] }
 0x34b   :  { %1965 = vmatpush.msra.mxu3 %v1529_v16  ;;  %v1489_v16 = vld [vmem:[%s11138_s1 + $0x280] sm:$0xff] }
 0x34d   :  { %1966 = vmatpush.msra.mxu3 %v1527_v7  ;;  %v1521_v7 = vld [vmem:[%s11138_s1 + $0x380] sm:$0xff] }
 0x34e   :  { %1230 = vrot.lane.b32.xlu0 %v6941_v5, %s5752_s14  ;;  %5427 = vrot.lane.b32.xlu2 %v5426_v46, %s5753_s15  ;;  %v1499_v46 = vld [vmem:[%s11138_s1 + $0x2d0] sm:$0xff]  ;;  %v7065_v25 = vpop.f32.mrf.mxu1 }
 0x34f   :  { %1851 = vmatpush.msra.mxu2 %v1499_v46  ;;  %v7020_v46 = vsel %vm1007_vm5, %v1033_v51, %v1034_v40  ;;  %v1537_v51 = vld [vmem:[%s11138_s1 + $0x400] sm:$0xff] }
 0x350   :  { %v5441_v40 = vpack.i.bf16 %v7023_v56, %v7020_v46  ;;  %2090 = vmatpush.msrb.mxu0 %v1537_v51  ;;  %v1523_v51 = vld [vmem:[%s11138_s1 + $0x390] sm:$0xff] }
 0x351   :  { %1232 = vrot.lane.b32.xlu1 %v6966_v24, %s5752_s14  ;;  %1852 = vmatpush.msra.mxu2 %v1497_v14  ;;  %v7025_v14 = vpop.f32.mrf.mxu0 }
 0x353   :  { %1853 = vmatpush.msra.mxu2 %v1495_v28  ;;  %v1525_v28 = vld [vmem:[%s11138_s1 + $0x3a0] sm:$0xff] }
 0x354   :  { %1967 = vmatpush.msra.mxu3 %v1525_v28  ;;  %v1519_v28 = vld [vmem:[%s11138_s1 + $0x370] sm:$0xff] }
 0x355   :  { %1854 = vmatpush.msra.mxu2 %v1493_v34  ;;  %v1487_v34 = vld [vmem:[%s11138_s1 + $0x270] sm:$0xff] }
 0x356   :  { %5437 = vrot.lane.b32.xlu0 %v6202_v39, %s5755_s29  ;;  %5432 = vrot.lane.b32.xlu2 %v6202_v39, %s5756_s30  ;;  %v1491_v39 = vld [vmem:[%s11138_s1 + $0x290] sm:$0xff] }
 0x357   :  { %1855 = vmatpush.msra.mxu2 %v1491_v39  ;;  %1968 = vmatpush.msra.mxu3 %v1523_v51 }
 0x359   :  { %5442 = vrot.lane.b32.xlu1 %v5441_v40, %s5753_s15  ;;  %v1041_v40 = vrot.slane %v6241_v38, 2  ;;  %1856 = vmatpush.msra.mxu2 %v1489_v16  ;;  %v7073_v39 = vpop.f32.mrf.mxu0  ;;  %v1485_v38 = vld [vmem:[%s11138_s1 + $0x260] sm:$0xff]  ;;  %v1483_v16 = vld [vmem:[%s11138_s1 + $0x250] sm:$0xff] }
 0x35a   :  { %1969 = vmatpush.msra.mxu3 %v1521_v7  ;;  %11474 = vst [vmem:[#allocation91_spill] sm:$0xff] %v7073_v39  ;;  %v1479_v7 = vld [vmem:[%s11138_s1 + $0x230] sm:$0xff]  ;;  %v1043_v39 = vrot.slane %v6287_v59, 2  ;;  %v1505_v59 = vld [vmem:[%s11138_s1 + $0x300] sm:$0xff] }
 0x35b   :  { %1857 = vmatpush.msra.mxu2 %v1487_v34  ;;  %v7082_v41 = vsel %vm1007_vm5, %v1039_v32, %v1041_v40  ;;  %v1481_v32 = vld [vmem:[%s11138_s1 + $0x240] sm:$0xff]  ;;  %v1515_v34 = vld [vmem:[%s11138_s1 + $0x350] sm:$0xff] }
 0x35c   :  { %1970 = vmatpush.msra.mxu3 %v1519_v28  ;;  %v5456_v51 = vpack.i.bf16 %v7082_v41, %v7079_v45  ;;  %v1513_v40 = vld [vmem:[%s11138_s1 + $0x340] sm:$0xff] }
 0x35d   :  { %1858 = vmatpush.msra.mxu2 %v1485_v38  ;;  %v7112_v38 = vpop.f32.mrf.mxu1 }
 0x35e   :  { %1236 = vrot.lane.b32.xlu0 %v7020_v46, %s5752_s14  ;;  %1234 = vrot.lane.b32.xlu2 %v6969_v2, %s5752_s14  ;;  %11475 = vst [vmem:[#allocation92_spill] sm:$0xff] %v7112_v38  ;;  %v1044_v38 = vrot.slane %v6296_v22, 2 }
 0x35f   :  { %1859 = vmatpush.msra.mxu2 %v1483_v16  ;;  %1971 = vmatpush.msra.mxu3 %v1517_v1  ;;  %v1477_v16 = vld [vmem:[%s11138_s1 + $0x220] sm:$0xff] }
 0x361   :  { %5447 = vrot.lane.b32.xlu1 %v6262_v12, %s5756_s30  ;;  %1860 = vmatpush.msra.mxu2 %v1481_v32  ;;  %v7120_v32 = vpop.f32.mrf.mxu0 }
 0x362   :  { %1972 = vmatpush.msra.mxu3 %v1515_v34  ;;  %11476 = vst [vmem:[#allocation93_spill] sm:$0xff] %v7120_v32  ;;  %v1410_v34 = vld [vmem:[%s11138_s1 + $0x8] sm:$0xff]  ;;  %v1046_v32 = vrot.slane %v6299_v23, 2 }
 0x363   :  { %1861 = vmatpush.msra.mxu2 %v1479_v7  ;;  %v1509_v7 = vld [vmem:[%s11138_s1 + $0x320] sm:$0xff]  ;;  %2203 = vmatpush.msrb.mxu1 %v1410_v34 }
 0x364   :  { %1973 = vmatpush.msra.mxu3 %v1513_v40 }
 0x365   :  { %1862 = vmatpush.msra.mxu2 %v1477_v16  ;;  %v1473_v16 = vld [vmem:[%s11138_s1 + $0x200] sm:$0xff]  ;;  %v7157_v22 = vpop.f32.mrf.mxu1 }
 0x366   :  { %5457 = vrot.lane.b32.xlu0 %v5456_v51, %s5753_s15  ;;  %5452 = vrot.lane.b32.xlu2 %v6262_v12, %s5755_s29  ;;  %v1511_v12 = vld [vmem:[%s11138_s1 + $0x330] sm:$0xff] }
 0x367   :  { %v1475_v51 = vld [vmem:[%s11138_s1 + $0x210] sm:$0xff]  ;;  %1974 = vmatpush.msra.mxu3 %v1511_v12  ;;  %v1472_v12 = vld [vmem:[%s11138_s1 + $0x1f8] sm:$0xff] }
 0x368   :  { %v5343_v28 = vpop.permute.xlu2 %5342  ;;  %1863 = vmatpush.msra.mxu2 %v1475_v51  ;;  %v1504_v51 = vld [vmem:[%s11138_s1 + $0x2f8] sm:$0xff] }
 0x369   :  { %v5344_v1 = vunpack.i.l.bf16 %v5343_v28  ;;  %1238 = vrot.lane.b32.xlu1 %v7023_v56, %s5752_s14  ;;  %1975 = vmatpush.msra.mxu3 %v1509_v7  ;;  %v5345_v23 = vunpack.i.h.bf16 %v5343_v28  ;;  %v7165_v7 = vsel %vm1007_vm5, %v1043_v39, %v1044_v38 }
 0x36a   :  { %1864 = vmatpush.msra.mxu2 %v1473_v16  ;;  %v7168_v16 = vsel %vm1007_vm5, %v1044_v38, %v1046_v32  ;;  %v1051_v38 = vrot.slane %v6328_v31, 2  ;;  %v1470_v31 = vld [vmem:[%s11138_s1 + $0x1e8] sm:$0xff] }
 0x36b   :  { %v7135_v40 = vsel %vm1280_vm4, %v6787_v18, %v5344_v1  ;;  %v1507_v1 = vld [vmem:[%s11138_s1 + $0x310] sm:$0xff]  ;;  %v7174_v28 = vsel %vm1280_vm4, %v6784_v17, %v5345_v23  ;;  %v5471_v39 = vpack.i.bf16 %v7168_v16, %v7165_v7  ;;  %v1552_v23 = vld [vmem:[%s11138_s1 + $0x478] sm:$0xff] }
 0x36c   :  { %11477 = vst [vmem:[#allocation94_spill] sm:$0xff] %v7135_v40  ;;  %1729 = vmatmul.f32.gmra.mxu0 %v7135_v40  ;;  %1976 = vmatpush.msra.mxu3 %v1507_v1  ;;  %v7176_v1 = vpop.f32.mrf.mxu0 }
 0x36d   :  { %2301 = vmatpush.msrb.mxu2 %v1472_v12  ;;  %11478 = vst [vmem:[#allocation95_spill] sm:$0xff] %v7174_v28  ;;  %v7188_v32 = vpop.f32.mrf.mxu1  ;;  %v1048_v12 = vrot.slane %v6345_v13, 2  ;;  %2648 = vmatpush.msra.mxu1 %v1552_v23 }
 0x36e   :  { %5462 = vrot.lane.b32.xlu0 %v6317_v37, %s5756_s30  ;;  %1240 = vrot.lane.b32.xlu2 %v7079_v45, %s5752_s14  ;;  %11479 = vst [vmem:[#allocation96_spill] sm:$0xff] %v7176_v1 }
 0x36f   :  { %1977 = vmatpush.msra.mxu3 %v1505_v59  ;;  %11480 = vst [vmem:[#allocation97_spill] sm:$0xff] %v7188_v32  ;;  %v1049_v59 = vrot.slane %v6348_v58, 2  ;;  %2302 = vmatpush.msrb.mxu2 %v1470_v31 }
 0x370   :  { %v7162_v34 = vpop.permute.xlu2 %5357 }
 0x371   :  { %5467 = vrot.lane.b32.xlu1 %v6317_v37, %s5755_s29  ;;  %2414 = vmatpush.msrb.mxu3 %v1504_v51  ;;  %v1536_v37 = vld [vmem:[%s11138_s1 + $0x3f8] sm:$0xff]  ;;  %v7205_v13 = vsel %vm1007_vm5, %v1048_v12, %v1049_v59  ;;  %v7208_v58 = vsel %vm1007_vm5, %v1049_v59, %v1051_v38  ;;  %v1502_v12 = vld [vmem:[%s11138_s1 + $0x2e8] sm:$0xff]  ;;  %v1056_v59 = vrot.slane %v6405_v43, 2 }
 0x372   :  { %2527 = vmatpush.msra.mxu0 %v1536_v37  ;;  %v5486_v23 = vpack.i.bf16 %v7208_v58, %v7205_v13 }
 0x373   :  { %2415 = vmatpush.msrb.mxu3 %v1502_v12 }
 0x374   :  { %1732 = vmatmul.f32.gmra.mxu0 %v7174_v28  ;;  %v1054_v28 = vrot.slane %v6408_v49, 2  ;;  %v5359_v49 = vunpack.i.l.bf16 %v7162_v34 }
 0x375   :  { %v7222_v38 = vpop.f32.mrf.mxu1 }
 0x376   :  { %1242 = vrot.lane.b32.xlu0 %v7082_v41, %s5752_s14  ;;  %5472 = vrot.lane.b32.xlu2 %v5471_v39, %s5753_s15  ;;  %v7210_v39 = vpop.f32.mrf.mxu0  ;;  %11483 = vst [vmem:[#allocation100_spill] sm:$0xff] %v7222_v38  ;;  %v7245_v38 = vsel %vm1007_vm5, %v1054_v28, %v1056_v59 }
 0x377   :  { %11482 = vst [vmem:[#allocation99_spill] sm:$0xff] %v7210_v39 }
 0x378   :  { %v7197_v51 = vpop.permute.xlu2 %1216 }
 0x379   :  { %1244 = vrot.lane.b32.xlu1 %v7165_v7, %s5752_s14  ;;  %11481 = vst [vmem:[#allocation98_spill] sm:$0xff] %v7197_v51 }
 0x37c   :  { %4973 = vmatmul.msk.f32.vlgmr.msrb.gmra.mxu0 %vm1280_vm4, %v7197_v51 }
 0x37d   :  { %v7257_v32 = vpop.f32.mrf.mxu1 }
 0x37e   :  { %5482 = vrot.lane.b32.xlu0 %v6366_v55, %s5755_s29  ;;  %5477 = vrot.lane.b32.xlu2 %v6366_v55, %s5756_s30  ;;  %v1053_v55 = vrot.slane %v6411_v27, 2  ;;  %v7227_v1 = vpop.f32.mrf.mxu0  ;;  %v1534_v27 = vld [vmem:[%s11138_s1 + $0x3e8] sm:$0xff]  ;;  %11487 = vst [vmem:[#allocation104_spill] sm:$0xff] %v7257_v32 }
 0x37f   :  { %11484 = vst [vmem:[#allocation101_spill] sm:$0xff] %v7227_v1  ;;  %2528 = vmatpush.msra.mxu0 %v1534_v27  ;;  %v1468_v27 = vld [vmem:[%s11138_s1 + $0x1d8] sm:$0xff] }
 0x380   :  { %v5348_v37 = vpop.permute.xlu0 %5347  ;;  %v7242_v1 = vsel %vm1007_vm5, %v1053_v55, %v1054_v28  ;;  %2303 = vmatpush.msrb.mxu2 %v1468_v27 }
 0x381   :  { %5487 = vrot.lane.b32.xlu1 %v5486_v23, %s5753_s15  ;;  %v5349_v51 = vunpack.i.l.bf16 %v5348_v37  ;;  %v5501_v55 = vpack.i.bf16 %v7245_v38, %v7242_v1  ;;  %v5350_v28 = vunpack.i.h.bf16 %v5348_v37 }
 0x383   :  { %v5353_v31 = vpop.permute.xlu1 %5352 }
 0x384   :  { %v5354_v39 = vunpack.i.l.bf16 %v5353_v31 }
 0x385   :  { %v7287_v27 = vpop.f32.mrf.mxu1 }
 0x386   :  { %1248 = vrot.lane.b32.xlu0 %v7205_v13, %s5752_s14  ;;  %1246 = vrot.lane.b32.xlu2 %v7168_v16, %s5752_s14  ;;  %v7234_v23 = vsel %vm1280_vm4, %v5349_v51, %v5354_v39  ;;  %v5355_v51 = vunpack.i.h.bf16 %v5353_v31  ;;  %v7272_v37 = vpop.f32.mrf.mxu0 }
 0x387   :  { %11485 = vst [vmem:[#allocation102_spill] sm:$0xff] %v7234_v23  ;;  %1842 = vmatmul.f32.gmra.mxu1 %v7234_v23  ;;  %v7252_v23 = vpop.permute.xlu2 %5382 }
 0x388   :  { %v5363_v43 = vpop.permute.xlu0 %5362  ;;  %11490 = vst [vmem:[#allocation107_spill] sm:$0xff] %v7272_v37 }
 0x389   :  { %v5364_v12 = vunpack.i.l.bf16 %v5363_v43  ;;  %5492 = vrot.lane.b32.xlu1 %v6426_v42, %s5756_s30  ;;  %v5365_v31 = vunpack.i.h.bf16 %v5363_v43  ;;  %v5360_v43 = vunpack.i.h.bf16 %v7162_v34 }
 0x38b   :  { %v7250_v39 = vsel %vm1280_vm4, %v5359_v49, %v5364_v12  ;;  %v5368_v40 = vpop.permute.xlu1 %5367  ;;  %v7266_v49 = vsel %vm1280_vm4, %v5350_v28, %v5355_v51  ;;  %v7283_v51 = vsel %vm1280_vm4, %v5360_v43, %v5365_v31  ;;  %v11492_v28 = vld [vmem:[#allocation39_spill] sm:$0xff]  ;;  %v11498_v43 = vld [vmem:[#allocation5_spill] sm:$0xff] }
 0x38c   :  { %11486 = vst [vmem:[#allocation103_spill] sm:$0xff] %v7250_v39  ;;  %1865 = vmatmul.f32.vlgmr.msra.gmra.mxu2 %v7250_v39  ;;  %v5369_v59 = vunpack.i.l.bf16 %v5368_v40 }
 0x38d   :  { %11488 = vst [vmem:[#allocation105_spill] sm:$0xff] %v7266_v49 }
 0x38e   :  { %5502 = vrot.lane.b32.xlu0 %v5501_v55, %s5753_s15  ;;  %5497 = vrot.lane.b32.xlu2 %v6426_v42, %s5755_s29  ;;  %v7270_v12 = vsel %vm1280_vm4, %v6824_v20, %v5369_v59  ;;  %v1500_v42 = vld [vmem:[%s11138_s1 + $0x2d8] sm:$0xff]  ;;  %v5370_v20 = vunpack.i.h.bf16 %v5368_v40  ;;  %11491 = vst [vmem:[#allocation108_spill] sm:$0xff] %v7283_v51  ;;  %v1061_v59 = vrot.slane %v11492_v28, 2 }
 0x38f   :  { %11489 = vst [vmem:[#allocation106_spill] sm:$0xff] %v7270_v12  ;;  %1845 = vmatmul.f32.gmra.mxu1 %v7266_v49  ;;  %1978 = vmatmul.f32.vlgmr.msra.gmra.mxu3 %v7270_v12  ;;  %v11494_v49 = vld [vmem:[#allocation35_spill] sm:$0xff]  ;;  %v11495_v12 = vld [vmem:[#allocation38_spill] sm:$0xff]  ;;  %v7291_v34 = vpop.permute.xlu2 %5387 }
 0x390   :  { %v5373_v32 = vpop.permute.xlu0 %5372  ;;  %2416 = vmatpush.msrb.mxu3 %v1500_v42  ;;  %11493 = vst [vmem:[#allocation39_spill] sm:$0xff] %v7287_v27  ;;  %v1058_v37 = vrot.slane %v11494_v49, 2  ;;  %v1059_v39 = vrot.slane %v11495_v12, 2  ;;  %v11496_v42 = vld [vmem:[#allocation40_spill] sm:$0xff]  ;;  %v7299_v31 = vsel %vm1280_vm4, %v6827_v10, %v5370_v20  ;;  %v7316_v20 = vpop.f32.mrf.mxu0 }
 0x391   :  { %1250 = vrot.lane.b32.xlu1 %v7208_v58, %s5752_s14  ;;  %11497 = vst [vmem:[#allocation35_spill] sm:$0xff] %v7299_v31  ;;  %v1532_v12 = vld [vmem:[%s11138_s1 + $0x3d8] sm:$0xff]  ;;  %v5374_v28 = vunpack.i.l.bf16 %v5373_v32 }
 0x392   :  { %v7311_v27 = vsel %vm1007_vm5, %v1058_v37, %v1059_v39  ;;  %v7314_v10 = vsel %vm1007_vm5, %v1059_v39, %v1061_v59  ;;  %11500 = vst [vmem:[#allocation40_spill] sm:$0xff] %v7316_v20  ;;  %2529 = vmatpush.msra.mxu0 %v1532_v12  ;;  %v1466_v59 = vld [vmem:[%s11138_s1 + $0x1c8] sm:$0xff] }
 0x393   :  { %v5378_v55 = vpop.permute.xlu1 %5377  ;;  %v5516_v39 = vpack.i.bf16 %v7314_v10, %v7311_v27  ;;  %2304 = vmatpush.msrb.mxu2 %v1466_v59 }
 0x394   :  { %1868 = vmatmul.f32.gmra.mxu2 %v7283_v51  ;;  %v5379_v40 = vunpack.i.l.bf16 %v5378_v55 }
 0x396   :  { %5507 = vrot.lane.b32.xlu0 %v11496_v42, %s5756_s30  ;;  %1252 = vrot.lane.b32.xlu2 %v7242_v1, %s5752_s14 }
 0x397   :  { %1981 = vmatmul.f32.gmra.mxu3 %v7299_v31  ;;  %2204 = vmatmul.f32.vlgmr.msrb.gmra.mxu1 %v11498_v43  ;;  %v1550_v43 = vld [vmem:[%s11138_s1 + $0x468] sm:$0xff]  ;;  %v5384_v31 = vunpack.i.l.bf16 %v7252_v23 }
 0x398   :  { %v7303_v49 = vpop.permute.xlu0 %1218  ;;  %2649 = vmatpush.msra.mxu1 %v1550_v43  ;;  %v11506_v43 = vld [vmem:[#allocation7_spill] sm:$0xff] }
 0x399   :  { %11499 = vst [vmem:[#allocation38_spill] sm:$0xff] %v7303_v49  ;;  %4974 = vmatmul.msk.f32.gmra.mxu0 %vm1280_vm4, %v7303_v49  ;;  %5512 = vrot.lane.b32.xlu1 %v11496_v42, %s5755_s29  ;;  %v7325_v49 = vsel %vm1280_vm4, %v5374_v28, %v5379_v40  ;;  %v7338_v42 = vpop.f32.mrf.mxu1  ;;  %v5380_v40 = vunpack.i.h.bf16 %v5378_v55  ;;  %v7342_v12 = vsel %vm1280_vm4, %v6867_v36, %v5384_v31  ;;  %v7344_v28 = vpop.permute.xlu2 %1222  ;;  %v1063_v36 = vrot.slane %v6510_v30, 2 }
 0x39a   :  { %11501 = vst [vmem:[#allocation5_spill] sm:$0xff] %v7325_v49  ;;  %v1064_v55 = vrot.slane %v6513_v9, 2  ;;  %v5385_v31 = vunpack.i.h.bf16 %v7252_v23  ;;  %v11510_v9 = vld [vmem:[#allocation46_spill] sm:$0xff] }
 0x39b   :  { %v7327_v37 = vpop.permute.xlu1 %1220  ;;  %11503 = vst [vmem:[#allocation110_spill] sm:$0xff] %v7338_v42  ;;  %v5375_v42 = vunpack.i.h.bf16 %v5373_v32 }
 0x39c   :  { %11502 = vst [vmem:[#allocation109_spill] sm:$0xff] %v7327_v37  ;;  %1871 = vmatmul.f32.gmra.mxu2 %v7325_v49  ;;  %v1498_v49 = vld [vmem:[%s11138_s1 + $0x2c8] sm:$0xff]  ;;  %v7366_v32 = vsel %vm1007_vm5, %v1063_v36, %v1064_v55 }
 0x39d   :  { %11504 = vst [vmem:[#allocation111_spill] sm:$0xff] %v7342_v12  ;;  %2417 = vmatpush.msrb.mxu3 %v1498_v49  ;;  %v7360_v59 = vsel %vm1280_vm4, %v5375_v42, %v5380_v40  ;;  %v7379_v42 = vsel %vm1280_vm4, %v6870_v33, %v5385_v31  ;;  %v11513_v40 = vld [vmem:[#allocation9_spill] sm:$0xff] }
 0x39e   :  { %1254 = vrot.lane.b32.xlu0 %v7245_v38, %s5752_s14  ;;  %5517 = vrot.lane.b32.xlu2 %v5516_v39, %s5753_s15  ;;  %11505 = vst [vmem:[#allocation112_spill] sm:$0xff] %v7344_v28  ;;  %v11507_v39 = vld [vmem:[#allocation43_spill] sm:$0xff] }
 0x39f   :  { %1984 = vmatmul.f32.gmra.mxu3 %v7342_v12  ;;  %2207 = vmatmul.f32.gmra.mxu1 %v11506_v43  ;;  %v1066_v51 = vrot.slane %v11507_v39, 2  ;;  %11508 = vst [vmem:[#allocation7_spill] sm:$0xff] %v7360_v59  ;;  %v7362_v43 = vpop.f32.mrf.mxu0 }
 0x3a0   :  { %v5393_v20 = vpop.permute.xlu0 %5392  ;;  %11509 = vst [vmem:[#allocation43_spill] sm:$0xff] %v7362_v43 }
 0x3a1   :  { %4975 = vmatmul.msk.f32.gmra.mxu0 %vm1280_vm4, %v7327_v37  ;;  %1256 = vrot.lane.b32.xlu1 %v7311_v27, %s5752_s14  ;;  %v7369_v30 = vsel %vm1007_vm5, %v1064_v55, %v1066_v51  ;;  %v7375_v23 = vpop.f32.mrf.mxu1  ;;  %v5394_v49 = vunpack.i.l.bf16 %v5393_v20  ;;  %11512 = vst [vmem:[#allocation113_spill] sm:$0xff] %v7379_v42  ;;  %v1530_v55 = vld [vmem:[%s11138_s1 + $0x3c8] sm:$0xff]  ;;  %v7393_v33 = vpop.permute.xlu2 %5407  ;;  %v1068_v37 = vrot.slane %v6586_v11, 2  ;;  %v11518_v11 = vld [vmem:[#allocation12_spill] sm:$0xff] }
 0x3a2   :  { %11511 = vst [vmem:[#allocation46_spill] sm:$0xff] %v7375_v23  ;;  %v5531_v51 = vpack.i.bf16 %v7369_v30, %v7366_v32  ;;  %2530 = vmatpush.msra.mxu0 %v1530_v55  ;;  %v11515_v23 = vld [vmem:[#allocation51_spill] sm:$0xff]  ;;  %v1496_v55 = vld [vmem:[%s11138_s1 + $0x2b8] sm:$0xff] }
 0x3a3   :  { %v5398_v39 = vpop.permute.xlu1 %5397  ;;  %2418 = vmatpush.msrb.mxu3 %v1496_v55  ;;  %v1528_v55 = vld [vmem:[%s11138_s1 + $0x3b8] sm:$0xff] }
 0x3a4   :  { %1874 = vmatmul.f32.gmra.mxu2 %v7360_v59  ;;  %v5399_v31 = vunpack.i.l.bf16 %v5398_v39  ;;  %v11516_v59 = vld [vmem:[#allocation52_spill] sm:$0xff]  ;;  %2531 = vmatpush.msra.mxu0 %v1528_v55  ;;  %v1462_v55 = vld [vmem:[%s11138_s1 + $0x1a8] sm:$0xff] }
 0x3a5   :  { %v1069_v12 = vrot.slane %v11516_v59, 2 }
 0x3a6   :  { %5527 = vrot.lane.b32.xlu0 %v11510_v9, %s5755_s29  ;;  %5522 = vrot.lane.b32.xlu2 %v11510_v9, %s5756_s30  ;;  %v5389_v9 = vunpack.i.l.bf16 %v7291_v34 }
 0x3a7   :  { %1987 = vmatmul.f32.gmra.mxu3 %v7379_v42  ;;  %2210 = vmatmul.f32.gmra.mxu1 %v11513_v40  ;;  %v1071_v42 = vrot.slane %v11515_v23, 2  ;;  %v7416_v23 = vsel %vm1280_vm4, %v6906_v63, %v5399_v31  ;;  %v7431_v63 = vsel %vm1007_vm5, %v1068_v37, %v1069_v12  ;;  %v5400_v31 = vunpack.i.h.bf16 %v5398_v39 }
 0x3a8   :  { %v7383_v36 = vpop.permute.xlu0 %1224  ;;  %v7397_v40 = vsel %vm1280_vm4, %v5389_v9, %v5394_v49  ;;  %v5395_v49 = vunpack.i.h.bf16 %v5393_v20 }
 0x3a9   :  { %11514 = vst [vmem:[#allocation9_spill] sm:$0xff] %v7383_v36  ;;  %4976 = vmatmul.msk.f32.gmra.mxu0 %vm1280_vm4, %v7344_v28  ;;  %5532 = vrot.lane.b32.xlu1 %v5531_v51, %s5753_s15  ;;  %v1464_v28 = vld [vmem:[%s11138_s1 + $0x1b8] sm:$0xff]  ;;  %v7408_v51 = vpop.f32.mrf.mxu0  ;;  %v7425_v9 = vpop.f32.mrf.mxu1  ;;  %v7434_v20 = vsel %vm1007_vm5, %v1069_v12, %v1071_v42  ;;  %v7454_v39 = vsel %vm1280_vm4, %v6909_v35, %v5400_v31 }
 0x3aa   :  { %11517 = vst [vmem:[#allocation51_spill] sm:$0xff] %v7408_v51  ;;  %2305 = vmatpush.msrb.mxu2 %v1464_v28  ;;  %v5390_v51 = vunpack.i.h.bf16 %v7291_v34  ;;  %v11520_v28 = vld [vmem:[#allocation53_spill] sm:$0xff]  ;;  %v5546_v37 = vpack.i.bf16 %v7434_v20, %v7431_v63  ;;  %v1548_v35 = vld [vmem:[%s11138_s1 + $0x458] sm:$0xff] }
 0x3ab   :  { %v7399_v43 = vpop.permute.xlu1 %5402  ;;  %11519 = vst [vmem:[#allocation52_spill] sm:$0xff] %v7425_v9  ;;  %v7441_v9 = vpop.permute.xlu2 %1228  ;;  %2650 = vmatpush.msra.mxu1 %v1548_v35 }
 0x3ac   :  { %1877 = vmatmul.f32.gmra.mxu2 %v7397_v40  ;;  %11522 = vst [vmem:[#allocation53_spill] sm:$0xff] %v7441_v9  ;;  %v5404_v12 = vunpack.i.l.bf16 %v7399_v43 }
 0x3ad   :  { %11524 = vst [vmem:[#allocation115_spill] sm:$0xff] %v7454_v39  ;;  %2306 = vmatpush.msrb.mxu2 %v1462_v55  ;;  %v5410_v55 = vunpack.i.h.bf16 %v7393_v33 }
 0x3ae   :  { %1260 = vrot.lane.b32.xlu0 %v7366_v32, %s5752_s14  ;;  %1258 = vrot.lane.b32.xlu2 %v7314_v10, %s5752_s14 }
 0x3af   :  { %1990 = vmatmul.f32.gmra.mxu3 %v7416_v23  ;;  %2213 = vmatmul.f32.gmra.mxu1 %v11518_v11  ;;  %v7439_v11 = vsel %vm1280_vm4, %v5390_v51, %v5395_v49  ;;  %v11526_v51 = vld [vmem:[#allocation13_spill] sm:$0xff] }
 0x3b0   :  { %v7420_v59 = vpop.permute.xlu0 %5412  ;;  %11521 = vst [vmem:[#allocation12_spill] sm:$0xff] %v7439_v11 }
 0x3b1   :  { %4977 = vmatmul.msk.f32.gmra.mxu0 %vm1280_vm4, %v7383_v36  ;;  %5537 = vrot.lane.b32.xlu1 %v11520_v28, %s5756_s30  ;;  %v7456_v42 = vpop.f32.mrf.mxu0  ;;  %v7473_v31 = vpop.f32.mrf.mxu1  ;;  %v1073_v36 = vrot.slane %v6640_v47, 2  ;;  %v11532_v47 = vld [vmem:[#allocation16_spill] sm:$0xff] }
 0x3b2   :  { %11525 = vst [vmem:[#allocation116_spill] sm:$0xff] %v7456_v42 }
 0x3b3   :  { %v7443_v34 = vpop.permute.xlu1 %1226  ;;  %11527 = vst [vmem:[#allocation13_spill] sm:$0xff] %v7473_v31  ;;  %v1074_v31 = vrot.slane %v6652_v3, 2  ;;  %v1494_v3 = vld [vmem:[%s11138_s1 + $0x2a8] sm:$0xff] }
 0x3b4   :  { %11523 = vst [vmem:[#allocation114_spill] sm:$0xff] %v7443_v34  ;;  %1880 = vmatmul.f32.gmra.mxu2 %v7439_v11  ;;  %v7488_v11 = vpop.permute.xlu2 %5427  ;;  %2419 = vmatpush.msrb.mxu3 %v1494_v3  ;;  %v1078_v3 = vrot.slane %v6692_v52, 2 }
 0x3b6   :  { %5547 = vrot.lane.b32.xlu0 %v5546_v37, %s5753_s15  ;;  %5542 = vrot.lane.b32.xlu2 %v11520_v28, %s5755_s29  ;;  %v5409_v28 = vunpack.i.l.bf16 %v7393_v33  ;;  %v5414_v37 = vunpack.i.l.bf16 %v7420_v59 }
 0x3b7   :  { %1993 = vmatmul.f32.gmra.mxu3 %v7454_v39  ;;  %2216 = vmatmul.f32.gmra.mxu1 %v11526_v51 }
 0x3b8   :  { %v7460_v49 = vpop.permute.xlu0 %5417  ;;  %v7477_v51 = vsel %vm1280_vm4, %v5404_v12, %v5409_v28  ;;  %v11530_v12 = vld [vmem:[#allocation59_spill] sm:$0xff]  ;;  %v5405_v28 = vunpack.i.h.bf16 %v7399_v43  ;;  %v7497_v35 = vsel %vm1280_vm4, %v6938_v4, %v5414_v37  ;;  %v7512_v4 = vsel %vm1007_vm5, %v1073_v36, %v1074_v31 }
 0x3b9   :  { %4978 = vmatmul.msk.f32.gmra.mxu0 %vm1280_vm4, %v7443_v34  ;;  %1262 = vrot.lane.b32.xlu1 %v7369_v30, %s5752_s14  ;;  %11528 = vst [vmem:[#allocation117_spill] sm:$0xff] %v7477_v51  ;;  %v11529_v34 = vld [vmem:[#allocation57_spill] sm:$0xff]  ;;  %v5415_v37 = vunpack.i.h.bf16 %v7420_v59 }
 0x3ba   :  { %v1076_v39 = vrot.slane %v11529_v34, 2  ;;  %v7499_v34 = vpop.f32.mrf.mxu0 }
 0x3bb   :  { %v7479_v42 = vpop.permute.xlu1 %5422  ;;  %11531 = vst [vmem:[#allocation57_spill] sm:$0xff] %v7499_v34  ;;  %v7528_v34 = vpop.f32.mrf.mxu1  ;;  %v7536_v59 = vsel %vm1280_vm4, %v6941_v5, %v5415_v37  ;;  %v5429_v37 = vunpack.i.l.bf16 %v7488_v11 }
 0x3bc   :  { %1883 = vmatmul.f32.gmra.mxu2 %v7477_v51  ;;  %v7515_v43 = vsel %vm1007_vm5, %v1074_v31, %v1076_v39  ;;  %11535 = vst [vmem:[#allocation118_spill] sm:$0xff] %v7528_v34  ;;  %v5424_v39 = vunpack.i.l.bf16 %v7479_v42  ;;  %v7538_v31 = vpop.permute.xlu2 %5432 }
 0x3bd   :  { %v5561_v36 = vpack.i.bf16 %v7515_v43, %v7512_v4 }
 0x3be   :  { %5552 = vrot.lane.b32.xlu0 %v11530_v12, %s5756_s30  ;;  %1264 = vrot.lane.b32.xlu2 %v7431_v63, %s5752_s14 }
 0x3bf   :  { %1996 = vmatmul.f32.gmra.mxu3 %v7497_v35  ;;  %2219 = vmatmul.f32.gmra.mxu1 %v11532_v47  ;;  %v7521_v47 = vsel %vm1280_vm4, %v5405_v28, %v5410_v55  ;;  %v1526_v28 = vld [vmem:[%s11138_s1 + $0x3a8] sm:$0xff]  ;;  %v1079_v55 = vrot.slane %v6695_v26, 2 }
 0x3c0   :  { %v7507_v51 = vpop.permute.xlu0 %1230  ;;  %2532 = vmatpush.msra.mxu0 %v1526_v28 }
 0x3c1   :  { %11533 = vst [vmem:[#allocation59_spill] sm:$0xff] %v7507_v51  ;;  %4979 = vmatmul.msk.f32.gmra.mxu0 %vm1280_vm4, %v7441_v9  ;;  %5557 = vrot.lane.b32.xlu1 %v11530_v12, %s5755_s29  ;;  %v11536_v12 = vld [vmem:[#allocation17_spill] sm:$0xff]  ;;  %v5419_v9 = vunpack.i.l.bf16 %v7460_v49 }
 0x3c2   :  { %v7551_v5 = vpop.f32.mrf.mxu0 }
 0x3c3   :  { %v7523_v33 = vpop.permute.xlu1 %1232  ;;  %11538 = vst [vmem:[#allocation17_spill] sm:$0xff] %v7551_v5  ;;  %v7559_v52 = vsel %vm1280_vm4, %v5419_v9, %v5424_v39  ;;  %v7567_v5 = vpop.f32.mrf.mxu1  ;;  %v11541_v9 = vld [vmem:[#allocation65_spill] sm:$0xff]  ;;  %v5425_v39 = vunpack.i.h.bf16 %v7479_v42 }
 0x3c4   :  { %11534 = vst [vmem:[#allocation16_spill] sm:$0xff] %v7523_v33  ;;  %1886 = vmatmul.f32.gmra.mxu2 %v7521_v47  ;;  %v7594_v42 = vpop.permute.xlu2 %1234 }
 0x3c5   :  { %11540 = vst [vmem:[#allocation119_spill] sm:$0xff] %v7567_v5  ;;  %v5434_v5 = vunpack.i.l.bf16 %v7538_v31 }
 0x3c6   :  { %1266 = vrot.lane.b32.xlu0 %v7434_v20, %s5752_s14  ;;  %5562 = vrot.lane.b32.xlu2 %v5561_v36, %s5753_s15  ;;  %v11537_v36 = vld [vmem:[#allocation62_spill] sm:$0xff]  ;;  %11543 = vst [vmem:[#allocation65_spill] sm:$0xff] %v7594_v42 }
 0x3c7   :  { %1999 = vmatmul.f32.gmra.mxu3 %v7536_v59  ;;  %2222 = vmatmul.f32.gmra.mxu1 %v11536_v12  ;;  %v1081_v34 = vrot.slane %v11537_v36, 2  ;;  %11539 = vst [vmem:[#allocation62_spill] sm:$0xff] %v7559_v52  ;;  %v1460_v36 = vld [vmem:[%s11138_s1 + $0x198] sm:$0xff] }
 0x3c8   :  { %v7556_v12 = vpop.permute.xlu0 %5437  ;;  %2307 = vmatpush.msrb.mxu2 %v1460_v36  ;;  %v5420_v36 = vunpack.i.h.bf16 %v7460_v49 }
 0x3c9   :  { %4980 = vmatmul.msk.f32.gmra.mxu0 %vm1280_vm4, %v7507_v51  ;;  %1268 = vrot.lane.b32.xlu1 %v7512_v4, %s5752_s14  ;;  %v7570_v51 = vsel %vm1007_vm5, %v1078_v3, %v1079_v55  ;;  %v7573_v28 = vsel %vm1007_vm5, %v1079_v55, %v1081_v34  ;;  %v11542_v3 = vld [vmem:[#allocation19_spill] sm:$0xff]  ;;  %v1492_v55 = vld [vmem:[%s11138_s1 + $0x298] sm:$0xff] }
 0x3ca   :  { %v5576_v34 = vpack.i.bf16 %v7573_v28, %v7570_v51  ;;  %2420 = vmatpush.msrb.mxu3 %v1492_v55  ;;  %v11549_v55 = vld [vmem:[#allocation21_spill] sm:$0xff] }
 0x3cb   :  { %v7561_v26 = vpop.permute.xlu1 %5442 }
 0x3cc   :  { %1889 = vmatmul.f32.gmra.mxu2 %v7559_v52  ;;  %v7582_v52 = vsel %vm1280_vm4, %v6966_v24, %v5429_v37  ;;  %v5430_v24 = vunpack.i.h.bf16 %v7488_v11  ;;  %v7599_v37 = vsel %vm1280_vm4, %v5420_v36, %v5425_v39  ;;  %v5439_v11 = vunpack.i.l.bf16 %v7556_v12  ;;  %v1524_v36 = vld [vmem:[%s11138_s1 + $0x398] sm:$0xff] }
 0x3cd   :  { %11544 = vst [vmem:[#allocation19_spill] sm:$0xff] %v7599_v37  ;;  %2533 = vmatpush.msra.mxu0 %v1524_v36 }
 0x3ce   :  { %5572 = vrot.lane.b32.xlu0 %v11541_v9, %s5755_s29  ;;  %5567 = vrot.lane.b32.xlu2 %v11541_v9, %s5756_s30  ;;  %v7601_v9 = vpop.f32.mrf.mxu0  ;;  %v7617_v39 = vsel %vm1280_vm4, %v6969_v2, %v5430_v24  ;;  %v1546_v2 = vld [vmem:[%s11138_s1 + $0x448] sm:$0xff]  ;;  %v5444_v24 = vunpack.i.l.bf16 %v7561_v26 }
 0x3cf   :  { %2002 = vmatmul.f32.gmra.mxu3 %v7582_v52  ;;  %2225 = vmatmul.f32.gmra.mxu1 %v11542_v3  ;;  %11545 = vst [vmem:[#allocation120_spill] sm:$0xff] %v7601_v9  ;;  %v1084_v9 = vrot.slane %v6784_v17, 2  ;;  %v1458_v17 = vld [vmem:[%s11138_s1 + $0x188] sm:$0xff] }
 0x3d0   :  { %v7604_v3 = vpop.permute.xlu0 %1236  ;;  %11548 = vst [vmem:[#allocation123_spill] sm:$0xff] %v7617_v39  ;;  %2651 = vmatpush.msra.mxu1 %v1546_v2  ;;  %2308 = vmatpush.msrb.mxu2 %v1458_v17 }
 0x3d1   :  { %4981 = vmatmul.msk.f32.gmra.mxu0 %vm1280_vm4, %v7523_v33  ;;  %5577 = vrot.lane.b32.xlu1 %v5576_v34, %s5753_s15  ;;  %11546 = vst [vmem:[#allocation121_spill] sm:$0xff] %v7604_v3  ;;  %v7612_v34 = vpop.f32.mrf.mxu1 }
 0x3d2   :  { %11547 = vst [vmem:[#allocation122_spill] sm:$0xff] %v7612_v34  ;;  %v1083_v34 = vrot.slane %v6787_v18, 2 }
 0x3d3   :  { %v7606_v49 = vpop.permute.xlu1 %5447 }
 0x3d4   :  { %1892 = vmatmul.f32.gmra.mxu2 %v7599_v37  ;;  %v7640_v18 = vsel %vm1007_vm5, %v1083_v34, %v1084_v9  ;;  %v7656_v34 = vsel %vm1280_vm4, %v7020_v46, %v5444_v24  ;;  %v5445_v46 = vunpack.i.h.bf16 %v7561_v26  ;;  %v5449_v17 = vunpack.i.l.bf16 %v7606_v49 }
 0x3d5   :  { %11554 = vst [vmem:[#allocation125_spill] sm:$0xff] %v7656_v34 }
 0x3d6   :  { %1272 = vrot.lane.b32.xlu0 %v7570_v51, %s5752_s14  ;;  %1270 = vrot.lane.b32.xlu2 %v7515_v43, %s5752_s14  ;;  %v7688_v26 = vsel %vm1280_vm4, %v7023_v56, %v5445_v46 }
 0x3d7   :  { %2005 = vmatmul.f32.gmra.mxu3 %v7617_v39  ;;  %2228 = vmatmul.f32.gmra.mxu1 %v11549_v55  ;;  %v7636_v55 = vsel %vm1280_vm4, %v5434_v5, %v5439_v11  ;;  %v5453_v39 = vpop.permute.xlu2 %5452  ;;  %v5440_v11 = vunpack.i.h.bf16 %v7556_v12  ;;  %v5435_v12 = vunpack.i.h.bf16 %v7538_v31  ;;  %v11560_v31 = vld [vmem:[#allocation82_spill] sm:$0xff] }
 0x3d8   :  { %11550 = vst [vmem:[#allocation21_spill] sm:$0xff] %v7636_v55  ;;  %v5458_v36 = vpop.permute.xlu0 %5457 }
 0x3d9   :  { %4982 = vmatmul.msk.f32.gmra.mxu0 %vm1280_vm4, %v7594_v42  ;;  %5582 = vrot.lane.b32.xlu1 %v6803_v48, %s5756_s30  ;;  %v7645_v42 = vpop.f32.mrf.mxu0  ;;  %v11552_v48 = vld [vmem:[#allocation81_spill] sm:$0xff]  ;;  %v7651_v5 = vpop.f32.mrf.mxu1  ;;  %v7673_v24 = vsel %vm1280_vm4, %v5435_v12, %v5440_v11  ;;  %11561 = vst [vmem:[#allocation82_spill] sm:$0xff] %v7688_v26  ;;  %v5454_v12 = vunpack.i.l.bf16 %v5453_v39  ;;  %v5459_v56 = vunpack.i.l.bf16 %v5458_v36  ;;  %s5758_s30 = smov 100  }
 0x3da   :  { %11551 = vst [vmem:[#allocation124_spill] sm:$0xff] %v7645_v42  ;;  %v11556_v42 = vld [vmem:[#allocation23_spill] sm:$0xff] }
 0x3db   :  { %11553 = vst [vmem:[#allocation81_spill] sm:$0xff] %v7651_v5  ;;  %v7658_v2 = vpop.permute.xlu1 %1238  ;;  %v7704_v46 = vsel %vm1280_vm4, %v5449_v17, %v5454_v12  ;;  %v11567_v17 = vld [vmem:[#allocation27_spill] sm:$0xff]  ;;  %v1488_v12 = vld [vmem:[%s11138_s1 + $0x278] sm:$0xff] }
 0x3dc   :  { %1895 = vmatmul.f32.gmra.mxu2 %v7636_v55  ;;  %11555 = vst [vmem:[#allocation126_spill] sm:$0xff] %v7658_v2  ;;  %v11557_v55 = vld [vmem:[#allocation80_spill] sm:$0xff] }
 0x3dd   :  { %v1086_v5 = vrot.slane %v11557_v55, 2  ;;  %11558 = vst [vmem:[#allocation23_spill] sm:$0xff] %v7673_v24 }
 0x3de   :  { %1180 = vrot.lane.b32.xlu0 %v7640_v18, %s5753_s15  ;;  %971 = vrot.lane.b32.xlu2 %v11552_v48, %s5755_s29  ;;  %v1490_v48 = vld [vmem:[%s11138_s1 + $0x288] sm:$0xff]  ;;  %11565 = vst [vmem:[#allocation128_spill] sm:$0xff] %v7704_v46 }
 0x3df   :  { %2008 = vmatmul.f32.gmra.mxu3 %v7656_v34  ;;  %2231 = vmatmul.f32.gmra.mxu1 %v11556_v42  ;;  %v7677_v42 = vsel %vm1007_vm5, %v1084_v9, %v1086_v5  ;;  %v7679_v55 = vpop.permute.xlu2 %1240  ;;  %v11563_v9 = vld [vmem:[#allocation25_spill] sm:$0xff]  ;;  %v1522_v5 = vld [vmem:[%s11138_s1 + $0x388] sm:$0xff]  ;;  %vm3243_vm5 = vcmask 1031168  }
 0x3e0   :  { %2421 = vmatpush.msrb.mxu3 %v1490_v48  ;;  %11559 = vst [vmem:[#allocation80_spill] sm:$0xff] %v7679_v55  ;;  %2534 = vmatpush.msra.mxu0 %v1522_v5 }
 0x3e1   :  { %4983 = vmatmul.msk.f32.gmra.mxu0 %vm1280_vm4, %v7604_v3  ;;  %1274 = vrot.lane.b32.xlu1 %v7573_v28, %s5752_s14  ;;  %v7690_v11 = vpop.f32.mrf.mxu0  ;;  %v7697_v48 = vpop.f32.mrf.mxu1 }
 0x3e2   :  { %11562 = vst [vmem:[#allocation127_spill] sm:$0xff] %v7690_v11  ;;  %v7715_v11 = vsel %vm1280_vm4, %v7079_v45, %v5459_v56  ;;  %2422 = vmatpush.msrb.mxu3 %v1488_v12  ;;  %v5460_v45 = vunpack.i.h.bf16 %v5458_v36  ;;  %v11574_v12 = vld [vmem:[#allocation29_spill] sm:$0xff]  ;;  %v1520_v36 = vld [vmem:[%s11138_s1 + $0x378] sm:$0xff] }
 0x3e3   :  { %11564 = vst [vmem:[#allocation25_spill] sm:$0xff] %v7697_v48  ;;  %v5468_v3 = vpop.permute.xlu1 %5467  ;;  %v5450_v48 = vunpack.i.h.bf16 %v7606_v49  ;;  %2535 = vmatpush.msra.mxu0 %v1520_v36  ;;  %v11579_v36 = vld [vmem:[#allocation31_spill] sm:$0xff] }
 0x3e4   :  { %1898 = vmatmul.f32.gmra.mxu2 %v7673_v24  ;;  %11566 = vst [vmem:[#allocation129_spill] sm:$0xff] %v7715_v11 }
 0x3e6   :  { %1182 = vrot.lane.b32.xlu0 %v7677_v42, %s5753_s15  ;;  %973 = vrot.lane.b32.xlu2 %v11560_v31, %s5755_s29  ;;  %v5463_v31 = vpop.permute.xlu0 %5462 }
 0x3e7   :  { %2011 = vmatmul.f32.gmra.mxu3 %v7688_v26  ;;  %2234 = vmatmul.f32.gmra.mxu1 %v11563_v9  ;;  %v1456_v9 = vld [vmem:[%s11138_s1 + $0x178] sm:$0xff]  ;;  %v5473_v5 = vpop.permute.xlu2 %5472 }
 0x3e8   :  { %2309 = vmatpush.msrb.mxu2 %v1456_v9 }
 0x3e9   :  { %4984 = vmatmul.msk.f32.gmra.mxu0 %vm1280_vm4, %v7658_v2  ;;  %1276 = vrot.lane.b32.xlu1 %v7640_v18, %s5752_s14  ;;  %v5455_v2 = vunpack.i.h.bf16 %v5453_v39  ;;  %v7724_v49 = vpop.f32.mrf.mxu0  ;;  %v7738_v39 = vsel %vm1280_vm4, %v7082_v41, %v5460_v45  ;;  %v5474_v45 = vunpack.i.l.bf16 %v5473_v5 }
 0x3ea   :  { %11568 = vst [vmem:[#allocation27_spill] sm:$0xff] %v7724_v49 }
 0x3eb   :  { %v7731_v9 = vsel %vm1280_vm4, %v5450_v48, %v5455_v2  ;;  %11573 = vst [vmem:[#allocation134_spill] sm:$0xff] %v7738_v39  ;;  %v1544_v2 = vld [vmem:[%s11138_s1 + $0x438] sm:$0xff]  ;;  %v7764_v49 = vsel %vm1280_vm4, %v7165_v7, %v5474_v45  ;;  %v1553_v7 = vld [vmem:[%s11139_s2] sm:$0x3] }
 0x3ec   :  { %1901 = vmatmul.f32.gmra.mxu2 %v7704_v46  ;;  %v7726_v46 = vpop.f32.mrf.mxu1  ;;  %11571 = vst [vmem:[#allocation132_spill] sm:$0xff] %v7731_v9  ;;  %2652 = vmatpush.msra.mxu1 %v1544_v2  ;;  %v5465_v2 = vunpack.i.h.bf16 %v5463_v31 }
 0x3ed   :  { %11569 = vst [vmem:[#allocation130_spill] sm:$0xff] %v7726_v46  ;;  %v5464_v46 = vunpack.i.l.bf16 %v5463_v31 }
 0x3ee   :  { %1278 = vrot.lane.b32.xlu2 %v7677_v42, %s5752_s14  ;;  %v7728_v56 = vpop.permute.xlu0 %1242  ;;  %11578 = vst [vmem:[#allocation137_spill] sm:$0xff] %v7764_v49  ;;  %s5766_s14 = smov 116  }
 0x3ef   :  { %2014 = vmatmul.f32.gmra.mxu3 %v7715_v11  ;;  %2237 = vmatmul.f32.gmra.mxu1 %v11567_v17  ;;  %11570 = vst [vmem:[#allocation131_spill] sm:$0xff] %v7728_v56  ;;  %v7733_v17 = vpop.permute.xlu1 %1244  ;;  %v5469_v11 = vunpack.i.l.bf16 %v5468_v3  ;;  %v7750_v48 = vpop.permute.xlu2 %5477 }
 0x3f0   :  { %11572 = vst [vmem:[#allocation133_spill] sm:$0xff] %v7733_v17 }
 0x3f1   :  { %4985 = vmatmul.msk.f32.gmra.mxu0 %vm1280_vm4, %v7679_v55  ;;  %v7752_v41 = vpop.f32.mrf.mxu0 }
 0x3f2   :  { %11575 = vst [vmem:[#allocation29_spill] sm:$0xff] %v7752_v41 }
 0x3f4   :  { %1904 = vmatmul.f32.gmra.mxu2 %v7731_v9  ;;  %v5470_v9 = vunpack.i.h.bf16 %v5468_v3  ;;  %v1486_v3 = vld [vmem:[%s11138_s1 + $0x268] sm:$0xff] }
 0x3f5   :  { %2423 = vmatpush.msrb.mxu3 %v1486_v3  ;;  %v11587_v3 = vld [vmem:[#allocation66_spill] sm:$0xff] }
 0x3f6   :  { %v5483_v55 = vpop.permute.xlu0 %5482  ;;  %v7780_v45 = vsel %vm1280_vm4, %v5465_v2, %v5470_v9  ;;  %v11586_v2 = vld [vmem:[#allocation33_spill] sm:$0xff] }
 0x3f7   :  { %2017 = vmatmul.f32.gmra.mxu3 %v7738_v39  ;;  %2240 = vmatmul.f32.gmra.mxu1 %v11574_v12  ;;  %v7755_v12 = vsel %vm1280_vm4, %v5464_v46, %v5469_v11  ;;  %v7758_v39 = vpop.f32.mrf.mxu1  ;;  %v1454_v11 = vld [vmem:[%s11138_s1 + $0x168] sm:$0xff]  ;;  %v5475_v46 = vunpack.i.h.bf16 %v5473_v5  ;;  %11580 = vst [vmem:[#allocation31_spill] sm:$0xff] %v7780_v45  ;;  %v7782_v31 = vpop.permute.xlu2 %1246 }
 0x3f8   :  { %11576 = vst [vmem:[#allocation135_spill] sm:$0xff] %v7755_v12  ;;  %2310 = vmatpush.msrb.mxu2 %v1454_v11  ;;  %v5479_v11 = vunpack.i.l.bf16 %v7750_v48 }
 0x3f9   :  { %4986 = vmatmul.msk.f32.gmra.mxu0 %vm1280_vm4, %v7728_v56  ;;  %11577 = vst [vmem:[#allocation136_spill] sm:$0xff] %v7758_v39  ;;  %v7760_v56 = vpop.permute.xlu1 %5487  ;;  %v7795_v5 = vsel %vm1280_vm4, %v7168_v16, %v5475_v46 }
 0x3fa   :  { %11581 = vst [vmem:[#allocation138_spill] sm:$0xff] %v7782_v31  ;;  %v5489_v16 = vunpack.i.l.bf16 %v7760_v56 }
 0x3fb   :  { %11585 = vst [vmem:[#allocation142_spill] sm:$0xff] %v7795_v5 }
 0x3fc   :  { %1907 = vmatmul.f32.gmra.mxu2 %v7755_v12  ;;  %v5484_v12 = vunpack.i.l.bf16 %v5483_v55  ;;  %v7821_v26 = vsel %vm1280_vm4, %v7205_v13, %v5489_v16  ;;  %v1452_v13 = vld [vmem:[%s11138_s1 + $0x158] sm:$0xff] }
 0x3fd   :  { %2311 = vmatpush.msrb.mxu2 %v1452_v13 }
 0x3fe   :  { %v7791_v41 = vpop.permute.xlu0 %1248  ;;  %v7811_v46 = vsel %vm1280_vm4, %v5479_v11, %v5484_v12  ;;  %v11592_v12 = vld [vmem:[#allocation36_spill] sm:$0xff] }
 0x3ff   :  { %2020 = vmatmul.f32.gmra.mxu3 %v7764_v49  ;;  %2243 = vmatmul.f32.gmra.mxu1 %v11579_v36  ;;  %v7784_v36 = vpop.f32.mrf.mxu0  ;;  %v7789_v49 = vperm.slane %v1553_v7, 0  ;;  %11584 = vst [vmem:[#allocation141_spill] sm:$0xff] %v7791_v41 }
 0x400   :  { %11582 = vst [vmem:[#allocation139_spill] sm:$0xff] %v7784_v36 }
 0x401   :  { %4987 = vmatmul.msk.f32.gmra.mxu0 %vm1280_vm4, %v7733_v17  ;;  %v7797_v9 = vpop.permute.xlu1 %5492  ;;  %v1641_v7 = vadd.f32 %v11587_v3, %v7789_v49  ;;  %11588 = vst [vmem:[#allocation33_spill] sm:$0xff] %v7811_v46  ;;  %v5485_v3 = vunpack.i.h.bf16 %v5483_v55 }
 0x402   :  { %v5494_v34 = vunpack.i.l.bf16 %v7797_v9 }
 0x404   :  { %1910 = vmatmul.f32.gmra.mxu2 %v7780_v45  ;;  %v7787_v17 = vpop.f32.mrf.mxu1  ;;  %v1518_v45 = vld [vmem:[%s11138_s1 + $0x368] sm:$0xff] }
 0x405   :  { %11583 = vst [vmem:[#allocation140_spill] sm:$0xff] %v7787_v17  ;;  %2536 = vmatpush.msra.mxu0 %v1518_v45  ;;  %v5480_v45 = vunpack.i.h.bf16 %v7750_v48  ;;  %v5490_v48 = vunpack.i.h.bf16 %v7760_v56 }
 0x406   :  { %v7826_v11 = vpop.permute.xlu0 %5502 }
 0x407   :  { %2023 = vmatmul.f32.gmra.mxu3 %v7795_v5  ;;  %2246 = vmatmul.f32.gmra.mxu1 %v11586_v2  ;;  %v11590_v5 = vld [vmem:[#allocation69_spill] sm:$0xff]  ;;  %v2092_v17 = vpop.f32.mrf.mxu0  ;;  %v7842_v16 = vsel %vm1280_vm4, %v5480_v45, %v5485_v3  ;;  %v7853_v56 = vsel %vm1280_vm4, %v7208_v58, %v5490_v48  ;;  %v1516_v58 = vld [vmem:[%s11138_s1 + $0x358] sm:$0xff] }
 0x408   :  { %v1754_v36 = vadd.f32 %v11590_v5, %v1641_v7  ;;  %11591 = vst [vmem:[#allocation69_spill] sm:$0xff] %v7821_v26  ;;  %v11593_v5 = vld [vmem:[#allocation67_spill] sm:$0xff]  ;;  %2537 = vmatpush.msra.mxu0 %v1516_v58 }
 0x409   :  { %4988 = vmatmul.msk.f32.gmra.mxu0 %vm1280_vm4, %v7782_v31  ;;  %v7817_v31 = vpop.permute.xlu2 %5497  ;;  %v1644_v55 = vadd.f32 %v11593_v5, %v7789_v49  ;;  %v7832_v7 = vpop.permute.xlu1 %1250  ;;  %11595 = vst [vmem:[#allocation67_spill] sm:$0xff] %v7842_v16 }
 0x40a   :  { %11594 = vst [vmem:[#allocation36_spill] sm:$0xff] %v7832_v7  ;;  %v5499_v13 = vunpack.i.l.bf16 %v7817_v31  ;;  %v5500_v58 = vunpack.i.h.bf16 %v7817_v31 }
 0x40b   :  { %11599 = vst [vmem:[#allocation144_spill] sm:$0xff] %v7853_v56 }
 0x40c   :  { %1913 = vmatmul.f32.gmra.mxu2 %v7811_v46  ;;  %v7814_v2 = vpop.f32.mrf.mxu1  ;;  %v7874_v48 = vsel %vm1280_vm4, %v5494_v34, %v5499_v13 }
 0x40d   :  { %11589 = vst [vmem:[#allocation66_spill] sm:$0xff] %v7814_v2 }
 0x40f   :  { %v1866_v39 = vpop.f32.mrf.mxu2  ;;  %2026 = vmatmul.f32.gmra.mxu3 %v7821_v26  ;;  %2249 = vmatmul.f32.gmra.mxu1 %v11592_v12 }
 0x410   :  { %v1867_v24 = vadd.f32 %v1866_v39, %v1754_v36  ;;  %v1484_v39 = vld [vmem:[%s11138_s1 + $0x258] sm:$0xff] }
 0x411   :  { %4989 = vmatmul.msk.f32.gmra.mxu0 %vm1280_vm4, %v7791_v41  ;;  %2424 = vmatpush.msrb.mxu3 %v1484_v39  ;;  %v11597_v41 = vld [vmem:[#allocation71_spill] sm:$0xff]  ;;  %v7855_v3 = vpop.permute.xlu2 %1252 }
 0x412   :  { %v1979_v36 = vpop.f32.mrf.mxu3  ;;  %v1757_v26 = vadd.f32 %v11597_v41, %v1644_v55  ;;  %11600 = vst [vmem:[#allocation145_spill] sm:$0xff] %v7855_v3  ;;  %v7871_v55 = vpop.permute.xlu0 %5507 }
 0x413   :  { %v1980_v12 = vadd.f32 %v1979_v36, %v1867_v24  ;;  %v11601_v24 = vld [vmem:[#allocation41_spill] sm:$0xff]  ;;  %v7876_v36 = vpop.permute.xlu1 %5512 }
 0x414   :  { %1916 = vmatmul.f32.gmra.mxu2 %v7842_v16  ;;  %v7845_v5 = vpop.f32.mrf.mxu1  ;;  %11603 = vst [vmem:[#allocation41_spill] sm:$0xff] %v7874_v48 }
 0x415   :  { %11596 = vst [vmem:[#allocation143_spill] sm:$0xff] %v7845_v5  ;;  %v7848_v46 = vadd.f32 %v2092_v17, %v1980_v12  ;;  %v11602_v17 = vld [vmem:[#allocation68_spill] sm:$0xff]  ;;  %v5495_v5 = vunpack.i.h.bf16 %v7797_v9  ;;  %v5505_v9 = vunpack.i.h.bf16 %v7826_v11 }
 0x416   :  { %v2095_v2 = vpop.f32.mrf.mxu0  ;;  %v1647_v41 = vadd.f32 %v11602_v17, %v7789_v49  ;;  %v11604_v17 = vld [vmem:[#allocation72_spill] sm:$0xff] }
 0x417   :  { %11598 = vst [vmem:[#allocation71_spill] sm:$0xff] %v7848_v46  ;;  %v1869_v33 = vpop.f32.mrf.mxu2  ;;  %2029 = vmatmul.f32.gmra.mxu3 %v7853_v56  ;;  %2252 = vmatmul.f32.gmra.mxu1 %v11601_v24  ;;  %v7906_v31 = vsel %vm1280_vm4, %v5495_v5, %v5500_v58  ;;  %v7921_v58 = vsel %vm1280_vm4, %v7245_v38, %v5505_v9 }
 0x418   :  { %v1870_v45 = vadd.f32 %v1869_v33, %v1757_v26  ;;  %v1542_v33 = vld [vmem:[%s11138_s1 + $0x428] sm:$0xff]  ;;  %v5504_v26 = vunpack.i.l.bf16 %v7826_v11  ;;  %11614 = vst [vmem:[#allocation147_spill] sm:$0xff] %v7921_v58 }
 0x419   :  { %4990 = vmatmul.msk.f32.gmra.mxu0 %vm1280_vm4, %v7832_v7  ;;  %2653 = vmatpush.msra.mxu1 %v1542_v33  ;;  %v1760_v7 = vadd.f32 %v11604_v17, %v1647_v41  ;;  %v7896_v33 = vpop.permute.xlu2 %5517  ;;  %v11611_v17 = vld [vmem:[#allocation77_spill] sm:$0xff] }
 0x41a   :  { %v1982_v39 = vpop.f32.mrf.mxu3  ;;  %v7887_v34 = vsel %vm1280_vm4, %v7242_v1, %v5504_v26  ;;  %v1450_v1 = vld [vmem:[%s11138_s1 + $0x148] sm:$0xff]  ;;  %v5519_v38 = vunpack.i.l.bf16 %v7896_v33 }
 0x41b   :  { %v1983_v12 = vadd.f32 %v1982_v39, %v1870_v45  ;;  %11606 = vst [vmem:[#allocation72_spill] sm:$0xff] %v7887_v34  ;;  %v11607_v45 = vld [vmem:[#allocation44_spill] sm:$0xff]  ;;  %2312 = vmatpush.msrb.mxu2 %v1450_v1  ;;  %v7909_v39 = vpop.permute.xlu0 %1254  ;;  %v11615_v1 = vld [vmem:[#allocation47_spill] sm:$0xff] }
 0x41c   :  { %1919 = vmatmul.f32.gmra.mxu2 %v7874_v48  ;;  %v7879_v24 = vpop.f32.mrf.mxu1  ;;  %11609 = vst [vmem:[#allocation44_spill] sm:$0xff] %v7906_v31 }
 0x41d   :  { %v7882_v56 = vadd.f32 %v2095_v2, %v1983_v12  ;;  %v11608_v2 = vld [vmem:[#allocation70_spill] sm:$0xff] }
 0x41e   :  { %v2098_v16 = vpop.f32.mrf.mxu0  ;;  %v1650_v41 = vadd.f32 %v11608_v2, %v7789_v49  ;;  %11610 = vst [vmem:[#allocation70_spill] sm:$0xff] %v7909_v39  ;;  %v7914_v2 = vpop.permute.xlu1 %1256 }
 0x41f   :  { %11605 = vst [vmem:[#allocation68_spill] sm:$0xff] %v7882_v56  ;;  %v1872_v37 = vpop.f32.mrf.mxu2  ;;  %2032 = vmatmul.f32.gmra.mxu3 %v7887_v34  ;;  %2255 = vmatmul.f32.gmra.mxu1 %v11607_v45  ;;  %v5514_v34 = vunpack.i.l.bf16 %v7876_v36 }
 0x420   :  { %v1873_v13 = vadd.f32 %v1872_v37, %v1760_v7  ;;  %v1482_v37 = vld [vmem:[%s11138_s1 + $0x248] sm:$0xff]  ;;  %v1763_v45 = vadd.f32 %v11611_v17, %v1650_v41  ;;  %11612 = vst [vmem:[#allocation77_spill] sm:$0xff] %v7914_v2 }
 0x421   :  { %4991 = vmatmul.msk.f32.gmra.mxu0 %vm1280_vm4, %v7855_v3  ;;  %2425 = vmatpush.msrb.mxu3 %v1482_v37  ;;  %v5509_v37 = vunpack.i.l.bf16 %v7871_v55  ;;  %v7937_v17 = vpop.permute.xlu2 %5522 }
 0x422   :  { %v1985_v7 = vpop.f32.mrf.mxu3 }
 0x423   :  { %v1986_v26 = vadd.f32 %v1985_v7, %v1873_v13  ;;  %v1514_v7 = vld [vmem:[%s11138_s1 + $0x348] sm:$0xff] }
 0x424   :  { %1922 = vmatmul.f32.gmra.mxu2 %v7906_v31  ;;  %v7911_v12 = vpop.f32.mrf.mxu1  ;;  %2538 = vmatpush.msra.mxu0 %v1514_v7  ;;  %v7946_v31 = vpop.permute.xlu0 %5527  ;;  %v11620_v7 = vld [vmem:[#allocation49_spill] sm:$0xff] }
 0x425   :  { %v7916_v3 = vadd.f32 %v2098_v16, %v1986_v26  ;;  %v11616_v16 = vld [vmem:[#allocation73_spill] sm:$0xff]  ;;  %v7935_v26 = vsel %vm1280_vm4, %v5509_v37, %v5514_v34  ;;  %v7950_v34 = vsel %vm1280_vm4, %v7311_v27, %v5519_v38  ;;  %v1448_v27 = vld [vmem:[%s11138_s1 + $0x138] sm:$0xff] }
 0x426   :  { %v2101_v11 = vpop.f32.mrf.mxu0  ;;  %v1653_v41 = vadd.f32 %v11616_v16, %v7789_v49  ;;  %11617 = vst [vmem:[#allocation47_spill] sm:$0xff] %v7935_v26  ;;  %v7952_v37 = vpop.permute.xlu1 %5532  ;;  %2313 = vmatpush.msrb.mxu2 %v1448_v27  ;;  %v5524_v27 = vunpack.i.l.bf16 %v7937_v17 }
 0x427   :  { %11613 = vst [vmem:[#allocation146_spill] sm:$0xff] %v7916_v3  ;;  %v1875_v5 = vpop.f32.mrf.mxu2  ;;  %2035 = vmatmul.f32.gmra.mxu3 %v7921_v58  ;;  %2258 = vmatmul.f32.gmra.mxu1 %v11615_v1  ;;  %v5515_v58 = vunpack.i.h.bf16 %v7876_v36  ;;  %v11621_v36 = vld [vmem:[#allocation79_spill] sm:$0xff] }
 0x428   :  { %v1876_v13 = vadd.f32 %v1875_v5, %v1763_v45  ;;  %v1766_v1 = vadd.f32 %v6816_v15, %v1653_v41  ;;  %11619 = vst [vmem:[#allocation148_spill] sm:$0xff] %v7950_v34  ;;  %v5510_v15 = vunpack.i.h.bf16 %v7871_v55  ;;  %v5520_v41 = vunpack.i.h.bf16 %v7896_v33 }
 0x429   :  { %4992 = vmatmul.msk.f32.gmra.mxu0 %vm1280_vm4, %v7909_v39  ;;  %v5529_v33 = vunpack.i.l.bf16 %v7946_v31 }
 0x42a   :  { %v1988_v9 = vpop.f32.mrf.mxu3 }
 0x42b   :  { %v1989_v45 = vadd.f32 %v1988_v9, %v1876_v13  ;;  %v7969_v9 = vsel %vm1280_vm4, %v5510_v15, %v5515_v58  ;;  %v7982_v58 = vsel %vm1280_vm4, %v7314_v10, %v5520_v41  ;;  %v1512_v10 = vld [vmem:[%s11138_s1 + $0x338] sm:$0xff]  ;;  %v5534_v41 = vunpack.i.l.bf16 %v7952_v37 }
 0x42c   :  { %1925 = vmatmul.f32.gmra.mxu2 %v7935_v26  ;;  %v7940_v5 = vpop.f32.mrf.mxu1  ;;  %11622 = vst [vmem:[#allocation49_spill] sm:$0xff] %v7969_v9  ;;  %2539 = vmatpush.msra.mxu0 %v1512_v10  ;;  %v5525_v10 = vunpack.i.h.bf16 %v7937_v17 }
 0x42d   :  { %v7943_v16 = vadd.f32 %v2101_v11, %v1989_v45  ;;  %v1656_v11 = vadd.f32 %v11621_v36, %v7789_v49  ;;  %11626 = vst [vmem:[#allocation151_spill] sm:$0xff] %v7982_v58 }
 0x42e   :  { %v2104_v39 = vpop.f32.mrf.mxu0 }
 0x42f   :  { %11618 = vst [vmem:[#allocation73_spill] sm:$0xff] %v7943_v16  ;;  %v1878_v48 = vpop.f32.mrf.mxu2  ;;  %2038 = vmatmul.f32.gmra.mxu3 %v7950_v34  ;;  %2261 = vmatmul.f32.gmra.mxu1 %v11620_v7  ;;  %v7975_v7 = vpop.permute.xlu2 %1258 }
 0x430   :  { %v1879_v13 = vadd.f32 %v1878_v48, %v1766_v1  ;;  %v1480_v48 = vld [vmem:[%s11138_s1 + $0x238] sm:$0xff]  ;;  %v1769_v1 = vadd.f32 %v6853_v21, %v1656_v11  ;;  %11624 = vst [vmem:[#allocation149_spill] sm:$0xff] %v7975_v7  ;;  %v7987_v21 = vpop.permute.xlu0 %1260 }
 0x431   :  { %4993 = vmatmul.msk.f32.gmra.mxu0 %vm1280_vm4, %v7914_v2  ;;  %2426 = vmatpush.msrb.mxu3 %v1480_v48  ;;  %v7993_v48 = vpop.permute.xlu1 %5537 }
 0x432   :  { %v1991_v38 = vpop.f32.mrf.mxu3 }
 0x433   :  { %v1992_v55 = vadd.f32 %v1991_v38, %v1879_v13  ;;  %v11627_v13 = vld [vmem:[#allocation54_spill] sm:$0xff] }
 0x434   :  { %1928 = vmatmul.f32.gmra.mxu2 %v7969_v9  ;;  %v7972_v45 = vpop.f32.mrf.mxu1  ;;  %11628 = vst [vmem:[#allocation54_spill] sm:$0xff] %v7987_v21  ;;  %v5530_v9 = vunpack.i.h.bf16 %v7946_v31  ;;  %v1446_v31 = vld [vmem:[%s11138_s1 + $0x128] sm:$0xff] }
 0x435   :  { %11623 = vst [vmem:[#allocation79_spill] sm:$0xff] %v7972_v45  ;;  %v7977_v36 = vadd.f32 %v2104_v39, %v1992_v55  ;;  %v11629_v39 = vld [vmem:[#allocation83_spill] sm:$0xff]  ;;  %v8003_v55 = vsel %vm1280_vm4, %v5524_v27, %v5529_v33  ;;  %v8014_v45 = vsel %vm1280_vm4, %v7366_v32, %v5534_v41  ;;  %v1478_v32 = vld [vmem:[%s11138_s1 + $0x228] sm:$0xff]  ;;  %2314 = vmatpush.msrb.mxu2 %v1446_v31 }
 0x436   :  { %v2107_v2 = vpop.f32.mrf.mxu0  ;;  %v1659_v11 = vadd.f32 %v11629_v39, %v7789_v49  ;;  %v8031_v17 = vsel %vm1280_vm4, %v5525_v10, %v5530_v9  ;;  %2427 = vmatpush.msrb.mxu3 %v1478_v32 }
 0x437   :  { %11625 = vst [vmem:[#allocation150_spill] sm:$0xff] %v7977_v36  ;;  %v1881_v34 = vpop.f32.mrf.mxu2  ;;  %2041 = vmatmul.f32.gmra.mxu3 %v7982_v58  ;;  %2264 = vmatmul.f32.gmra.mxu1 %v11627_v13  ;;  %v5543_v33 = vpop.permute.xlu2 %5542 }
 0x438   :  { %v1882_v15 = vadd.f32 %v1881_v34, %v1769_v1  ;;  %v1540_v34 = vld [vmem:[%s11138_s1 + $0x418] sm:$0xff]  ;;  %v1772_v39 = vadd.f32 %v6880_v29, %v1659_v11  ;;  %v1662_v29 = vadd.f32 %v6850_v0, %v7789_v49  ;;  %v5544_v31 = vunpack.i.l.bf16 %v5543_v33 }
 0x439   :  { %4994 = vmatmul.msk.f32.gmra.mxu0 %vm1280_vm4, %v7975_v7  ;;  %2654 = vmatpush.msra.mxu1 %v1540_v34  ;;  %v8033_v34 = vpop.permute.xlu1 %1262 }
 0x43a   :  { %v1994_v38 = vpop.f32.mrf.mxu3 }
 0x43b   :  { %v1995_v1 = vadd.f32 %v1994_v38, %v1882_v15  ;;  %v11631_v15 = vld [vmem:[#allocation56_spill] sm:$0xff]  ;;  %v1775_v38 = vadd.f32 %v6915_v60, %v1662_v29  ;;  %v1665_v60 = vadd.f32 %v6883_v53, %v7789_v49  ;;  %v1510_v29 = vld [vmem:[%s11138_s1 + $0x328] sm:$0xff] }
 0x43c   :  { %1931 = vmatmul.f32.gmra.mxu2 %v8003_v55  ;;  %v8006_v13 = vpop.f32.mrf.mxu1  ;;  %11632 = vst [vmem:[#allocation56_spill] sm:$0xff] %v8033_v34  ;;  %2540 = vmatpush.msra.mxu0 %v1510_v29  ;;  %v5545_v29 = vunpack.i.h.bf16 %v5543_v33 }
 0x43d   :  { %v8009_v7 = vadd.f32 %v2107_v2, %v1995_v1  ;;  %v5535_v2 = vunpack.i.h.bf16 %v7952_v37  ;;  %v5539_v37 = vunpack.i.l.bf16 %v7993_v48  ;;  %v1778_v53 = vadd.f32 %v6935_v62, %v1665_v60 }
 0x43e   :  { %v2110_v58 = vpop.f32.mrf.mxu0  ;;  %v1668_v62 = vadd.f32 %v6917_v61, %v7789_v49 }
 0x43f   :  { %11630 = vst [vmem:[#allocation83_spill] sm:$0xff] %v8009_v7  ;;  %v1884_v26 = vpop.f32.mrf.mxu2  ;;  %2044 = vmatmul.f32.gmra.mxu3 %v8014_v45  ;;  %2267 = vmatmul.f32.gmra.mxu1 %v11631_v15  ;;  %v8044_v9 = vsel %vm1280_vm4, %v7369_v30, %v5535_v2  ;;  %v8058_v2 = vsel %vm1280_vm4, %v5539_v37, %v5544_v31  ;;  %v11638_v31 = vld [vmem:[#allocation63_spill] sm:$0xff] }
 0x440   :  { %v1885_v27 = vadd.f32 %v1884_v26, %v1772_v39  ;;  %v5548_v26 = vpop.permute.xlu0 %5547  ;;  %11634 = vst [vmem:[#allocation153_spill] sm:$0xff] %v8044_v9 }
 0x441   :  { %4995 = vmatmul.msk.f32.gmra.mxu0 %vm1280_vm4, %v7987_v21  ;;  %v5549_v30 = vunpack.i.l.bf16 %v5548_v26 }
 0x442   :  { %v1997_v11 = vpop.f32.mrf.mxu3 }
 0x443   :  { %v1998_v0 = vadd.f32 %v1997_v11, %v1885_v27  ;;  %v11635_v27 = vld [vmem:[#allocation60_spill] sm:$0xff]  ;;  %v8073_v37 = vsel %vm1280_vm4, %v7431_v63, %v5549_v30 }
 0x444   :  { %1934 = vmatmul.f32.gmra.mxu2 %v8031_v17  ;;  %v8036_v41 = vpop.f32.mrf.mxu1  ;;  %v1476_v63 = vld [vmem:[%s11138_s1 + $0x218] sm:$0xff] }
 0x445   :  { %v8039_v1 = vadd.f32 %v2110_v58, %v1998_v0  ;;  %v8052_v58 = vpop.permute.xlu2 %1264  ;;  %2428 = vmatpush.msrb.mxu3 %v1476_v63  ;;  %v11644_v63 = vld [vmem:[#allocation75_spill] sm:$0xff] }
 0x446   :  { %v2113_v39 = vpop.f32.mrf.mxu0  ;;  %11636 = vst [vmem:[#allocation60_spill] sm:$0xff] %v8052_v58 }
 0x447   :  { %11633 = vst [vmem:[#allocation152_spill] sm:$0xff] %v8039_v1  ;;  %v1887_v15 = vpop.f32.mrf.mxu2  ;;  %2047 = vmatmul.f32.gmra.mxu3 %v8044_v9  ;;  %2270 = vmatmul.f32.gmra.mxu1 %v11635_v27  ;;  %v5540_v9 = vunpack.i.h.bf16 %v7993_v48  ;;  %v1444_v48 = vld [vmem:[%s11138_s1 + $0x118] sm:$0xff] }
 0x448   :  { %v1888_v10 = vadd.f32 %v1887_v15, %v1775_v38  ;;  %v8061_v0 = vpop.permute.xlu0 %5552  ;;  %v8066_v15 = vpop.permute.xlu1 %5557  ;;  %2315 = vmatpush.msrb.mxu2 %v1444_v48 }
 0x449   :  { %4996 = vmatmul.msk.f32.gmra.mxu0 %vm1280_vm4, %v8033_v34  ;;  %v8088_v60 = vsel %vm1280_vm4, %v5540_v9, %v5545_v29 }
 0x44a   :  { %v2000_v32 = vpop.f32.mrf.mxu3 }
 0x44b   :  { %v2001_v11 = vadd.f32 %v2000_v32, %v1888_v10  ;;  %v1781_v32 = vadd.f32 %v6952_v19, %v1668_v62  ;;  %v5554_v19 = vunpack.i.l.bf16 %v8061_v0  ;;  %v1538_v62 = vld [vmem:[%s11138_s1 + $0x408] sm:$0xff] }
 0x44c   :  { %1937 = vmatmul.f32.gmra.mxu2 %v8058_v2  ;;  %v8063_v38 = vpop.f32.mrf.mxu1  ;;  %2655 = vmatpush.msra.mxu1 %v1538_v62 }
 0x44d   :  { %v8068_v27 = vadd.f32 %v2113_v39, %v2001_v11  ;;  %v5563_v33 = vpop.permute.xlu2 %5562 }
 0x44e   :  { %v2116_v34 = vpop.f32.mrf.mxu0 }
 0x44f   :  { %11637 = vst [vmem:[#allocation154_spill] sm:$0xff] %v8068_v27  ;;  %v1890_v21 = vpop.f32.mrf.mxu2  ;;  %2050 = vmatmul.f32.gmra.mxu3 %v8073_v37  ;;  %2273 = vmatmul.f32.gmra.mxu1 %v11638_v31  ;;  %v5559_v31 = vunpack.i.l.bf16 %v8066_v15 }
 0x450   :  { %v1891_v10 = vadd.f32 %v1890_v21, %v1778_v53  ;;  %v5550_v21 = vunpack.i.h.bf16 %v5548_v26  ;;  %v8101_v29 = vpop.permute.xlu0 %1266  ;;  %v8103_v48 = vpop.permute.xlu1 %1268 }
 0x451   :  { %4997 = vmatmul.msk.f32.gmra.mxu0 %vm1280_vm4, %v8052_v58  ;;  %11642 = vst [vmem:[#allocation157_spill] sm:$0xff] %v8101_v29 }
 0x452   :  { %v2003_v39 = vpop.f32.mrf.mxu3  ;;  %v8099_v9 = vsel %vm1280_vm4, %v7434_v20, %v5550_v21  ;;  %11643 = vst [vmem:[#allocation158_spill] sm:$0xff] %v8103_v48  ;;  %v1508_v20 = vld [vmem:[%s11138_s1 + $0x318] sm:$0xff]  ;;  %v5564_v21 = vunpack.i.l.bf16 %v5563_v33 }
 0x453   :  { %v2004_v30 = vadd.f32 %v2003_v39, %v1891_v10  ;;  %11641 = vst [vmem:[#allocation156_spill] sm:$0xff] %v8099_v9  ;;  %2541 = vmatpush.msra.mxu0 %v1508_v20  ;;  %v5555_v20 = vunpack.i.h.bf16 %v8061_v0 }
 0x454   :  { %1940 = vmatmul.f32.gmra.mxu2 %v8088_v60  ;;  %v8091_v61 = vpop.f32.mrf.mxu1 }
 0x455   :  { %11639 = vst [vmem:[#allocation63_spill] sm:$0xff] %v8091_v61  ;;  %v8094_v11 = vadd.f32 %v2116_v34, %v2004_v30  ;;  %v1671_v34 = vadd.f32 %v6943_v6, %v7789_v49  ;;  %v8119_v30 = vsel %vm1280_vm4, %v5554_v19, %v5559_v31  ;;  %v8132_v31 = vsel %vm1280_vm4, %v7512_v4, %v5564_v21  ;;  %v1474_v4 = vld [vmem:[%s11138_s1 + $0x208] sm:$0xff] }
 0x456   :  { %v2119_v53 = vpop.f32.mrf.mxu0  ;;  %11647 = vst [vmem:[#allocation160_spill] sm:$0xff] %v8132_v31  ;;  %2429 = vmatpush.msrb.mxu3 %v1474_v4 }
 0x457   :  { %11640 = vst [vmem:[#allocation155_spill] sm:$0xff] %v8094_v11  ;;  %v1893_v26 = vpop.f32.mrf.mxu2  ;;  %2053 = vmatmul.f32.gmra.mxu3 %v8099_v9  ;;  %2276 = vmatmul.f32.gmra.mxu1 %v11644_v63  ;;  %v1784_v6 = vadd.f32 %v6976_v44, %v1671_v34  ;;  %v8125_v63 = vpop.permute.xlu2 %5567  ;;  %v5560_v9 = vunpack.i.h.bf16 %v8066_v15  ;;  %v1674_v44 = vadd.f32 %v6956_v54, %v7789_v49  ;;  %v1442_v15 = vld [vmem:[%s11138_s1 + $0x108] sm:$0xff] }
 0x458   :  { %v1894_v10 = vadd.f32 %v1893_v26, %v1781_v32  ;;  %2316 = vmatpush.msrb.mxu2 %v1442_v15  ;;  %v5573_v0 = vpop.permute.xlu0 %5572 }
 0x459   :  { %4998 = vmatmul.msk.f32.gmra.mxu0 %vm1280_vm4, %v8101_v29  ;;  %v8148_v62 = vsel %vm1280_vm4, %v5555_v20, %v5560_v9 }
 0x45a   :  { %v2006_v39 = vpop.f32.mrf.mxu3 }
 0x45b   :  { %v2007_v32 = vadd.f32 %v2006_v39, %v1894_v10  ;;  %v11648_v10 = vld [vmem:[#allocation78_spill] sm:$0xff]  ;;  %v1787_v39 = vadd.f32 %v7017_v57, %v1674_v44  ;;  %v1677_v57 = vadd.f32 %v6978_v50, %v7789_v49 }
 0x45c   :  { %1943 = vmatmul.f32.gmra.mxu2 %v8119_v30  ;;  %v8122_v26 = vpop.f32.mrf.mxu1  ;;  %11649 = vst [vmem:[#allocation78_spill] sm:$0xff] %v8148_v62 }
 0x45d   :  { %11645 = vst [vmem:[#allocation75_spill] sm:$0xff] %v8122_v26  ;;  %v8127_v61 = vadd.f32 %v2119_v53, %v2007_v32  ;;  %v5578_v53 = vpop.permute.xlu1 %5577 }
 0x45e   :  { %v2122_v29 = vpop.f32.mrf.mxu0 }
 0x45f   :  { %11646 = vst [vmem:[#allocation159_spill] sm:$0xff] %v8127_v61  ;;  %v1896_v58 = vpop.f32.mrf.mxu2  ;;  %2056 = vmatmul.f32.gmra.mxu3 %v8132_v31  ;;  %2279 = vmatmul.f32.gmra.mxu1 %v11648_v10  ;;  %v5574_v10 = vunpack.i.l.bf16 %v5573_v0  ;;  %v8160_v9 = vpop.permute.xlu2 %1270 }
 0x460   :  { %v1897_v19 = vadd.f32 %v1896_v58, %v1784_v6  ;;  %v5565_v58 = vunpack.i.h.bf16 %v5563_v33  ;;  %11653 = vst [vmem:[#allocation164_spill] sm:$0xff] %v8160_v9 }
 0x461   :  { %4999 = vmatmul.msk.f32.gmra.mxu0 %vm1280_vm4, %v8103_v48 }
 0x462   :  { %v2009_v34 = vpop.f32.mrf.mxu3  ;;  %v8158_v33 = vsel %vm1280_vm4, %v7515_v43, %v5565_v58  ;;  %v1506_v43 = vld [vmem:[%s11138_s1 + $0x308] sm:$0xff]  ;;  %v1790_v58 = vadd.f32 %v7065_v25, %v1677_v57  ;;  %v1680_v25 = vadd.f32 %v7025_v14, %v7789_v49  ;;  %s5782_s1 = smov 68  }
 0x463   :  { %v2010_v21 = vadd.f32 %v2009_v34, %v1897_v19  ;;  %11652 = vst [vmem:[#allocation163_spill] sm:$0xff] %v8158_v33  ;;  %v5569_v19 = vunpack.i.l.bf16 %v8125_v63  ;;  %2542 = vmatpush.msra.mxu0 %v1506_v43  ;;  %v5570_v43 = vunpack.i.h.bf16 %v8125_v63 }
 0x464   :  { %1946 = vmatmul.f32.gmra.mxu2 %v8148_v62  ;;  %v8151_v54 = vpop.f32.mrf.mxu1 }
 0x465   :  { %11650 = vst [vmem:[#allocation161_spill] sm:$0xff] %v8151_v54  ;;  %v8154_v32 = vadd.f32 %v2122_v29, %v2010_v21  ;;  %v5579_v29 = vunpack.i.l.bf16 %v5578_v53  ;;  %v5583_v15 = vpop.permute.xlu1 %5582  ;;  %v5575_v21 = vunpack.i.h.bf16 %v5573_v0  ;;  %v5580_v0 = vunpack.i.h.bf16 %v5578_v53 }
 0x466   :  { %v2125_v6 = vpop.f32.mrf.mxu0 }
 0x467   :  { %11651 = vst [vmem:[#allocation162_spill] sm:$0xff] %v8154_v32  ;;  %v1899_v26 = vpop.f32.mrf.mxu2  ;;  %2059 = vmatmul.f32.gmra.mxu3 %v8158_v33  ;;  %2282 = vmatmul.f32.gmra.mxu1 %v6808_v8  ;;  %v8183_v54 = vsel %vm1280_vm4, %v7570_v51, %v5579_v29  ;;  %v8195_v51 = vsel %vm1280_vm4, %v5570_v43, %v5575_v21  ;;  %v972_v57 = vpop.permute.xlu2 %971  ;;  %v11667_v43 = vld [vmem:[#allocation91_spill] sm:$0xff] }
 0x468   :  { %v1900_v20 = vadd.f32 %v1899_v26, %v1787_v39  ;;  %v8173_v26 = vsel %vm1280_vm4, %v5569_v19, %v5574_v10  ;;  %11657 = vst [vmem:[#allocation168_spill] sm:$0xff] %v8183_v54  ;;  %v8185_v10 = vpop.permute.xlu0 %1272  ;;  %v8207_v53 = vsel %vm1280_vm4, %v7573_v28, %v5580_v0 }
 0x469   :  { %5000 = vmatmul.msk.f32.gmra.mxu0 %vm1280_vm4, %v8160_v9  ;;  %11654 = vst [vmem:[#allocation165_spill] sm:$0xff] %v8173_v26 }
 0x46a   :  { %v2012_v44 = vpop.f32.mrf.mxu3  ;;  %11658 = vst [vmem:[#allocation169_spill] sm:$0xff] %v8185_v10 }
 0x46b   :  { %v2013_v8 = vadd.f32 %v2012_v44, %v1900_v20  ;;  %v11659_v20 = vld [vmem:[#allocation85_spill] sm:$0xff]  ;;  %11665 = vst [vmem:[#allocation172_spill] sm:$0xff] %v8207_v53 }
 0x46c   :  { %1949 = vmatmul.f32.gmra.mxu2 %v8173_v26  ;;  %v8176_v4 = vpop.f32.mrf.mxu1  ;;  %11660 = vst [vmem:[#allocation85_spill] sm:$0xff] %v8195_v51  ;;  %v11739_v26 = vld [vmem:[#allocation19_spill] sm:$0xff] }
 0x46d   :  { %11655 = vst [vmem:[#allocation166_spill] sm:$0xff] %v8176_v4  ;;  %v8179_v34 = vadd.f32 %v2125_v6, %v2013_v8  ;;  %v11662_v8 = vld [vmem:[#allocation92_spill] sm:$0xff]  ;;  %v8201_v63 = vpop.permute.xlu1 %1274  ;;  %v5584_v4 = vunpack.i.l.bf16 %v5583_v15 }
 0x46e   :  { %v2128_v50 = vpop.f32.mrf.mxu0  ;;  %11663 = vst [vmem:[#allocation92_spill] sm:$0xff] %v8201_v63 }
 0x46f   :  { %11656 = vst [vmem:[#allocation167_spill] sm:$0xff] %v8179_v34  ;;  %v1902_v39 = vpop.f32.mrf.mxu2  ;;  %2062 = vmatmul.f32.gmra.mxu3 %v8183_v54  ;;  %2285 = vmatmul.f32.gmra.mxu1 %v11659_v20 }
 0x470   :  { %v1903_v19 = vadd.f32 %v1902_v39, %v1790_v58  ;;  %v1793_v58 = vadd.f32 %v11662_v8, %v1680_v25  ;;  %v1683_v25 = vadd.f32 %v11667_v43, %v7789_v49 }
 0x471   :  { %5001 = vmatmul.msk.f32.gmra.mxu0 %vm1280_vm4, %v8185_v10  ;;  %v2866_v10 = vmul.f32 %v7943_v16, %v7943_v16 }
 0x472   :  { %v2015_v6 = vpop.f32.mrf.mxu3  ;;  %v1796_v0 = vadd.f32 %v7157_v22, %v1683_v25  ;;  %v11674_v22 = vld [vmem:[#allocation93_spill] sm:$0xff] }
 0x473   :  { %v2016_v29 = vadd.f32 %v2015_v6, %v1903_v19  ;;  %v11666_v19 = vld [vmem:[#allocation87_spill] sm:$0xff] }
 0x474   :  { %1952 = vmatmul.f32.gmra.mxu2 %v8195_v51  ;;  %v8198_v44 = vpop.f32.mrf.mxu1 }
 0x475   :  { %11661 = vst [vmem:[#allocation170_spill] sm:$0xff] %v8198_v44  ;;  %v8203_v39 = vadd.f32 %v2128_v50, %v2016_v29  ;;  %v1181_v50 = vpop.permute.xlu0 %1180  ;;  %v8216_v29 = vsel %vm1280_vm4, %v5584_v4, %v972_v57  ;;  %v5585_v44 = vunpack.i.h.bf16 %v5583_v15  ;;  %v11673_v57 = vld [vmem:[#allocation89_spill] sm:$0xff] }
 0x476   :  { %v2131_v20 = vpop.f32.mrf.mxu0  ;;  %11668 = vst [vmem:[#allocation87_spill] sm:$0xff] %v8216_v29  ;;  %v8226_v43 = vsel %vm1280_vm4, %v7640_v18, %v1181_v50 }
 0x477   :  { %11664 = vst [vmem:[#allocation171_spill] sm:$0xff] %v8203_v39  ;;  %v1905_v14 = vpop.f32.mrf.mxu2  ;;  %2065 = vmatmul.f32.gmra.mxu3 %v8207_v53  ;;  %2288 = vmatmul.f32.gmra.mxu1 %v11666_v19  ;;  %v8228_v53 = vpop.permute.xlu1 %1276 }
 0x478   :  { %v1906_v21 = vadd.f32 %v1905_v14, %v1793_v58  ;;  %v974_v58 = vpop.permute.xlu2 %973  ;;  %11671 = vst [vmem:[#allocation174_spill] sm:$0xff] %v8226_v43 }
 0x479   :  { %5002 = vmatmul.msk.f32.gmra.mxu0 %vm1280_vm4, %v8201_v63  ;;  %11672 = vst [vmem:[#allocation175_spill] sm:$0xff] %v8228_v53  ;;  %v8237_v15 = vsel %vm1280_vm4, %v5585_v44, %v974_v58  ;;  %v11681_v58 = vld [vmem:[#allocation94_spill] sm:$0xff] }
 0x47a   :  { %v2018_v6 = vpop.f32.mrf.mxu3  ;;  %11675 = vst [vmem:[#allocation89_spill] sm:$0xff] %v8237_v15 }
 0x47b   :  { %v2019_v8 = vadd.f32 %v2018_v6, %v1906_v21 }
 0x47c   :  { %1955 = vmatmul.f32.gmra.mxu2 %v8216_v29  ;;  %v8219_v28 = vpop.f32.mrf.mxu1  ;;  %v11711_v29 = vld [vmem:[#allocation7_spill] sm:$0xff] }
 0x47d   :  { %11669 = vst [vmem:[#allocation91_spill] sm:$0xff] %v8219_v28  ;;  %v8222_v14 = vadd.f32 %v2131_v20, %v2019_v8  ;;  %v1686_v20 = vadd.f32 %v11674_v22, %v7789_v49  ;;  %v1183_v25 = vpop.permute.xlu0 %1182 }
 0x47e   :  { %v2134_v19 = vpop.f32.mrf.mxu0  ;;  %v8247_v28 = vsel %vm1280_vm4, %v7677_v42, %v1183_v25  ;;  %v11685_v42 = vld [vmem:[#allocation100_spill] sm:$0xff] }
 0x47f   :  { %11670 = vst [vmem:[#allocation173_spill] sm:$0xff] %v8222_v14  ;;  %v1908_v63 = vpop.f32.mrf.mxu2  ;;  %2068 = vmatmul.f32.gmra.mxu3 %v8226_v43  ;;  %2291 = vmatmul.f32.gmra.mxu1 %v11673_v57  ;;  %v11703_v43 = vld [vmem:[#allocation5_spill] sm:$0xff] }
 0x480   :  { %v1909_v4 = vadd.f32 %v1908_v63, %v1796_v0  ;;  %v11677_v63 = vld [vmem:[#allocation97_spill] sm:$0xff]  ;;  %11679 = vst [vmem:[#allocation176_spill] sm:$0xff] %v8247_v28  ;;  %v8249_v22 = vpop.permute.xlu2 %1278 }
 0x481   :  { %5003 = vmatmul.msk.f32.gmra.mxu0 %vm1280_vm4, %v8228_v53  ;;  %v1799_v6 = vadd.f32 %v11677_v63, %v1686_v20  ;;  %11680 = vst [vmem:[#allocation177_spill] sm:$0xff] %v8249_v22  ;;  %v11688_v53 = vld [vmem:[#allocation103_spill] sm:$0xff] }
 0x482   :  { %v2021_v21 = vpop.f32.mrf.mxu3 }
 0x483   :  { %v2022_v18 = vadd.f32 %v2021_v21, %v1909_v4  ;;  %v11682_v4 = vld [vmem:[#allocation96_spill] sm:$0xff] }
 0x484   :  { %1958 = vmatmul.f32.gmra.mxu2 %v8237_v15  ;;  %v8240_v50 = vpop.f32.mrf.mxu1  ;;  %v11691_v15 = vld [vmem:[#allocation8_spill] sm:$0xff] }
 0x485   :  { %11676 = vst [vmem:[#allocation93_spill] sm:$0xff] %v8240_v50  ;;  %v8243_v8 = vadd.f32 %v2134_v19, %v2022_v18  ;;  %v1689_v19 = vadd.f32 %v11682_v4, %v7789_v49  ;;  %v11683_v18 = vld [vmem:[#allocation6_spill] sm:$0xff]  ;;  %v11690_v4 = vld [vmem:[#allocation99_spill] sm:$0xff] }
 0x486   :  { %v2137_v0 = vpop.f32.mrf.mxu0 }
 0x487   :  { %11678 = vst [vmem:[#allocation97_spill] sm:$0xff] %v8243_v8  ;;  %v1911_v57 = vpop.f32.mrf.mxu2  ;;  %2071 = vmatmul.f32.gmra.mxu3 %v8247_v28  ;;  %2294 = vmatmul.f32.gmra.mxu1 %v11681_v58  ;;  %v1802_v25 = vadd.f32 %v11685_v42, %v1689_v19  ;;  %v11687_v58 = vld [vmem:[#allocation95_spill] sm:$0xff] }
 0x488   :  { %v1912_v44 = vadd.f32 %v1911_v57, %v1799_v6 }
 0x489   :  { %5004 = vmatmul.msk.f32.gmra.mxu0 %vm1280_vm4, %v8249_v22  ;;  %v11689_v22 = vld [vmem:[#allocation106_spill] sm:$0xff] }
 0x48a   :  { %v2024_v20 = vpop.f32.mrf.mxu3 }
 0x48b   :  { %v2025_v21 = vadd.f32 %v2024_v20, %v1912_v44  ;;  %v1692_v44 = vadd.f32 %v11690_v4, %v7789_v49 }
 0x48c   :  { %2317 = vmatmul.f32.vlgmr.msrb.gmra.mxu2 %v11683_v18  ;;  %v8258_v63 = vpop.f32.mrf.mxu1 }
 0x48d   :  { %11684 = vst [vmem:[#allocation94_spill] sm:$0xff] %v8258_v63  ;;  %v8261_v50 = vadd.f32 %v2137_v0, %v2025_v21  ;;  %v11693_v0 = vld [vmem:[#allocation104_spill] sm:$0xff] }
 0x48e   :  { %v2140_v6 = vpop.f32.mrf.mxu0  ;;  %v1805_v19 = vadd.f32 %v11693_v0, %v1692_v44 }
 0x48f   :  { %11686 = vst [vmem:[#allocation96_spill] sm:$0xff] %v8261_v50  ;;  %v1914_v57 = vpop.f32.mrf.mxu2  ;;  %2297 = vmatmul.f32.gmra.mxu1 %v11687_v58  ;;  %2430 = vmatmul.f32.vlgmr.msrb.gmra.mxu3 %v11688_v53  ;;  %v11695_v58 = vld [vmem:[#allocation108_spill] sm:$0xff]  ;;  %v11696_v53 = vld [vmem:[#allocation98_spill] sm:$0xff]  ;;  %v2890_v33 = vmul.f32 %v8261_v50, %v8261_v50 }
 0x490   :  { %v1915_v28 = vadd.f32 %v1914_v57, %v1802_v25 }
 0x491   :  { %2543 = vmatmul.f32.vlgmr.msra.gmra.mxu0 %v11689_v22  ;;  %v11697_v22 = vld [vmem:[#allocation35_spill] sm:$0xff] }
 0x492   :  { %v2027_v20 = vpop.f32.mrf.mxu3 }
 0x493   :  { %v2028_v18 = vadd.f32 %v2027_v20, %v1915_v28  ;;  %v11698_v28 = vld [vmem:[#allocation101_spill] sm:$0xff] }
 0x494   :  { %2320 = vmatmul.f32.gmra.mxu2 %v11691_v15  ;;  %v8269_v63 = vpop.f32.mrf.mxu1  ;;  %v1695_v4 = vadd.f32 %v11698_v28, %v7789_v49 }
 0x495   :  { %11692 = vst [vmem:[#allocation6_spill] sm:$0xff] %v8269_v63  ;;  %v8272_v21 = vadd.f32 %v2140_v6, %v2028_v18  ;;  %v11699_v63 = vld [vmem:[#allocation10_spill] sm:$0xff]  ;;  %v11701_v6 = vld [vmem:[#allocation39_spill] sm:$0xff] }
 0x496   :  { %v2143_v42 = vpop.f32.mrf.mxu0  ;;  %v1808_v18 = vadd.f32 %v11701_v6, %v1695_v4 }
 0x497   :  { %11694 = vst [vmem:[#allocation100_spill] sm:$0xff] %v8272_v21  ;;  %v1917_v25 = vpop.f32.mrf.mxu2  ;;  %2433 = vmatmul.f32.gmra.mxu3 %v11695_v58  ;;  %5005 = vmatmul.msk.f32.vlgmr.msra.gmra.mxu1 %vm1280_vm4, %v11696_v53  ;;  %v11704_v53 = vld [vmem:[#allocation38_spill] sm:$0xff] }
 0x498   :  { %v1918_v57 = vadd.f32 %v1917_v25, %v1805_v19 }
 0x499   :  { %2546 = vmatmul.f32.gmra.mxu0 %v11697_v22  ;;  %v11705_v22 = vld [vmem:[#allocation111_spill] sm:$0xff] }
 0x49a   :  { %v2030_v15 = vpop.f32.mrf.mxu3 }
 0x49b   :  { %v2031_v20 = vadd.f32 %v2030_v15, %v1918_v57  ;;  %v11706_v57 = vld [vmem:[#allocation107_spill] sm:$0xff] }
 0x49c   :  { %2323 = vmatmul.f32.gmra.mxu2 %v11699_v63  ;;  %v8281_v44 = vpop.f32.mrf.mxu1  ;;  %v1698_v28 = vadd.f32 %v11706_v57, %v7789_v49 }
 0x49d   :  { %11700 = vst [vmem:[#allocation95_spill] sm:$0xff] %v8281_v44  ;;  %v8284_v0 = vadd.f32 %v2143_v42, %v2031_v20  ;;  %v11707_v44 = vld [vmem:[#allocation11_spill] sm:$0xff]  ;;  %v11709_v42 = vld [vmem:[#allocation110_spill] sm:$0xff] }
 0x49e   :  { %v2146_v19 = vpop.f32.mrf.mxu0  ;;  %v1811_v20 = vadd.f32 %v11709_v42, %v1698_v28 }
 0x49f   :  { %11702 = vst [vmem:[#allocation103_spill] sm:$0xff] %v8284_v0  ;;  %v1920_v25 = vpop.f32.mrf.mxu2  ;;  %2436 = vmatmul.f32.gmra.mxu3 %v11703_v43  ;;  %5006 = vmatmul.msk.f32.gmra.mxu1 %vm1280_vm4, %v11704_v53  ;;  %v11712_v53 = vld [vmem:[#allocation109_spill] sm:$0xff] }
 0x4a0   :  { %v1921_v58 = vadd.f32 %v1920_v25, %v1808_v18 }
 0x4a1   :  { %2549 = vmatmul.f32.gmra.mxu0 %v11705_v22  ;;  %v11713_v22 = vld [vmem:[#allocation113_spill] sm:$0xff] }
 0x4a2   :  { %v2033_v63 = vpop.f32.mrf.mxu3 }
 0x4a3   :  { %v2034_v15 = vadd.f32 %v2033_v63, %v1921_v58  ;;  %v11714_v58 = vld [vmem:[#allocation40_spill] sm:$0xff] }
 0x4a4   :  { %2326 = vmatmul.f32.gmra.mxu2 %v11707_v44  ;;  %v8293_v4 = vpop.f32.mrf.mxu1  ;;  %v1701_v57 = vadd.f32 %v11714_v58, %v7789_v49  ;;  %v11720_v58 = vld [vmem:[#allocation15_spill] sm:$0xff] }
 0x4a5   :  { %11708 = vst [vmem:[#allocation106_spill] sm:$0xff] %v8293_v4  ;;  %v8296_v6 = vadd.f32 %v2146_v19, %v2034_v15  ;;  %v11715_v4 = vld [vmem:[#allocation14_spill] sm:$0xff] }
 0x4a6   :  { %v2149_v18 = vpop.f32.mrf.mxu0  ;;  %v11717_v19 = vld [vmem:[#allocation46_spill] sm:$0xff] }
 0x4a7   :  { %11710 = vst [vmem:[#allocation99_spill] sm:$0xff] %v8296_v6  ;;  %v1923_v43 = vpop.f32.mrf.mxu2  ;;  %2439 = vmatmul.f32.gmra.mxu3 %v11711_v29  ;;  %5007 = vmatmul.msk.f32.gmra.mxu1 %vm1280_vm4, %v11712_v53  ;;  %v1814_v15 = vadd.f32 %v11717_v19, %v1701_v57  ;;  %v11719_v53 = vld [vmem:[#allocation112_spill] sm:$0xff]  ;;  %v11725_v19 = vld [vmem:[#allocation115_spill] sm:$0xff] }
 0x4a8   :  { %v1924_v25 = vadd.f32 %v1923_v43, %v1811_v20 }
 0x4a9   :  { %2552 = vmatmul.f32.gmra.mxu0 %v11713_v22 }
 0x4aa   :  { %v2036_v44 = vpop.f32.mrf.mxu3 }
 0x4ab   :  { %v2037_v63 = vadd.f32 %v2036_v44, %v1924_v25 }
 0x4ac   :  { %2329 = vmatmul.f32.gmra.mxu2 %v11715_v4  ;;  %v8305_v28 = vpop.f32.mrf.mxu1 }
 0x4ad   :  { %11716 = vst [vmem:[#allocation8_spill] sm:$0xff] %v8305_v28  ;;  %v8308_v42 = vadd.f32 %v2149_v18, %v2037_v63  ;;  %v11723_v63 = vld [vmem:[#allocation12_spill] sm:$0xff] }
 0x4ae   :  { %v2152_v20 = vpop.f32.mrf.mxu0 }
 0x4af   :  { %11718 = vst [vmem:[#allocation104_spill] sm:$0xff] %v8308_v42  ;;  %v1926_v29 = vpop.f32.mrf.mxu2  ;;  %2442 = vmatmul.f32.gmra.mxu3 %v7397_v40  ;;  %5008 = vmatmul.msk.f32.gmra.mxu1 %vm1280_vm4, %v11719_v53  ;;  %v11724_v40 = vld [vmem:[#allocation9_spill] sm:$0xff] }
 0x4b0   :  { %v1927_v43 = vadd.f32 %v1926_v29, %v1814_v15  ;;  %v11726_v15 = vld [vmem:[#allocation18_spill] sm:$0xff]  ;;  %v11728_v53 = vld [vmem:[#allocation117_spill] sm:$0xff] }
 0x4b1   :  { %2555 = vmatmul.f32.gmra.mxu0 %v7416_v23 }
 0x4b2   :  { %v2039_v22 = vpop.f32.mrf.mxu3 }
 0x4b3   :  { %v2040_v25 = vadd.f32 %v2039_v22, %v1927_v43  ;;  %v11729_v22 = vld [vmem:[#allocation114_spill] sm:$0xff] }
 0x4b4   :  { %2332 = vmatmul.f32.gmra.mxu2 %v11720_v58  ;;  %v8315_v4 = vpop.f32.mrf.mxu1  ;;  %v11730_v58 = vld [vmem:[#allocation20_spill] sm:$0xff] }
 0x4b5   :  { %11721 = vst [vmem:[#allocation108_spill] sm:$0xff] %v8315_v4  ;;  %v8317_v44 = vadd.f32 %v2152_v20, %v2040_v25  ;;  %v11736_v4 = vld [vmem:[#allocation59_spill] sm:$0xff] }
 0x4b6   :  { %v8319_v18 = vpop.f32.mrf.mxu0 }
 0x4b7   :  { %11722 = vst [vmem:[#allocation98_spill] sm:$0xff] %v8317_v44  ;;  %v8321_v57 = vpop.f32.mrf.mxu2  ;;  %2445 = vmatmul.f32.gmra.mxu3 %v11723_v63  ;;  %5009 = vmatmul.msk.f32.gmra.mxu1 %vm1280_vm4, %v11724_v40 }
 0x4b9   :  { %2558 = vmatmul.f32.gmra.mxu0 %v11725_v19 }
 0x4ba   :  { %v8327_v23 = vpop.f32.mrf.mxu3 }
 0x4bc   :  { %2335 = vmatmul.f32.gmra.mxu2 %v11726_v15  ;;  %v8330_v29 = vpop.f32.mrf.mxu1  ;;  %v11732_v15 = vld [vmem:[#allocation53_spill] sm:$0xff] }
 0x4bd   :  { %11727 = vst [vmem:[#allocation35_spill] sm:$0xff] %v8330_v29  ;;  %v11735_v29 = vld [vmem:[#allocation62_spill] sm:$0xff] }
 0x4be   :  { %v8332_v43 = vpop.f32.mrf.mxu0 }
 0x4bf   :  { %v8334_v20 = vpop.f32.mrf.mxu2  ;;  %2448 = vmatmul.f32.gmra.mxu3 %v11728_v53  ;;  %5010 = vmatmul.msk.f32.gmra.mxu1 %vm1280_vm4, %v11729_v22 }
 0x4c1   :  { %2561 = vmatmul.f32.gmra.mxu0 %v7497_v35  ;;  %v11733_v35 = vld [vmem:[#allocation22_spill] sm:$0xff] }
 0x4c2   :  { %v8340_v25 = vpop.f32.mrf.mxu3 }
 0x4c4   :  { %2338 = vmatmul.f32.gmra.mxu2 %v11730_v58  ;;  %v8343_v63 = vpop.f32.mrf.mxu1 }
 0x4c5   :  { %11731 = vst [vmem:[#allocation101_spill] sm:$0xff] %v8343_v63 }
 0x4c6   :  { %v8345_v40 = vpop.f32.mrf.mxu0 }
 0x4c7   :  { %v8347_v19 = vpop.f32.mrf.mxu2  ;;  %2451 = vmatmul.f32.gmra.mxu3 %v7521_v47  ;;  %5011 = vmatmul.msk.f32.gmra.mxu1 %vm1280_vm4, %v11732_v15  ;;  %v2862_v47 = vmul.f32 %v7882_v56, %v7882_v56  ;;  %v2860_v15 = vmul.f32 %v7848_v46, %v7848_v46 }
 0x4c9   :  { %2564 = vmatmul.f32.gmra.mxu0 %v7536_v59 }
 0x4ca   :  { %v8353_v53 = vpop.f32.mrf.mxu3 }
 0x4cc   :  { %2341 = vmatmul.f32.gmra.mxu2 %v11733_v35  ;;  %v8356_v22 = vpop.f32.mrf.mxu1  ;;  %v2753_v35 = vadd.f32 %v7882_v56, %v7848_v46  ;;  %v2868_v46 = vmul.f32 %v7977_v36, %v7977_v36 }
 0x4cd   :  { %11734 = vst [vmem:[#allocation10_spill] sm:$0xff] %v8356_v22  ;;  %v2864_v22 = vmul.f32 %v7916_v3, %v7916_v3 }
 0x4ce   :  { %v8358_v58 = vpop.f32.mrf.mxu0 }
 0x4cf   :  { %v8360_v63 = vpop.f32.mrf.mxu2  ;;  %2454 = vmatmul.f32.gmra.mxu3 %v11735_v29  ;;  %5012 = vmatmul.msk.f32.gmra.mxu1 %vm1280_vm4, %v11736_v4  ;;  %v11737_v29 = vld [vmem:[#allocation24_spill] sm:$0xff]  ;;  %v2924_v4 = vadd.f32 %v2862_v47, %v2860_v15  ;;  %v11741_v47 = vld [vmem:[#allocation123_spill] sm:$0xff] }
 0x4d1   :  { %2567 = vmatmul.f32.gmra.mxu0 %v7582_v52  ;;  %v2754_v52 = vadd.f32 %v2753_v35, %v7916_v3  ;;  %v2925_v9 = vadd.f32 %v2924_v4, %v2864_v22  ;;  %v2870_v3 = vmul.f32 %v8009_v7, %v8009_v7 }
 0x4d2   :  { %v8368_v59 = vpop.f32.mrf.mxu3 }
 0x4d3   :  { %v2755_v56 = vadd.f32 %v2754_v52, %v7943_v16  ;;  %v2926_v15 = vadd.f32 %v2925_v9, %v2866_v10  ;;  %v2872_v52 = vmul.f32 %v8039_v1, %v8039_v1 }
 0x4d4   :  { %2344 = vmatmul.f32.gmra.mxu2 %v11737_v29  ;;  %v8377_v28 = vpop.f32.mrf.mxu1  ;;  %v11740_v29 = vld [vmem:[#allocation16_spill] sm:$0xff] }
 0x4d5   :  { %11738 = vst [vmem:[#allocation39_spill] sm:$0xff] %v8377_v28  ;;  %v2756_v35 = vadd.f32 %v2755_v56, %v7977_v36  ;;  %v2927_v22 = vadd.f32 %v2926_v15, %v2868_v46  ;;  %v2874_v56 = vmul.f32 %v8068_v27, %v8068_v27  ;;  %v11744_v36 = vld [vmem:[#allocation21_spill] sm:$0xff] }
 0x4d6   :  { %v8382_v51 = vpop.f32.mrf.mxu0 }
 0x4d7   :  { %v8384_v54 = vpop.f32.mrf.mxu2  ;;  %2457 = vmatmul.f32.gmra.mxu3 %v11739_v26  ;;  %5013 = vmatmul.msk.f32.gmra.mxu1 %vm1280_vm4, %v11740_v29  ;;  %v2757_v4 = vadd.f32 %v2756_v35, %v8009_v7  ;;  %v11742_v26 = vld [vmem:[#allocation26_spill] sm:$0xff]  ;;  %v2928_v29 = vadd.f32 %v2927_v22, %v2870_v3  ;;  %v2876_v35 = vmul.f32 %v8094_v11, %v8094_v11  ;;  %v11746_v3 = vld [vmem:[#allocation125_spill] sm:$0xff] }
 0x4d9   :  { %2570 = vmatmul.f32.gmra.mxu0 %v11741_v47  ;;  %v2758_v9 = vadd.f32 %v2757_v4, %v8039_v1  ;;  %v2929_v46 = vadd.f32 %v2928_v29, %v2872_v52  ;;  %v2878_v1 = vmul.f32 %v8127_v61, %v8127_v61 }
 0x4da   :  { %v8396_v28 = vpop.f32.mrf.mxu3 }
 0x4db   :  { %v2759_v15 = vadd.f32 %v2758_v9, %v8068_v27  ;;  %v2930_v22 = vadd.f32 %v2929_v46, %v2874_v56  ;;  %v2880_v9 = vmul.f32 %v8154_v32, %v8154_v32  ;;  %v2882_v46 = vmul.f32 %v8179_v34, %v8179_v34 }
 0x4dc   :  { %2347 = vmatmul.f32.gmra.mxu2 %v11742_v26  ;;  %v8402_v16 = vpop.f32.mrf.mxu1  ;;  %v11745_v26 = vld [vmem:[#allocation65_spill] sm:$0xff] }
 0x4dd   :  { %11743 = vst [vmem:[#allocation5_spill] sm:$0xff] %v8402_v16  ;;  %v2760_v4 = vadd.f32 %v2759_v15, %v8094_v11  ;;  %v2931_v52 = vadd.f32 %v2930_v22, %v2876_v35  ;;  %v11750_v11 = vld [vmem:[#allocation23_spill] sm:$0xff] }
 0x4de   :  { %v8407_v10 = vpop.f32.mrf.mxu0 }
 0x4df   :  { %v8409_v47 = vpop.f32.mrf.mxu2  ;;  %2460 = vmatmul.f32.gmra.mxu3 %v11744_v36  ;;  %5014 = vmatmul.msk.f32.gmra.mxu1 %vm1280_vm4, %v11745_v26  ;;  %v2761_v29 = vadd.f32 %v2760_v4, %v8127_v61  ;;  %v11747_v36 = vld [vmem:[#allocation28_spill] sm:$0xff]  ;;  %v2932_v26 = vadd.f32 %v2931_v52, %v2878_v1  ;;  %v11751_v1 = vld [vmem:[#allocation121_spill] sm:$0xff]  ;;  %v11752_v52 = vld [vmem:[#allocation82_spill] sm:$0xff] }
 0x4e1   :  { %2573 = vmatmul.f32.gmra.mxu0 %v11746_v3  ;;  %v2762_v56 = vadd.f32 %v2761_v29, %v8154_v32  ;;  %v11749_v3 = vld [vmem:[#allocation43_spill] sm:$0xff]  ;;  %v2933_v4 = vadd.f32 %v2932_v26, %v2880_v9 }
 0x4e2   :  { %v8421_v7 = vpop.f32.mrf.mxu3  ;;  %v1704_v35 = vadd.f32 %v11749_v3, %v7789_v49  ;;  %v2886_v3 = vmul.f32 %v8222_v14, %v8222_v14  ;;  %v11753_v9 = vld [vmem:[#allocation51_spill] sm:$0xff] }
 0x4e3   :  { %v2763_v61 = vadd.f32 %v2762_v56, %v8179_v34  ;;  %v2934_v29 = vadd.f32 %v2933_v4, %v2882_v46  ;;  %v1707_v26 = vadd.f32 %v11753_v9, %v7789_v49  ;;  %v11754_v34 = vld [vmem:[#allocation52_spill] sm:$0xff] }
 0x4e4   :  { %2350 = vmatmul.f32.gmra.mxu2 %v11747_v36  ;;  %v8427_v27 = vpop.f32.mrf.mxu1  ;;  %v2884_v36 = vmul.f32 %v8203_v39, %v8203_v39 }
 0x4e5   :  { %11748 = vst [vmem:[#allocation38_spill] sm:$0xff] %v8427_v27  ;;  %v2764_v32 = vadd.f32 %v2763_v61, %v8203_v39  ;;  %v1817_v27 = vadd.f32 %v11754_v34, %v1704_v35  ;;  %v11756_v61 = vld [vmem:[#allocation116_spill] sm:$0xff] }
 0x4e6   :  { %v8432_v15 = vpop.f32.mrf.mxu0  ;;  %v2935_v16 = vadd.f32 %v2934_v29, %v2884_v36  ;;  %v1710_v46 = vadd.f32 %v11756_v61, %v7789_v49  ;;  %v11759_v29 = vld [vmem:[#allocation57_spill] sm:$0xff] }
 0x4e7   :  { %v8436_v22 = vpop.f32.mrf.mxu2  ;;  %2463 = vmatmul.f32.gmra.mxu3 %v11750_v11  ;;  %5015 = vmatmul.msk.f32.gmra.mxu1 %vm1280_vm4, %v11751_v1  ;;  %v2765_v11 = vadd.f32 %v2764_v32, %v8222_v14  ;;  %v2888_v1 = vmul.f32 %v8243_v8, %v8243_v8  ;;  %v1930_v34 = vadd.f32 %v8321_v57, %v1817_v27  ;;  %v11758_v32 = vld [vmem:[#allocation13_spill] sm:$0xff]  ;;  %v11762_v27 = vld [vmem:[#allocation126_spill] sm:$0xff] }
 0x4e8   :  { %v2936_v39 = vadd.f32 %v2935_v16, %v2886_v3  ;;  %v1820_v36 = vadd.f32 %v11758_v32, %v1707_v26  ;;  %v11760_v14 = vld [vmem:[#allocation17_spill] sm:$0xff]  ;;  %v2892_v3 = vmul.f32 %v8272_v21, %v8272_v21  ;;  %v11763_v57 = vld [vmem:[#allocation118_spill] sm:$0xff]  ;;  %v11764_v32 = vld [vmem:[#allocation120_spill] sm:$0xff] }
 0x4e9   :  { %2576 = vmatmul.f32.gmra.mxu0 %v11752_v52  ;;  %v11755_v52 = vld [vmem:[#allocation30_spill] sm:$0xff]  ;;  %v2766_v9 = vadd.f32 %v2765_v11, %v8243_v8  ;;  %v1716_v61 = vadd.f32 %v11760_v14, %v7789_v49  ;;  %v11761_v11 = vld [vmem:[#allocation128_spill] sm:$0xff]  ;;  %v1823_v26 = vadd.f32 %v11763_v57, %v1710_v46  ;;  %v11765_v14 = vld [vmem:[#allocation129_spill] sm:$0xff] }
 0x4ea   :  { %v8450_v56 = vpop.f32.mrf.mxu3  ;;  %v1933_v8 = vadd.f32 %v8334_v20, %v1820_v36  ;;  %v11767_v57 = vld [vmem:[#allocation122_spill] sm:$0xff]  ;;  %v11769_v36 = vld [vmem:[#allocation81_spill] sm:$0xff] }
 0x4eb   :  { %v2767_v16 = vadd.f32 %v2766_v9, %v8261_v50  ;;  %v2894_v9 = vmul.f32 %v8284_v0, %v8284_v0  ;;  %v11766_v50 = vld [vmem:[#allocation119_spill] sm:$0xff] }
 0x4ec   :  { %2353 = vmatmul.f32.gmra.mxu2 %v11755_v52  ;;  %v8459_v4 = vpop.f32.mrf.mxu1  ;;  %v1713_v52 = vadd.f32 %v11759_v29, %v7789_v49  ;;  %v1719_v29 = vadd.f32 %v11764_v32, %v7789_v49  ;;  %v1829_v32 = vadd.f32 %v11767_v57, %v1716_v61 }
 0x4ed   :  { %11757 = vst [vmem:[#allocation111_spill] sm:$0xff] %v8459_v4  ;;  %v2937_v4 = vadd.f32 %v2936_v39, %v2888_v1  ;;  %v2768_v1 = vadd.f32 %v2767_v16, %v8272_v21 }
 0x4ee   :  { %v8465_v35 = vpop.f32.mrf.mxu0  ;;  %v1826_v62 = vadd.f32 %v11766_v50, %v1713_v52  ;;  %v1832_v16 = vadd.f32 %v11769_v36, %v1719_v29  ;;  %v2046_v50 = vadd.f32 %v8340_v25, %v1933_v8  ;;  %v11772_v29 = vld [vmem:[#allocation127_spill] sm:$0xff] }
 0x4ef   :  { %v1950_v48 = vpop.f32.mrf.mxu2  ;;  %2466 = vmatmul.f32.gmra.mxu3 %v11761_v11  ;;  %5016 = vmatmul.msk.f32.gmra.mxu1 %vm1280_vm4, %v11762_v27  ;;  %v2938_v39 = vadd.f32 %v2937_v4, %v2890_v33  ;;  %v2043_v11 = vadd.f32 %v8327_v23, %v1930_v34  ;;  %v1936_v27 = vadd.f32 %v8347_v19, %v1823_v26  ;;  %v11768_v4 = vld [vmem:[#allocation32_spill] sm:$0xff]  ;;  %v11773_v8 = vld [vmem:[#allocation27_spill] sm:$0xff] }
 0x4f0   :  { %v2769_v20 = vadd.f32 %v2768_v1, %v8284_v0  ;;  %v2896_v33 = vmul.f32 %v8296_v6, %v8296_v6  ;;  %v11770_v23 = vld [vmem:[#allocation124_spill] sm:$0xff]  ;;  %v1939_v19 = vadd.f32 %v8360_v63, %v1826_v62  ;;  %v2898_v26 = vmul.f32 %v8308_v42, %v8308_v42 }
 0x4f1   :  { %2579 = vmatmul.f32.gmra.mxu0 %v11765_v14  ;;  %v2939_v31 = vadd.f32 %v2938_v39, %v2892_v3  ;;  %v1722_v34 = vadd.f32 %v11770_v23, %v7789_v49  ;;  %v8507_v14 = vadd.f32 %v8319_v18, %v2043_v11  ;;  %v1725_v1 = vadd.f32 %v11772_v29, %v7789_v49  ;;  %v11774_v11 = vld [vmem:[#allocation132_spill] sm:$0xff] }
 0x4f2   :  { %v8489_v46 = vpop.f32.mrf.mxu3  ;;  %v2770_v3 = vadd.f32 %v2769_v20, %v8296_v6  ;;  %v1728_v25 = vadd.f32 %v11773_v8, %v7789_v49  ;;  %v2049_v62 = vadd.f32 %v8353_v53, %v1936_v27  ;;  %v2900_v18 = vmul.f32 %v8317_v44, %v8317_v44  ;;  %v11775_v20 = vld [vmem:[#allocation80_spill] sm:$0xff]  ;;  %v11778_v27 = vld [vmem:[#allocation134_spill] sm:$0xff]  ;;  %v11869_v6 = vld [vmem:[#allocation89_spill] sm:$0xff] }
 0x4f3   :  { %v2940_v61 = vadd.f32 %v2939_v31, %v2894_v9  ;;  %11771 = vst [vmem:[#allocation107_spill] sm:$0xff] %v8507_v14  ;;  %v1942_v31 = vadd.f32 %v8384_v54, %v1829_v32  ;;  %v8525_v23 = vadd.f32 %v8332_v43, %v2046_v50  ;;  %v2052_v53 = vadd.f32 %v8368_v59, %v1939_v19  ;;  %v11781_v50 = vld [vmem:[#allocation136_spill] sm:$0xff] }
 0x4f4   :  { %2356 = vmatmul.f32.gmra.mxu2 %v11768_v4  ;;  %v8501_v52 = vpop.f32.mrf.mxu1  ;;  %v2771_v57 = vadd.f32 %v2770_v3, %v8308_v42  ;;  %v11776_v4 = vld [vmem:[#allocation25_spill] sm:$0xff]  ;;  %v1945_v54 = vadd.f32 %v8409_v47, %v1832_v16  ;;  %v11779_v3 = vld [vmem:[#allocation130_spill] sm:$0xff]  ;;  %v8535_v8 = vadd.f32 %v8345_v40, %v2049_v62  ;;  %v1841_v47 = vadd.f32 %v11781_v50, %v1728_v25 }
 0x4f5   :  { %v2941_v9 = vadd.f32 %v2940_v61, %v2896_v33  ;;  %v1835_v36 = vadd.f32 %v11776_v4, %v1722_v34  ;;  %11777 = vst [vmem:[#allocation11_spill] sm:$0xff] %v8525_v23  ;;  %v2902_v61 = vmul.f32 %v8507_v14, %v8507_v14  ;;  %v1838_v29 = vadd.f32 %v11779_v3, %v1725_v1 }
 0x4f6   :  { %v8509_v39 = vpop.f32.mrf.mxu0  ;;  %v2772_v33 = vadd.f32 %v2771_v57, %v8317_v44  ;;  %11780 = vst [vmem:[#allocation110_spill] sm:$0xff] %v8535_v8  ;;  %v2055_v43 = vadd.f32 %v8396_v28, %v1942_v31  ;;  %v8545_v1 = vadd.f32 %v8358_v58, %v2052_v53  ;;  %v2058_v40 = vadd.f32 %v8421_v7, %v1945_v54  ;;  %v11788_v54 = vld [vmem:[#allocation135_spill] sm:$0xff]  ;;  %v11874_v44 = vld [vmem:[#allocation177_spill] sm:$0xff] }
 0x4f7   :  { %v1953_v63 = vpop.f32.mrf.mxu2  ;;  %2469 = vmatmul.f32.gmra.mxu3 %v11774_v11  ;;  %5017 = vmatmul.msk.f32.gmra.mxu1 %vm1280_vm4, %v11775_v20  ;;  %v2942_v32 = vadd.f32 %v2941_v9, %v2898_v26  ;;  %v1948_v34 = vadd.f32 %v8436_v22, %v1835_v36  ;;  %v11782_v26 = vld [vmem:[#allocation34_spill] sm:$0xff]  ;;  %v2904_v9 = vmul.f32 %v8525_v23, %v8525_v23  ;;  %v11785_v22 = vld [vmem:[#allocation29_spill] sm:$0xff] }
 0x4f8   :  { %v2773_v19 = vadd.f32 %v2772_v33, %v8507_v14  ;;  %11783 = vst [vmem:[#allocation7_spill] sm:$0xff] %v8545_v1  ;;  %v1951_v62 = vadd.f32 %v1950_v48, %v1838_v29  ;;  %v1731_v31 = vadd.f32 %v11785_v22, %v7789_v49  ;;  %v2906_v11 = vmul.f32 %v8535_v8, %v8535_v8  ;;  %v11787_v48 = vld [vmem:[#allocation140_spill] sm:$0xff] }
 0x4f9   :  { %2582 = vmatmul.f32.gmra.mxu0 %v11778_v27  ;;  %v2943_v16 = vadd.f32 %v2942_v32, %v2900_v18  ;;  %v8556_v20 = vadd.f32 %v8382_v51, %v2055_v43  ;;  %v2061_v58 = vadd.f32 %v8450_v56, %v1948_v34  ;;  %v1954_v4 = vadd.f32 %v1953_v63, %v1841_v47  ;;  %v11789_v27 = vld [vmem:[#allocation131_spill] sm:$0xff]  ;;  %v11791_v63 = vld [vmem:[#allocation137_spill] sm:$0xff] }
 0x4fa   :  { %v2066_v59 = vpop.f32.mrf.mxu3  ;;  %v2774_v57 = vadd.f32 %v2773_v19, %v8525_v23  ;;  %v1844_v36 = vadd.f32 %v11787_v48, %v1731_v31  ;;  %v2908_v33 = vmul.f32 %v8545_v1, %v8545_v1  ;;  %v8567_v51 = vadd.f32 %v8407_v10, %v2058_v40  ;;  %v11800_v48 = vld [vmem:[#allocation133_spill] sm:$0xff] }
 0x4fb   :  { %v2944_v25 = vadd.f32 %v2943_v16, %v2902_v61  ;;  %11786 = vst [vmem:[#allocation113_spill] sm:$0xff] %v8556_v20  ;;  %v2064_v56 = vadd.f32 %v8489_v46, %v1951_v62  ;;  %v2910_v43 = vmul.f32 %v8556_v20, %v8556_v20  ;;  %v8575_v34 = vadd.f32 %v8432_v15, %v2061_v58  ;;  %v11793_v16 = vld [vmem:[#allocation139_spill] sm:$0xff]  ;;  %v11794_v46 = vld [vmem:[#allocation37_spill] sm:$0xff]  ;;  %v11797_v15 = vld [vmem:[#allocation66_spill] sm:$0xff] }
 0x4fc   :  { %2359 = vmatmul.f32.gmra.mxu2 %v11782_v26  ;;  %v8548_v28 = vpop.f32.mrf.mxu1  ;;  %v2775_v53 = vadd.f32 %v2774_v57, %v8535_v8  ;;  %11790 = vst [vmem:[#allocation40_spill] sm:$0xff] %v8567_v51  ;;  %v2067_v50 = vadd.f32 %v2066_v59, %v1954_v4  ;;  %v1734_v10 = vadd.f32 %v11793_v16, %v7789_v49  ;;  %v11805_v16 = vld [vmem:[#allocation143_spill] sm:$0xff] }
 0x4fd   :  { %11784 = vst [vmem:[#allocation109_spill] sm:$0xff] %v8548_v28  ;;  %v2945_v32 = vadd.f32 %v2944_v25, %v2904_v9  ;;  %v2912_v9 = vmul.f32 %v8567_v51, %v8567_v51  ;;  %v8584_v40 = vadd.f32 %v8465_v35, %v2064_v56  ;;  %v2914_v57 = vmul.f32 %v8575_v34, %v8575_v34  ;;  %v11870_v8 = vld [vmem:[#allocation175_spill] sm:$0xff] }
 0x4fe   :  { %v2182_v18 = vpop.f32.mrf.mxu0  ;;  %v2776_v61 = vadd.f32 %v2775_v53, %v8545_v1  ;;  %11792 = vst [vmem:[#allocation14_spill] sm:$0xff] %v8575_v34  ;;  %v1847_v22 = vadd.f32 %v11797_v15, %v1734_v10 }
 0x4ff   :  { %v1956_v7 = vpop.f32.mrf.mxu2  ;;  %2472 = vmatmul.f32.gmra.mxu3 %v11788_v54  ;;  %5018 = vmatmul.msk.f32.gmra.mxu1 %vm1280_vm4, %v11789_v27  ;;  %v2946_v29 = vadd.f32 %v2945_v32, %v2906_v11  ;;  %11795 = vst [vmem:[#allocation46_spill] sm:$0xff] %v8584_v40  ;;  %v8593_v11 = vadd.f32 %v8509_v39, %v2067_v50  ;;  %v11801_v54 = vld [vmem:[#allocation142_spill] sm:$0xff]  ;;  %v5724_v39 = vld [vmem:[%s11139_s2] sm:$0x3]  ;;  %s5757_s2 = smov 86  }
 0x500   :  { %v1957_v3 = vadd.f32 %v1956_v7, %v1844_v36  ;;  %v2777_v19 = vadd.f32 %v2776_v61, %v8556_v20  ;;  %v11799_v7 = vld [vmem:[#allocation31_spill] sm:$0xff]  ;;  %v2916_v53 = vmul.f32 %v8584_v40, %v8584_v40  ;;  %v8605_v27 = vperm.slane %v5724_v39, 1 }
 0x501   :  { %2585 = vmatmul.f32.gmra.mxu0 %v11791_v63  ;;  %v2947_v26 = vadd.f32 %v2946_v29, %v2908_v33  ;;  %11798 = vst [vmem:[#allocation15_spill] sm:$0xff] %v8593_v11  ;;  %v2918_v63 = vmul.f32 %v8593_v11, %v8593_v11 }
 0x502   :  { %v2069_v47 = vpop.f32.mrf.mxu3  ;;  %v2778_v59 = vadd.f32 %v2777_v19, %v8567_v51  ;;  %v2206_v10 = vadd.f32 %v11805_v16, %v8605_v27  ;;  %v2209_v39 = vadd.f32 %v7879_v24, %v8605_v27  ;;  %v11812_v16 = vld [vmem:[#allocation67_spill] sm:$0xff] }
 0x503   :  { %v2070_v31 = vadd.f32 %v2069_v47, %v1957_v3  ;;  %v2948_v49 = vadd.f32 %v2947_v26, %v2910_v43  ;;  %v11803_v43 = vld [vmem:[#allocation42_spill] sm:$0xff] }
 0x504   :  { %2362 = vmatmul.f32.gmra.mxu2 %v11794_v46  ;;  %v8586_v62 = vpop.f32.mrf.mxu1  ;;  %v2779_v4 = vadd.f32 %v2778_v59, %v8575_v34 }
 0x505   :  { %11796 = vst [vmem:[#allocation112_spill] sm:$0xff] %v8586_v62  ;;  %v2949_v36 = vadd.f32 %v2948_v49, %v2912_v9  ;;  %v8608_v33 = vadd.f32 %v2182_v18, %v2070_v31  ;;  %v11807_v49 = vld [vmem:[#allocation33_spill] sm:$0xff] }
 0x506   :  { %v2185_v25 = vpop.f32.mrf.mxu0  ;;  %v2780_v32 = vadd.f32 %v2779_v4, %v8584_v40 }
 0x507   :  { %v1959_v58 = vpop.f32.mrf.mxu2  ;;  %2475 = vmatmul.f32.gmra.mxu3 %v11799_v7  ;;  %5019 = vmatmul.msk.f32.gmra.mxu1 %vm1280_vm4, %v11800_v48  ;;  %11802 = vst [vmem:[#allocation12_spill] sm:$0xff] %v8608_v33  ;;  %v2950_v56 = vadd.f32 %v2949_v36, %v2914_v57  ;;  %v2920_v18 = vmul.f32 %v8608_v33, %v8608_v33  ;;  %v11808_v57 = vld [vmem:[#allocation138_spill] sm:$0xff] }
 0x508   :  { %v1960_v35 = vadd.f32 %v1959_v58, %v1847_v22  ;;  %v2781_v3 = vadd.f32 %v2780_v32, %v8593_v11  ;;  %v11809_v58 = vld [vmem:[#allocation69_spill] sm:$0xff] }
 0x509   :  { %2588 = vmatmul.f32.gmra.mxu0 %v11801_v54  ;;  %v2951_v50 = vadd.f32 %v2950_v56, %v2916_v53  ;;  %v11810_v53 = vld [vmem:[#allocation45_spill] sm:$0xff] }
 0x50a   :  { %v2072_v61 = vpop.f32.mrf.mxu3  ;;  %v2782_v19 = vadd.f32 %v2781_v3, %v8608_v33 }
 0x50b   :  { %v2073_v29 = vadd.f32 %v2072_v61, %v1960_v35  ;;  %v2952_v9 = vadd.f32 %v2951_v50, %v2918_v63 }
 0x50c   :  { %2365 = vmatmul.f32.gmra.mxu2 %v11803_v43  ;;  %v8614_v47 = vpop.f32.mrf.mxu1 }
 0x50d   :  { %11804 = vst [vmem:[#allocation9_spill] sm:$0xff] %v8614_v47  ;;  %v8621_v46 = vadd.f32 %v2185_v25, %v2073_v29  ;;  %v2953_v4 = vadd.f32 %v2952_v9, %v2920_v18 }
 0x50e   :  { %v2544_v26 = vpop.f32.mrf.mxu0 }
 0x50f   :  { %11806 = vst [vmem:[#allocation115_spill] sm:$0xff] %v8621_v46  ;;  %v2318_v15 = vpop.f32.mrf.mxu2  ;;  %v2783_v22 = vadd.f32 %v2782_v19, %v8621_v46  ;;  %v2922_v59 = vmul.f32 %v8621_v46, %v8621_v46  ;;  %2478 = vmatmul.f32.gmra.mxu3 %v11807_v49  ;;  %5020 = vmatmul.msk.f32.gmra.mxu1 %vm1280_vm4, %v11808_v57  ;;  %v11814_v19 = vld [vmem:[#allocation144_spill] sm:$0xff] }
 0x510   :  { %v2319_v31 = vadd.f32 %v2318_v15, %v2206_v10  ;;  %v11813_v10 = vld [vmem:[#allocation141_spill] sm:$0xff] }
 0x511   :  { %2591 = vmatmul.f32.gmra.mxu0 %v11809_v58  ;;  %v2784_v35 = vrot.slane %v2783_v22, 4  ;;  %v2954_v48 = vadd.f32 %v2953_v4, %v2922_v59 }
 0x512   :  { %v2431_v25 = vpop.f32.mrf.mxu3 }
 0x513   :  { %v2785_v7 = vadd.f32 %v2784_v35, %v2783_v22  ;;  %v2432_v36 = vadd.f32 %v2431_v25, %v2319_v31  ;;  %v2955_v29 = vrot.slane %v2954_v48, 4  ;;  %v11816_v22 = vld [vmem:[#allocation48_spill] sm:$0xff]  ;;  %v2212_v31 = vadd.f32 %v7911_v12, %v8605_v27  ;;  %v11818_v12 = vld [vmem:[#allocation41_spill] sm:$0xff] }
 0x514   :  { %2368 = vmatmul.f32.gmra.mxu2 %v11810_v53  ;;  %v2657_v54 = vpop.f32.mrf.mxu1 }
 0x515   :  { %v2786_v32 = vrot.slane %v2785_v7, 2  ;;  %v2545_v56 = vadd.f32 %v2544_v26, %v2432_v36  ;;  %v2956_v24 = vadd.f32 %v2955_v29, %v2954_v48  ;;  %v11820_v48 = vld [vmem:[#allocation72_spill] sm:$0xff] }
 0x516   :  { %v2547_v63 = vpop.f32.mrf.mxu0 }
 0x517   :  { %v2321_v61 = vpop.f32.mrf.mxu2  ;;  %v2787_v3 = vadd.f32 %v2786_v32, %v2785_v7  ;;  %v8633_v43 = vadd.f32 %v2657_v54, %v2545_v56  ;;  %2481 = vmatmul.f32.gmra.mxu3 %v11812_v16  ;;  %5021 = vmatmul.msk.f32.gmra.mxu1 %vm1280_vm4, %v11813_v10  ;;  %v2957_v4 = vrot.slane %v2956_v24, 2  ;;  %v11819_v7 = vld [vmem:[#allocation36_spill] sm:$0xff]  ;;  %v2215_v56 = vadd.f32 %v7940_v5, %v8605_v27  ;;  %v11824_v10 = vld [vmem:[#allocation145_spill] sm:$0xff] }
 0x518   :  { %v2322_v50 = vadd.f32 %v2321_v61, %v2209_v39  ;;  %v11821_v39 = vld [vmem:[#allocation50_spill] sm:$0xff]  ;;  %v11823_v5 = vld [vmem:[#allocation44_spill] sm:$0xff] }
 0x519   :  { %11811 = vst [vmem:[#allocation18_spill] sm:$0xff] %v8633_v43  ;;  %2594 = vmatmul.f32.gmra.mxu0 %v11814_v19  ;;  %v2788_v18 = vrot.slane %v2787_v3, 1  ;;  %v2958_v53 = vadd.f32 %v2957_v4, %v2956_v24  ;;  %v11825_v19 = vld [vmem:[#allocation147_spill] sm:$0xff] }
 0x51a   :  { %v2434_v9 = vpop.f32.mrf.mxu3 }
 0x51b   :  { %v8639_v15 = vadd.f32 %v2788_v18, %v2787_v3  ;;  %v2435_v26 = vadd.f32 %v2434_v9, %v2322_v50  ;;  %v2959_v29 = vrot.slane %v2958_v53, 1 }
 0x51c   :  { %2371 = vmatmul.f32.gmra.mxu2 %v11816_v22  ;;  %v2660_v59 = vpop.f32.mrf.mxu1 }
 0x51d   :  { %11815 = vst [vmem:[#allocation117_spill] sm:$0xff] %v8639_v15  ;;  %v2548_v49 = vadd.f32 %v2547_v63, %v2435_v26  ;;  %3048 = vrot.lane.b32.xlu1 %v8639_v15, %s5757_s2  ;;  %3040 = vrot.lane.b32.xlu2 %v8639_v15, %s5758_s30  ;;  %v8671_v9 = vadd.f32 %v2959_v29, %v2958_v53  ;;  %v11827_v26 = vld [vmem:[#allocation55_spill] sm:$0xff] }
 0x51e   :  { %v2550_v57 = vpop.f32.mrf.mxu0  ;;  %3031 = vrot.lane.b32.xlu0 %v8639_v15, %s5759_s9 }
 0x51f   :  { %v2324_v58 = vpop.f32.mrf.mxu2  ;;  %v8650_v35 = vadd.f32 %v2660_v59, %v2548_v49  ;;  %2484 = vmatmul.f32.gmra.mxu3 %v11818_v12  ;;  %5022 = vmatmul.msk.f32.gmra.mxu1 %vm1280_vm4, %v11819_v7  ;;  %11826 = vst [vmem:[#allocation53_spill] sm:$0xff] %v8671_v9  ;;  %v11828_v59 = vld [vmem:[#allocation79_spill] sm:$0xff]  ;;  %v11831_v7 = vld [vmem:[#allocation70_spill] sm:$0xff] }
 0x520   :  { %v2325_v25 = vadd.f32 %v2324_v58, %v2212_v31  ;;  %v2218_v31 = vadd.f32 %v11828_v59, %v8605_v27  ;;  %v11830_v12 = vld [vmem:[#allocation47_spill] sm:$0xff] }
 0x521   :  { %11817 = vst [vmem:[#allocation114_spill] sm:$0xff] %v8650_v35  ;;  %2597 = vmatmul.f32.gmra.mxu0 %v11820_v48  ;;  %v11832_v48 = vld [vmem:[#allocation148_spill] sm:$0xff] }
 0x522   :  { %v2437_v36 = vpop.f32.mrf.mxu3 }
 0x523   :  { %v2438_v54 = vadd.f32 %v2437_v36, %v2325_v25 }
 0x524   :  { %2374 = vmatmul.f32.gmra.mxu2 %v11821_v39  ;;  %v2663_v32 = vpop.f32.mrf.mxu1 }
 0x525   :  { %v2551_v63 = vadd.f32 %v2550_v57, %v2438_v54  ;;  %3072 = vrot.lane.b32.xlu1 %v8639_v15, %s5760_s10  ;;  %3064 = vrot.lane.b32.xlu2 %v8639_v15, %s5761_s11  ;;  %v11833_v54 = vld [vmem:[#allocation58_spill] sm:$0xff] }
 0x526   :  { %v2553_v61 = vpop.f32.mrf.mxu0  ;;  %3056 = vrot.lane.b32.xlu0 %v8639_v15, %s5762_s12 }
 0x527   :  { %v2327_v3 = vpop.f32.mrf.mxu2  ;;  %v8665_v50 = vadd.f32 %v2663_v32, %v2551_v63  ;;  %2487 = vmatmul.f32.gmra.mxu3 %v11823_v5  ;;  %5023 = vmatmul.msk.f32.gmra.mxu1 %vm1280_vm4, %v11824_v10  ;;  %v2221_v32 = vadd.f32 %v8006_v13, %v8605_v27  ;;  %v11835_v5 = vld [vmem:[#allocation77_spill] sm:$0xff]  ;;  %v11836_v13 = vld [vmem:[#allocation151_spill] sm:$0xff] }
 0x528   :  { %v2328_v16 = vadd.f32 %v2327_v3, %v2215_v56 }
 0x529   :  { %11822 = vst [vmem:[#allocation20_spill] sm:$0xff] %v8665_v50  ;;  %2600 = vmatmul.f32.gmra.mxu0 %v11825_v19 }
 0x52a   :  { %v2440_v18 = vpop.f32.mrf.mxu3 }
 0x52b   :  { %v2441_v24 = vadd.f32 %v2440_v18, %v2328_v16  ;;  %v11834_v16 = vld [vmem:[#allocation49_spill] sm:$0xff] }
 0x52c   :  { %2377 = vmatmul.f32.gmra.mxu2 %v11827_v26  ;;  %v2666_v22 = vpop.f32.mrf.mxu1  ;;  %v11837_v18 = vld [vmem:[#allocation61_spill] sm:$0xff]  ;;  %v2224_v26 = vadd.f32 %v8036_v41, %v8605_v27 }
 0x52d   :  { %v2554_v49 = vadd.f32 %v2553_v61, %v2441_v24  ;;  %3036 = vrot.lane.b32.xlu1 %v8671_v9, %s5759_s9  ;;  %3088 = vrot.lane.b32.xlu2 %v8639_v15, %s5763_s13  ;;  %s5773_s9 = smov 14  }
 0x52e   :  { %v2556_v57 = vpop.f32.mrf.mxu0  ;;  %3080 = vrot.lane.b32.xlu0 %v8639_v15, %s5764_s17 }
 0x52f   :  { %v2330_v58 = vpop.f32.mrf.mxu2  ;;  %v8682_v4 = vadd.f32 %v2666_v22, %v2554_v49  ;;  %2490 = vmatmul.f32.gmra.mxu3 %v11830_v12  ;;  %5024 = vmatmul.msk.f32.gmra.mxu1 %vm1280_vm4, %v11831_v7  ;;  %v11839_v12 = vld [vmem:[#allocation64_spill] sm:$0xff] }
 0x530   :  { %v2331_v25 = vadd.f32 %v2330_v58, %v2218_v31  ;;  %v11838_v58 = vld [vmem:[#allocation149_spill] sm:$0xff] }
 0x531   :  { %11829 = vst [vmem:[#allocation22_spill] sm:$0xff] %v8682_v4  ;;  %2603 = vmatmul.f32.gmra.mxu0 %v11832_v48  ;;  %v2227_v48 = vadd.f32 %v8063_v38, %v8605_v27 }
 0x532   :  { %v2443_v36 = vpop.f32.mrf.mxu3 }
 0x533   :  { %v2444_v53 = vadd.f32 %v2443_v36, %v2331_v25 }
 0x534   :  { %2380 = vmatmul.f32.gmra.mxu2 %v11833_v54  ;;  %v2669_v39 = vpop.f32.mrf.mxu1 }
 0x535   :  { %v2557_v56 = vadd.f32 %v2556_v57, %v2444_v53  ;;  %3060 = vrot.lane.b32.xlu1 %v8671_v9, %s5762_s12  ;;  %3052 = vrot.lane.b32.xlu2 %v8671_v9, %s5757_s2  ;;  %s5771_s2 = smov 42  }
 0x536   :  { %v2559_v63 = vpop.f32.mrf.mxu0  ;;  %3097 = vrot.lane.b32.xlu0 %v8639_v15, %s5765_s0 }
 0x537   :  { %v2333_v61 = vpop.f32.mrf.mxu2  ;;  %v8697_v3 = vadd.f32 %v2669_v39, %v2557_v56  ;;  %2493 = vmatmul.f32.gmra.mxu3 %v11834_v16  ;;  %5025 = vmatmul.msk.f32.gmra.mxu1 %vm1280_vm4, %v11835_v5  ;;  %v11840_v39 = vld [vmem:[#allocation54_spill] sm:$0xff] }
 0x538   :  { %v2334_v29 = vadd.f32 %v2333_v61, %v2221_v32  ;;  %v11841_v32 = vld [vmem:[#allocation153_spill] sm:$0xff] }
 0x539   :  { %2606 = vmatmul.f32.gmra.mxu0 %v11836_v13 }
 0x53a   :  { %v2446_v10 = vpop.f32.mrf.mxu3 }
 0x53b   :  { %v2447_v19 = vadd.f32 %v2446_v10, %v2334_v29 }
 0x53c   :  { %2383 = vmatmul.f32.gmra.mxu2 %v11837_v18  ;;  %v2672_v24 = vpop.f32.mrf.mxu1 }
 0x53d   :  { %v2560_v22 = vadd.f32 %v2559_v63, %v2447_v19  ;;  %3084 = vrot.lane.b32.xlu1 %v8671_v9, %s5764_s17  ;;  %3076 = vrot.lane.b32.xlu2 %v8671_v9, %s5760_s10  ;;  %v11842_v63 = vld [vmem:[#allocation74_spill] sm:$0xff]  ;;  %v11844_v19 = vld [vmem:[#allocation76_spill] sm:$0xff]  ;;  %s5774_s10 = smov 84  }
 0x53e   :  { %v2562_v59 = vpop.f32.mrf.mxu0  ;;  %3044 = vrot.lane.b32.xlu0 %v8671_v9, %s5758_s30  ;;  %s5772_s30 = smov 28  }
 0x53f   :  { %v2336_v31 = vpop.f32.mrf.mxu2  ;;  %v8712_v49 = vadd.f32 %v2672_v24, %v2560_v22  ;;  %2496 = vmatmul.f32.gmra.mxu3 %v8003_v55  ;;  %5026 = vmatmul.msk.f32.gmra.mxu1 %vm1280_vm4, %v11838_v58  ;;  %v11845_v22 = vld [vmem:[#allocation60_spill] sm:$0xff] }
 0x540   :  { %v2337_v57 = vadd.f32 %v2336_v31, %v2224_v26 }
 0x541   :  { %2609 = vmatmul.f32.gmra.mxu0 %v8014_v45 }
 0x542   :  { %v2449_v41 = vpop.f32.mrf.mxu3 }
 0x543   :  { %v2450_v25 = vadd.f32 %v2449_v41, %v2337_v57  ;;  %v11848_v41 = vld [vmem:[#allocation157_spill] sm:$0xff] }
 0x544   :  { %2386 = vmatmul.f32.gmra.mxu2 %v11839_v12  ;;  %v2675_v7 = vpop.f32.mrf.mxu1  ;;  %v11850_v12 = vld [vmem:[#allocation86_spill] sm:$0xff] }
 0x545   :  { %v2563_v36 = vadd.f32 %v2562_v59, %v2450_v25  ;;  %3092 = vrot.lane.b32.xlu2 %v8671_v9, %s5763_s13 }
 0x546   :  { %v2565_v53 = vpop.f32.mrf.mxu0  ;;  %3068 = vrot.lane.b32.xlu0 %v8671_v9, %s5761_s11 }
 0x547   :  { %v2339_v55 = vpop.f32.mrf.mxu2  ;;  %v8725_v54 = vadd.f32 %v2675_v7, %v2563_v36  ;;  %2499 = vmatmul.f32.gmra.mxu3 %v8031_v17  ;;  %5027 = vmatmul.msk.f32.gmra.mxu1 %vm1280_vm4, %v11840_v39  ;;  %v11843_v17 = vld [vmem:[#allocation56_spill] sm:$0xff] }
 0x548   :  { %v2340_v45 = vadd.f32 %v2339_v55, %v2227_v48  ;;  %v11852_v55 = vld [vmem:[#allocation158_spill] sm:$0xff]  ;;  %v11854_v39 = vld [vmem:[#allocation88_spill] sm:$0xff] }
 0x549   :  { %2612 = vmatmul.f32.gmra.mxu0 %v11841_v32 }
 0x54a   :  { %v2452_v38 = vpop.f32.mrf.mxu3 }
 0x54b   :  { %v2453_v56 = vadd.f32 %v2452_v38, %v2340_v45 }
 0x54c   :  { %2389 = vmatmul.f32.gmra.mxu2 %v11842_v63  ;;  %v2678_v61 = vpop.f32.mrf.mxu1  ;;  %v11855_v63 = vld [vmem:[#allocation165_spill] sm:$0xff] }
 0x54d   :  { %v2566_v29 = vadd.f32 %v2565_v53, %v2453_v56  ;;  %v11851_v53 = vld [vmem:[#allocation78_spill] sm:$0xff] }
 0x54e   :  { %v8732_v16 = vpop.f32.mrf.mxu0  ;;  %3106 = vrot.lane.b32.xlu0 %v8671_v9, %s5765_s0 }
 0x54f   :  { %v8736_v5 = vpop.f32.mrf.mxu2  ;;  %v8738_v13 = vadd.f32 %v2678_v61, %v2566_v29  ;;  %2502 = vmatmul.f32.gmra.mxu3 %v8058_v2  ;;  %5028 = vmatmul.msk.f32.gmra.mxu1 %vm1280_vm4, %v11843_v17  ;;  %v11846_v2 = vld [vmem:[#allocation156_spill] sm:$0xff] }
 0x550   :  { %v11856_v61 = vld [vmem:[#allocation164_spill] sm:$0xff] }
 0x551   :  { %2615 = vmatmul.f32.gmra.mxu0 %v8073_v37  ;;  %v11847_v37 = vld [vmem:[#allocation84_spill] sm:$0xff] }
 0x552   :  { %v8744_v10 = vpop.f32.mrf.mxu3  ;;  %v11857_v29 = vld [vmem:[#allocation168_spill] sm:$0xff] }
 0x554   :  { %2392 = vmatmul.f32.gmra.mxu2 %v11844_v19  ;;  %v8747_v18 = vpop.f32.mrf.mxu1  ;;  %v11858_v19 = vld [vmem:[#allocation90_spill] sm:$0xff] }
 0x556   :  { %v8749_v24 = vpop.f32.mrf.mxu0 }
 0x557   :  { %v8751_v26 = vpop.f32.mrf.mxu2  ;;  %2505 = vmatmul.f32.gmra.mxu3 %v8088_v60  ;;  %5029 = vmatmul.msk.f32.gmra.mxu1 %vm1280_vm4, %v11845_v22  ;;  %v11849_v60 = vld [vmem:[#allocation160_spill] sm:$0xff] }
 0x559   :  { %2618 = vmatmul.f32.gmra.mxu0 %v11846_v2 }
 0x55a   :  { %v8757_v59 = vpop.f32.mrf.mxu3 }
 0x55c   :  { %2395 = vmatmul.f32.gmra.mxu2 %v11847_v37  ;;  %v8760_v31 = vpop.f32.mrf.mxu1 }
 0x55e   :  { %v8762_v57 = vpop.f32.mrf.mxu0 }
 0x55f   :  { %v8764_v58 = vpop.f32.mrf.mxu2  ;;  %2508 = vmatmul.f32.gmra.mxu3 %v8119_v30  ;;  %5030 = vmatmul.msk.f32.gmra.mxu1 %vm1280_vm4, %v11848_v41  ;;  %v11853_v30 = vld [vmem:[#allocation163_spill] sm:$0xff]  ;;  %v11859_v41 = vld [vmem:[#allocation85_spill] sm:$0xff] }
 0x561   :  { %2621 = vmatmul.f32.gmra.mxu0 %v11849_v60  ;;  %v11860_v60 = vld [vmem:[#allocation169_spill] sm:$0xff] }
 0x562   :  { %v8770_v25 = vpop.f32.mrf.mxu3 }
 0x564   :  { %2398 = vmatmul.f32.gmra.mxu2 %v11850_v12  ;;  %v8773_v7 = vpop.f32.mrf.mxu1  ;;  %v11861_v12 = vld [vmem:[#allocation172_spill] sm:$0xff] }
 0x566   :  { %v8775_v48 = vpop.f32.mrf.mxu0 }
 0x567   :  { %v8777_v36 = vpop.f32.mrf.mxu2  ;;  %2511 = vmatmul.f32.gmra.mxu3 %v11851_v53  ;;  %5031 = vmatmul.msk.f32.gmra.mxu1 %vm1280_vm4, %v11852_v55  ;;  %v11862_v55 = vld [vmem:[#allocation102_spill] sm:$0xff] }
 0x569   :  { %2624 = vmatmul.f32.gmra.mxu0 %v11853_v30 }
 0x56a   :  { %v8783_v45 = vpop.f32.mrf.mxu3 }
 0x56c   :  { %2401 = vmatmul.f32.gmra.mxu2 %v11854_v39  ;;  %v8786_v32 = vpop.f32.mrf.mxu1 }
 0x56e   :  { %v8788_v38 = vpop.f32.mrf.mxu0 }
 0x56f   :  { %v8790_v56 = vpop.f32.mrf.mxu2  ;;  %2514 = vmatmul.f32.gmra.mxu3 %v11855_v63  ;;  %5032 = vmatmul.msk.f32.gmra.mxu1 %vm1280_vm4, %v11856_v61  ;;  %v11863_v61 = vld [vmem:[#allocation87_spill] sm:$0xff] }
 0x571   :  { %2627 = vmatmul.f32.gmra.mxu0 %v11857_v29  ;;  %v11864_v29 = vld [vmem:[#allocation92_spill] sm:$0xff] }
 0x572   :  { %v8796_v17 = vpop.f32.mrf.mxu3 }
 0x574   :  { %2404 = vmatmul.f32.gmra.mxu2 %v11858_v19  ;;  %v8799_v22 = vpop.f32.mrf.mxu1  ;;  %v11865_v19 = vld [vmem:[#allocation174_spill] sm:$0xff] }
 0x576   :  { %v8801_v2 = vpop.f32.mrf.mxu0 }
 0x577   :  { %v8803_v37 = vpop.f32.mrf.mxu2  ;;  %2517 = vmatmul.f32.gmra.mxu3 %v11859_v41  ;;  %5033 = vmatmul.msk.f32.gmra.mxu1 %vm1280_vm4, %v11860_v60  ;;  %v11866_v60 = vld [vmem:[#allocation105_spill] sm:$0xff] }
 0x579   :  { %2630 = vmatmul.f32.gmra.mxu0 %v11861_v12 }
 0x57a   :  { %v8809_v53 = vpop.f32.mrf.mxu3 }
 0x57c   :  { %2407 = vmatmul.f32.gmra.mxu2 %v11862_v55  ;;  %v8812_v30 = vpop.f32.mrf.mxu1 }
 0x57e   :  { %v8814_v39 = vpop.f32.mrf.mxu0 }
 0x57f   :  { %v8816_v63 = vpop.f32.mrf.mxu2  ;;  %2520 = vmatmul.f32.gmra.mxu3 %v11863_v61  ;;  %5034 = vmatmul.msk.f32.gmra.mxu1 %vm1280_vm4, %v11864_v29  ;;  %v11871_v61 = vld [vmem:[#allocation176_spill] sm:$0xff] }
 0x581   :  { %2633 = vmatmul.f32.gmra.mxu0 %v11865_v19 }
 0x582   :  { %v8822_v41 = vpop.f32.mrf.mxu3 }
 0x584   :  { %2410 = vmatmul.f32.gmra.mxu2 %v11866_v60  ;;  %v8825_v12 = vpop.f32.mrf.mxu1 }
 0x585   :  { %11867 = vst [vmem:[#allocation62_spill] sm:$0xff] %v8825_v12  ;;  %v11913_v12 = vld [vmem:[#allocation106_spill] sm:$0xff] }
 0x586   :  { %v8827_v55 = vpop.f32.mrf.mxu0 }
 0x587   :  { %11868 = vst [vmem:[#allocation59_spill] sm:$0xff] %v8827_v55  ;;  %v8829_v23 = vpop.f32.mrf.mxu2  ;;  %2523 = vmatmul.f32.gmra.mxu3 %v11869_v6  ;;  %5035 = vmatmul.msk.f32.gmra.mxu1 %vm1280_vm4, %v11870_v8 }
 0x589   :  { %2636 = vmatmul.f32.gmra.mxu0 %v11871_v61 }
 0x58a   :  { %v8835_v29 = vpop.f32.mrf.mxu3 }
 0x58c   :  { %v8837_v19 = vpop.f32.mrf.mxu1 }
 0x58d   :  { %11872 = vst [vmem:[#allocation24_spill] sm:$0xff] %v8837_v19 }
 0x58e   :  { %v8839_v42 = vpop.f32.mrf.mxu0 }
 0x58f   :  { %11873 = vst [vmem:[#allocation19_spill] sm:$0xff] %v8839_v42  ;;  %v8841_v60 = vpop.f32.mrf.mxu2  ;;  %5036 = vmatmul.msk.f32.gmra.mxu1 %vm1280_vm4, %v11874_v44 }
 0x592   :  { %v8845_v21 = vpop.f32.mrf.mxu3 }
 0x593   :  { %11875 = vst [vmem:[#allocation16_spill] sm:$0xff] %v8845_v21 }
 0x594   :  { %v8847_v0 = vpop.f32.mrf.mxu1 }
 0x595   :  { %11876 = vst [vmem:[#allocation123_spill] sm:$0xff] %v8847_v0 }
 0x596   :  { %v8849_v6 = vpop.f32.mrf.mxu0 }
 0x597   :  { %11877 = vst [vmem:[#allocation26_spill] sm:$0xff] %v8849_v6  ;;  %v8851_v8 = vpop.f32.mrf.mxu2 }
 0x59a   :  { %v8853_v61 = vpop.f32.mrf.mxu3 }
 0x59b   :  { %11878 = vst [vmem:[#allocation21_spill] sm:$0xff] %v8853_v61  ;;  %v11918_v61 = vld [vmem:[#allocation108_spill] sm:$0xff] }
 0x59c   :  { %v8855_v46 = vpop.f32.mrf.mxu1 }
 0x59d   :  { %11879 = vst [vmem:[#allocation65_spill] sm:$0xff] %v8855_v46 }
 0x59e   :  { %v8857_v33 = vpop.f32.mrf.mxu0 }
 0x59f   :  { %11880 = vst [vmem:[#allocation125_spill] sm:$0xff] %v8857_v33  ;;  %v8859_v1 = vpop.f32.mrf.mxu2 }
 0x5a0   :  { %11881 = vst [vmem:[#allocation28_spill] sm:$0xff] %v8859_v1  ;;  %v8953_v1 = vadd.f32 %v11918_v61, %v8605_v27  ;;  %v11921_v61 = vld [vmem:[#allocation35_spill] sm:$0xff] }
 0x5a2   :  { %v8861_v20 = vpop.f32.mrf.mxu3  ;;  %11919 = vst [vmem:[#allocation80_spill] sm:$0xff] %v8953_v1  ;;  %v8970_v1 = vadd.f32 %v11921_v61, %v8605_v27 }
 0x5a3   :  { %11882 = vst [vmem:[#allocation43_spill] sm:$0xff] %v8861_v20 }
 0x5a4   :  { %v8863_v14 = vpop.f32.mrf.mxu1 }
 0x5a5   :  { %11883 = vst [vmem:[#allocation23_spill] sm:$0xff] %v8863_v14 }
 0x5a6   :  { %v8865_v44 = vpop.f32.mrf.mxu0 }
 0x5a7   :  { %11884 = vst [vmem:[#allocation121_spill] sm:$0xff] %v8865_v44  ;;  %v8867_v51 = vpop.f32.mrf.mxu2 }
 0x5a8   :  { %11885 = vst [vmem:[#allocation82_spill] sm:$0xff] %v8867_v51  ;;  %v2861_v51 = vmul.f32 %v8633_v43, %v8633_v43 }
 0x5aa   :  { %v8869_v11 = vpop.f32.mrf.mxu3 }
 0x5ab   :  { %11886 = vst [vmem:[#allocation51_spill] sm:$0xff] %v8869_v11 }
 0x5ac   :  { %v8871_v40 = vpop.f32.mrf.mxu1 }
 0x5ad   :  { %11887 = vst [vmem:[#allocation52_spill] sm:$0xff] %v8871_v40 }
 0x5ae   :  { %v8873_v34 = vpop.f32.mrf.mxu0 }
 0x5af   :  { %11888 = vst [vmem:[#allocation30_spill] sm:$0xff] %v8873_v34  ;;  %v8875_v9 = vpop.f32.mrf.mxu2 }
 0x5b0   :  { %11889 = vst [vmem:[#allocation116_spill] sm:$0xff] %v8875_v9 }
 0x5b2   :  { %v8877_v15 = vpop.f32.mrf.mxu3 }
 0x5b3   :  { %11890 = vst [vmem:[#allocation13_spill] sm:$0xff] %v8877_v15 }
 0x5b4   :  { %v8879_v47 = vpop.f32.mrf.mxu1 }
 0x5b5   :  { %11891 = vst [vmem:[#allocation57_spill] sm:$0xff] %v8879_v47  ;;  %v11902_v47 = vld [vmem:[#allocation63_spill] sm:$0xff] }
 0x5b6   :  { %v8881_v62 = vpop.f32.mrf.mxu0 }
 0x5b7   :  { %11892 = vst [vmem:[#allocation17_spill] sm:$0xff] %v8881_v62  ;;  %v8883_v46 = vpop.f32.mrf.mxu2  ;;  %v2230_v62 = vadd.f32 %v11902_v47, %v8605_v27  ;;  %v2863_v47 = vmul.f32 %v8650_v35, %v8650_v35 }
 0x5b8   :  { %11893 = vst [vmem:[#allocation128_spill] sm:$0xff] %v8883_v46  ;;  %v11903_v46 = vld [vmem:[#allocation75_spill] sm:$0xff] }
 0x5ba   :  { %v8885_v14 = vpop.f32.mrf.mxu3 }
 0x5bb   :  { %11894 = vst [vmem:[#allocation126_spill] sm:$0xff] %v8885_v14  ;;  %v2233_v14 = vadd.f32 %v11903_v46, %v8605_v27  ;;  %v2343_v46 = vadd.f32 %v8736_v5, %v2230_v62  ;;  %v8938_v62 = vadd.f32 %v11913_v12, %v8605_v27  ;;  %v2792_v5 = vsel %vm2790_vm6, %v8650_v35, 0.0 }
 0x5bc   :  { %v8887_v44 = vpop.f32.mrf.mxu1  ;;  %v2791_v12 = vsel %vm2790_vm6, %v8633_v43, 0.0  ;;  %v2867_v35 = vmul.f32 %v8682_v4, %v8682_v4  ;;  %v11922_v43 = vld [vmem:[#allocation101_spill] sm:$0xff] }
 0x5bd   :  { %11895 = vst [vmem:[#allocation118_spill] sm:$0xff] %v8887_v44  ;;  %v11904_v44 = vld [vmem:[#allocation161_spill] sm:$0xff]  ;;  %v8974_v55 = vadd.f32 %v11922_v43, %v8605_v27  ;;  %v2798_v43 = vsel %vm2790_vm6, %v8697_v3, 0.0 }
 0x5be   :  { %v8889_v33 = vpop.f32.mrf.mxu0  ;;  %v2236_v9 = vadd.f32 %v11904_v44, %v8605_v27  ;;  %11914 = vst [vmem:[#allocation127_spill] sm:$0xff] %v8938_v62 }
 0x5bf   :  { %11896 = vst [vmem:[#allocation120_spill] sm:$0xff] %v8889_v33  ;;  %v8891_v0 = vpop.f32.mrf.mxu2  ;;  %v11905_v33 = vld [vmem:[#allocation166_spill] sm:$0xff] }
 0x5c0   :  { %11897 = vst [vmem:[#allocation129_spill] sm:$0xff] %v8891_v0  ;;  %v2239_v0 = vadd.f32 %v11905_v33, %v8605_v27  ;;  %v11910_v33 = vld [vmem:[#allocation94_spill] sm:$0xff] }
 0x5c1   :  { %v8924_v19 = vadd.f32 %v11910_v33, %v8605_v27  ;;  %v2865_v33 = vmul.f32 %v8665_v50, %v8665_v50 }
 0x5c2   :  { %v8893_v40 = vpop.f32.mrf.mxu3 }
 0x5c3   :  { %11898 = vst [vmem:[#allocation119_spill] sm:$0xff] %v8893_v40  ;;  %v11906_v40 = vld [vmem:[#allocation170_spill] sm:$0xff]  ;;  %v2964_v21 = vsel %vm2790_vm6, %v2865_v33, 0.0 }
 0x5c4   :  { %v8895_v34 = vpop.f32.mrf.mxu1  ;;  %v2242_v6 = vadd.f32 %v11906_v40, %v8605_v27  ;;  %v11911_v40 = vld [vmem:[#allocation6_spill] sm:$0xff] }
 0x5c5   :  { %11899 = vst [vmem:[#allocation122_spill] sm:$0xff] %v8895_v34  ;;  %v11907_v34 = vld [vmem:[#allocation91_spill] sm:$0xff]  ;;  %v8928_v42 = vadd.f32 %v11911_v40, %v8605_v27  ;;  %v2346_v40 = vadd.f32 %v8751_v26, %v2233_v14  ;;  %v2962_v14 = vsel %vm2790_vm6, %v2863_v47, 0.0  ;;  %v2794_v26 = vsel %vm2790_vm6, %v8665_v50, 0.0 }
 0x5c6   :  { %v8897_v11 = vpop.f32.mrf.mxu0  ;;  %v2793_v47 = vadd.f32 %v2792_v5, %v2791_v12  ;;  %v2966_v50 = vsel %vm2790_vm6, %v2867_v35, 0.0  ;;  %v2352_v12 = vadd.f32 %v8777_v36, %v2239_v0 }
 0x5c7   :  { %11900 = vst [vmem:[#allocation32_spill] sm:$0xff] %v8897_v11  ;;  %v8899_v15 = vpop.f32.mrf.mxu2  ;;  %v2245_v11 = vadd.f32 %v11907_v34, %v8605_v27  ;;  %v11912_v34 = vld [vmem:[#allocation95_spill] sm:$0xff] }
 0x5c8   :  { %11901 = vst [vmem:[#allocation81_spill] sm:$0xff] %v8899_v15  ;;  %v11908_v15 = vld [vmem:[#allocation93_spill] sm:$0xff]  ;;  %v2795_v61 = vadd.f32 %v2794_v26, %v2793_v47  ;;  %v11924_v26 = vld [vmem:[#allocation39_spill] sm:$0xff] }
 0x5c9   :  { %v8915_v20 = vadd.f32 %v11908_v15, %v8605_v27  ;;  %v8932_v15 = vadd.f32 %v11912_v34, %v8605_v27  ;;  %v11916_v34 = vld [vmem:[#allocation8_spill] sm:$0xff]  ;;  %v9000_v47 = vadd.f32 %v11924_v26, %v8605_v27  ;;  %v11927_v26 = vld [vmem:[#allocation111_spill] sm:$0xff] }
 0x5ca   :  { %v8920_v44 = vpop.f32.mrf.mxu3  ;;  %v8949_v28 = vadd.f32 %v11916_v34, %v8605_v27  ;;  %v2456_v34 = vadd.f32 %v8744_v10, %v2343_v46  ;;  %v2796_v10 = vsel %vm2790_vm6, %v8682_v4, 0.0 }
 0x5cb   :  { %11909 = vst [vmem:[#allocation124_spill] sm:$0xff] %v8920_v44  ;;  %v2797_v35 = vadd.f32 %v2796_v10, %v2795_v61 }
 0x5cc   :  { %v8945_v44 = vpop.f32.mrf.mxu1  ;;  %11917 = vst [vmem:[#allocation132_spill] sm:$0xff] %v8949_v28  ;;  %v2569_v5 = vadd.f32 %v8732_v16, %v2456_v34 }
 0x5cd   :  { %11915 = vst [vmem:[#allocation27_spill] sm:$0xff] %v8945_v44  ;;  %v2349_v44 = vadd.f32 %v8764_v58, %v2236_v9  ;;  %v2869_v9 = vmul.f32 %v8697_v3, %v8697_v3  ;;  %v2459_v58 = vadd.f32 %v8757_v59, %v2346_v40  ;;  %v11923_v59 = vld [vmem:[#allocation10_spill] sm:$0xff]  ;;  %v2799_v34 = vadd.f32 %v2798_v43, %v2797_v35 }
 0x5ce   :  { %v8959_v62 = vpop.f32.mrf.mxu0  ;;  %v2364_v35 = vadd.f32 %v8829_v23, %v8924_v19 }
 0x5cf   :  { %11920 = vst [vmem:[#allocation25_spill] sm:$0xff] %v8959_v62  ;;  %v8966_v28 = vpop.f32.mrf.mxu2  ;;  %v2961_v62 = vsel %vm2790_vm6, %v2861_v51, 0.0  ;;  %v2871_v51 = vmul.f32 %v8712_v49, %v8712_v49  ;;  %v2462_v33 = vadd.f32 %v8770_v25, %v2349_v44  ;;  %v2968_v16 = vsel %vm2790_vm6, %v2869_v9, 0.0 }
 0x5d0   :  { %v2963_v46 = vadd.f32 %v2962_v14, %v2961_v62  ;;  %v8995_v62 = vadd.f32 %v11923_v59, %v8605_v27  ;;  %v2355_v14 = vadd.f32 %v8790_v56, %v2242_v6  ;;  %v2800_v25 = vsel %vm2790_vm6, %v8712_v49, 0.0 }
 0x5d1   :  { %v2572_v0 = vadd.f32 %v8749_v24, %v2459_v58  ;;  %v2358_v56 = vadd.f32 %v8803_v37, %v2245_v11  ;;  %v2970_v10 = vsel %vm2790_vm6, %v2871_v51, 0.0  ;;  %v9015_v9 = vadd.f32 %v8747_v18, %v2569_v5 }
 0x5d2   :  { %v8991_v4 = vpop.f32.mrf.mxu3  ;;  %v2965_v40 = vadd.f32 %v2964_v21, %v2963_v46  ;;  %v2873_v21 = vmul.f32 %v8725_v54, %v8725_v54  ;;  %v2575_v46 = vadd.f32 %v8762_v57, %v2462_v33  ;;  %v2465_v24 = vadd.f32 %v8783_v45, %v2352_v12 }
 0x5d3   :  { %v2801_v59 = vadd.f32 %v2800_v25, %v2799_v34  ;;  %v2468_v11 = vadd.f32 %v8796_v17, %v2355_v14  ;;  %v2802_v37 = vsel %vm2790_vm6, %v8725_v54, 0.0  ;;  %v2875_v18 = vmul.f32 %v8738_v13, %v8738_v13 }
 0x5d4   :  { %v9006_v36 = vpop.f32.mrf.mxu1  ;;  %v2967_v44 = vadd.f32 %v2966_v50, %v2965_v40  ;;  %v11925_v50 = vld [vmem:[#allocation5_spill] sm:$0xff]  ;;  %v9031_v57 = vadd.f32 %v8760_v31, %v2572_v0  ;;  %v2361_v45 = vadd.f32 %v8816_v63, %v8915_v20  ;;  %v2972_v5 = vsel %vm2790_vm6, %v2873_v21, 0.0  ;;  %v11926_v63 = vld [vmem:[#allocation38_spill] sm:$0xff] }
 0x5d5   :  { %v9023_v61 = vadd.f32 %v11925_v50, %v8605_v27  ;;  %v2804_v33 = vsel %vm2790_vm6, %v8738_v13, 0.0  ;;  %v2471_v17 = vadd.f32 %v8809_v53, %v2358_v56  ;;  %v2877_v12 = vmul.f32 %v9015_v9, %v9015_v9 }
 0x5d6   :  { %v9011_v6 = vpop.f32.mrf.mxu0  ;;  %v2969_v43 = vadd.f32 %v2968_v16, %v2967_v44  ;;  %v9042_v40 = vadd.f32 %v8773_v7, %v2575_v46  ;;  %v2578_v31 = vadd.f32 %v8775_v48, %v2465_v24  ;;  %v9051_v14 = vadd.f32 %v11926_v63, %v8605_v27  ;;  %v11932_v63 = vld [vmem:[#allocation21_spill] sm:$0xff] }
 0x5d7   :  { %v9019_v58 = vpop.f32.mrf.mxu2  ;;  %v9055_v53 = vadd.f32 %v11927_v26, %v8605_v27  ;;  %v2803_v16 = vadd.f32 %v2802_v37, %v2801_v59  ;;  %v2581_v25 = vadd.f32 %v8788_v38, %v2468_v11  ;;  %v2974_v0 = vsel %vm2790_vm6, %v2875_v18, 0.0 }
 0x5d8   :  { %v2971_v51 = vadd.f32 %v2970_v10, %v2969_v43  ;;  %v2879_v48 = vmul.f32 %v9031_v57, %v9031_v57  ;;  %v2474_v23 = vadd.f32 %v8822_v41, %v2361_v45  ;;  %v2806_v34 = vsel %vm2790_vm6, %v9015_v9, 0.0 }
 0x5d9   :  { %v2805_v44 = vadd.f32 %v2804_v33, %v2803_v16  ;;  %v2584_v21 = vadd.f32 %v8801_v2, %v2471_v17  ;;  %v2367_v56 = vadd.f32 %v8841_v60, %v8928_v42  ;;  %v2976_v10 = vsel %vm2790_vm6, %v2877_v12, 0.0  ;;  %v11930_v33 = vld [vmem:[#allocation127_spill] sm:$0xff]  ;;  %v11931_v17 = vld [vmem:[#allocation28_spill] sm:$0xff]  ;;  %v11933_v16 = vld [vmem:[#allocation109_spill] sm:$0xff] }
 0x5da   :  { %v9047_v20 = vpop.f32.mrf.mxu3  ;;  %v2973_v7 = vadd.f32 %v2972_v5, %v2971_v51  ;;  %v2881_v46 = vmul.f32 %v9042_v40, %v9042_v40  ;;  %v9075_v41 = vadd.f32 %v8786_v32, %v2578_v31  ;;  %v2477_v24 = vadd.f32 %v8835_v29, %v2364_v35 }
 0x5db   :  { %v9082_v2 = vadd.f32 %v8501_v52, %v8605_v27  ;;  %v9085_v42 = vadd.f32 %v8799_v22, %v2581_v25  ;;  %v2370_v60 = vadd.f32 %v8851_v8, %v8932_v15  ;;  %v2807_v59 = vadd.f32 %v2806_v34, %v2805_v44  ;;  %v11928_v22 = vld [vmem:[#allocation16_spill] sm:$0xff]  ;;  %v11929_v15 = vld [vmem:[#allocation59_spill] sm:$0xff]  ;;  %v11936_v44 = vld [vmem:[#allocation82_spill] sm:$0xff] }
 0x5dc   :  { %v9062_v19 = vpop.f32.mrf.mxu1  ;;  %v2975_v43 = vadd.f32 %v2974_v0, %v2973_v7  ;;  %v2808_v32 = vsel %vm2790_vm6, %v9031_v57, 0.0  ;;  %v2978_v11 = vsel %vm2790_vm6, %v2879_v48, 0.0  ;;  %v2587_v29 = vadd.f32 %v8814_v39, %v2474_v23  ;;  %v11934_v0 = vld [vmem:[#allocation62_spill] sm:$0xff]  ;;  %v11935_v23 = vld [vmem:[#allocation132_spill] sm:$0xff] }
 0x5dd   :  { %v2810_v52 = vsel %vm2790_vm6, %v9042_v40, 0.0  ;;  %v9096_v18 = vadd.f32 %v8812_v30, %v2584_v21  ;;  %v2480_v45 = vadd.f32 %v11928_v22, %v2367_v56  ;;  %v2980_v51 = vsel %vm2790_vm6, %v2881_v46, 0.0 }
 0x5de   :  { %v9069_v38 = vpop.f32.mrf.mxu0  ;;  %v2977_v37 = vadd.f32 %v2976_v10, %v2975_v43  ;;  %v2883_v8 = vmul.f32 %v9075_v41, %v9075_v41  ;;  %v2590_v5 = vadd.f32 %v11929_v15, %v2477_v24  ;;  %v2373_v12 = vadd.f32 %v11931_v17, %v11930_v33  ;;  %v11937_v24 = vld [vmem:[#allocation19_spill] sm:$0xff]  ;;  %v11940_v33 = vld [vmem:[#allocation26_spill] sm:$0xff] }
 0x5df   :  { %v9078_v50 = vpop.f32.mrf.mxu2  ;;  %v2809_v31 = vadd.f32 %v2808_v32, %v2807_v59  ;;  %v2885_v30 = vmul.f32 %v9085_v42, %v9085_v42  ;;  %v2483_v26 = vadd.f32 %v11932_v63, %v2370_v60  ;;  %v9112_v25 = vadd.f32 %v11933_v16, %v8605_v27 }
 0x5e0   :  { %v2979_v35 = vadd.f32 %v2978_v11, %v2977_v37  ;;  %v2812_v7 = vsel %vm2790_vm6, %v9075_v41, 0.0  ;;  %v9117_v48 = vadd.f32 %v11934_v0, %v2587_v29  ;;  %v2376_v34 = vadd.f32 %v11936_v44, %v11935_v23  ;;  %v11938_v11 = vld [vmem:[#allocation24_spill] sm:$0xff]  ;;  %v11939_v37 = vld [vmem:[#allocation43_spill] sm:$0xff] }
 0x5e1   :  { %v2811_v56 = vadd.f32 %v2810_v52, %v2809_v31  ;;  %v2887_v46 = vmul.f32 %v9096_v18, %v9096_v18  ;;  %v2593_v43 = vadd.f32 %v11937_v24, %v2480_v45  ;;  %v2982_v59 = vsel %vm2790_vm6, %v2883_v8, 0.0  ;;  %v11941_v45 = vld [vmem:[#allocation80_spill] sm:$0xff]  ;;  %v11945_v44 = vld [vmem:[#allocation123_spill] sm:$0xff] }
 0x5e2   :  { %v9105_v39 = vpop.f32.mrf.mxu3  ;;  %v2981_v10 = vadd.f32 %v2980_v51, %v2979_v35  ;;  %v2814_v32 = vsel %vm2790_vm6, %v9085_v42, 0.0  ;;  %v9132_v29 = vadd.f32 %v11938_v11, %v2590_v5  ;;  %v2486_v22 = vadd.f32 %v11939_v37, %v2373_v12  ;;  %v11942_v31 = vld [vmem:[#allocation116_spill] sm:$0xff]  ;;  %v11943_v5 = vld [vmem:[#allocation51_spill] sm:$0xff]  ;;  %v11946_v11 = vld [vmem:[#allocation125_spill] sm:$0xff] }
 0x5e3   :  { %v2813_v52 = vadd.f32 %v2812_v7, %v2811_v56  ;;  %v2984_v51 = vsel %vm2790_vm6, %v2885_v30, 0.0  ;;  %v2596_v17 = vadd.f32 %v11940_v33, %v2483_v26  ;;  %v2379_v35 = vadd.f32 %v11942_v31, %v11941_v45  ;;  %v11944_v12 = vld [vmem:[#allocation128_spill] sm:$0xff] }
 0x5e4   :  { %v9121_v21 = vpop.f32.mrf.mxu1  ;;  %v2816_v8 = vsel %vm2790_vm6, %v9096_v18, 0.0  ;;  %v2889_v63 = vmul.f32 %v9117_v48, %v9117_v48  ;;  %v2489_v16 = vadd.f32 %v11943_v5, %v2376_v34  ;;  %v2382_v0 = vadd.f32 %v11944_v12, %v8970_v1  ;;  %v11947_v34 = vld [vmem:[#allocation129_spill] sm:$0xff] }
 0x5e5   :  { %v2983_v23 = vadd.f32 %v2982_v59, %v2981_v10  ;;  %v2815_v7 = vadd.f32 %v2814_v32, %v2813_v52  ;;  %v2986_v30 = vsel %vm2790_vm6, %v2887_v46, 0.0  ;;  %v9150_v26 = vadd.f32 %v11945_v44, %v2593_v43  ;;  %v11948_v59 = vld [vmem:[#allocation65_spill] sm:$0xff]  ;;  %v11950_v52 = vld [vmem:[#allocation112_spill] sm:$0xff]  ;;  %v11952_v44 = vld [vmem:[#allocation126_spill] sm:$0xff] }
 0x5e6   :  { %v9126_v60 = vpop.f32.mrf.mxu0  ;;  %v2818_v56 = vsel %vm2790_vm6, %v9117_v48, 0.0  ;;  %v2891_v24 = vmul.f32 %v9132_v29, %v9132_v29  ;;  %v2599_v37 = vadd.f32 %v11946_v11, %v2486_v22  ;;  %v2385_v33 = vadd.f32 %v11947_v34, %v8974_v55  ;;  %v11949_v43 = vld [vmem:[#allocation13_spill] sm:$0xff] }
 0x5e7   :  { %v9135_v15 = vpop.f32.mrf.mxu2  ;;  %v2985_v1 = vadd.f32 %v2984_v51, %v2983_v23  ;;  %v2817_v10 = vadd.f32 %v2816_v8, %v2815_v7  ;;  %v9162_v46 = vadd.f32 %v11948_v59, %v2596_v17  ;;  %v2492_v32 = vadd.f32 %v11949_v43, %v2379_v35  ;;  %v11951_v12 = vld [vmem:[#allocation121_spill] sm:$0xff] }
 0x5e8   :  { %v9167_v31 = vadd.f32 %v11950_v52, %v8605_v27  ;;  %v2988_v5 = vsel %vm2790_vm6, %v2889_v63, 0.0  ;;  %v2602_v22 = vadd.f32 %v11951_v12, %v2489_v16  ;;  %v2495_v11 = vadd.f32 %v11952_v44, %v2382_v0  ;;  %v11953_v8 = vld [vmem:[#allocation81_spill] sm:$0xff]  ;;  %v11954_v63 = vld [vmem:[#allocation23_spill] sm:$0xff]  ;;  %v11957_v12 = vld [vmem:[#allocation52_spill] sm:$0xff] }
 0x5e9   :  { %v2987_v34 = vadd.f32 %v2986_v30, %v2985_v1  ;;  %v2819_v51 = vadd.f32 %v2818_v56, %v2817_v10  ;;  %v2893_v17 = vmul.f32 %v9150_v26, %v9150_v26  ;;  %v2388_v35 = vadd.f32 %v11953_v8, %v8995_v62  ;;  %v11955_v16 = vld [vmem:[#allocation119_spill] sm:$0xff]  ;;  %v11956_v10 = vld [vmem:[#allocation30_spill] sm:$0xff]  ;;  %v11958_v44 = vld [vmem:[#allocation17_spill] sm:$0xff] }
 0x5ea   :  { %v9159_v45 = vpop.f32.mrf.mxu3  ;;  %v2820_v23 = vsel %vm2790_vm6, %v9132_v29, 0.0  ;;  %v2990_v7 = vsel %vm2790_vm6, %v2891_v24, 0.0  ;;  %v9182_v59 = vadd.f32 %v11954_v63, %v2599_v37  ;;  %v2498_v0 = vadd.f32 %v11955_v16, %v2385_v33  ;;  %v11959_v16 = vld [vmem:[#allocation124_spill] sm:$0xff] }
 0x5eb   :  { %v2989_v56 = vadd.f32 %v2988_v5, %v2987_v34  ;;  %v2895_v1 = vmul.f32 %v9162_v46, %v9162_v46  ;;  %v2605_v52 = vadd.f32 %v11956_v10, %v2492_v32  ;;  %v2391_v62 = vadd.f32 %v8966_v28, %v9000_v47  ;;  %v11960_v10 = vld [vmem:[#allocation120_spill] sm:$0xff] }
 0x5ec   :  { %v9172_v55 = vpop.f32.mrf.mxu1  ;;  %v2822_v24 = vsel %vm2790_vm6, %v9150_v26, 0.0  ;;  %v9195_v37 = vadd.f32 %v11957_v12, %v2602_v22  ;;  %v2608_v33 = vadd.f32 %v11958_v44, %v2495_v11  ;;  %v2394_v8 = vadd.f32 %v9019_v58, %v9023_v61  ;;  %v11961_v61 = vld [vmem:[#allocation57_spill] sm:$0xff] }
 0x5ed   :  { %v2821_v5 = vadd.f32 %v2820_v23, %v2819_v51  ;;  %v2991_v34 = vadd.f32 %v2990_v7, %v2989_v56  ;;  %v2992_v63 = vsel %vm2790_vm6, %v2893_v17, 0.0  ;;  %v2501_v32 = vadd.f32 %v11959_v16, %v2388_v35  ;;  %v11962_v7 = vld [vmem:[#allocation118_spill] sm:$0xff] }
 0x5ee   :  { %v9185_v43 = vpop.f32.mrf.mxu0  ;;  %v2824_v28 = vsel %vm2790_vm6, %v9162_v46, 0.0  ;;  %v2897_v47 = vmul.f32 %v9182_v59, %v9182_v59  ;;  %v2611_v22 = vadd.f32 %v11960_v10, %v2498_v0  ;;  %v2397_v11 = vadd.f32 %v9078_v50, %v9051_v14 }
 0x5ef   :  { %v2402_v30 = vpop.f32.mrf.mxu2  ;;  %v2823_v44 = vadd.f32 %v2822_v24, %v2821_v5  ;;  %v2994_v58 = vsel %vm2790_vm6, %v2895_v1, 0.0  ;;  %v9211_v51 = vadd.f32 %v11961_v61, %v2605_v52  ;;  %v2504_v17 = vadd.f32 %v8991_v4, %v2391_v62  ;;  %v11963_v1 = vld [vmem:[#allocation32_spill] sm:$0xff]  ;;  %v11964_v5 = vld [vmem:[#allocation122_spill] sm:$0xff] }
 0x5f0   :  { %v2993_v35 = vadd.f32 %v2992_v63, %v2991_v34  ;;  %v2899_v23 = vmul.f32 %v9195_v37, %v9195_v37  ;;  %v9217_v56 = vadd.f32 %v11962_v7, %v2608_v33  ;;  %v2507_v0 = vadd.f32 %v9047_v20, %v2394_v8 }
 0x5f1   :  { %v2825_v14 = vadd.f32 %v2824_v28, %v2823_v44  ;;  %v2826_v50 = vsel %vm2790_vm6, %v9182_v59, 0.0  ;;  %v2614_v52 = vadd.f32 %v11963_v1, %v2501_v32  ;;  %v2400_v4 = vadd.f32 %v9135_v15, %v9055_v53  ;;  %v11965_v28 = vld [vmem:[#allocation25_spill] sm:$0xff]  ;;  %v11966_v44 = vld [vmem:[#allocation27_spill] sm:$0xff] }
 0x5f2   :  { %v2515_v12 = vpop.f32.mrf.mxu3  ;;  %v2995_v62 = vadd.f32 %v2994_v58, %v2993_v35  ;;  %v2996_v24 = vsel %vm2790_vm6, %v2897_v47, 0.0  ;;  %v9229_v34 = vadd.f32 %v11964_v5, %v2611_v22  ;;  %v2510_v33 = vadd.f32 %v9105_v39, %v2397_v11 }
 0x5f3   :  { %v2828_v8 = vsel %vm2790_vm6, %v9195_v37, 0.0  ;;  %v2901_v63 = vmul.f32 %v9211_v51, %v9211_v51  ;;  %v2617_v32 = vadd.f32 %v11965_v28, %v2504_v17  ;;  %v2403_v10 = vadd.f32 %v2402_v30, %v9082_v2 }
 0x5f4   :  { %v9220_v16 = vpop.f32.mrf.mxu1  ;;  %v2827_v53 = vadd.f32 %v2826_v50, %v2825_v14  ;;  %v2998_v15 = vsel %vm2790_vm6, %v2899_v23, 0.0  ;;  %v2903_v47 = vmul.f32 %v9217_v56, %v9217_v56  ;;  %v2620_v22 = vadd.f32 %v9011_v6, %v2507_v0 }
 0x5f5   :  { %v2830_v11 = vsel %vm2790_vm6, %v9211_v51, 0.0  ;;  %v9245_v58 = vadd.f32 %v11966_v44, %v2614_v52  ;;  %v2513_v61 = vadd.f32 %v9159_v45, %v2400_v4  ;;  %v2997_v2 = vadd.f32 %v2996_v24, %v2995_v62 }
 0x5f6   :  { %v2631_v39 = vpop.f32.mrf.mxu0  ;;  %v2829_v30 = vadd.f32 %v2828_v8, %v2827_v53  ;;  %v2905_v35 = vmul.f32 %v9229_v34, %v9229_v34  ;;  %v2623_v23 = vadd.f32 %v9069_v38, %v2510_v33  ;;  %v3000_v6 = vsel %vm2790_vm6, %v2901_v63, 0.0 }
 0x5f7   :  { %v2405_v20 = vpop.f32.mrf.mxu2  ;;  %v2832_v0 = vsel %vm2790_vm6, %v9217_v56, 0.0  ;;  %v9256_v14 = vadd.f32 %v9006_v36, %v2617_v32  ;;  %v2516_v50 = vadd.f32 %v2515_v12, %v2403_v10  ;;  %v2999_v45 = vadd.f32 %v2998_v15, %v2997_v2 }
 0x5f8   :  { %v2406_v17 = vadd.f32 %v2405_v20, %v9112_v25  ;;  %v2831_v1 = vadd.f32 %v2830_v11, %v2829_v30  ;;  %v3002_v25 = vsel %vm2790_vm6, %v2903_v47, 0.0  ;;  %v9260_v52 = vadd.f32 %v9062_v19, %v2620_v22 }
 0x5f9   :  { %v2834_v38 = vsel %vm2790_vm6, %v9229_v34, 0.0  ;;  %v2907_v62 = vmul.f32 %v9245_v58, %v9245_v58  ;;  %v2626_v24 = vadd.f32 %v9126_v60, %v2513_v61  ;;  %v3001_v36 = vadd.f32 %v3000_v6, %v2999_v45 }
 0x5fa   :  { %v2518_v7 = vpop.f32.mrf.mxu3  ;;  %v2833_v33 = vadd.f32 %v2832_v0, %v2831_v1  ;;  %v3004_v12 = vsel %vm2790_vm6, %v2905_v35, 0.0  ;;  %v9269_v20 = vadd.f32 %v9121_v21, %v2623_v23  ;;  %v2836_v19 = vsel %vm2790_vm6, %v9245_v58, 0.0 }
 0x5fb   :  { %v2519_v5 = vadd.f32 %v2518_v7, %v2406_v17  ;;  %v2909_v63 = vmul.f32 %v9256_v14, %v9256_v14  ;;  %v2629_v28 = vadd.f32 %v9185_v43, %v2516_v50  ;;  %v3003_v60 = vadd.f32 %v3002_v25, %v3001_v36 }
 0x5fc   :  { %v2744_v4 = vpop.f32.mrf.mxu1  ;;  %v2835_v10 = vadd.f32 %v2834_v38, %v2833_v33  ;;  %v2911_v53 = vmul.f32 %v9260_v52, %v9260_v52  ;;  %v3006_v15 = vsel %vm2790_vm6, %v2907_v62, 0.0  ;;  %v2838_v21 = vsel %vm2790_vm6, %v9256_v14, 0.0 }
 0x5fd   :  { %v9283_v47 = vadd.f32 %v9172_v55, %v2626_v24  ;;  %v2632_v22 = vadd.f32 %v2631_v39, %v2519_v5  ;;  %v3005_v11 = vadd.f32 %v3004_v12, %v3003_v60  ;;  %v2913_v43 = vmul.f32 %v9269_v20, %v9269_v20  ;;  %v11967_v55 = vld [vmem:[#allocation9_spill] sm:$0xff] }
 0x5fe   :  { %v2837_v44 = vadd.f32 %v2836_v19, %v2835_v10  ;;  %v3008_v17 = vsel %vm2790_vm6, %v2909_v63, 0.0  ;;  %v2840_v2 = vsel %vm2790_vm6, %v9260_v52, 0.0  ;;  %v9291_v30 = vadd.f32 %v9220_v16, %v2629_v28 }
 0x5ff   :  { %v2408_v8 = vpop.f32.mrf.mxu2  ;;  %v2299_v23 = vadd.f32 %v11967_v55, %v8605_v27  ;;  %v3007_v39 = vadd.f32 %v3006_v15, %v3005_v11  ;;  %v3010_v6 = vsel %vm2790_vm6, %v2911_v53, 0.0  ;;  %v2842_v50 = vsel %vm2790_vm6, %v9269_v20, 0.0 }
 0x600   :  { %v2409_v32 = vadd.f32 %v2408_v8, %v9167_v31  ;;  %v2634_v31 = vpop.f32.mrf.mxu0  ;;  %v2839_v7 = vadd.f32 %v2838_v21, %v2837_v44  ;;  %v2915_v45 = vmul.f32 %v9283_v47, %v9283_v47  ;;  %v9300_v1 = vadd.f32 %v2744_v4, %v2632_v22 }
 0x601   :  { %v3009_v16 = vadd.f32 %v3008_v17, %v3007_v39  ;;  %v3012_v62 = vsel %vm2790_vm6, %v2913_v43, 0.0  ;;  %v2844_v27 = vsel %vm2790_vm6, %v9283_v47, 0.0  ;;  %v2917_v5 = vmul.f32 %v9291_v30, %v9291_v30 }
 0x602   :  { %v2521_v61 = vpop.f32.mrf.mxu3  ;;  %v2841_v38 = vadd.f32 %v2840_v2, %v2839_v7  ;;  %v3014_v4 = vsel %vm2790_vm6, %v2915_v45, 0.0  ;;  %v2846_v19 = vsel %vm2790_vm6, %v9291_v30, 0.0  ;;  %v2919_v63 = vmul.f32 %v9300_v1, %v9300_v1 }
 0x603   :  { %v2522_v35 = vadd.f32 %v2521_v61, %v2409_v32  ;;  %v3011_v12 = vadd.f32 %v3010_v6, %v3009_v16  ;;  %v3016_v10 = vsel %vm2790_vm6, %v2917_v5, 0.0  ;;  %v2848_v53 = vsel %vm2790_vm6, %v9300_v1, 0.0 }
 0x604   :  { %v2747_v0 = vpop.f32.mrf.mxu1  ;;  %v2843_v8 = vadd.f32 %v2842_v50, %v2841_v38  ;;  %v3018_v43 = vsel %vm2790_vm6, %v2919_v63, 0.0 }
 0x605   :  { %v2635_v25 = vadd.f32 %v2634_v31, %v2522_v35  ;;  %v3013_v28 = vadd.f32 %v3012_v62, %v3011_v12 }
 0x606   :  { %v2845_v32 = vadd.f32 %v2844_v27, %v2843_v8 }
 0x607   :  { %v2411_v24 = vpop.f32.mrf.mxu2  ;;  %v9307_v36 = vadd.f32 %v2747_v0, %v2635_v25  ;;  %v3015_v22 = vadd.f32 %v3014_v4, %v3013_v28 }
 0x608   :  { %v2412_v33 = vadd.f32 %v2411_v24, %v2299_v23  ;;  %v2847_v11 = vadd.f32 %v2846_v19, %v2845_v32  ;;  %v2637_v44 = vpop.f32.mrf.mxu0  ;;  %v3032_v32 = vpop.permute.xlu0 %3031 }
 0x609   :  { %11968 = vst [vmem:[#allocation134_spill] sm:$0xff] %v9307_v36  ;;  %v2921_v15 = vmul.f32 %v9307_v36, %v9307_v36  ;;  %v2850_v31 = vsel %vm2790_vm6, %v9307_v36, 0.0  ;;  %v3017_v17 = vadd.f32 %v3016_v10, %v3015_v22  ;;  %v3041_v10 = vpop.permute.xlu2 %3040 }
 0x60a   :  { %v2524_v60 = vpop.f32.mrf.mxu3  ;;  %v2849_v2 = vadd.f32 %v2848_v53, %v2847_v11  ;;  %v3049_v53 = vpop.permute.xlu1 %3048 }
 0x60b   :  { %v2525_v21 = vadd.f32 %v2524_v60, %v2412_v33  ;;  %v3020_v55 = vsel %vm2790_vm6, %v2921_v15, 0.0  ;;  %v3019_v39 = vadd.f32 %v3018_v43, %v3017_v17 }
 0x60c   :  { %v2750_v35 = vpop.f32.mrf.mxu1  ;;  %v2851_v7 = vadd.f32 %v2850_v31, %v2849_v2 }
 0x60d   :  { %v2638_v61 = vadd.f32 %v2637_v44, %v2525_v21  ;;  %v3021_v50 = vadd.f32 %v3020_v55, %v3019_v39  ;;  %v11970_v55 = vld [vmem:[#allocation117_spill] sm:$0xff] }
 0x60e   :  { %v3034_v39 = vadd.f32 %v3032_v32, %v11970_v55 }
 0x60f   :  { %v9323_v23 = vadd.f32 %v2750_v35, %v2638_v61 }
 0x610   :  { %v3057_v60 = vpop.permute.xlu0 %3056 }
 0x611   :  { %11969 = vst [vmem:[#allocation130_spill] sm:$0xff] %v9323_v23  ;;  %v2852_v6 = vsel %vm2790_vm6, %v9323_v23, 0.0  ;;  %v2923_v0 = vmul.f32 %v9323_v23, %v9323_v23  ;;  %v3065_v21 = vpop.permute.xlu2 %3064 }
 0x612   :  { %v2853_v45 = vadd.f32 %v2852_v6, %v2851_v7  ;;  %v3073_v22 = vpop.permute.xlu1 %3072 }
 0x613   :  { %v3022_v25 = vsel %vm2790_vm6, %v2923_v0, 0.0  ;;  %v3043_v0 = vadd.f32 %v3041_v10, %v3034_v39 }
 0x614   :  { %v2854_v16 = vrot.slane %v2853_v45, 4  ;;  %v3023_v38 = vadd.f32 %v3022_v25, %v3021_v50 }
 0x615   :  { %v3051_v50 = vadd.f32 %v3049_v53, %v3043_v0 }
 0x616   :  { %v2855_v62 = vadd.f32 %v2854_v16, %v2853_v45  ;;  %v3024_v24 = vrot.slane %v3023_v38, 4  ;;  %v11971_v45 = vld [vmem:[#allocation53_spill] sm:$0xff] }
 0x618   :  { %v2856_v27 = vrot.slane %v2855_v62, 2  ;;  %v3025_v5 = vadd.f32 %v3024_v24, %v3023_v38  ;;  %v3081_v15 = vpop.permute.xlu0 %3080 }
 0x619   :  { %v3089_v44 = vpop.permute.xlu2 %3088 }
 0x61a   :  { %v2857_v33 = vadd.f32 %v2856_v27, %v2855_v62  ;;  %v3026_v12 = vrot.slane %v3025_v5, 2  ;;  %v3037_v43 = vpop.permute.xlu1 %3036  ;;  %v3059_v62 = vadd.f32 %v3057_v60, %v3051_v50 }
 0x61b   :  { %v3039_v25 = vadd.f32 %v3037_v43, %v11971_v45 }
 0x61c   :  { %v2858_v8 = vrot.slane %v2857_v33, 1  ;;  %v3027_v19 = vadd.f32 %v3026_v12, %v3025_v5  ;;  %v3067_v5 = vadd.f32 %v3065_v21, %v3059_v62 }
 0x61e   :  { %v2859_v4 = vadd.f32 %v2858_v8, %v2857_v33  ;;  %v3028_v63 = vrot.slane %v3027_v19, 1 }
 0x620   :  { %3099 = vrot.lane.b32.xlu1 %v2859_v4, %s5765_s0  ;;  %3113 = vrot.lane.b32.xlu2 %v2859_v4, %s5766_s14  ;;  %v3029_v28 = vadd.f32 %v3028_v63, %v3027_v19  ;;  %v3098_v11 = vpop.permute.xlu0 %3097 }
 0x621   :  { %3129 = vrot.lane.b32.xlu0 %v2859_v4, %s5767_s28  ;;  %v3053_v61 = vpop.permute.xlu2 %3052 }
 0x622   :  { %v3061_v17 = vpop.permute.xlu1 %3060 }
 0x628   :  { %3121 = vrot.lane.b32.xlu1 %v2859_v4, %s5768_s18  ;;  %3137 = vrot.lane.b32.xlu2 %v2859_v4, %s5769_s19  ;;  %v3045_v31 = vpop.permute.xlu0 %3044 }
 0x629   :  { %3117 = vrot.lane.b32.xlu0 %v3029_v28, %s5766_s14  ;;  %v3077_v35 = vpop.permute.xlu2 %3076  ;;  %v3047_v24 = vadd.f32 %v3045_v31, %v3039_v25 }
 0x62a   :  { %v3085_v7 = vpop.permute.xlu1 %3084 }
 0x62b   :  { %v3055_v33 = vadd.f32 %v3053_v61, %v3047_v24 }
 0x62d   :  { %v3063_v19 = vadd.f32 %v3061_v17, %v3055_v33 }
 0x630   :  { %3145 = vrot.lane.b32.xlu1 %v2859_v4, %s5753_s15  ;;  %3125 = vrot.lane.b32.xlu2 %v3029_v28, %s5768_s18  ;;  %v3069_v2 = vpop.permute.xlu0 %3068  ;;  %s5777_s18 = smov 98  }
 0x631   :  { %3141 = vrot.lane.b32.xlu0 %v3029_v28, %s5769_s19  ;;  %v3093_v16 = vpop.permute.xlu2 %3092  ;;  %s5778_s19 = smov 112  }
 0x638   :  { %3108 = vrot.lane.b32.xlu1 %v3029_v28, %s5765_s0  ;;  %3149 = vrot.lane.b32.xlu2 %v3029_v28, %s5753_s15  ;;  %v3107_v6 = vpop.permute.xlu0 %3106 }
 0x639   :  { %3153 = vrot.lane.b32.xlu0 %v2859_v4, %s5770_s20  ;;  %v3075_v4 = vadd.f32 %v3073_v22, %v3067_v5 }
 0x63b   :  { %v3083_v63 = vadd.f32 %v3081_v15, %v3075_v4 }
 0x63d   :  { %v3091_v10 = vadd.f32 %v3089_v44, %v3083_v63 }
 0x640   :  { %3133 = vrot.lane.b32.xlu1 %v3029_v28, %s5767_s28  ;;  %s5776_s28 = smov 126  }
 0x648   :  { %3157 = vrot.lane.b32.xlu1 %v3029_v28, %s5770_s20  ;;  %v3071_v28 = vadd.f32 %v3069_v2, %v3063_v19 }
 0x64a   :  { %v3079_v53 = vadd.f32 %v3077_v35, %v3071_v28  ;;  %v4129_v28 = vld [vmem:[%s11142_s5 + $0xf8] sm:$0xff] }
 0x64b   :  { %4358 = vmatpush.msra.mxu3 %v4129_v28  ;;  %v4121_v28 = vld [vmem:[%s11142_s5 + $0xb8] sm:$0xff] }
 0x64c   :  { %v3087_v45 = vadd.f32 %v3085_v7, %v3079_v53 }
 0x64e   :  { %v3095_v61 = vadd.f32 %v3093_v16, %v3087_v45  ;;  %v4128_v45 = vld [vmem:[%s11142_s5 + $0xf0] sm:$0xff] }
 0x64f   :  { %4359 = vmatpush.msra.mxu3 %v4128_v45 }
 0x67a   :  { %v3114_v12 = vpop.permute.xlu2 %3113 }
 0x682   :  { %v3138_v0 = vpop.permute.xlu2 %3137 }
 0x68a   :  { %v3126_v17 = vpop.permute.xlu2 %3125 }
 0x692   :  { %v3100_v38 = vpop.permute.xlu1 %3099  ;;  %v3150_v4 = vpop.permute.xlu2 %3149 }
 0x693   :  { %v3130_v27 = vpop.permute.xlu0 %3129  ;;  %v3102_v55 = vsel %vm3101_vm7, %v3098_v11, %v3100_v38 }
 0x694   :  { %v3104_v43 = vadd.f32 %v3102_v55, %v3091_v10 }
 0x696   :  { %v3116_v60 = vadd.f32 %v3114_v12, %v3104_v43 }
 0x69a   :  { %v3122_v8 = vpop.permute.xlu1 %3121 }
 0x69b   :  { %v3118_v32 = vpop.permute.xlu0 %3117  ;;  %v3124_v50 = vadd.f32 %v3122_v8, %v3116_v60  ;;  %v3176_v60 = vld [vmem:[%s11140_s3] sm:$0x1]  ;;  %s5775_s3 = smov 70  }
 0x69d   :  { %v3132_v22 = vadd.f32 %v3130_v27, %v3124_v50  ;;  %v4113_v27 = vld [vmem:[%s11142_s5 + $0x78] sm:$0xff] }
 0x69e   :  { %4245 = vmatpush.msra.mxu2 %v4113_v27  ;;  %v4100_v27 = vld [vmem:[%s11142_s5 + $0x10] sm:$0xff] }
 0x69f   :  { %v3140_v2 = vadd.f32 %v3138_v0, %v3132_v22  ;;  %v4112_v0 = vld [vmem:[%s11142_s5 + $0x70] sm:$0xff]  ;;  %v3178_v22 = vld [vmem:[%s11141_s4] sm:$0x1] }
 0x6a0   :  { %4246 = vmatpush.msra.mxu2 %v4112_v0 }
 0x6a2   :  { %v3146_v39 = vpop.permute.xlu1 %3145 }
 0x6a3   :  { %v3142_v31 = vpop.permute.xlu0 %3141  ;;  %v3148_v44 = vadd.f32 %v3146_v39, %v3140_v2  ;;  %v4126_v2 = vld [vmem:[%s11142_s5 + $0xe0] sm:$0xff] }
 0x6aa   :  { %v3109_v21 = vpop.permute.xlu1 %3108 }
 0x6ab   :  { %v3110_v25 = vsel %vm3101_vm7, %v3107_v6, %v3109_v21  ;;  %v3154_v5 = vpop.permute.xlu0 %3153  ;;  %vm3245_vm7 = vcmask 97280  }
 0x6ac   :  { %v3112_v62 = vadd.f32 %v3110_v25, %v3095_v61  ;;  %v3156_v38 = vadd.f32 %v3154_v5, %v3148_v44  ;;  %v4111_v61 = vld [vmem:[%s11142_s5 + $0x68] sm:$0xff]  ;;  %v4109_v5 = vld [vmem:[%s11142_s5 + $0x58] sm:$0xff]  ;;  %v4108_v44 = vld [vmem:[%s11142_s5 + $0x50] sm:$0xff] }
 0x6ad   :  { %v4127_v25 = vld [vmem:[%s11142_s5 + $0xe8] sm:$0xff]  ;;  %4247 = vmatpush.msra.mxu2 %v4111_v61 }
 0x6ae   :  { %v3120_v15 = vadd.f32 %v3118_v32, %v3112_v62  ;;  %v3161_v7 = vmul.f32 0.00024414063, %v3156_v38  ;;  %4360 = vmatpush.msra.mxu3 %v4127_v25  ;;  %v4107_v38 = vld [vmem:[%s11142_s5 + $0x48] sm:$0xff] }
 0x6b0   :  { %v3128_v24 = vadd.f32 %v3126_v17, %v3120_v15  ;;  %v3163_v63 = vmul.f32 %v3161_v7, %v3161_v7  ;;  %4361 = vmatpush.msra.mxu3 %v4126_v2 }
 0x6b2   :  { %v3134_v11 = vpop.permute.xlu1 %3133 }
 0x6b3   :  { %v3136_v35 = vadd.f32 %v3134_v11, %v3128_v24  ;;  %v4110_v24 = vld [vmem:[%s11142_s5 + $0x60] sm:$0xff]  ;;  %v4125_v11 = vld [vmem:[%s11142_s5 + $0xd8] sm:$0xff] }
 0x6b4   :  { %4248 = vmatpush.msra.mxu2 %v4110_v24  ;;  %4362 = vmatpush.msra.mxu3 %v4125_v11 }
 0x6b5   :  { %v3144_v33 = vadd.f32 %v3142_v31, %v3136_v35  ;;  %v4124_v35 = vld [vmem:[%s11142_s5 + $0xd0] sm:$0xff] }
 0x6b6   :  { %4249 = vmatpush.msra.mxu2 %v4109_v5  ;;  %4363 = vmatpush.msra.mxu3 %v4124_v35 }
 0x6b7   :  { %v3152_v12 = vadd.f32 %v3150_v4, %v3144_v33  ;;  %v4123_v33 = vld [vmem:[%s11142_s5 + $0xc8] sm:$0xff]  ;;  %v4106_v4 = vld [vmem:[%s11142_s5 + $0x40] sm:$0xff] }
 0x6b8   :  { %4250 = vmatpush.msra.mxu2 %v4108_v44  ;;  %4364 = vmatpush.msra.mxu3 %v4123_v33 }
 0x6ba   :  { %v3158_v19 = vpop.permute.xlu1 %3157  ;;  %4251 = vmatpush.msra.mxu2 %v4107_v38  ;;  %v4119_v38 = vld [vmem:[%s11142_s5 + $0xa8] sm:$0xff] }
 0x6bb   :  { %v3160_v8 = vadd.f32 %v3158_v19, %v3152_v12  ;;  %v4105_v12 = vld [vmem:[%s11142_s5 + $0x38] sm:$0xff]  ;;  %v4104_v19 = vld [vmem:[%s11142_s5 + $0x30] sm:$0xff] }
 0x6bc   :  { %4252 = vmatpush.msra.mxu2 %v4106_v4 }
 0x6bd   :  { %v3162_v16 = vmul.f32 0.00024414063, %v3160_v8  ;;  %v4103_v8 = vld [vmem:[%s11142_s5 + $0x28] sm:$0xff] }
 0x6be   :  { %4253 = vmatpush.msra.mxu2 %v4105_v12 }
 0x6bf   :  { %v3164_v6 = vsub.f32 %v3162_v16, %v3163_v63  ;;  %v4102_v16 = vld [vmem:[%s11142_s5 + $0x20] sm:$0xff] }
 0x6c0   :  { %4254 = vmatpush.msra.mxu2 %v4104_v19 }
 0x6c1   :  { %v3165_v32 = vadd.f32 1e-05, %v3164_v6  ;;  %v4101_v6 = vld [vmem:[%s11142_s5 + $0x18] sm:$0xff] }
 0x6c2   :  { %4255 = vmatpush.msra.mxu2 %v4103_v8 }
 0x6c3   :  { %5722 = vrsqrt.f32 %v3165_v32  ;;  %vm3172_vm9 = vweird.f32 %v3165_v32 }
 0x6c4   :  { %4256 = vmatpush.msra.mxu2 %v4102_v16 }
 0x6c6   :  { %4257 = vmatpush.msra.mxu2 %v4101_v6 }
 0x6c8   :  { %4258 = vmatpush.msra.mxu2 %v4100_v27 }
 0x6c9   :  { %v5723_v55 = vpop.eup %5722 }
 0x6ca   :  { %v3167_v10 = vmul.f32 %v5723_v55, %v3165_v32  ;;  %vm3173_vm8 = vweird.f32 %v5723_v55  ;;  %v4099_v32 = vld [vmem:[%s11142_s5 + $0x8] sm:$0xff] }
 0x6cb   :  { %vm3174_vm10 = vmor %vm3172_vm9, %vm3173_vm8  ;;  %4259 = vmatpush.msra.mxu2 %v4099_v32  ;;  %vm3247_vm8 = vcmask 211968   ;;  %vm3249_vm9 = vcmask 326656  }
 0x6cc   :  { %v3168_v53 = vmul.f32 %v5723_v55, %v3167_v10 }
 0x6ce   :  { %v3169_v39 = vmul.f32 0.5, %v3168_v53 }
 0x6d0   :  { %v3170_v43 = vsub.f32 1.5, %v3169_v39 }
 0x6d2   :  { %v3171_v31 = vmul.f32 %v5723_v55, %v3170_v43  ;;  %v11350_v43 = vmov 0.0  }
 0x6d4   :  { %v3175_v50 = vsel %vm3174_vm10, %v5723_v55, %v3171_v31  ;;  %v4098_v55 = vld [vmem:[%s11142_s5] sm:$0xff]  ;;  %v4120_v31 = vld [vmem:[%s11142_s5 + $0xb0] sm:$0xff]  ;;  %vm3251_vm10 = vcmask 441344  }
 0x6d5   :  { %v9351_v21 = vmul.f32 %v3176_v60, %v3175_v50  ;;  %4260 = vmatpush.msra.mxu2 %v4098_v55 }
 0x6d6   :  { %4261 = vmatmul.f32.vlgmr.msra.gmra.mxu2 %v11350_v43 }
 0x6d7   :  { %3188 = vrot.lane.b32.xlu1 %v9351_v21, %s5771_s2  ;;  %3185 = vrot.lane.b32.xlu0 %v9351_v21, %s5772_s30  ;;  %v3179_v62 = vmul.f32 %v9351_v21, %v3161_v7  ;;  %v4122_v7 = vld [vmem:[%s11142_s5 + $0xc0] sm:$0xff] }
 0x6d8   :  { %3182 = vrot.lane.b32.xlu2 %v9351_v21, %s5773_s9  ;;  %4365 = vmatpush.msra.mxu3 %v4122_v7 }
 0x6d9   :  { %v9373_v17 = vsub.f32 %v3178_v22, %v3179_v62 }
 0x6da   :  { %4366 = vmatpush.msra.mxu3 %v4121_v28 }
 0x6db   :  { %v9376_v15 = vperm.slane %v9373_v17, 0 }
 0x6dc   :  { %4367 = vmatpush.msra.mxu3 %v4120_v31 }
 0x6de   :  { %4264 = vmatmul.f32.gmra.mxu2 %v11350_v43  ;;  %4368 = vmatpush.msra.mxu3 %v4119_v38  ;;  %v12002_v43 = vld [vmem:[#allocation100_spill] sm:$0xff] }
 0x6df   :  { %3197 = vrot.lane.b32.xlu1 %v9351_v21, %s5774_s10  ;;  %3191 = vrot.lane.b32.xlu0 %v9351_v21, %s5755_s29 }
 0x6e0   :  { %3194 = vrot.lane.b32.xlu2 %v9351_v21, %s5775_s3 }
 0x6e7   :  { %3206 = vrot.lane.b32.xlu1 %v9351_v21, %s5776_s28  ;;  %3200 = vrot.lane.b32.xlu0 %v9351_v21, %s5777_s18 }
 0x6e8   :  { %3203 = vrot.lane.b32.xlu2 %v9351_v21, %s5778_s19 }
 0x6ef   :  { %3264 = vrot.lane.b32.xlu0 %v9376_v15, %s5771_s2  ;;  %3261 = vrot.lane.b32.xlu1 %v9376_v15, %s5772_s30  ;;  %s5784_s2 = smov 82  }
 0x6f0   :  { %3258 = vrot.lane.b32.xlu2 %v9376_v15, %s5773_s9 }
 0x6f7   :  { %3273 = vrot.lane.b32.xlu0 %v9376_v15, %s5774_s10  ;;  %3270 = vrot.lane.b32.xlu1 %v9376_v15, %s5775_s3 }
 0x6f8   :  { %3267 = vrot.lane.b32.xlu2 %v9376_v15, %s5755_s29  ;;  %s5780_s29 = smov 26  }
 0x6ff   :  { %3279 = vrot.lane.b32.xlu0 %v9376_v15, %s5778_s19  ;;  %3282 = vrot.lane.b32.xlu1 %v9376_v15, %s5776_s28  ;;  %s5786_s28 = smov 96  }
 0x700   :  { %3276 = vrot.lane.b32.xlu2 %v9376_v15, %s5777_s18 }
 0x707   :  { %3209 = vrot.lane.b32.xlu0 %v9351_v21, %s5779_s26  ;;  %3212 = vrot.lane.b32.xlu1 %v9351_v21, %s5780_s29 }
 0x708   :  { %3215 = vrot.lane.b32.xlu2 %v9351_v21, %s5781_s27 }
 0x70f   :  { %3221 = vrot.lane.b32.xlu0 %v9351_v21, %s5782_s1  ;;  %3218 = vrot.lane.b32.xlu1 %v9351_v21, %s5783_s8 }
 0x710   :  { %3224 = vrot.lane.b32.xlu2 %v9351_v21, %s5784_s2 }
 0x717   :  { %3285 = vrot.lane.b32.xlu0 %v9376_v15, %s5779_s26  ;;  %3291 = vrot.lane.b32.xlu1 %v9376_v15, %s5781_s27  ;;  %s5788_s26 = smov 128  }
 0x718   :  { %3288 = vrot.lane.b32.xlu2 %v9376_v15, %s5780_s29  ;;  %s5789_s29 = smov 8  }
 0x71f   :  { %3294 = vrot.lane.b32.xlu0 %v9376_v15, %s5783_s8  ;;  %3297 = vrot.lane.b32.xlu1 %v9376_v15, %s5782_s1 }
 0x732   :  { %v3183_v63 = vpop.permute.xlu2 %3182 }
 0x733   :  { %v3228_v25 = vsel %vm3227_vm11, %v9351_v21, %v3183_v63 }
 0x73a   :  { %v3195_v10 = vpop.permute.xlu2 %3194 }
 0x742   :  { %v3204_v60 = vpop.permute.xlu2 %3203 }
 0x749   :  { %v3189_v53 = vpop.permute.xlu1 %3188  ;;  %v3186_v39 = vpop.permute.xlu0 %3185 }
 0x74a   :  { %v3230_v62 = vsel %vm3229_vm12, %v3228_v25, %v3186_v39  ;;  %v3259_v22 = vpop.permute.xlu2 %3258 }
 0x74b   :  { %v3232_v24 = vsel %vm3231_vm13, %v3230_v62, %v3189_v53  ;;  %v3303_v35 = vsel %vm3227_vm11, %v9373_v17, %v3259_v22  ;;  %v11974_v62 = vld [vmem:[#allocation46_spill] sm:$0xff]  ;;  %vm3254_vm11 = vcmask 670720  }
 0x751   :  { %v3198_v0 = vpop.permute.xlu1 %3197  ;;  %v3192_v45 = vpop.permute.xlu0 %3191 }
 0x752   :  { %v3234_v2 = vsel %vm3233_vm14, %v3232_v24, %v3192_v45  ;;  %v3268_v4 = vpop.permute.xlu2 %3267  ;;  %v11972_v45 = vld [vmem:[#allocation146_spill] sm:$0xff]  ;;  %v11975_v24 = vld [vmem:[#allocation15_spill] sm:$0xff] }
 0x753   :  { %v3236_v44 = vsel %vm3235_vm15, %v3234_v2, %v3195_v10 }
 0x754   :  { %v3238_v33 = vsel %vm3237_vm0, %v3236_v44, %v3198_v0 }
 0x759   :  { %v9462_v50 = vpop.permute.xlu1 %3206  ;;  %v3201_v61 = vpop.permute.xlu0 %3200 }
 0x75a   :  { %v3240_v7 = vsel %vm3239_vm2, %v3238_v33, %v3201_v61  ;;  %v3277_v32 = vpop.permute.xlu2 %3276  ;;  %v11973_v61 = vld [vmem:[#allocation14_spill] sm:$0xff] }
 0x75b   :  { %v3242_v19 = vsel %vm3241_vm3, %v3240_v7, %v3204_v60 }
 0x75c   :  { %v3244_v6 = vsel %vm3243_vm5, %v3242_v19, %v9462_v50 }
 0x75d   :  { %v9484_v28 = vperm.slane %v3244_v6, 0 }
 0x75f   :  { %v3324_v60 = vmul.f32 %v9484_v28, %v11972_v45  ;;  %v3374_v25 = vmul.f32 %v9484_v28, %v11973_v61  ;;  %v3376_v22 = vmul.f32 %v9484_v28, %v11974_v62  ;;  %v3378_v2 = vmul.f32 %v9484_v28, %v11975_v24  ;;  %v11983_v61 = vld [vmem:[#allocation152_spill] sm:$0xff]  ;;  %v11984_v62 = vld [vmem:[#allocation154_spill] sm:$0xff]  ;;  %v11985_v24 = vld [vmem:[#allocation159_spill] sm:$0xff] }
 0x761   :  { %v3265_v5 = vpop.permute.xlu0 %3264  ;;  %v3262_v11 = vpop.permute.xlu1 %3261 }
 0x762   :  { %v3304_v21 = vsel %vm3229_vm12, %v3303_v35, %v3262_v11  ;;  %v11976_v11 = vld [vmem:[#allocation71_spill] sm:$0xff]  ;;  %v11977_v35 = vld [vmem:[#allocation68_spill] sm:$0xff]  ;;  %vm9790_vm12 = vmneg %vm2790_vm6 }
 0x763   :  { %v3305_v12 = vsel %vm3231_vm13, %v3304_v21, %v3265_v5  ;;  %v4118_v5 = vld [vmem:[%s11142_s5 + $0xa0] sm:$0xff]  ;;  %v3320_v44 = vmul.f32 %v9484_v28, %v11976_v11  ;;  %v3322_v21 = vmul.f32 %v9484_v28, %v11977_v35 }
 0x764   :  { %v3306_v63 = vsel %vm3233_vm14, %v3305_v12, %v3268_v4  ;;  %4369 = vmatpush.msra.mxu3 %v4118_v5 }
 0x769   :  { %v3274_v8 = vpop.permute.xlu0 %3273  ;;  %v3271_v17 = vpop.permute.xlu1 %3270 }
 0x76a   :  { %v3307_v16 = vsel %vm3235_vm15, %v3306_v63, %v3271_v17 }
 0x76b   :  { %v3308_v27 = vsel %vm3237_vm0, %v3307_v16, %v3274_v8  ;;  %v11979_v16 = vld [vmem:[#allocation83_spill] sm:$0xff] }
 0x76c   :  { %v3309_v10 = vsel %vm3239_vm2, %v3308_v27, %v3277_v32  ;;  %v3330_v6 = vmul.f32 %v9484_v28, %v11979_v16  ;;  %v11980_v27 = vld [vmem:[#allocation150_spill] sm:$0xff]  ;;  %v11987_v16 = vld [vmem:[#allocation107_spill] sm:$0xff] }
 0x76d   :  { %v3328_v32 = vmul.f32 %v9484_v28, %v11980_v27  ;;  %v11988_v27 = vld [vmem:[#allocation113_spill] sm:$0xff] }
 0x771   :  { %v3280_v55 = vpop.permute.xlu0 %3279  ;;  %v9487_v53 = vpop.permute.xlu1 %3282 }
 0x772   :  { %v3310_v39 = vsel %vm3241_vm3, %v3309_v10, %v3280_v55  ;;  %v11981_v55 = vld [vmem:[#allocation73_spill] sm:$0xff] }
 0x773   :  { %v3311_v0 = vsel %vm3243_vm5, %v3310_v39, %v9487_v53  ;;  %v3326_v10 = vmul.f32 %v9484_v28, %v11981_v55 }
 0x774   :  { %v9493_v31 = vperm.slane %v3311_v0, 0  ;;  %v11982_v0 = vld [vmem:[#allocation155_spill] sm:$0xff] }
 0x775   :  { %v3336_v45 = vmul.f32 %v9484_v28, %v11982_v0  ;;  %v11990_v0 = vld [vmem:[#allocation12_spill] sm:$0xff] }
 0x776   :  { %v9509_v38 = vadd.f32 %v9493_v31, %v3374_v25  ;;  %v9512_v33 = vadd.f32 %v9493_v31, %v3376_v22  ;;  %v9515_v4 = vadd.f32 %v9493_v31, %v3378_v2  ;;  %v3390_v7 = vadd.f32 %v9493_v31, %v3324_v60 }
 0x777   :  { %v3388_v12 = vadd.f32 %v9493_v31, %v3322_v21  ;;  %v3386_v19 = vadd.f32 %v9493_v31, %v3320_v44  ;;  %v3396_v39 = vadd.f32 %v9493_v31, %v3330_v6  ;;  %v3394_v60 = vadd.f32 %v9493_v31, %v3328_v32 }
 0x778   :  { %11978 = vst [vmem:[#allocation136_spill] sm:$0xff] %v9509_v38  ;;  %v9520_v8 = vmax.f32 %v3390_v7, 0.0  ;;  %v3332_v25 = vmul.f32 %v9484_v28, %v11983_v61  ;;  %v3334_v22 = vmul.f32 %v9484_v28, %v11984_v62  ;;  %v3338_v2 = vmul.f32 %v9484_v28, %v11985_v24  ;;  %v4117_v24 = vld [vmem:[%s11142_s5 + $0x98] sm:$0xff] }
 0x779   :  { %v3452_v17 = vmax.f32 %v3388_v12, 0.0  ;;  %v3450_v63 = vmax.f32 %v3386_v19, 0.0  ;;  %v3392_v5 = vadd.f32 %v9493_v31, %v3326_v10  ;;  %v3402_v11 = vadd.f32 %v9493_v31, %v3336_v45  ;;  %v11986_v12 = vld [vmem:[#allocation40_spill] sm:$0xff]  ;;  %v11989_v10 = vld [vmem:[#allocation7_spill] sm:$0xff]  ;;  %4370 = vmatpush.msra.mxu3 %v4117_v24 }
 0x77a   :  { %3586 = vrot.lane.b32.xlu1 %v9520_v8, %s5786_s28  ;;  %v9544_v44 = vmax.f32 %v3396_v39, 0.0  ;;  %v3400_v35 = vadd.f32 %v9493_v31, %v3334_v22  ;;  %v3398_v21 = vadd.f32 %v9493_v31, %v3332_v25  ;;  %v3404_v7 = vadd.f32 %v9493_v31, %v3338_v2 }
 0x77b   :  { %3582 = vrot.lane.b32.xlu0 %v3452_v17, %s5786_s28  ;;  %3578 = vrot.lane.b32.xlu2 %v3450_v63, %s5786_s28  ;;  %v3372_v19 = vmul.f32 %v9484_v28, %v11986_v12  ;;  %v3362_v6 = vmul.f32 %v9484_v28, %v11987_v16  ;;  %v3370_v32 = vmul.f32 %v9484_v28, %v11988_v27  ;;  %v9559_v55 = vmax.f32 %v3392_v5, 0.0 }
 0x77c   :  { %4267 = vmatmul.f32.gmra.mxu2 %v3450_v63  ;;  %v9551_v63 = vmax.f32 %v3394_v60, 0.0  ;;  %v3368_v39 = vmul.f32 %v9484_v28, %v11989_v10  ;;  %v3380_v45 = vmul.f32 %v9484_v28, %v11990_v0  ;;  %v9569_v60 = vmax.f32 %v3402_v11, 0.0  ;;  %v11992_v11 = vld [vmem:[#allocation115_spill] sm:$0xff]  ;;  %v11999_v10 = vld [vmem:[#allocation173_spill] sm:$0xff] }
 0x77d   :  { %v9572_v61 = vadd.f32 %v9493_v31, %v3372_v19  ;;  %v9574_v25 = vmax.f32 %v3400_v35, 0.0  ;;  %v9576_v62 = vmax.f32 %v3398_v21, 0.0  ;;  %v9578_v22 = vmax.f32 %v3404_v7, 0.0  ;;  %v11993_v7 = vld [vmem:[#allocation97_spill] sm:$0xff]  ;;  %v11994_v19 = vld [vmem:[#allocation96_spill] sm:$0xff] }
 0x77e   :  { %v9584_v2 = vadd.f32 %v9493_v31, %v3370_v32  ;;  %v9590_v5 = vadd.f32 %v9493_v31, %v3380_v45  ;;  %v3382_v35 = vmul.f32 %v9484_v28, %v11992_v11  ;;  %v3348_v12 = vmul.f32 %v9484_v28, %v11993_v7  ;;  %v11997_v11 = vld [vmem:[#allocation162_spill] sm:$0xff] }
 0x77f   :  { %v3350_v16 = vmul.f32 %v9484_v28, %v11994_v19  ;;  %v3346_v27 = vmul.f32 %v9484_v28, %v11999_v10  ;;  %v3352_v21 = vmul.f32 %v9484_v28, %v12002_v43 }
 0x780   :  { %11991 = vst [vmem:[#allocation34_spill] sm:$0xff] %v9590_v5  ;;  %v3414_v45 = vadd.f32 %v9493_v31, %v3348_v12 }
 0x781   :  { %v3416_v24 = vadd.f32 %v9493_v31, %v3350_v16 }
 0x782   :  { %3598 = vrot.lane.b32.xlu1 %v9544_v44, %s5786_s28 }
 0x783   :  { %3594 = vrot.lane.b32.xlu0 %v9551_v63, %s5786_s28  ;;  %3300 = vrot.lane.b32.xlu2 %v9376_v15, %s5784_s2  ;;  %v9587_v15 = vadd.f32 %v9493_v31, %v3362_v6  ;;  %v9604_v6 = vadd.f32 %v9493_v31, %v3382_v35  ;;  %v3340_v35 = vmul.f32 %v9484_v28, %v11997_v11  ;;  %v3480_v32 = vmax.f32 %v3416_v24, 0.0 }
 0x784   :  { %4270 = vmatmul.f32.gmra.mxu2 %v3452_v17  ;;  %v9593_v17 = vadd.f32 %v9493_v31, %v3368_v39  ;;  %v11996_v39 = vld [vmem:[#allocation167_spill] sm:$0xff] }
 0x785   :  { %11995 = vst [vmem:[#allocation29_spill] sm:$0xff] %v9604_v6  ;;  %v3342_v0 = vmul.f32 %v9484_v28, %v11996_v39  ;;  %v3406_v19 = vadd.f32 %v9493_v31, %v3340_v35  ;;  %v3478_v39 = vmax.f32 %v3414_v45, 0.0  ;;  %v3412_v45 = vadd.f32 %v9493_v31, %v3346_v27  ;;  %v12000_v35 = vld [vmem:[#allocation103_spill] sm:$0xff] }
 0x786   :  { %v3354_v10 = vmul.f32 %v9484_v28, %v12000_v35 }
 0x787   :  { %v3408_v7 = vadd.f32 %v9493_v31, %v3342_v0  ;;  %v9629_v16 = vmax.f32 %v3406_v19, 0.0  ;;  %v9633_v11 = vpack.i.bf16 %v3480_v32, %v3478_v39  ;;  %v4116_v0 = vld [vmem:[%s11142_s5 + $0x90] sm:$0xff]  ;;  %v9646_v24 = vmax.f32 %v3412_v45, 0.0 }
 0x788   :  { %4371 = vmatpush.msra.mxu3 %v4116_v0  ;;  %v9661_v27 = vadd.f32 %v9493_v31, %v3354_v10  ;;  %v9664_v0 = vadd.f32 %v9493_v31, %v3352_v21  ;;  %v12006_v10 = vld [vmem:[#allocation104_spill] sm:$0xff] }
 0x789   :  { %v9627_v12 = vmax.f32 %v3408_v7, 0.0  ;;  %11998 = vst [vmem:[#allocation140_spill] sm:$0xff] %v9633_v11  ;;  %v12001_v7 = vld [vmem:[#allocation171_spill] sm:$0xff]  ;;  %v3358_v23 = vmul.f32 %v9484_v28, %v12006_v10 }
 0x78a   :  { %3610 = vrot.lane.b32.xlu1 %v9569_v60, %s5786_s28  ;;  %v3344_v19 = vmul.f32 %v9484_v28, %v12001_v7  ;;  %12003 = vst [vmem:[#allocation135_spill] sm:$0xff] %v9661_v27  ;;  %v11353_v45 = vmax.f32 %v9661_v27, 0.0  ;;  %v11354_v43 = vmax.f32 %v9664_v0, 0.0  ;;  %v12005_v7 = vld [vmem:[#allocation98_spill] sm:$0xff]  ;;  %v12008_v27 = vld [vmem:[#allocation99_spill] sm:$0xff] }
 0x78b   :  { %3606 = vrot.lane.b32.xlu0 %v9574_v25, %s5786_s28  ;;  %3590 = vrot.lane.b32.xlu2 %v9559_v55, %s5786_s28  ;;  %12004 = vst [vmem:[#allocation131_spill] sm:$0xff] %v9664_v0  ;;  %v3360_v11 = vmul.f32 %v9484_v28, %v12005_v7  ;;  %v12009_v0 = vld [vmem:[#allocation11_spill] sm:$0xff] }
 0x78c   :  { %4273 = vmatmul.f32.gmra.mxu2 %v9520_v8  ;;  %v3364_v36 = vmul.f32 %v9484_v28, %v12009_v0  ;;  %v9728_v0 = vmax.f32 %v9584_v2, 0.0  ;;  %v11358_v2 = vmax.f32 %v9590_v5, 0.0 }
 0x78d   :  { %v3426_v21 = vadd.f32 %v9493_v31, %v3360_v11  ;;  %v3356_v11 = vmul.f32 %v9484_v28, %v12008_v27 }
 0x78f   :  { %v9689_v7 = vmax.f32 %v3426_v21, 0.0  ;;  %v3422_v21 = vadd.f32 %v9493_v31, %v3356_v11  ;;  %v3213_v11 = vpop.permute.xlu1 %3212 }
 0x791   :  { %v9712_v27 = vmax.f32 %v3422_v21, 0.0 }
 0x792   :  { %3622 = vrot.lane.b32.xlu1 %v9627_v12, %s5786_s28 }
 0x793   :  { %3618 = vrot.lane.b32.xlu0 %v9629_v16, %s5786_s28  ;;  %3602 = vrot.lane.b32.xlu2 %v9576_v62, %s5786_s28 }
 0x794   :  { %4276 = vmatmul.f32.gmra.mxu2 %v9559_v55 }
 0x797   :  { %v3219_v5 = vpop.permute.xlu1 %3218 }
 0x79a   :  { %3634 = vrot.lane.b32.xlu1 %v3478_v39, %s5786_s28  ;;  %v3410_v39 = vadd.f32 %v9493_v31, %v3344_v19  ;;  %v4115_v19 = vld [vmem:[%s11142_s5 + $0x88] sm:$0xff] }
 0x79b   :  { %3630 = vrot.lane.b32.xlu0 %v9646_v24, %s5786_s28  ;;  %3614 = vrot.lane.b32.xlu2 %v9578_v22, %s5786_s28 }
 0x79c   :  { %4279 = vmatmul.f32.gmra.mxu2 %v9551_v63  ;;  %v9669_v35 = vmax.f32 %v3410_v39, 0.0  ;;  %v3424_v39 = vadd.f32 %v9493_v31, %v3358_v23  ;;  %4372 = vmatpush.msra.mxu3 %v4115_v19 }
 0x79e   :  { %v9691_v10 = vmax.f32 %v3424_v39, 0.0 }
 0x7a2   :  { %3646 = vrot.lane.b32.xlu1 %v11353_v45, %s5786_s28  ;;  %v12007_v45 = vld [vmem:[#allocation110_spill] sm:$0xff] }
 0x7a3   :  { %3642 = vrot.lane.b32.xlu0 %v11354_v43, %s5786_s28  ;;  %3626 = vrot.lane.b32.xlu2 %v9669_v35, %s5786_s28  ;;  %v3366_v43 = vmul.f32 %v9484_v28, %v12007_v45  ;;  %v3430_v45 = vadd.f32 %v9493_v31, %v3364_v36  ;;  %v4114_v36 = vld [vmem:[%s11142_s5 + $0x80] sm:$0xff]  ;;  %v9725_v28 = vmax.f32 %v9572_v61, 0.0  ;;  %v9741_v61 = vmax.f32 %v9515_v4, 0.0  ;;  %v4177_v4 = vld [vmem:[%s11142_s5 + $0x278] sm:$0xff] }
 0x7a4   :  { %4282 = vmatmul.f32.gmra.mxu2 %v9544_v44  ;;  %4373 = vmatpush.msra.mxu3 %v4114_v36  ;;  %v11365_v36 = vmax.f32 %v9509_v38, 0.0  ;;  %v3292_v38 = vpop.permute.xlu1 %3291 }
 0x7a5   :  { %v3432_v23 = vadd.f32 %v9493_v31, %v3366_v43  ;;  %v9710_v39 = vmax.f32 %v3430_v45, 0.0  ;;  %12010 = vst [vmem:[#allocation137_spill] sm:$0xff] %v9725_v28  ;;  %v3216_v31 = vpop.permute.xlu2 %3215  ;;  %v9731_v43 = vmax.f32 %v9587_v15, 0.0  ;;  %v5591_v15 = vpack.i.bf16 %v11358_v2, %v9741_v61  ;;  %4697 = vmatpush.msrb.mxu2 %v4177_v4  ;;  %v4161_v2 = vld [vmem:[%s11142_s5 + $0x1f8] sm:$0xff] }
 0x7a6   :  { %12011 = vst [vmem:[#allocation139_spill] sm:$0xff] %v9741_v61  ;;  %v4181_v61 = vld [vmem:[%s11142_s5 + $0x298] sm:$0xff]  ;;  %4584 = vmatpush.msrb.mxu1 %v4161_v2  ;;  %v12014_v2 = vpack.i.bf16 %v9559_v55, %v9520_v8  ;;  %v4144_v55 = vld [vmem:[%s11142_s5 + $0x170] sm:$0xff] }
 0x7a7   :  { %v9708_v19 = vmax.f32 %v3432_v23, 0.0  ;;  %v9748_v23 = vmax.f32 %v9593_v17, 0.0  ;;  %4822 = vmatpush.msrb.mxu3 %v4181_v61 }
 0x7aa   :  { %3658 = vrot.lane.b32.xlu1 %v9689_v7, %s5786_s28 }
 0x7ab   :  { %3654 = vrot.lane.b32.xlu0 %v9691_v10, %s5786_s28  ;;  %3638 = vrot.lane.b32.xlu2 %v3480_v32, %s5786_s28  ;;  %v3210_v32 = vpop.permute.xlu0 %3209 }
 0x7ac   :  { %4285 = vmatmul.f32.gmra.mxu2 %v9576_v62  ;;  %v3246_v17 = vsel %vm3245_vm7, %v9462_v50, %v3210_v32  ;;  %v12012_v50 = vmax.f32 %v9512_v33, 0.0 }
 0x7ad   :  { %v3225_v45 = vpop.permute.xlu2 %3224  ;;  %v3248_v4 = vsel %vm3247_vm8, %v3246_v17, %v3213_v11 }
 0x7ae   :  { %v9775_v32 = vpack.i.bf16 %v12012_v50, %v11365_v36  ;;  %v3250_v61 = vsel %vm3249_vm9, %v3248_v4, %v3216_v31  ;;  %v4160_v4 = vld [vmem:[%s11142_s5 + $0x1f0] sm:$0xff] }
 0x7af   :  { %4585 = vmatpush.msrb.mxu1 %v4160_v4  ;;  %v11368_v4 = vmax.f32 %v9604_v6, 0.0 }
 0x7b0   :  { %12013 = vst [vmem:[#allocation37_spill] sm:$0xff] %v9775_v32 }
 0x7b2   :  { %3670 = vrot.lane.b32.xlu1 %v9708_v19, %s5786_s28 }
 0x7b3   :  { %3666 = vrot.lane.b32.xlu0 %v9710_v39, %s5786_s28  ;;  %3650 = vrot.lane.b32.xlu2 %v9712_v27, %s5786_s28  ;;  %v3222_v21 = vpop.permute.xlu0 %3221 }
 0x7b4   :  { %4288 = vmatmul.f32.gmra.mxu2 %v9574_v25 }
 0x7ba   :  { %3682 = vrot.lane.b32.xlu1 %v9725_v28, %s5786_s28  ;;  %v3252_v28 = vsel %vm3251_vm10, %v3250_v61, %v3219_v5 }
 0x7bb   :  { %3678 = vrot.lane.b32.xlu0 %v9728_v0, %s5786_s28  ;;  %3662 = vrot.lane.b32.xlu2 %v9731_v43, %s5786_s28  ;;  %v3286_v11 = vpop.permute.xlu0 %3285  ;;  %v3253_v17 = vsel %vm220_vm1, %v3252_v28, %v3222_v21  ;;  %v4176_v28 = vld [vmem:[%s11142_s5 + $0x270] sm:$0xff] }
 0x7bc   :  { %4291 = vmatmul.f32.gmra.mxu2 %v9569_v60  ;;  %v3312_v50 = vsel %vm3245_vm7, %v9487_v53, %v3286_v11  ;;  %v3255_v5 = vsel %vm3254_vm11, %v3253_v17, %v3225_v45  ;;  %v3298_v11 = vpop.permute.xlu1 %3297  ;;  %v12018_v17 = vld [vmem:[#allocation18_spill] sm:$0xff] }
 0x7bd   :  { %4698 = vmatpush.msrb.mxu2 %v4176_v28  ;;  %v9805_v8 = vperm.slane %v3255_v5, 0  ;;  %v12020_v28 = vld [vmem:[#allocation20_spill] sm:$0xff] }
 0x7bf   :  { %v3325_v36 = vmul.f32 %v9805_v8, %v12020_v28 }
 0x7c3   :  { %5592 = vrot.lane.b32.xlu0 %v5591_v15, %s5786_s28  ;;  %3674 = vrot.lane.b32.xlu2 %v9748_v23, %s5786_s28  ;;  %v4145_v15 = vld [vmem:[%s11142_s5 + $0x178] sm:$0xff]  ;;  %v3295_v45 = vpop.permute.xlu0 %3294 }
 0x7c4   :  { %4294 = vmatmul.f32.gmra.mxu2 %v9578_v22  ;;  %4471 = vmatpush.msrb.mxu0 %v4145_v15  ;;  %v3289_v15 = vpop.permute.xlu2 %3288 }
 0x7c5   :  { %v3313_v53 = vsel %vm3247_vm8, %v3312_v50, %v3289_v15  ;;  %v3321_v50 = vmul.f32 %v9805_v8, %v12018_v17 }
 0x7c6   :  { %4472 = vmatpush.msrb.mxu0 %v4144_v55  ;;  %v3314_v61 = vsel %vm3249_vm9, %v3313_v53, %v3292_v38  ;;  %v12021_v55 = vld [vmem:[#allocation22_spill] sm:$0xff]  ;;  %v3331_v38 = vmul.f32 %v9805_v8, %v8712_v49  ;;  %v3333_v53 = vmul.f32 %v9805_v8, %v8725_v54  ;;  %v3341_v49 = vmul.f32 %v9805_v8, %v9042_v40 }
 0x7c7   :  { %v3315_v15 = vsel %vm3251_vm10, %v3314_v61, %v3295_v45  ;;  %v3335_v45 = vmul.f32 %v9805_v8, %v8738_v13  ;;  %v3343_v54 = vmul.f32 %v9805_v8, %v9075_v41  ;;  %v3345_v13 = vmul.f32 %v9805_v8, %v9085_v42 }
 0x7c8   :  { %v3316_v61 = vsel %vm220_vm1, %v3315_v15, %v3298_v11  ;;  %v3347_v15 = vmul.f32 %v9805_v8, %v9096_v18  ;;  %v3353_v40 = vmul.f32 %v9805_v8, %v9150_v26  ;;  %v3355_v41 = vmul.f32 %v9805_v8, %v9162_v46 }
 0x7c9   :  { %v3357_v42 = vmul.f32 %v9805_v8, %v9182_v59  ;;  %v3359_v18 = vmul.f32 %v9805_v8, %v9195_v37  ;;  %vm4186_vm1 = vcmask 261120  }
 0x7cb   :  { %5587 = vrot.lane.b32.xlu2 %v9775_v32, %s5786_s28  ;;  %v3327_v32 = vmul.f32 %v9805_v8, %v12021_v55  ;;  %v3361_v55 = vmul.f32 %v9805_v8, %v9211_v51 }
 0x7cc   :  { %4297 = vmatmul.f32.gmra.mxu2 %v9629_v16 }
 0x7d3   :  { %5602 = vrot.lane.b32.xlu2 %v12014_v2, %s5754_s16  ;;  %v12019_v2 = vld [vmem:[#allocation114_spill] sm:$0xff] }
 0x7d4   :  { %4300 = vmatmul.f32.gmra.mxu2 %v9627_v12  ;;  %v3323_v5 = vmul.f32 %v9805_v8, %v12019_v2  ;;  %v3337_v2 = vmul.f32 %v9805_v8, %v9015_v9  ;;  %v3349_v9 = vmul.f32 %v9805_v8, %v9117_v48 }
 0x7d5   :  { %v9799_v21 = vpop.permute.xlu2 %3578 }
 0x7d6   :  { %12017 = vst [vmem:[#allocation66_spill] sm:$0xff] %v9799_v21  ;;  %5038 = vmatmul.msk.f32.vlgmr.msra.gmra.mxu3 %vm9790_vm12, %v9799_v21  ;;  %v3329_v21 = vmul.f32 %v9805_v8, %v8697_v3  ;;  %v3339_v3 = vmul.f32 %v9805_v8, %v9031_v57  ;;  %v3351_v57 = vmul.f32 %v9805_v8, %v9132_v29 }
 0x7dc   :  { %4303 = vmatmul.f32.gmra.mxu2 %v9669_v35 }
 0x7dd   :  { %v3301_v17 = vpop.permute.xlu2 %3300 }
 0x7de   :  { %v3317_v28 = vsel %vm3254_vm11, %v3316_v61, %v3301_v17 }
 0x7df   :  { %v9847_v11 = vperm.slane %v3317_v28, 0 }
 0x7e1   :  { %v9864_v48 = vadd.f32 %v9847_v11, %v3321_v50  ;;  %v9867_v29 = vadd.f32 %v9847_v11, %v3323_v5  ;;  %v3395_v26 = vadd.f32 %v9847_v11, %v3329_v21  ;;  %v3407_v61 = vadd.f32 %v9847_v11, %v3341_v49 }
 0x7e2   :  { %v9872_v46 = vadd.f32 %v9847_v11, %v3353_v40  ;;  %v9875_v59 = vadd.f32 %v9847_v11, %v3355_v41  ;;  %v3391_v37 = vadd.f32 %v9847_v11, %v3325_v36  ;;  %v3397_v51 = vadd.f32 %v9847_v11, %v3331_v38 }
 0x7e3   :  { %v3363_v50 = vmul.f32 %v9805_v8, %v9217_v56  ;;  %v9883_v5 = vmul.f32 %v9805_v8, %v9229_v34  ;;  %v11369_v21 = vmax.f32 %v9864_v48, 0.0  ;;  %v11370_v17 = vmax.f32 %v9867_v29, 0.0  ;;  %v4175_v56 = vld [vmem:[%s11142_s5 + $0x268] sm:$0xff] }
 0x7e4   :  { %4306 = vmatmul.f32.gmra.mxu2 %v9646_v24  ;;  %v9888_v49 = vmax.f32 %v3395_v26, 0.0  ;;  %v9890_v28 = vmax.f32 %v3407_v61, 0.0  ;;  %v9892_v36 = vmax.f32 %v3391_v37, 0.0  ;;  %v9894_v38 = vmax.f32 %v3397_v51, 0.0 }
 0x7e5   :  { %v5596_v34 = vpack.i.bf16 %v11369_v21, %v11368_v4  ;;  %v3393_v40 = vadd.f32 %v9847_v11, %v3327_v32  ;;  %v3399_v41 = vadd.f32 %v9847_v11, %v3333_v53  ;;  %v3401_v26 = vadd.f32 %v9847_v11, %v3335_v45  ;;  %4699 = vmatpush.msrb.mxu2 %v4175_v56 }
 0x7e6   :  { %3837 = vrot.lane.b32.xlu0 %v9892_v36, %s5754_s16  ;;  %v5606_v37 = vpack.i.bf16 %v9892_v36, %v11370_v17  ;;  %v3403_v51 = vadd.f32 %v9847_v11, %v3337_v2  ;;  %v3409_v4 = vadd.f32 %v9847_v11, %v3343_v54  ;;  %v3405_v56 = vadd.f32 %v9847_v11, %v3339_v3  ;;  %v4143_v2 = vld [vmem:[%s11142_s5 + $0x168] sm:$0xff] }
 0x7e7   :  { %5597 = vrot.lane.b32.xlu1 %v5596_v34, %s5786_s28  ;;  %v9915_v32 = vmax.f32 %v3393_v40, 0.0  ;;  %v9917_v53 = vmax.f32 %v3399_v41, 0.0  ;;  %v9919_v45 = vmax.f32 %v3401_v26, 0.0  ;;  %v4159_v54 = vld [vmem:[%s11142_s5 + $0x1e8] sm:$0xff]  ;;  %v3411_v40 = vadd.f32 %v9847_v11, %v3345_v13  ;;  %4473 = vmatpush.msrb.mxu0 %v4143_v2  ;;  %v9953_v2 = vpop.f32.mrf.mxu2 }
 0x7e8   :  { %5607 = vrot.lane.b32.xlu2 %v5606_v37, %s5786_s28  ;;  %v9923_v21 = vmax.f32 %v3403_v51, 0.0  ;;  %v9931_v34 = vmax.f32 %v3409_v4, 0.0  ;;  %v3413_v41 = vadd.f32 %v9847_v11, %v3347_v15  ;;  %4586 = vmatpush.msrb.mxu1 %v4159_v54  ;;  %v9939_v37 = vmax.f32 %v3405_v56, 0.0  ;;  %12022 = vst [vmem:[#allocation31_spill] sm:$0xff] %v9953_v2 }
 0x7e9   :  { %v5616_v3 = vpack.i.bf16 %v9888_v49, %v9915_v32  ;;  %v9942_v51 = vadd.f32 %v9847_v11, %v3349_v9  ;;  %v9946_v17 = vmax.f32 %v3411_v40, 0.0  ;;  %v9951_v15 = vadd.f32 %v9847_v11, %v3357_v42 }
 0x7ea   :  { %v9948_v13 = vmax.f32 %v3413_v41, 0.0  ;;  %v9959_v9 = vadd.f32 %v9847_v11, %v3351_v57  ;;  %v9962_v26 = vadd.f32 %v9847_v11, %v3361_v55  ;;  %v3367_v40 = vmul.f32 %v9805_v8, %v9245_v58 }
 0x7eb   :  { %v11371_v56 = vmax.f32 %v9942_v51, 0.0  ;;  %v12023_v41 = vmov 0.0   ;;  %v9970_v4 = vadd.f32 %v9847_v11, %v3363_v50  ;;  %v9973_v54 = vadd.f32 %v9847_v11, %v3359_v18 }
 0x7ec   :  { %4309 = vmatmul.f32.gmra.mxu2 %v12023_v41  ;;  %v3369_v57 = vmul.f32 %v9805_v8, %v9256_v14  ;;  %v3371_v55 = vmul.f32 %v9805_v8, %v9260_v52  ;;  %v11372_v42 = vmax.f32 %v9959_v9, 0.0  ;;  %v3373_v50 = vmul.f32 %v9805_v8, %v9269_v20  ;;  %v10038_v6 = vpop.permute.xlu1 %3586 }
 0x7ed   :  { %v9979_v61 = vpop.permute.xlu0 %3582  ;;  %v9984_v58 = vpack.i.bf16 %v11371_v56, %v9948_v13  ;;  %v3375_v18 = vmul.f32 %v9805_v8, %v9283_v47  ;;  %v3377_v14 = vmul.f32 %v9805_v8, %v9291_v30  ;;  %v12024_v52 = vpack.i.bf16 %v9544_v44, %v9551_v63 }
 0x7ee   :  { %5040 = vmatmul.msk.f32.gmra.mxu3 %vm9790_vm12, %v9979_v61  ;;  %v12025_v20 = vmax.f32 %v9872_v46, 0.0  ;;  %v10009_v30 = vadd.f32 %v9847_v11, %v3367_v40  ;;  %v10012_v56 = vadd.f32 %v9847_v11, %v3369_v57  ;;  %v10016_v44 = vadd.f32 %v9847_v11, %v9883_v5  ;;  %v12026_v57 = vld [vmem:[#allocation134_spill] sm:$0xff] }
 0x7ef   :  { %5612 = vrot.lane.b32.xlu0 %v12024_v52, %s5754_s16  ;;  %3841 = vrot.lane.b32.xlu1 %v9915_v32, %s5754_s16  ;;  %v3379_v63 = vmul.f32 %v9805_v8, %v9300_v1  ;;  %v10023_v52 = vadd.f32 %v9847_v11, %v3373_v50  ;;  %v10029_v40 = vadd.f32 %v9847_v11, %v3375_v18  ;;  %v12027_v5 = vld [vmem:[#allocation130_spill] sm:$0xff] }
 0x7f0   :  { %v10006_v47 = vpack.i.bf16 %v12025_v20, %v11372_v42  ;;  %3849 = vrot.lane.b32.xlu2 %v9894_v38, %s5754_s16  ;;  %v10026_v20 = vadd.f32 %v9847_v11, %v3371_v55  ;;  %v3381_v42 = vmul.f32 %v9805_v8, %v12026_v57  ;;  %v3383_v2 = vmul.f32 %v9805_v8, %v12027_v5  ;;  %v4174_v8 = vld [vmem:[%s11142_s5 + $0x260] sm:$0xff]  ;;  %v10053_v57 = vpop.f32.mrf.mxu2 }
 0x7f1   :  { %v10036_v1 = vadd.f32 %v9847_v11, %v3377_v14  ;;  %v10041_v50 = vadd.f32 %v9847_v11, %v3379_v63  ;;  %12028 = vst [vmem:[#allocation133_spill] sm:$0xff] %v10053_v57  ;;  %v12029_v14 = vmax.f32 %v9864_v48, 0.0  ;;  %4700 = vmatpush.msrb.mxu2 %v4174_v8  ;;  %v4158_v48 = vld [vmem:[%s11142_s5 + $0x1e0] sm:$0xff]  ;;  %v12032_v5 = vmax.f32 %v9867_v29, 0.0  ;;  %v12035_v29 = vld [vmem:[#allocation135_spill] sm:$0xff] }
 0x7f2   :  { %v10044_v55 = vadd.f32 %v9847_v11, %v3381_v42  ;;  %v10047_v18 = vadd.f32 %v9847_v11, %v3383_v2  ;;  %v4142_v11 = vld [vmem:[%s11142_s5 + $0x160] sm:$0xff]  ;;  %4587 = vmatpush.msrb.mxu1 %v4158_v48  ;;  %v10070_v2 = vpop.permute.xlu2 %3590 }
 0x7f3   :  { %v4036_v63 = vsel %vm2790_vm6, %v12029_v14, %v10038_v6  ;;  %4474 = vmatpush.msrb.mxu0 %v4142_v11  ;;  %v4037_v8 = vsel %vm2790_vm6, %v12032_v5, %v10070_v2  ;;  %v12034_v11 = vpack.i.bf16 %v9578_v22, %v9569_v60  ;;  %v12038_v22 = vpack.i.bf16 %v9923_v21, %v9919_v45 }
 0x7f4   :  { %4312 = vmatmul.f32.gmra.mxu2 %v12023_v41 }
 0x7f5   :  { %v10090_v48 = vpop.permute.xlu0 %3594 }
 0x7f6   :  { %4380 = vmatmul.f32.gmra.mxu3 %v4036_v63  ;;  %v12033_v63 = vpack.i.bf16 %v9574_v25, %v9576_v62  ;;  %v4038_v25 = vsel %vm2790_vm6, %v9892_v36, %v10090_v48  ;;  %v12037_v62 = vpack.i.bf16 %v9917_v53, %v9894_v38  ;;  %v4141_v36 = vld [vmem:[%s11142_s5 + $0x158] sm:$0xff] }
 0x7f7   :  { %5617 = vrot.lane.b32.xlu0 %v5616_v3, %s5786_s28  ;;  %3845 = vrot.lane.b32.xlu1 %v9888_v49, %s5754_s16  ;;  %v12030_v3 = vld [vmem:[#allocation131_spill] sm:$0xff] }
 0x7f8   :  { %3853 = vrot.lane.b32.xlu2 %v9917_v53, %s5754_s16  ;;  %v12031_v42 = vmax.f32 %v12030_v3, 0.0  ;;  %v12036_v3 = vmax.f32 %v12035_v29, 0.0  ;;  %4475 = vmatpush.msrb.mxu0 %v4141_v36  ;;  %v12040_v36 = vpack.i.bf16 %v9890_v28, %v9939_v37 }
 0x7fa   :  { %v10097_v5 = vpop.permute.xlu2 %3602 }
 0x7fc   :  { %4315 = vmatmul.f32.gmra.mxu2 %v12031_v42  ;;  %v4173_v42 = vld [vmem:[%s11142_s5 + $0x258] sm:$0xff] }
 0x7fd   :  { %4701 = vmatpush.msrb.mxu2 %v4173_v42  ;;  %v10125_v29 = vpop.permute.xlu0 %3606 }
 0x7fe   :  { %4383 = vmatmul.f32.gmra.mxu3 %v4037_v8  ;;  %v4180_v8 = vld [vmem:[%s11142_s5 + $0x290] sm:$0xff] }
 0x7ff   :  { %3857 = vrot.lane.b32.xlu0 %v9919_v45, %s5754_s16  ;;  %v10080_v14 = vpop.f32.mrf.mxu2  ;;  %5622 = vrot.lane.b32.xlu1 %v12033_v63, %s5754_s16  ;;  %v4157_v63 = vld [vmem:[%s11142_s5 + $0x1d8] sm:$0xff] }
 0x800   :  { %5632 = vrot.lane.b32.xlu2 %v12034_v11, %s5754_s16  ;;  %4823 = vmatpush.msrb.mxu3 %v4180_v8  ;;  %v10123_v11 = vpop.permute.xlu1 %3598 }
 0x801   :  { %4588 = vmatpush.msrb.mxu1 %v4157_v63  ;;  %v4039_v42 = vsel %vm2790_vm6, %v9915_v32, %v10123_v11  ;;  %v4040_v32 = vsel %vm2790_vm6, %v9888_v49, %v10097_v5  ;;  %v4140_v63 = vld [vmem:[%s11142_s5 + $0x150] sm:$0xff] }
 0x802   :  { %v4156_v49 = vld [vmem:[%s11142_s5 + $0x1d0] sm:$0xff]  ;;  %4476 = vmatpush.msrb.mxu0 %v4140_v63  ;;  %v12041_v63 = vld [vmem:[#allocation140_spill] sm:$0xff] }
 0x803   :  { %4589 = vmatpush.msrb.mxu1 %v4156_v49 }
 0x804   :  { %4318 = vmatmul.f32.gmra.mxu2 %v12036_v3  ;;  %v5641_v3 = vpack.i.bf16 %v9627_v12, %v9629_v16  ;;  %v4172_v12 = vld [vmem:[%s11142_s5 + $0x250] sm:$0xff] }
 0x805   :  { %v10148_v16 = vpop.permute.xlu0 %3618  ;;  %4702 = vmatpush.msrb.mxu2 %v4172_v12  ;;  %v5651_v12 = vpack.i.bf16 %v9646_v24, %v9669_v35  ;;  %v4171_v24 = vld [vmem:[%s11142_s5 + $0x248] sm:$0xff] }
 0x806   :  { %4386 = vmatmul.f32.gmra.mxu3 %v4038_v25  ;;  %v10134_v25 = vpop.permute.xlu2 %3614 }
 0x807   :  { %3861 = vrot.lane.b32.xlu0 %v9923_v21, %s5754_s16  ;;  %v10104_v60 = vpop.f32.mrf.mxu2  ;;  %5627 = vrot.lane.b32.xlu1 %v12037_v62, %s5786_s28  ;;  %12039 = vst [vmem:[#allocation142_spill] sm:$0xff] %v10134_v25 }
 0x808   :  { %5637 = vrot.lane.b32.xlu2 %v12038_v22, %s5786_s28  ;;  %v10142_v22 = vpop.permute.xlu1 %3610  ;;  %4703 = vmatpush.msrb.mxu2 %v4171_v24 }
 0x809   :  { %v4042_v35 = vsel %vm2790_vm6, %v9917_v53, %v10142_v22  ;;  %v4139_v53 = vld [vmem:[%s11142_s5 + $0x148] sm:$0xff] }
 0x80a   :  { %4477 = vmatpush.msrb.mxu0 %v4139_v53  ;;  %v4043_v53 = vsel %vm2790_vm6, %v9919_v45, %v10134_v25  ;;  %v4137_v45 = vld [vmem:[%s11142_s5 + $0x138] sm:$0xff] }
 0x80c   :  { %4321 = vmatmul.f32.gmra.mxu2 %v9712_v27 }
 0x80e   :  { %4389 = vmatmul.f32.gmra.mxu3 %v4039_v42  ;;  %v4041_v42 = vsel %vm2790_vm6, %v9894_v38, %v10125_v29  ;;  %v12042_v38 = vmax.f32 %v9942_v51, 0.0  ;;  %v4155_v51 = vld [vmem:[%s11142_s5 + $0x1c8] sm:$0xff] }
 0x80f   :  { %5642 = vrot.lane.b32.xlu0 %v5641_v3, %s5754_s16  ;;  %v10136_v62 = vpop.f32.mrf.mxu2  ;;  %3865 = vrot.lane.b32.xlu1 %v9939_v37, %s5754_s16  ;;  %v10169_v3 = vpop.permute.xlu2 %3626 }
 0x810   :  { %3873 = vrot.lane.b32.xlu2 %v9931_v34, %s5754_s16  ;;  %4590 = vmatpush.msrb.mxu1 %v4155_v51  ;;  %v12048_v51 = vmax.f32 %v9959_v9, 0.0  ;;  %v4152_v9 = vld [vmem:[%s11142_s5 + $0x1b0] sm:$0xff] }
 0x814   :  { %4324 = vmatmul.f32.gmra.mxu2 %v9691_v10 }
 0x816   :  { %4392 = vmatmul.f32.gmra.mxu3 %v4040_v32  ;;  %v10177_v32 = vpop.permute.xlu1 %3622 }
 0x817   :  { %5647 = vrot.lane.b32.xlu0 %v12040_v36, %s5786_s28  ;;  %v10157_v8 = vpop.f32.mrf.mxu2  ;;  %3869 = vrot.lane.b32.xlu1 %v9890_v28, %s5754_s16  ;;  %v10181_v36 = vpop.permute.xlu0 %3630 }
 0x818   :  { %3877 = vrot.lane.b32.xlu2 %v9946_v17, %s5754_s16  ;;  %v10188_v49 = vpop.permute.xlu2 %3638 }
 0x81c   :  { %4327 = vmatmul.f32.gmra.mxu2 %v9689_v7 }
 0x81e   :  { %4395 = vmatmul.f32.gmra.mxu3 %v4041_v42 }
 0x81f   :  { %3881 = vrot.lane.b32.xlu0 %v9948_v13, %s5754_s16  ;;  %v10183_v57 = vpop.f32.mrf.mxu2  ;;  %5652 = vrot.lane.b32.xlu1 %v5651_v12, %s5754_s16  ;;  %v12043_v12 = vpack.i.bf16 %v9946_v17, %v9931_v34  ;;  %v10216_v24 = vpop.permute.xlu0 %3642 }
 0x820   :  { %5662 = vrot.lane.b32.xlu2 %v12041_v63, %s5754_s16  ;;  %v10214_v63 = vpop.permute.xlu1 %3634  ;;  %12045 = vst [vmem:[#allocation143_spill] sm:$0xff] %v10216_v24 }
 0x821   :  { %12044 = vst [vmem:[#allocation42_spill] sm:$0xff] %v10214_v63 }
 0x824   :  { %4330 = vmatmul.f32.gmra.mxu2 %v9731_v43 }
 0x826   :  { %4398 = vmatmul.f32.gmra.mxu3 %v4042_v35  ;;  %v5671_v35 = vpack.i.bf16 %v9712_v27, %v12023_v41  ;;  %v10234_v27 = vmax.f32 %v9951_v15, 0.0  ;;  %v4136_v15 = vld [vmem:[%s11142_s5 + $0x130] sm:$0xff] }
 0x827   :  { %3885 = vrot.lane.b32.xlu0 %v12042_v38, %s5754_s16  ;;  %v10200_v42 = vpop.f32.mrf.mxu2  ;;  %5657 = vrot.lane.b32.xlu1 %v12043_v12, %s5786_s28  ;;  %v4154_v38 = vld [vmem:[%s11142_s5 + $0x1c0] sm:$0xff]  ;;  %v10227_v12 = vpop.permute.xlu2 %3650 }
 0x828   :  { %5667 = vrot.lane.b32.xlu2 %v9984_v58, %s5786_s28  ;;  %v4138_v58 = vld [vmem:[%s11142_s5 + $0x140] sm:$0xff]  ;;  %12046 = vst [vmem:[#allocation33_spill] sm:$0xff] %v10227_v12  ;;  %4591 = vmatpush.msrb.mxu1 %v4154_v38  ;;  %v4135_v38 = vld [vmem:[%s11142_s5 + $0x128] sm:$0xff] }
 0x829   :  { %4478 = vmatpush.msrb.mxu0 %v4138_v58  ;;  %v4044_v58 = vsel %vm2790_vm6, %v9923_v21, %v10148_v16 }
 0x82b   :  { %4479 = vmatpush.msrb.mxu0 %v4137_v45  ;;  %v5686_v45 = vpack.i.bf16 %v9689_v7, %v9691_v10  ;;  %v4170_v10 = vld [vmem:[%s11142_s5 + $0x240] sm:$0xff] }
 0x82c   :  { %4333 = vmatmul.f32.gmra.mxu2 %v9710_v39 }
 0x82d   :  { %4480 = vmatpush.msrb.mxu0 %v4136_v15  ;;  %v4150_v15 = vld [vmem:[%s11142_s5 + $0x1a0] sm:$0xff]  ;;  %4704 = vmatpush.msrb.mxu2 %v4170_v10 }
 0x82e   :  { %4401 = vmatmul.f32.gmra.mxu3 %v4043_v53  ;;  %v4151_v53 = vld [vmem:[%s11142_s5 + $0x1a8] sm:$0xff] }
 0x82f   :  { %5672 = vrot.lane.b32.xlu0 %v5671_v35, %s5754_s16  ;;  %v10236_v41 = vpop.f32.mrf.mxu2  ;;  %3889 = vrot.lane.b32.xlu1 %v12048_v51, %s5754_s16  ;;  %v4153_v35 = vld [vmem:[%s11142_s5 + $0x1b8] sm:$0xff]  ;;  %v10262_v51 = vpop.permute.xlu1 %3646 }
 0x830   :  { %12047 = vst [vmem:[#allocation138_spill] sm:$0xff] %v10236_v41  ;;  %3895 = vrot.lane.b32.xlu2 %v10234_v27, %s5754_s16  ;;  %4592 = vmatpush.msrb.mxu1 %v4153_v35  ;;  %v10264_v41 = vpop.permute.xlu0 %3654  ;;  %v4134_v35 = vld [vmem:[%s11142_s5 + $0x120] sm:$0xff]  ;;  %v10285_v25 = vpop.permute.xlu2 %3662 }
 0x831   :  { %12049 = vst [vmem:[#allocation69_spill] sm:$0xff] %v10262_v51  ;;  %4481 = vmatpush.msrb.mxu0 %v4135_v38  ;;  %v4149_v38 = vld [vmem:[%s11142_s5 + $0x198] sm:$0xff] }
 0x832   :  { %4593 = vmatpush.msrb.mxu1 %v4152_v9  ;;  %v12050_v9 = vmax.f32 %v9875_v59, 0.0 }
 0x833   :  { %4482 = vmatpush.msrb.mxu0 %v4134_v35  ;;  %v10309_v35 = vmax.f32 %v9962_v26, 0.0  ;;  %v10325_v26 = vmax.f32 %v9973_v54, 0.0  ;;  %v4168_v54 = vld [vmem:[%s11142_s5 + $0x230] sm:$0xff] }
 0x834   :  { %4336 = vmatmul.f32.gmra.mxu2 %v9708_v19  ;;  %4594 = vmatpush.msrb.mxu1 %v4151_v53  ;;  %v5681_v7 = vpack.i.bf16 %v10234_v27, %v12050_v9  ;;  %v4148_v53 = vld [vmem:[%s11142_s5 + $0x190] sm:$0xff]  ;;  %v4169_v9 = vld [vmem:[%s11142_s5 + $0x238] sm:$0xff] }
 0x835   :  { %4705 = vmatpush.msrb.mxu2 %v4169_v9  ;;  %v5691_v9 = vpack.i.bf16 %v10309_v35, %v10325_v26 }
 0x836   :  { %4404 = vmatmul.f32.gmra.mxu3 %v4044_v58  ;;  %4595 = vmatpush.msrb.mxu1 %v4150_v15  ;;  %v4133_v58 = vld [vmem:[%s11142_s5 + $0x118] sm:$0xff]  ;;  %v4147_v15 = vld [vmem:[%s11142_s5 + $0x188] sm:$0xff] }
 0x837   :  { %5687 = vrot.lane.b32.xlu0 %v5686_v45, %s5754_s16  ;;  %5677 = vrot.lane.b32.xlu1 %v10006_v47, %s5786_s28  ;;  %v10289_v21 = vpop.f32.mrf.mxu2  ;;  %v4132_v47 = vld [vmem:[%s11142_s5 + $0x110] sm:$0xff]  ;;  %v4131_v45 = vld [vmem:[%s11142_s5 + $0x108] sm:$0xff] }
 0x838   :  { %5682 = vrot.lane.b32.xlu2 %v5681_v7, %s5786_s28  ;;  %4483 = vmatpush.msrb.mxu0 %v4133_v58  ;;  %v10317_v7 = vpop.permute.xlu1 %3658  ;;  %v10319_v10 = vpop.permute.xlu0 %3666  ;;  %v4045_v58 = vsel %vm2790_vm6, %v9939_v37, %v10177_v32  ;;  %v4146_v37 = vld [vmem:[%s11142_s5 + $0x180] sm:$0xff] }
 0x839   :  { %4596 = vmatpush.msrb.mxu1 %v4149_v38  ;;  %v4130_v38 = vld [vmem:[%s11142_s5 + $0x100] sm:$0xff]  ;;  %4706 = vmatpush.msrb.mxu2 %v4168_v54  ;;  %v5706_v54 = vpack.i.bf16 %v9748_v23, %v9708_v19  ;;  %v4163_v19 = vld [vmem:[%s11142_s5 + $0x208] sm:$0xff] }
 0x83a   :  { %4484 = vmatpush.msrb.mxu0 %v4132_v47  ;;  %v10333_v47 = vmax.f32 %v9970_v4, 0.0  ;;  %v4167_v4 = vld [vmem:[%s11142_s5 + $0x228] sm:$0xff] }
 0x83b   :  { %4597 = vmatpush.msrb.mxu1 %v4148_v53  ;;  %v10345_v53 = vpop.permute.xlu2 %3674  ;;  %4707 = vmatpush.msrb.mxu2 %v4167_v4 }
 0x83c   :  { %4339 = vmatmul.f32.gmra.mxu2 %v9748_v23  ;;  %4485 = vmatpush.msrb.mxu0 %v4131_v45  ;;  %v4162_v23 = vld [vmem:[%s11142_s5 + $0x200] sm:$0xff] }
 0x83d   :  { %4598 = vmatpush.msrb.mxu1 %v4147_v15  ;;  %v4166_v15 = vld [vmem:[%s11142_s5 + $0x220] sm:$0xff] }
 0x83e   :  { %4407 = vmatmul.f32.gmra.mxu3 %v4045_v58  ;;  %4486 = vmatpush.msrb.mxu0 %v4130_v38  ;;  %v4165_v58 = vld [vmem:[%s11142_s5 + $0x218] sm:$0xff]  ;;  %v4046_v38 = vsel %vm2790_vm6, %v9890_v28, %v10169_v3 }
 0x83f   :  { %3903 = vrot.lane.b32.xlu0 %v10309_v35, %s5754_s16  ;;  %3899 = vrot.lane.b32.xlu1 %v10325_v26, %s5754_s16  ;;  %v10350_v45 = vpop.f32.mrf.mxu2 }
 0x840   :  { %3907 = vrot.lane.b32.xlu2 %v10333_v47, %s5754_s16  ;;  %4599 = vmatpush.msrb.mxu1 %v4146_v37  ;;  %12051 = vst [vmem:[#allocation45_spill] sm:$0xff] %v10350_v45  ;;  %v5696_v37 = vpack.i.bf16 %v9710_v39, %v9731_v43  ;;  %v10369_v4 = vpop.permute.xlu1 %3670  ;;  %v10371_v45 = vpop.permute.xlu0 %3678  ;;  %v4164_v39 = vld [vmem:[%s11142_s5 + $0x210] sm:$0xff]  ;;  %v4179_v43 = vld [vmem:[%s11142_s5 + $0x288] sm:$0xff] }
 0x841   :  { %4708 = vmatpush.msrb.mxu2 %v4166_v15  ;;  %4824 = vmatpush.msrb.mxu3 %v4179_v43 }
 0x843   :  { %4709 = vmatpush.msrb.mxu2 %v4165_v58  ;;  %v10387_v28 = vpop.permute.xlu2 %5587  ;;  %v10393_v58 = vmax.f32 %v10009_v30, 0.0 }
 0x844   :  { %4342 = vmatmul.f32.gmra.mxu2 %v9728_v0 }
 0x845   :  { %4710 = vmatpush.msrb.mxu2 %v4164_v39 }
 0x846   :  { %4410 = vmatmul.f32.gmra.mxu3 %v4046_v38  ;;  %v4047_v38 = vsel %vm2790_vm6, %v9931_v34, %v10181_v36 }
 0x847   :  { %5692 = vrot.lane.b32.xlu0 %v5691_v9, %s5786_s28  ;;  %5697 = vrot.lane.b32.xlu1 %v5696_v37, %s5754_s16  ;;  %v10389_v15 = vpop.f32.mrf.mxu2  ;;  %v12052_v9 = vld [vmem:[#allocation137_spill] sm:$0xff]  ;;  %v10399_v37 = vmax.f32 %v10016_v44, 0.0  ;;  %v12054_v44 = vld [vmem:[#allocation136_spill] sm:$0xff] }
 0x848   :  { %5707 = vrot.lane.b32.xlu2 %v5706_v54, %s5754_s16  ;;  %4711 = vmatpush.msrb.mxu2 %v4163_v19  ;;  %v10404_v54 = vmax.f32 %v10012_v56, 0.0  ;;  %v10410_v30 = vpop.permute.xlu1 %3682  ;;  %v10412_v34 = vpop.permute.xlu0 %5592  ;;  %v12055_v39 = vmax.f32 %v12054_v44, 0.0  ;;  %v5711_v43 = vpack.i.bf16 %v12052_v9, %v9728_v0  ;;  %v4048_v56 = vsel %vm2790_vm6, %v9946_v17, %v10214_v63 }
 0x849   :  { %12053 = vst [vmem:[#allocation67_spill] sm:$0xff] %v10412_v34  ;;  %v10440_v63 = vmax.f32 %v10023_v52, 0.0 }
 0x84a   :  { %4712 = vmatpush.msrb.mxu2 %v4162_v23  ;;  %v5701_v23 = vpack.i.bf16 %v10399_v37, %v10333_v47 }
 0x84b   :  { %v10418_v19 = vpop.permute.xlu2 %5602 }
 0x84c   :  { %4345 = vmatmul.f32.gmra.mxu2 %v12052_v9  ;;  %v5604_v44 = vunpack.i.l.bf16 %v10418_v19 }
 0x84e   :  { %4413 = vmatmul.f32.gmra.mxu3 %v4047_v38 }
 0x84f   :  { %3915 = vrot.lane.b32.xlu0 %v10393_v58, %s5754_s16  ;;  %3911 = vrot.lane.b32.xlu1 %v10399_v37, %s5754_s16  ;;  %v10425_v38 = vpop.f32.mrf.mxu2 }
 0x850   :  { %3919 = vrot.lane.b32.xlu2 %v10404_v54, %s5754_s16  ;;  %12056 = vst [vmem:[#allocation141_spill] sm:$0xff] %v10425_v38  ;;  %v4049_v38 = vsel %vm2790_vm6, %v9948_v13, %v10188_v49  ;;  %v5605_v13 = vunpack.i.h.bf16 %v10418_v19  ;;  %v10477_v19 = vmax.f32 %v10036_v1, 0.0 }
 0x853   :  { %v5608_v34 = vpop.permute.xlu2 %5607 }
 0x854   :  { %4348 = vmatmul.f32.gmra.mxu2 %v12055_v39  ;;  %v12059_v39 = vmax.f32 %v9512_v33, 0.0  ;;  %v5609_v33 = vunpack.i.l.bf16 %v5608_v34 }
 0x856   :  { %4416 = vmatmul.f32.gmra.mxu3 %v4048_v56 }
 0x857   :  { %5712 = vrot.lane.b32.xlu0 %v5711_v43, %s5754_s16  ;;  %5702 = vrot.lane.b32.xlu1 %v5701_v23, %s5786_s28  ;;  %v12060_v43 = vld [vmem:[#allocation66_spill] sm:$0xff]  ;;  %v10455_v52 = vpop.f32.mrf.mxu2 }
 0x858   :  { %3672 = vrot.lane.b32.xlu2 %v10393_v58, %s5786_s28  ;;  %v10431_v0 = vpop.permute.xlu0 %3837 }
 0x859   :  { %12057 = vst [vmem:[#allocation144_spill] sm:$0xff] %v10431_v0  ;;  %v10433_v9 = vpop.permute.xlu1 %5597 }
 0x85a   :  { %12058 = vst [vmem:[#allocation48_spill] sm:$0xff] %v10433_v9  ;;  %v5600_v17 = vunpack.i.h.bf16 %v10433_v9  ;;  %v10449_v9 = vmax.f32 %v10026_v20, 0.0  ;;  %v12063_v20 = vld [vmem:[#allocation139_spill] sm:$0xff] }
 0x85c   :  { %4351 = vmatmul.f32.gmra.mxu2 %v12059_v39  ;;  %v3706_v56 = vsel %vm2790_vm6, %v12060_v43, %v5600_v17  ;;  %v4066_v23 = vsel %vm1280_vm4, %v5600_v17, %v5604_v44  ;;  %v12061_v17 = vld [vmem:[#allocation37_spill] sm:$0xff] }
 0x85d   :  { %4487 = vmatmul.f32.vlgmr.msrb.gmra.mxu0 %v3706_v56  ;;  %4600 = vmatmul.f32.vlgmr.msrb.gmra.mxu1 %v4066_v23  ;;  %v10466_v56 = vmax.f32 %v10029_v40, 0.0  ;;  %v4067_v23 = vsel %vm1280_vm4, %v5609_v33, %v5605_v13  ;;  %v5610_v40 = vunpack.i.h.bf16 %v5608_v34 }
 0x85e   :  { %4419 = vmatmul.f32.gmra.mxu3 %v4049_v38  ;;  %v3707_v38 = vsel %vm2790_vm6, %v9979_v61, %v5609_v33  ;;  %v10484_v33 = vpop.f32.mrf.mxu3 }
 0x85f   :  { %3927 = vrot.lane.b32.xlu0 %v10440_v63, %s5754_s16  ;;  %3923 = vrot.lane.b32.xlu1 %v10449_v9, %s5754_s16  ;;  %12064 = vst [vmem:[#allocation36_spill] sm:$0xff] %v10484_v33  ;;  %v3708_v1 = vsel %vm2790_vm6, %v10038_v6, %v5610_v40  ;;  %v10501_v33 = vmax.f32 %v10041_v50, 0.0  ;;  %v10519_v50 = vld [vmem:[%s11143_s6] ss:$0 sm:$0xff] }
 0x860   :  { %5717 = vrot.lane.b32.xlu2 %v12061_v17, %s5754_s16 }
 0x861   :  { %v10459_v39 = vpop.permute.xlu1 %3841  ;;  %v10462_v43 = vpop.permute.xlu0 %5612 }
 0x862   :  { %12062 = vst [vmem:[#allocation41_spill] sm:$0xff] %v10459_v39  ;;  %v5614_v61 = vunpack.i.l.bf16 %v10462_v43  ;;  %v3950_v31 = vsel %vm1280_vm4, %v5605_v13, %v10459_v39  ;;  %v3511_v39 = vmax.f32 %v10044_v55, 0.0 }
 0x864   :  { %4354 = vmatmul.f32.gmra.mxu2 %v12063_v20  ;;  %v4068_v34 = vsel %vm1280_vm4, %v5610_v40, %v5614_v61 }
 0x865   :  { %4490 = vmatmul.f32.gmra.mxu0 %v3707_v38  ;;  %4603 = vmatmul.f32.gmra.mxu1 %v4067_v23  ;;  %v10488_v38 = vpop.f32.mrf.mxu2  ;;  %v3949_v23 = vsel %vm1280_vm4, %v5604_v44, %v10431_v0  ;;  %v10503_v44 = vpop.permute.xlu2 %3849 }
 0x866   :  { %5042 = vmatmul.msk.f32.gmra.mxu3 %vm9790_vm12, %v10216_v24 }
 0x867   :  { %3931 = vrot.lane.b32.xlu0 %v10466_v56, %s5754_s16  ;;  %3676 = vrot.lane.b32.xlu1 %v10404_v54, %s5786_s28 }
 0x868   :  { %3935 = vrot.lane.b32.xlu2 %v10477_v19, %s5754_s16 }
 0x869   :  { %v10486_v17 = vpop.permute.xlu1 %3845  ;;  %v5618_v24 = vpop.permute.xlu0 %5617 }
 0x86a   :  { %v5619_v6 = vunpack.i.l.bf16 %v5618_v24 }
 0x86c   :  { %4713 = vmatmul.f32.vlgmr.msrb.gmra.mxu2 %v3949_v23  ;;  %v5615_v23 = vunpack.i.h.bf16 %v10462_v43  ;;  %v3709_v0 = vsel %vm2790_vm6, %v10070_v2, %v5619_v6  ;;  %v12065_v43 = vmax.f32 %v9872_v46, 0.0  ;;  %v4269_v2 = vadd.f32 %v10519_v50, %v10080_v14 }
 0x86d   :  { %4493 = vmatmul.f32.gmra.mxu0 %v3708_v1  ;;  %4606 = vmatmul.f32.gmra.mxu1 %v4068_v34  ;;  %v10521_v34 = vpop.f32.mrf.mxu2  ;;  %v10539_v46 = vpop.permute.xlu2 %3853 }
 0x86e   :  { %5044 = vmatmul.msk.f32.gmra.mxu3 %vm9790_vm12, %v10262_v51  ;;  %v4069_v51 = vsel %vm1280_vm4, %v5619_v6, %v5615_v23  ;;  %v4052_v13 = vsel %vm2790_vm6, %v12065_v43, %v10227_v12  ;;  %v5620_v6 = vunpack.i.h.bf16 %v5618_v24  ;;  %v3951_v43 = vsel %vm1280_vm4, %v5614_v61, %v10486_v17 }
 0x86f   :  { %3684 = vrot.lane.b32.xlu0 %v10440_v63, %s5786_s28  ;;  %3680 = vrot.lane.b32.xlu1 %v10449_v9, %s5786_s28  ;;  %v12066_v24 = vmax.f32 %v9875_v59, 0.0  ;;  %v3513_v61 = vmax.f32 %v10047_v18, 0.0  ;;  %v3952_v18 = vsel %vm1280_vm4, %v5615_v23, %v10503_v44  ;;  %v4275_v23 = vadd.f32 %v10519_v50, %v10136_v62 }
 0x870   :  { %3939 = vrot.lane.b32.xlu2 %v10501_v33, %s5754_s16  ;;  %v3710_v55 = vsel %vm2790_vm6, %v10090_v48, %v5620_v6  ;;  %v12067_v48 = vld [vmem:[#allocation34_spill] sm:$0xff] }
 0x871   :  { %v10509_v40 = vpop.f32.mrf.mxu3  ;;  %v10512_v1 = vpop.permute.xlu1 %5622 }
 0x874   :  { %4716 = vmatmul.f32.gmra.mxu2 %v3950_v31 }
 0x875   :  { %4496 = vmatmul.f32.gmra.mxu0 %v3709_v0  ;;  %4609 = vmatmul.f32.gmra.mxu1 %v4069_v51  ;;  %v5624_v51 = vunpack.i.l.bf16 %v10512_v1  ;;  %v10552_v12 = vpop.f32.mrf.mxu2 }
 0x876   :  { %4428 = vmatmul.f32.gmra.mxu3 %v4052_v13  ;;  %v4053_v13 = vsel %vm2790_vm6, %v12066_v24, %v10264_v41  ;;  %v10568_v24 = vpop.permute.xlu2 %5632 }
 0x877   :  { %3688 = vrot.lane.b32.xlu0 %v10466_v56, %s5786_s28  ;;  %3937 = vrot.lane.b32.xlu1 %v12063_v20, %s5754_s16  ;;  %v4070_v20 = vsel %vm1280_vm4, %v5620_v6, %v5624_v51  ;;  %v12068_v6 = vmax.f32 %v12067_v48, 0.0  ;;  %v3953_v62 = vsel %vm1280_vm4, %v5624_v51, %v10539_v46  ;;  %v4278_v51 = vadd.f32 %v10519_v50, %v10157_v8 }
 0x878   :  { %3943 = vrot.lane.b32.xlu2 %v3511_v39, %s5754_s16  ;;  %v4056_v8 = vsel %vm2790_vm6, %v10309_v35, %v10319_v10 }
 0x879   :  { %v4381_v0 = vpop.f32.mrf.mxu3  ;;  %v5628_v14 = vpop.permute.xlu1 %5627 }
 0x87a   :  { %v10541_v31 = vadd.f32 %v4381_v0, %v4269_v2  ;;  %v10557_v2 = vpop.permute.xlu0 %3857  ;;  %v4272_v0 = vadd.f32 %v10519_v50, %v10104_v60  ;;  %v5629_v59 = vunpack.i.l.bf16 %v5628_v14  ;;  %v4054_v60 = vsel %vm2790_vm6, %v10234_v27, %v10317_v7  ;;  %v4178_v27 = vld [vmem:[%s11142_s5 + $0x280] sm:$0xff]  ;;  %s5787_s5 = smov [#allocation2]  }
 0x87b   :  { %4825 = vmatpush.msrb.mxu3 %v4178_v27 }
 0x87c   :  { %4719 = vmatmul.f32.gmra.mxu2 %v3951_v43 }
 0x87d   :  { %4499 = vmatmul.f32.gmra.mxu0 %v3710_v55  ;;  %4612 = vmatmul.f32.gmra.mxu1 %v4070_v20  ;;  %v5625_v55 = vunpack.i.h.bf16 %v10512_v1  ;;  %v12069_v1 = vld [vmem:[#allocation29_spill] sm:$0xff] }
 0x87e   :  { %4431 = vmatmul.f32.gmra.mxu3 %v4053_v13  ;;  %v3711_v13 = vsel %vm2790_vm6, %v10123_v11, %v5629_v59  ;;  %v10585_v11 = vpop.f32.mrf.mxu2 }
 0x87f   :  { %3692 = vrot.lane.b32.xlu0 %v10477_v19, %s5786_s28  ;;  %3941 = vrot.lane.b32.xlu1 %v12068_v6, %s5754_s16  ;;  %v4071_v48 = vsel %vm1280_vm4, %v5629_v59, %v5625_v55  ;;  %v12070_v6 = vmax.f32 %v12069_v1, 0.0 }
 0x880   :  { %3947 = vrot.lane.b32.xlu2 %v3513_v61, %s5754_s16 }
 0x881   :  { %v4384_v43 = vpop.f32.mrf.mxu3  ;;  %v10604_v1 = vpop.permute.xlu1 %3865 }
 0x882   :  { %v10566_v20 = vadd.f32 %v4384_v43, %v4272_v0  ;;  %v5630_v0 = vunpack.i.h.bf16 %v5628_v14  ;;  %v10591_v59 = vpop.permute.xlu0 %3861 }
 0x884   :  { %4722 = vmatmul.f32.gmra.mxu2 %v3952_v18  ;;  %v5634_v18 = vunpack.i.l.bf16 %v10568_v24  ;;  %v3712_v14 = vsel %vm2790_vm6, %v10097_v5, %v5630_v0  ;;  %v5635_v5 = vunpack.i.h.bf16 %v10568_v24  ;;  %v4281_v24 = vadd.f32 %v10519_v50, %v10183_v57 }
 0x885   :  { %4502 = vmatmul.f32.gmra.mxu0 %v3711_v13  ;;  %4615 = vmatmul.f32.gmra.mxu1 %v4071_v48  ;;  %v5638_v48 = vpop.permute.xlu2 %5637 }
 0x886   :  { %4434 = vmatmul.f32.gmra.mxu3 %v4054_v60  ;;  %v4055_v60 = vsel %vm2790_vm6, %v10325_v26, %v10285_v25  ;;  %v3954_v26 = vsel %vm1280_vm4, %v5625_v55, %v10557_v2 }
 0x887   :  { %3696 = vrot.lane.b32.xlu0 %v10501_v33, %s5786_s28  ;;  %3945 = vrot.lane.b32.xlu1 %v12070_v6, %s5754_s16  ;;  %v5639_v6 = vunpack.i.l.bf16 %v5638_v48  ;;  %s4959_s16 = sshll.u32 %s5787_s5, 4  ;;  %s4960_s16 = int_to_ptr.vmem [resolvable:$true] %s4959_s16 }
 0x888   :  { %3704 = vrot.lane.b32.xlu2 %v3513_v61, %s5786_s28  ;;  %v4072_v61 = vsel %vm1280_vm4, %v5630_v0, %v5634_v18  ;;  %v10610_v0 = vpop.f32.mrf.mxu2 }
 0x889   :  { %v4387_v43 = vpop.f32.mrf.mxu3  ;;  %v10627_v55 = vpop.permute.xlu1 %3869 }
 0x88a   :  { %v10594_v13 = vadd.f32 %v4387_v43, %v4275_v23  ;;  %v10614_v43 = vpop.permute.xlu0 %5642 }
 0x88c   :  { %4725 = vmatmul.f32.gmra.mxu2 %v3953_v62  ;;  %v4073_v62 = vsel %vm1280_vm4, %v5639_v6, %v5635_v5 }
 0x88d   :  { %4505 = vmatmul.f32.gmra.mxu0 %v3712_v14  ;;  %4618 = vmatmul.f32.gmra.mxu1 %v4072_v61  ;;  %v5640_v14 = vunpack.i.h.bf16 %v5638_v48  ;;  %v5644_v61 = vunpack.i.l.bf16 %v10614_v43  ;;  %v4057_v48 = vsel %vm2790_vm6, %v10333_v47, %v10369_v4 }
 0x88e   :  { %4437 = vmatmul.f32.gmra.mxu3 %v4055_v60 }
 0x88f   :  { %3700 = vrot.lane.b32.xlu1 %v3511_v39, %s5786_s28  ;;  %v3713_v39 = vsel %vm2790_vm6, %v10125_v29, %v5639_v6  ;;  %v3955_v29 = vsel %vm1280_vm4, %v5634_v18, %v10591_v59  ;;  %v3714_v35 = vsel %vm2790_vm6, %v10142_v22, %v5640_v14  ;;  %v4284_v18 = vadd.f32 %v10519_v50, %v10200_v42 }
 0x890   :  { %v10633_v6 = vpop.f32.mrf.mxu2  ;;  %v4058_v42 = vsel %vm2790_vm6, %v10399_v37, %v10345_v53 }
 0x891   :  { %v4390_v23 = vpop.f32.mrf.mxu3 }
 0x892   :  { %v10612_v27 = vadd.f32 %v4390_v23, %v4278_v51  ;;  %v4074_v23 = vsel %vm1280_vm4, %v5640_v14, %v5644_v61  ;;  %v5648_v57 = vpop.permute.xlu0 %5647  ;;  %v3956_v14 = vsel %vm1280_vm4, %v5635_v5, %v10604_v1 }
 0x894   :  { %4728 = vmatmul.f32.gmra.mxu2 %v3954_v26  ;;  %v10641_v26 = vpop.permute.xlu2 %3873 }
 0x895   :  { %4508 = vmatmul.f32.gmra.mxu0 %v3713_v39  ;;  %4621 = vmatmul.f32.gmra.mxu1 %v4073_v62  ;;  %v5649_v39 = vunpack.i.l.bf16 %v5648_v57 }
 0x896   :  { %4440 = vmatmul.f32.gmra.mxu3 %v4056_v8  ;;  %v5645_v8 = vunpack.i.h.bf16 %v10614_v43 }
 0x898   :  { %v10658_v43 = vpop.f32.mrf.mxu2 }
 0x899   :  { %v4393_v60 = vpop.f32.mrf.mxu3 }
 0x89a   :  { %v10629_v51 = vadd.f32 %v4393_v60, %v4281_v24  ;;  %v10648_v24 = vpop.permute.xlu1 %5652  ;;  %v12071_v60 = vld [vmem:[#allocation142_spill] sm:$0xff] }
 0x89b   :  { %v3715_v47 = vsel %vm2790_vm6, %v12071_v60, %v5649_v39  ;;  %v5654_v5 = vunpack.i.l.bf16 %v10648_v24 }
 0x89c   :  { %4731 = vmatmul.f32.gmra.mxu2 %v3955_v29  ;;  %v4075_v29 = vsel %vm1280_vm4, %v5649_v39, %v5645_v8  ;;  %v3957_v39 = vsel %vm1280_vm4, %v5644_v61, %v10627_v55 }
 0x89d   :  { %4511 = vmatmul.f32.gmra.mxu0 %v3714_v35  ;;  %4624 = vmatmul.f32.gmra.mxu1 %v4074_v23  ;;  %v12072_v35 = vld [vmem:[#allocation138_spill] sm:$0xff] }
 0x89e   :  { %4443 = vmatmul.f32.gmra.mxu3 %v4057_v48  ;;  %v4287_v23 = vadd.f32 %v10519_v50, %v12072_v35  ;;  %v5650_v48 = vunpack.i.h.bf16 %v5648_v57  ;;  %v4059_v57 = vsel %vm2790_vm6, %v10393_v58, %v10371_v45  ;;  %v10679_v35 = vpop.permute.xlu0 %3881 }
 0x8a0   :  { %v3716_v37 = vsel %vm2790_vm6, %v10148_v16, %v5650_v48  ;;  %v4076_v60 = vsel %vm1280_vm4, %v5650_v48, %v5654_v5  ;;  %v5655_v16 = vunpack.i.h.bf16 %v10648_v24  ;;  %v12075_v24 = vld [vmem:[#allocation45_spill] sm:$0xff] }
 0x8a1   :  { %v4396_v62 = vpop.f32.mrf.mxu3 }
 0x8a2   :  { %v10646_v22 = vadd.f32 %v4396_v62, %v4284_v18  ;;  %v10663_v18 = vpop.permute.xlu2 %3877 }
 0x8a4   :  { %4734 = vmatmul.f32.gmra.mxu2 %v3956_v14 }
 0x8a5   :  { %4514 = vmatmul.f32.gmra.mxu0 %v3715_v47  ;;  %4627 = vmatmul.f32.gmra.mxu1 %v4075_v29  ;;  %v5658_v47 = vpop.permute.xlu1 %5657  ;;  %v4290_v29 = vadd.f32 %v10519_v50, %v10289_v21 }
 0x8a6   :  { %4446 = vmatmul.f32.gmra.mxu3 %v4058_v42  ;;  %v10677_v42 = vpop.f32.mrf.mxu2  ;;  %v5659_v61 = vunpack.i.l.bf16 %v5658_v47 }
 0x8a8   :  { %v3717_v58 = vsel %vm2790_vm6, %v10177_v32, %v5659_v61  ;;  %v4077_v21 = vsel %vm1280_vm4, %v5659_v61, %v5655_v16  ;;  %v10702_v61 = vpop.permute.xlu0 %3885 }
 0x8a9   :  { %v4399_v62 = vpop.f32.mrf.mxu3 }
 0x8aa   :  { %v10665_v14 = vadd.f32 %v4399_v62, %v4287_v23  ;;  %v10684_v62 = vpop.permute.xlu2 %5662 }
 0x8ac   :  { %12073 = vst [vmem:[#allocation72_spill] sm:$0xff] %v10665_v14  ;;  %4737 = vmatmul.f32.gmra.mxu2 %v3957_v39  ;;  %v3958_v39 = vsel %vm1280_vm4, %v5645_v8, %v10641_v26 }
 0x8ad   :  { %4517 = vmatmul.f32.gmra.mxu0 %v3716_v37  ;;  %4630 = vmatmul.f32.gmra.mxu1 %v4076_v60  ;;  %v4060_v37 = vsel %vm2790_vm6, %v10404_v54, %v10410_v30  ;;  %v4293_v60 = vadd.f32 %v10519_v50, %v12075_v24  ;;  %v4296_v24 = vadd.f32 %v10519_v50, %v10389_v15 }
 0x8ae   :  { %4449 = vmatmul.f32.gmra.mxu3 %v4059_v57  ;;  %v5660_v57 = vunpack.i.h.bf16 %v5658_v47 }
 0x8b0   :  { %v3718_v54 = vsel %vm2790_vm6, %v10169_v3, %v5660_v57  ;;  %v5665_v3 = vunpack.i.h.bf16 %v10684_v62 }
 0x8b1   :  { %v4402_v23 = vpop.f32.mrf.mxu3 }
 0x8b2   :  { %v10682_v48 = vadd.f32 %v4402_v23, %v4290_v29  ;;  %v11384_v29 = vunpack.i.l.bf16 %v10387_v28  ;;  %v5664_v23 = vunpack.i.l.bf16 %v10684_v62 }
 0x8b4   :  { %12074 = vst [vmem:[#allocation50_spill] sm:$0xff] %v10682_v48  ;;  %4740 = vmatmul.f32.gmra.mxu2 %v3958_v39  ;;  %v10698_v39 = vpop.f32.mrf.mxu2  ;;  %v4078_v47 = vsel %vm1280_vm4, %v5660_v57, %v5664_v23  ;;  %v10719_v57 = vpop.permute.xlu1 %3889 }
 0x8b5   :  { %4520 = vmatmul.f32.gmra.mxu0 %v3717_v58  ;;  %4633 = vmatmul.f32.gmra.mxu1 %v4077_v21  ;;  %v3959_v58 = vsel %vm1280_vm4, %v5654_v5, %v10663_v18  ;;  %v5668_v21 = vpop.permute.xlu2 %5667  ;;  %v11385_v5 = vunpack.i.h.bf16 %v10387_v28 }
 0x8b6   :  { %4452 = vmatmul.f32.gmra.mxu3 %v4060_v37  ;;  %v4061_v37 = vsel %vm2790_vm6, %v10449_v9, %v11384_v29 }
 0x8b7   :  { %v4062_v62 = vsel %vm2790_vm6, %v10440_v63, %v11385_v5 }
 0x8b9   :  { %v4405_v8 = vpop.f32.mrf.mxu3 }
 0x8ba   :  { %v10700_v32 = vadd.f32 %v4405_v8, %v4293_v60  ;;  %v5669_v60 = vunpack.i.l.bf16 %v5668_v21 }
 0x8bc   :  { %12076 = vst [vmem:[#allocation44_spill] sm:$0xff] %v10700_v32  ;;  %4743 = vmatmul.f32.gmra.mxu2 %v3959_v58  ;;  %v3719_v9 = vsel %vm2790_vm6, %v10181_v36, %v5669_v60  ;;  %v4079_v15 = vsel %vm1280_vm4, %v5669_v60, %v5665_v3  ;;  %v12079_v36 = vld [vmem:[#allocation67_spill] sm:$0xff] }
 0x8bd   :  { %4523 = vmatmul.f32.gmra.mxu0 %v3718_v54  ;;  %4636 = vmatmul.f32.gmra.mxu1 %v4078_v47  ;;  %v3960_v54 = vsel %vm1280_vm4, %v5655_v16, %v10679_v35  ;;  %v10723_v47 = vpop.f32.mrf.mxu2  ;;  %v11386_v29 = vunpack.i.l.bf16 %v12079_v36 }
 0x8be   :  { %4455 = vmatmul.f32.gmra.mxu3 %v4061_v37  ;;  %v10728_v37 = vpop.permute.xlu0 %5672 }
 0x8c1   :  { %v4408_v8 = vpop.f32.mrf.mxu3 }
 0x8c2   :  { %v10717_v58 = vadd.f32 %v4408_v8, %v4296_v24  ;;  %v12078_v24 = vld [vmem:[#allocation141_spill] sm:$0xff]  ;;  %v5670_v8 = vunpack.i.h.bf16 %v5668_v21  ;;  %v4063_v21 = vsel %vm2790_vm6, %v10466_v56, %v11386_v29 }
 0x8c3   :  { %v4299_v16 = vadd.f32 %v10519_v50, %v12078_v24  ;;  %v5678_v24 = vpop.permute.xlu1 %5677 }
 0x8c4   :  { %12077 = vst [vmem:[#allocation145_spill] sm:$0xff] %v10717_v58  ;;  %4746 = vmatmul.f32.gmra.mxu2 %v3960_v54  ;;  %v10737_v54 = vunpack.i.l.bf16 %v10728_v37 }
 0x8c5   :  { %4526 = vmatmul.f32.gmra.mxu0 %v3719_v9  ;;  %4639 = vmatmul.f32.gmra.mxu1 %v4079_v15  ;;  %v3961_v9 = vsel %vm1280_vm4, %v5664_v23, %v10702_v61  ;;  %v12081_v15 = vld [vmem:[#allocation42_spill] sm:$0xff]  ;;  %v4302_v23 = vadd.f32 %v10519_v50, %v10455_v52 }
 0x8c6   :  { %4458 = vmatmul.f32.gmra.mxu3 %v4062_v62  ;;  %v3720_v63 = vsel %vm2790_vm6, %v12081_v15, %v5670_v8  ;;  %v4080_v62 = vsel %vm1280_vm4, %v5670_v8, %v10737_v54  ;;  %v10759_v8 = vpop.permute.xlu2 %3895 }
 0x8c9   :  { %v4411_v60 = vpop.f32.mrf.mxu3 }
 0x8ca   :  { %v10740_v58 = vadd.f32 %v4411_v60, %v4299_v16  ;;  %v10752_v16 = vpop.f32.mrf.mxu2  ;;  %v5679_v60 = vunpack.i.l.bf16 %v5678_v24 }
 0x8cc   :  { %12080 = vst [vmem:[#allocation147_spill] sm:$0xff] %v10740_v58  ;;  %4749 = vmatmul.f32.gmra.mxu2 %v3961_v9  ;;  %v11387_v9 = vunpack.i.h.bf16 %v12079_v36  ;;  %v3721_v56 = vsel %vm2790_vm6, %v10188_v49, %v5679_v60  ;;  %v10776_v49 = vpop.permute.xlu0 %5687 }
 0x8cd   :  { %4529 = vmatmul.f32.gmra.mxu0 %v3720_v63  ;;  %4642 = vmatmul.f32.gmra.mxu1 %v4080_v62  ;;  %v3962_v63 = vsel %vm1280_vm4, %v5665_v3, %v10719_v57  ;;  %v4081_v62 = vsel %vm1280_vm4, %v5679_v60, %v10737_v54  ;;  %v5675_v60 = vunpack.i.h.bf16 %v10728_v37 }
 0x8ce   :  { %4461 = vmatmul.f32.gmra.mxu3 %v4063_v21  ;;  %v4064_v52 = vsel %vm2790_vm6, %v10477_v19, %v11387_v9  ;;  %v4305_v21 = vadd.f32 %v10519_v50, %v10488_v38  ;;  %v12086_v19 = vld [vmem:[#allocation143_spill] sm:$0xff] }
 0x8d1   :  { %v4414_v15 = vpop.f32.mrf.mxu3 }
 0x8d2   :  { %v10757_v5 = vadd.f32 %v4414_v15, %v4302_v23  ;;  %v5680_v23 = vunpack.i.h.bf16 %v5678_v24  ;;  %v10773_v3 = vpop.f32.mrf.mxu2  ;;  %v12083_v15 = vld [vmem:[#allocation48_spill] sm:$0xff] }
 0x8d4   :  { %12082 = vst [vmem:[#allocation55_spill] sm:$0xff] %v10757_v5  ;;  %4752 = vmatmul.f32.gmra.mxu2 %v3962_v63  ;;  %v3722_v38 = vsel %vm2790_vm6, %v12086_v19, %v5680_v23  ;;  %v4082_v24 = vsel %vm1280_vm4, %v5680_v23, %v5675_v60  ;;  %v5683_v63 = vpop.permute.xlu2 %5682  ;;  %v5689_v23 = vunpack.i.l.bf16 %v10776_v49  ;;  %v10805_v48 = vpop.permute.xlu0 %3903 }
 0x8d5   :  { %4532 = vmatmul.f32.gmra.mxu0 %v3721_v56  ;;  %4645 = vmatmul.f32.gmra.mxu1 %v4081_v62  ;;  %v5684_v19 = vunpack.i.l.bf16 %v5683_v63 }
 0x8d6   :  { %4464 = vmatmul.f32.gmra.mxu3 %v4064_v52  ;;  %v12087_v52 = vld [vmem:[#allocation133_spill] sm:$0xff] }
 0x8d7   :  { %v4266_v9 = vadd.f32 %v10519_v50, %v12087_v52  ;;  %v4083_v14 = vsel %vm1280_vm4, %v5684_v19, %v5689_v23 }
 0x8d9   :  { %v4417_v29 = vpop.f32.mrf.mxu3  ;;  %v4379_v58 = vadd.f32 %v10509_v40, %v4266_v9  ;;  %v4311_v40 = vadd.f32 %v10519_v50, %v10552_v12  ;;  %v12091_v9 = vld [vmem:[#allocation144_spill] sm:$0xff]  ;;  %v12093_v12 = vld [vmem:[#allocation33_spill] sm:$0xff] }
 0x8da   :  { %v10779_v56 = vadd.f32 %v4417_v29, %v4305_v21  ;;  %v10781_v62 = vpop.f32.mrf.mxu0  ;;  %v10783_v5 = vpop.f32.mrf.mxu1  ;;  %v12088_v29 = vunpack.i.l.bf16 %v12083_v15 }
 0x8db   :  { %12085 = vst [vmem:[#allocation47_spill] sm:$0xff] %v10783_v5  ;;  %v10795_v21 = vpop.permute.xlu1 %3899  ;;  %v10801_v32 = vpop.f32.mrf.mxu2 }
 0x8dc   :  { %12084 = vst [vmem:[#allocation79_spill] sm:$0xff] %v10779_v56  ;;  %4755 = vmatmul.f32.gmra.mxu2 %v10737_v54  ;;  %v4065_v37 = vsel %vm2790_vm6, %v10501_v33, %v12088_v29  ;;  %v4308_v56 = vadd.f32 %v10519_v50, %v10521_v34 }
 0x8dd   :  { %4535 = vmatmul.f32.gmra.mxu0 %v3722_v38  ;;  %4648 = vmatmul.f32.gmra.mxu1 %v4082_v24 }
 0x8de   :  { %4467 = vmatmul.f32.gmra.mxu3 %v4065_v37  ;;  %v12090_v37 = vld [vmem:[#allocation69_spill] sm:$0xff] }
 0x8df   :  { %v3723_v34 = vsel %vm2790_vm6, %v12090_v37, %v5684_v19 }
 0x8e1   :  { %v4420_v52 = vpop.f32.mrf.mxu3 }
 0x8e2   :  { %v10803_v38 = vadd.f32 %v4420_v52, %v4308_v56  ;;  %v4491_v24 = vpop.f32.mrf.mxu0  ;;  %v4604_v29 = vpop.f32.mrf.mxu1  ;;  %v5690_v56 = vunpack.i.h.bf16 %v10776_v49 }
 0x8e3   :  { %v4492_v33 = vadd.f32 %v4491_v24, %v4379_v58  ;;  %v5685_v58 = vunpack.i.h.bf16 %v5683_v63  ;;  %v10818_v52 = vpop.permute.xlu1 %5697 }
 0x8e4   :  { %12089 = vst [vmem:[#allocation70_spill] sm:$0xff] %v10803_v38  ;;  %4758 = vmatmul.f32.gmra.mxu2 %v10737_v54 }
 0x8e5   :  { %v10811_v5 = vadd.f32 %v4604_v29, %v4492_v33  ;;  %4538 = vmatmul.f32.gmra.mxu0 %v3723_v34  ;;  %4651 = vmatmul.f32.gmra.mxu1 %v4083_v14  ;;  %v3963_v14 = vsel %vm1280_vm4, %v5675_v60, %v10759_v8  ;;  %v10825_v29 = vpop.f32.mrf.mxu2  ;;  %v3724_v63 = vsel %vm2790_vm6, %v12093_v12, %v5685_v58  ;;  %v5693_v34 = vpop.permute.xlu0 %5692 }
 0x8e6   :  { %5045 = vmatmul.msk.f32.vlgmr.msrb.gmra.mxu3 %vm4186_vm1, %v12091_v9  ;;  %v4084_v49 = vsel %vm1280_vm4, %v5685_v58, %v5690_v56  ;;  %v5694_v60 = vunpack.i.l.bf16 %v5693_v34 }
 0x8e9   :  { %v4423_v24 = vpop.f32.mrf.mxu3 }
 0x8ea   :  { %v10820_v38 = vadd.f32 %v4423_v24, %v4311_v40  ;;  %v4494_v37 = vpop.f32.mrf.mxu0  ;;  %v4607_v33 = vpop.f32.mrf.mxu1  ;;  %v12094_v40 = vld [vmem:[#allocation41_spill] sm:$0xff]  ;;  %v5699_v24 = vunpack.i.l.bf16 %v10818_v52 }
 0x8eb   :  { %v4495_v19 = vadd.f32 %v4494_v37, %v10541_v31  ;;  %v4314_v31 = vadd.f32 %v10519_v50, %v10585_v11  ;;  %v3964_v11 = vsel %vm1280_vm4, %v5689_v23, %v10795_v21  ;;  %v5700_v23 = vunpack.i.h.bf16 %v10818_v52 }
 0x8ec   :  { %12092 = vst [vmem:[#allocation148_spill] sm:$0xff] %v10820_v38  ;;  %4761 = vmatmul.f32.gmra.mxu2 %v3963_v14  ;;  %v10837_v14 = vpop.permute.xlu2 %3907  ;;  %v10841_v38 = vpop.permute.xlu1 %3911 }
 0x8ed   :  { %v10830_v9 = vadd.f32 %v4607_v33, %v4495_v19  ;;  %4541 = vmatmul.f32.gmra.mxu0 %v3724_v63  ;;  %4654 = vmatmul.f32.gmra.mxu1 %v4084_v49  ;;  %v3725_v63 = vsel %vm2790_vm6, %v10264_v41, %v5694_v60  ;;  %v4085_v49 = vsel %vm1280_vm4, %v5694_v60, %v5699_v24  ;;  %v10860_v60 = vpop.permute.xlu0 %3915 }
 0x8ee   :  { %5046 = vmatmul.msk.f32.gmra.mxu3 %vm4186_vm1, %v12094_v40 }
 0x8f1   :  { %v4426_v37 = vpop.f32.mrf.mxu3 }
 0x8f2   :  { %v10839_v12 = vadd.f32 %v4426_v37, %v4314_v31  ;;  %v4497_v58 = vpop.f32.mrf.mxu0  ;;  %v4610_v33 = vpop.f32.mrf.mxu1  ;;  %v5695_v37 = vunpack.i.h.bf16 %v5693_v34 }
 0x8f3   :  { %v4498_v19 = vadd.f32 %v4497_v58, %v10566_v20  ;;  %v10851_v31 = vpop.f32.mrf.mxu2  ;;  %v4317_v20 = vadd.f32 %v10519_v50, %v10610_v0 }
 0x8f4   :  { %4764 = vmatmul.f32.gmra.mxu2 %v3964_v11  ;;  %v4086_v0 = vsel %vm1280_vm4, %v5695_v37, %v5700_v23  ;;  %v10868_v34 = vpop.permute.xlu2 %5707  ;;  %v5703_v52 = vpop.permute.xlu1 %5702 }
 0x8f5   :  { %v10849_v40 = vadd.f32 %v4610_v33, %v4498_v19  ;;  %4544 = vmatmul.f32.gmra.mxu0 %v3725_v63  ;;  %4657 = vmatmul.f32.gmra.mxu1 %v4085_v49  ;;  %v3965_v63 = vsel %vm1280_vm4, %v5690_v56, %v10805_v48  ;;  %v5704_v56 = vunpack.i.l.bf16 %v5703_v52 }
 0x8f6   :  { %5047 = vmatmul.msk.f32.gmra.mxu3 %vm4186_vm1, %v10486_v17  ;;  %v3726_v17 = vsel %vm2790_vm6, %v10317_v7, %v5695_v37  ;;  %v5709_v7 = vunpack.i.l.bf16 %v10868_v34 }
 0x8f9   :  { %v4429_v58 = vpop.f32.mrf.mxu3 }
 0x8fa   :  { %v10858_v11 = vadd.f32 %v4429_v58, %v4317_v20  ;;  %v4500_v41 = vpop.f32.mrf.mxu0  ;;  %v4613_v33 = vpop.f32.mrf.mxu1 }
 0x8fb   :  { %v4501_v19 = vadd.f32 %v4500_v41, %v10594_v13  ;;  %v4320_v13 = vadd.f32 %v10519_v50, %v10633_v6  ;;  %v10876_v20 = vpop.f32.mrf.mxu2  ;;  %v4087_v6 = vsel %vm1280_vm4, %v5704_v56, %v5709_v7 }
 0x8fc   :  { %4767 = vmatmul.f32.gmra.mxu2 %v3965_v63  ;;  %v3966_v63 = vsel %vm1280_vm4, %v5699_v24, %v10837_v14  ;;  %v4323_v24 = vadd.f32 %v10519_v50, %v10658_v43 }
 0x8fd   :  { %v10870_v49 = vadd.f32 %v4613_v33, %v4501_v19  ;;  %4547 = vmatmul.f32.gmra.mxu0 %v3726_v17  ;;  %4660 = vmatmul.f32.gmra.mxu1 %v4086_v0  ;;  %v10887_v17 = vpop.permute.xlu0 %5712 }
 0x8fe   :  { %5048 = vmatmul.msk.f32.gmra.mxu3 %vm4186_vm1, %v10503_v44  ;;  %v3727_v44 = vsel %vm2790_vm6, %v10285_v25, %v5704_v56  ;;  %v5710_v25 = vunpack.i.h.bf16 %v10868_v34 }
 0x901   :  { %v4432_v58 = vpop.f32.mrf.mxu3 }
 0x902   :  { %v10879_v37 = vadd.f32 %v4432_v58, %v4320_v13  ;;  %v4503_v41 = vpop.f32.mrf.mxu0  ;;  %v4616_v33 = vpop.f32.mrf.mxu1  ;;  %v5705_v13 = vunpack.i.h.bf16 %v5703_v52 }
 0x903   :  { %v4504_v19 = vadd.f32 %v4503_v41, %v10612_v27  ;;  %v10893_v27 = vpop.permute.xlu2 %3919  ;;  %v10898_v41 = vpop.f32.mrf.mxu2 }
 0x904   :  { %4770 = vmatmul.f32.gmra.mxu2 %v3966_v63  ;;  %v4088_v43 = vsel %vm1280_vm4, %v5705_v13, %v5710_v25  ;;  %v10908_v52 = vpop.permute.xlu1 %3923 }
 0x905   :  { %v10889_v0 = vadd.f32 %v4616_v33, %v4504_v19  ;;  %4550 = vmatmul.f32.gmra.mxu0 %v3727_v44  ;;  %4663 = vmatmul.f32.gmra.mxu1 %v4087_v6  ;;  %v3728_v44 = vsel %vm2790_vm6, %v10319_v10, %v5705_v13  ;;  %v5714_v6 = vunpack.i.l.bf16 %v10887_v17 }
 0x906   :  { %5049 = vmatmul.msk.f32.gmra.mxu3 %vm4186_vm1, %v10539_v46  ;;  %v3967_v46 = vsel %vm1280_vm4, %v5700_v23, %v10841_v38  ;;  %v4326_v23 = vadd.f32 %v10519_v50, %v10677_v42 }
 0x909   :  { %v4435_v58 = vpop.f32.mrf.mxu3 }
 0x90a   :  { %v10900_v56 = vadd.f32 %v4435_v58, %v4323_v24  ;;  %v4506_v19 = vpop.f32.mrf.mxu0  ;;  %v4619_v63 = vpop.f32.mrf.mxu1 }
 0x90b   :  { %v4507_v33 = vadd.f32 %v4506_v19, %v10629_v51  ;;  %v10914_v51 = vpop.permute.xlu0 %3927  ;;  %v3673_v24 = vpop.permute.xlu2 %3672 }
 0x90c   :  { %4773 = vmatmul.f32.gmra.mxu2 %v3967_v46  ;;  %v3729_v46 = vsel %vm2790_vm6, %v10369_v4, %v3673_v24  ;;  %v4089_v42 = vsel %vm1280_vm4, %v3673_v24, %v5714_v6  ;;  %v3969_v4 = vsel %vm1280_vm4, %v5710_v25, %v10893_v27 }
 0x90d   :  { %v10910_v34 = vadd.f32 %v4619_v63, %v4507_v33  ;;  %4553 = vmatmul.f32.gmra.mxu0 %v3728_v44  ;;  %4666 = vmatmul.f32.gmra.mxu1 %v4088_v43  ;;  %v3968_v33 = vsel %vm1280_vm4, %v5709_v7, %v10860_v60  ;;  %v10924_v63 = vpop.f32.mrf.mxu2  ;;  %v4329_v7 = vadd.f32 %v10519_v50, %v10698_v39 }
 0x90e   :  { %5050 = vmatmul.msk.f32.gmra.mxu3 %vm4186_vm1, %v10557_v2 }
 0x911   :  { %v4438_v10 = vpop.f32.mrf.mxu3 }
 0x912   :  { %v10919_v58 = vadd.f32 %v4438_v10, %v4326_v23  ;;  %v4509_v13 = vpop.f32.mrf.mxu0  ;;  %v4622_v2 = vpop.f32.mrf.mxu1  ;;  %v5715_v10 = vunpack.i.h.bf16 %v10887_v17  ;;  %v4332_v17 = vadd.f32 %v10519_v50, %v10723_v47 }
 0x913   :  { %v4510_v19 = vadd.f32 %v4509_v13, %v10646_v22  ;;  %v3677_v22 = vpop.permute.xlu1 %3676  ;;  %v10935_v43 = vpop.permute.xlu0 %3931 }
 0x914   :  { %4776 = vmatmul.f32.gmra.mxu2 %v3968_v33  ;;  %v3730_v24 = vsel %vm2790_vm6, %v10345_v53, %v3677_v22  ;;  %v5718_v39 = vpop.permute.xlu2 %5717  ;;  %v3970_v53 = vsel %vm1280_vm4, %v5714_v6, %v10908_v52 }
 0x915   :  { %v10929_v44 = vadd.f32 %v4622_v2, %v4510_v19  ;;  %4556 = vmatmul.f32.gmra.mxu0 %v3729_v46  ;;  %4669 = vmatmul.f32.gmra.mxu1 %v4089_v42  ;;  %v10945_v19 = vpop.f32.mrf.mxu2  ;;  %v5719_v25 = vunpack.i.l.bf16 %v5718_v39  ;;  %v5720_v6 = vunpack.i.h.bf16 %v5718_v39 }
 0x916   :  { %5051 = vmatmul.msk.f32.gmra.mxu3 %vm4186_vm1, %v10591_v59  ;;  %v4090_v59 = vsel %vm1280_vm4, %v3677_v22, %v5715_v10 }
 0x919   :  { %v4441_v23 = vpop.f32.mrf.mxu3 }
 0x91a   :  { %v10938_v13 = vadd.f32 %v4441_v23, %v4329_v7 }
 0x91b   :  { %v3681_v33 = vpop.permute.xlu1 %3680  ;;  %v3685_v42 = vpop.permute.xlu0 %3684 }
 0x91c   :  { %4779 = vmatmul.f32.gmra.mxu2 %v3969_v4  ;;  %v3731_v22 = vsel %vm2790_vm6, %v10371_v45, %v3681_v33  ;;  %v4091_v7 = vsel %vm1280_vm4, %v3681_v33, %v5719_v25  ;;  %v10964_v23 = vpop.permute.xlu2 %3935  ;;  %v3971_v45 = vsel %vm1280_vm4, %v5715_v10, %v10914_v51 }
 0x91d   :  { %4559 = vmatmul.f32.gmra.mxu0 %v3730_v24  ;;  %4672 = vmatmul.f32.gmra.mxu1 %v4090_v59  ;;  %v10962_v47 = vpop.f32.mrf.mxu2 }
 0x91e   :  { %5052 = vmatmul.msk.f32.gmra.mxu3 %vm4186_vm1, %v10604_v1  ;;  %v4335_v1 = vadd.f32 %v10519_v50, %v10752_v16  ;;  %v4338_v16 = vadd.f32 %v10519_v50, %v10773_v3 }
 0x921   :  { %v4444_v2 = vpop.f32.mrf.mxu3 }
 0x922   :  { %v10951_v46 = vadd.f32 %v4444_v2, %v4332_v17  ;;  %v3732_v17 = vsel %vm2790_vm6, %v10410_v30, %v3685_v42  ;;  %v3972_v30 = vsel %vm1280_vm4, %v5719_v25, %v10935_v43  ;;  %v3973_v25 = vsel %vm1280_vm4, %v5720_v6, %v10964_v23 }
 0x923   :  { %v3938_v59 = vpop.permute.xlu1 %3937  ;;  %v3689_v33 = vpop.permute.xlu0 %3688 }
 0x924   :  { %4782 = vmatmul.f32.gmra.mxu2 %v3970_v53  ;;  %v10981_v10 = vpop.permute.xlu2 %3939 }
 0x925   :  { %4562 = vmatmul.f32.gmra.mxu0 %v3731_v22  ;;  %4675 = vmatmul.f32.gmra.mxu1 %v4091_v7  ;;  %v10977_v2 = vpop.f32.mrf.mxu2 }
 0x926   :  { %5053 = vmatmul.msk.f32.gmra.mxu3 %vm4186_vm1, %v10627_v55  ;;  %v4092_v55 = vsel %vm1280_vm4, %v3685_v42, %v5720_v6  ;;  %v12095_v42 = vunpack.i.l.bf16 %v10387_v28  ;;  %v4344_v6 = vadd.f32 %v10519_v50, %v10825_v29 }
 0x928   :  { %v3733_v22 = vsel %vm2790_vm6, %v12095_v42, %v3689_v33 }
 0x929   :  { %v4447_v4 = vpop.f32.mrf.mxu3 }
 0x92a   :  { %v10966_v24 = vadd.f32 %v4447_v4, %v4335_v1  ;;  %v4341_v1 = vadd.f32 %v10519_v50, %v10801_v32 }
 0x92b   :  { %v3942_v7 = vpop.permute.xlu1 %3941  ;;  %v3693_v3 = vpop.permute.xlu0 %3692 }
 0x92c   :  { %4785 = vmatmul.f32.gmra.mxu2 %v3971_v45 }
 0x92d   :  { %4565 = vmatmul.f32.gmra.mxu0 %v3732_v17  ;;  %4678 = vmatmul.f32.gmra.mxu1 %v4092_v55  ;;  %v10997_v17 = vpop.f32.mrf.mxu2  ;;  %v12096_v55 = vunpack.i.h.bf16 %v10387_v28  ;;  %v3974_v28 = vsel %vm1280_vm4, %v3938_v59, %v10981_v10 }
 0x92e   :  { %5054 = vmatmul.msk.f32.gmra.mxu3 %vm4186_vm1, %v10641_v26  ;;  %v4093_v26 = vsel %vm1280_vm4, %v3689_v33, %v3938_v59 }
 0x92f   :  { %v3734_v33 = vsel %vm2790_vm6, %v12096_v55, %v3693_v3 }
 0x931   :  { %v4450_v39 = vpop.f32.mrf.mxu3 }
 0x932   :  { %v10979_v53 = vadd.f32 %v4450_v39, %v4338_v16  ;;  %v4094_v16 = vsel %vm1280_vm4, %v3693_v3, %v3942_v7 }
 0x933   :  { %v3946_v32 = vpop.permute.xlu1 %3945  ;;  %v3697_v39 = vpop.permute.xlu0 %3696 }
 0x934   :  { %4788 = vmatmul.f32.gmra.mxu2 %v3972_v30  ;;  %v4095_v3 = vsel %vm1280_vm4, %v3697_v39, %v3946_v32 }
 0x935   :  { %4568 = vmatmul.f32.gmra.mxu0 %v3733_v22  ;;  %4681 = vmatmul.f32.gmra.mxu1 %v4093_v26  ;;  %v12097_v22 = vunpack.i.l.bf16 %v12079_v36 }
 0x936   :  { %5055 = vmatmul.msk.f32.gmra.mxu3 %vm4186_vm1, %v10663_v18  ;;  %v11003_v18 = vpop.permute.xlu2 %3943 }
 0x937   :  { %v3735_v26 = vsel %vm2790_vm6, %v12097_v22, %v3697_v39  ;;  %v3975_v55 = vsel %vm1280_vm4, %v3942_v7, %v11003_v18 }
 0x939   :  { %v4453_v4 = vpop.f32.mrf.mxu3 }
 0x93a   :  { %v10993_v45 = vadd.f32 %v4453_v4, %v4341_v1  ;;  %v4347_v1 = vadd.f32 %v10519_v50, %v10851_v31  ;;  %v4350_v31 = vadd.f32 %v10519_v50, %v10876_v20 }
 0x93b   :  { %v3701_v59 = vpop.permute.xlu1 %3700 }
 0x93c   :  { %4791 = vmatmul.f32.gmra.mxu2 %v3973_v25 }
 0x93d   :  { %4571 = vmatmul.f32.gmra.mxu0 %v3734_v33  ;;  %4684 = vmatmul.f32.gmra.mxu1 %v4094_v16  ;;  %v12098_v33 = vunpack.i.h.bf16 %v12079_v36 }
 0x93e   :  { %5056 = vmatmul.msk.f32.gmra.mxu3 %vm4186_vm1, %v10679_v35  ;;  %v11017_v35 = vpop.f32.mrf.mxu2  ;;  %v11021_v29 = vpop.permute.xlu2 %3947 }
 0x93f   :  { %v3736_v16 = vsel %vm2790_vm6, %v12098_v33, %v3701_v59  ;;  %v3976_v36 = vsel %vm1280_vm4, %v3946_v32, %v11021_v29  ;;  %v12100_v32 = vld [vmem:[#allocation31_spill] sm:$0xff] }
 0x941   :  { %v4456_v30 = vpop.f32.mrf.mxu3 }
 0x942   :  { %v11009_v42 = vadd.f32 %v4456_v30, %v4344_v6 }
 0x944   :  { %4794 = vmatmul.f32.gmra.mxu2 %v3974_v28  ;;  %v12099_v28 = vunpack.i.l.bf16 %v12083_v15  ;;  %v4263_v15 = vadd.f32 %v10519_v50, %v12100_v32 }
 0x945   :  { %4574 = vmatmul.f32.gmra.mxu0 %v3735_v26  ;;  %4687 = vmatmul.f32.gmra.mxu1 %v4095_v3 }
 0x946   :  { %5057 = vmatmul.msk.f32.gmra.mxu3 %vm4186_vm1, %v10702_v61  ;;  %v4096_v61 = vsel %vm1280_vm4, %v3701_v59, %v10737_v54  ;;  %v4729_v6 = vpop.f32.mrf.mxu2  ;;  %v3705_v39 = vpop.permute.xlu2 %3704  ;;  %v12101_v59 = vld [vmem:[#allocation36_spill] sm:$0xff] }
 0x947   :  { %v3737_v22 = vsel %vm2790_vm6, %v12099_v28, %v3705_v39  ;;  %v4097_v26 = vsel %vm1280_vm4, %v3705_v39, %v10737_v54 }
 0x949   :  { %v4459_v4 = vpop.f32.mrf.mxu3 }
 0x94a   :  { %v11025_v25 = vadd.f32 %v4459_v4, %v4347_v1  ;;  %v4376_v4 = vadd.f32 %v12101_v59, %v4263_v15 }
 0x94c   :  { %4797 = vmatmul.f32.gmra.mxu2 %v3975_v55  ;;  %v4356_v55 = vadd.f32 %v10519_v50, %v10924_v63 }
 0x94d   :  { %4577 = vmatmul.f32.gmra.mxu0 %v3736_v16  ;;  %4690 = vmatmul.f32.gmra.mxu1 %v4096_v61 }
 0x94e   :  { %5058 = vmatmul.msk.f32.gmra.mxu3 %vm4186_vm1, %v10719_v57  ;;  %v4353_v57 = vadd.f32 %v10519_v50, %v10898_v41  ;;  %v4732_v3 = vpop.f32.mrf.mxu2  ;;  %v4489_v41 = vadd.f32 %v10781_v62, %v4376_v4  ;;  %v4718_v50 = vadd.f32 %v10962_v47, %v10811_v5  ;;  %v4512_v62 = vpop.f32.mrf.mxu0  ;;  %v4724_v5 = vadd.f32 %v10997_v17, %v10849_v40 }
 0x94f   :  { %v4730_v40 = vadd.f32 %v4729_v6, %v10889_v0 }
 0x951   :  { %v4462_v30 = vpop.f32.mrf.mxu3 }
 0x952   :  { %v11038_v7 = vadd.f32 %v4462_v30, %v4350_v31  ;;  %v12102_v31 = vld [vmem:[#allocation47_spill] sm:$0xff] }
 0x953   :  { %v4602_v39 = vadd.f32 %v12102_v31, %v4489_v41 }
 0x954   :  { %4800 = vmatmul.f32.gmra.mxu2 %v3976_v36 }
 0x955   :  { %4580 = vmatmul.f32.gmra.mxu0 %v3737_v22  ;;  %4693 = vmatmul.f32.gmra.mxu1 %v4097_v26  ;;  %v4715_v30 = vadd.f32 %v10945_v19, %v4602_v39  ;;  %v4625_v26 = vpop.f32.mrf.mxu1  ;;  %v4721_v19 = vadd.f32 %v10977_v2, %v10830_v9  ;;  %v4727_v9 = vadd.f32 %v11017_v35, %v10870_v49 }
 0x956   :  { %5059 = vmatmul.msk.f32.gmra.mxu3 %vm4186_vm1, %v10737_v54  ;;  %v4735_v61 = vpop.f32.mrf.mxu2  ;;  %v4515_v32 = vpop.f32.mrf.mxu0 }
 0x957   :  { %v4736_v0 = vadd.f32 %v4735_v61, %v10929_v44 }
 0x959   :  { %v4465_v20 = vpop.f32.mrf.mxu3 }
 0x95a   :  { %v11051_v1 = vadd.f32 %v4465_v20, %v4353_v57 }
 0x95c   :  { %4803 = vmatmul.f32.gmra.mxu2 %v10737_v54 }
 0x95e   :  { %5060 = vmatmul.msk.f32.gmra.mxu3 %vm4186_vm1, %v10737_v54 }
 0x961   :  { %v4468_v33 = vpop.f32.mrf.mxu3 }
 0x962   :  { %v11062_v16 = vadd.f32 %v4468_v33, %v4356_v55 }
 0x964   :  { %4806 = vmatmul.f32.gmra.mxu2 %v10737_v54 }
 0x966   :  { %5061 = vmatmul.msk.f32.gmra.mxu3 %vm4186_vm1, %v10759_v8  ;;  %v4738_v8 = vpop.f32.mrf.mxu2 }
 0x969   :  { %v4827_v36 = vpop.f32.mrf.mxu3 }
 0x96a   :  { %v4828_v28 = vadd.f32 %v4827_v36, %v4715_v30 }
 0x96c   :  { %4923 = vst [vmem:[#allocation2] sm:$0xff] %v4828_v28  ;;  %v12103_v28 = vld [vmem:[#allocation72_spill] sm:$0xff] }
 0x96e   :  { %5062 = vmatmul.msk.f32.gmra.mxu3 %vm4186_vm1, %v10795_v21  ;;  %v4628_v21 = vpop.f32.mrf.mxu1  ;;  %v4741_v47 = vpop.f32.mrf.mxu2 }
 0x971   :  { %v4830_v63 = vpop.f32.mrf.mxu3 }
 0x972   :  { %v4831_v22 = vadd.f32 %v4830_v63, %v4718_v50  ;;  %v4513_v50 = vadd.f32 %v4512_v62, %v12103_v28 }
 0x974   :  { %4924 = vst [vmem:[#allocation2 + $0x8] sm:$0xff] %v4831_v22 }
 0x976   :  { %5063 = vmatmul.msk.f32.gmra.mxu3 %vm4186_vm1, %v10805_v48  ;;  %v4518_v48 = vpop.f32.mrf.mxu0  ;;  %v4631_v4 = vpop.f32.mrf.mxu1 }
 0x977   :  { %v4744_v33 = vpop.f32.mrf.mxu2 }
 0x979   :  { %v4833_v57 = vpop.f32.mrf.mxu3 }
 0x97a   :  { %v4834_v20 = vadd.f32 %v4833_v57, %v4721_v19 }
 0x97c   :  { %4925 = vst [vmem:[#allocation2 + $0x10] sm:$0xff] %v4834_v20  ;;  %v12104_v20 = vld [vmem:[#allocation50_spill] sm:$0xff] }
 0x97e   :  { %5064 = vmatmul.msk.f32.gmra.mxu3 %vm4186_vm1, %v10837_v14  ;;  %v4521_v14 = vpop.f32.mrf.mxu0  ;;  %v4634_v31 = vpop.f32.mrf.mxu1 }
 0x97f   :  { %v4747_v39 = vpop.f32.mrf.mxu2 }
 0x981   :  { %v4836_v15 = vpop.f32.mrf.mxu3 }
 0x982   :  { %v4837_v59 = vadd.f32 %v4836_v15, %v4724_v5  ;;  %v4516_v5 = vadd.f32 %v4515_v32, %v12104_v20  ;;  %v12109_v20 = vld [vmem:[#allocation79_spill] sm:$0xff] }
 0x984   :  { %4926 = vst [vmem:[#allocation2 + $0x18] sm:$0xff] %v4837_v59  ;;  %v4629_v44 = vadd.f32 %v4628_v21, %v4516_v5  ;;  %v12105_v59 = vld [vmem:[#allocation44_spill] sm:$0xff] }
 0x986   :  { %5065 = vmatmul.msk.f32.gmra.mxu3 %vm4186_vm1, %v10841_v38  ;;  %v4733_v38 = vadd.f32 %v4732_v3, %v10910_v34  ;;  %v4524_v49 = vpop.f32.mrf.mxu0  ;;  %v4637_v36 = vpop.f32.mrf.mxu1  ;;  %v4742_v61 = vadd.f32 %v4741_v47, %v4629_v44 }
 0x989   :  { %v4839_v2 = vpop.f32.mrf.mxu3 }
 0x98a   :  { %v4840_v55 = vadd.f32 %v4839_v2, %v4727_v9 }
 0x98c   :  { %4927 = vst [vmem:[#allocation2 + $0x20] sm:$0xff] %v4840_v55 }
 0x98e   :  { %5066 = vmatmul.msk.f32.gmra.mxu3 %vm4186_vm1, %v10860_v60  ;;  %v4750_v60 = vpop.f32.mrf.mxu2  ;;  %v4527_v22 = vpop.f32.mrf.mxu0 }
 0x98f   :  { %v4640_v3 = vpop.f32.mrf.mxu1 }
 0x991   :  { %v4842_v17 = vpop.f32.mrf.mxu3 }
 0x992   :  { %v4843_v41 = vadd.f32 %v4842_v17, %v4730_v40  ;;  %v12106_v17 = vld [vmem:[#allocation145_spill] sm:$0xff] }
 0x993   :  { %v4522_v21 = vadd.f32 %v4521_v14, %v12106_v17 }
 0x994   :  { %4928 = vst [vmem:[#allocation2 + $0x28] sm:$0xff] %v4843_v41 }
 0x995   :  { %v4635_v47 = vadd.f32 %v4634_v31, %v4522_v21 }
 0x996   :  { %5067 = vmatmul.msk.f32.gmra.mxu3 %vm4186_vm1, %v10893_v27  ;;  %v4626_v27 = vadd.f32 %v4625_v26, %v4513_v50  ;;  %v4753_v19 = vpop.f32.mrf.mxu2  ;;  %v4530_v15 = vpop.f32.mrf.mxu0  ;;  %v4519_v26 = vadd.f32 %v4518_v48, %v12105_v59 }
 0x997   :  { %v4643_v9 = vpop.f32.mrf.mxu1  ;;  %v4748_v48 = vadd.f32 %v4747_v39, %v4635_v47  ;;  %v4531_v5 = vadd.f32 %v4530_v15, %v12109_v20 }
 0x998   :  { %v4739_v34 = vadd.f32 %v4738_v8, %v4626_v27  ;;  %v4632_v8 = vadd.f32 %v4631_v4, %v4519_v26  ;;  %v12107_v4 = vld [vmem:[#allocation147_spill] sm:$0xff] }
 0x999   :  { %v4845_v35 = vpop.f32.mrf.mxu3 }
 0x99a   :  { %v4846_v30 = vadd.f32 %v4845_v35, %v4733_v38  ;;  %v4745_v55 = vadd.f32 %v4744_v33, %v4632_v8  ;;  %v12111_v8 = vld [vmem:[#allocation148_spill] sm:$0xff] }
 0x99c   :  { %4929 = vst [vmem:[#allocation2 + $0x30] sm:$0xff] %v4846_v30 }
 0x99e   :  { %5068 = vmatmul.msk.f32.gmra.mxu3 %vm4186_vm1, %v10908_v52  ;;  %v4533_v32 = vpop.f32.mrf.mxu0 }
 0x99f   :  { %v4646_v38 = vpop.f32.mrf.mxu1 }
 0x9a1   :  { %v4848_v6 = vpop.f32.mrf.mxu3 }
 0x9a2   :  { %v4849_v63 = vadd.f32 %v4848_v6, %v4736_v0  ;;  %v4525_v0 = vadd.f32 %v4524_v49, %v12107_v4 }
 0x9a4   :  { %4930 = vst [vmem:[#allocation2 + $0x38] sm:$0xff] %v4849_v63  ;;  %v12108_v63 = vld [vmem:[#allocation55_spill] sm:$0xff] }
 0x9a5   :  { %v4528_v31 = vadd.f32 %v4527_v22, %v12108_v63 }
 0x9a6   :  { %5069 = vmatmul.msk.f32.gmra.mxu3 %vm4186_vm1, %v10914_v51  ;;  %v4756_v51 = vpop.f32.mrf.mxu2  ;;  %v4536_v35 = vpop.f32.mrf.mxu0 }
 0x9a7   :  { %v4649_v33 = vpop.f32.mrf.mxu1 }
 0x9a9   :  { %v4851_v57 = vpop.f32.mrf.mxu3 }
 0x9aa   :  { %v4852_v52 = vadd.f32 %v4851_v57, %v4739_v34 }
 0x9ac   :  { %4931 = vst [vmem:[#allocation2 + $0x40] sm:$0xff] %v4852_v52 }
 0x9ae   :  { %5070 = vmatmul.msk.f32.gmra.mxu3 %vm4186_vm1, %v10935_v43  ;;  %v4759_v43 = vpop.f32.mrf.mxu2  ;;  %v4539_v34 = vpop.f32.mrf.mxu0 }
 0x9af   :  { %v4652_v49 = vpop.f32.mrf.mxu1  ;;  %v4540_v47 = vadd.f32 %v4539_v34, %v10839_v12 }
 0x9b1   :  { %v4854_v62 = vpop.f32.mrf.mxu3 }
 0x9b2   :  { %v4855_v2 = vadd.f32 %v4854_v62, %v4742_v61  ;;  %v12110_v61 = vld [vmem:[#allocation70_spill] sm:$0xff] }
 0x9b4   :  { %4932 = vst [vmem:[#allocation2 + $0x48] sm:$0xff] %v4855_v2 }
 0x9b6   :  { %5071 = vmatmul.msk.f32.gmra.mxu3 %vm4186_vm1, %v10964_v23  ;;  %v4638_v23 = vadd.f32 %v4637_v36, %v4525_v0  ;;  %v4762_v14 = vpop.f32.mrf.mxu2 }
 0x9b7   :  { %v4655_v62 = vpop.f32.mrf.mxu1 }
 0x9b8   :  { %v4751_v28 = vadd.f32 %v4750_v60, %v4638_v23  ;;  %v4644_v60 = vadd.f32 %v4643_v9, %v4531_v5  ;;  %v4537_v9 = vadd.f32 %v4536_v35, %v12111_v8 }
 0x9b9   :  { %v4857_v40 = vpop.f32.mrf.mxu3 }
 0x9ba   :  { %v4858_v41 = vadd.f32 %v4857_v40, %v4745_v55  ;;  %v4757_v22 = vadd.f32 %v4756_v51, %v4644_v60  ;;  %v4650_v17 = vadd.f32 %v4649_v33, %v4537_v9 }
 0x9bc   :  { %4933 = vst [vmem:[#allocation2 + $0x50] sm:$0xff] %v4858_v41  ;;  %v4763_v21 = vadd.f32 %v4762_v14, %v4650_v17 }
 0x9be   :  { %5072 = vmatmul.msk.f32.gmra.mxu3 %vm4186_vm1, %v10981_v10  ;;  %v4641_v10 = vadd.f32 %v4640_v3, %v4528_v31  ;;  %v4765_v57 = vpop.f32.mrf.mxu2  ;;  %v4534_v3 = vadd.f32 %v4533_v32, %v12110_v61 }
 0x9bf   :  { %v4658_v40 = vpop.f32.mrf.mxu1 }
 0x9c0   :  { %v4754_v39 = vadd.f32 %v4753_v19, %v4641_v10  ;;  %v4647_v19 = vadd.f32 %v4646_v38, %v4534_v3  ;;  %v4653_v38 = vadd.f32 %v4652_v49, %v4540_v47 }
 0x9c1   :  { %v4860_v30 = vpop.f32.mrf.mxu3 }
 0x9c2   :  { %v4861_v6 = vadd.f32 %v4860_v30, %v4748_v48  ;;  %v4760_v26 = vadd.f32 %v4759_v43, %v4647_v19  ;;  %v4766_v4 = vadd.f32 %v4765_v57, %v4653_v38 }
 0x9c4   :  { %4934 = vst [vmem:[#allocation2 + $0x58] sm:$0xff] %v4861_v6 }
 0x9c6   :  { %5073 = vmatmul.msk.f32.gmra.mxu3 %vm4186_vm1, %v11003_v18  ;;  %v4542_v18 = vpop.f32.mrf.mxu0 }
 0x9c7   :  { %v4661_v30 = vpop.f32.mrf.mxu1  ;;  %v4543_v0 = vadd.f32 %v4542_v18, %v10858_v11 }
 0x9c9   :  { %v4863_v50 = vpop.f32.mrf.mxu3  ;;  %v4656_v23 = vadd.f32 %v4655_v62, %v4543_v0 }
 0x9ca   :  { %v4864_v27 = vadd.f32 %v4863_v50, %v4751_v28 }
 0x9cc   :  { %4935 = vst [vmem:[#allocation2 + $0x60] sm:$0xff] %v4864_v27 }
 0x9ce   :  { %5074 = vmatmul.msk.f32.gmra.mxu3 %vm4186_vm1, %v11021_v29  ;;  %v4768_v29 = vpop.f32.mrf.mxu2  ;;  %v4545_v15 = vpop.f32.mrf.mxu0 }
 0x9cf   :  { %v4769_v28 = vadd.f32 %v4768_v29, %v4656_v23  ;;  %v4664_v33 = vpop.f32.mrf.mxu1  ;;  %v4546_v63 = vadd.f32 %v4545_v15, %v10879_v37 }
 0x9d1   :  { %v4866_v36 = vpop.f32.mrf.mxu3  ;;  %v4659_v27 = vadd.f32 %v4658_v40, %v4546_v63 }
 0x9d2   :  { %v4867_v52 = vadd.f32 %v4866_v36, %v4754_v39 }
 0x9d4   :  { %4936 = vst [vmem:[#allocation2 + $0x68] sm:$0xff] %v4867_v52 }
 0x9d6   :  { %5075 = vmatmul.msk.f32.gmra.mxu3 %vm4186_vm1, %v10737_v54  ;;  %v4771_v51 = vpop.f32.mrf.mxu2  ;;  %v4548_v32 = vpop.f32.mrf.mxu0 }
 0x9d7   :  { %v4772_v34 = vadd.f32 %v4771_v51, %v4659_v27  ;;  %v4549_v39 = vadd.f32 %v4548_v32, %v10900_v56  ;;  %v4667_v49 = vpop.f32.mrf.mxu1 }
 0x9d9   :  { %v4869_v44 = vpop.f32.mrf.mxu3  ;;  %v4662_v36 = vadd.f32 %v4661_v30, %v4549_v39 }
 0x9da   :  { %v4870_v59 = vadd.f32 %v4869_v44, %v4757_v22 }
 0x9dc   :  { %4937 = vst [vmem:[#allocation2 + $0x70] sm:$0xff] %v4870_v59 }
 0x9de   :  { %5076 = vmatmul.msk.f32.gmra.mxu3 %vm4186_vm1, %v10737_v54  ;;  %v4774_v54 = vpop.f32.mrf.mxu2  ;;  %v4551_v6 = vpop.f32.mrf.mxu0 }
 0x9df   :  { %v4775_v5 = vadd.f32 %v4774_v54, %v4662_v36  ;;  %v4552_v18 = vadd.f32 %v4551_v6, %v10919_v58  ;;  %v4670_v37 = vpop.f32.mrf.mxu1 }
 0x9e1   :  { %v4872_v2 = vpop.f32.mrf.mxu3  ;;  %v4665_v44 = vadd.f32 %v4664_v33, %v4552_v18 }
 0x9e2   :  { %v4873_v55 = vadd.f32 %v4872_v2, %v4760_v26 }
 0x9e4   :  { %4938 = vst [vmem:[#allocation2 + $0x78] sm:$0xff] %v4873_v55 }
 0x9e6   :  { %v4777_v14 = vpop.f32.mrf.mxu2  ;;  %v4554_v31 = vpop.f32.mrf.mxu0 }
 0x9e7   :  { %v4778_v61 = vadd.f32 %v4777_v14, %v4665_v44  ;;  %v4555_v56 = vadd.f32 %v4554_v31, %v10938_v13  ;;  %v4673_v19 = vpop.f32.mrf.mxu1 }
 0x9e9   :  { %v4875_v41 = vpop.f32.mrf.mxu3  ;;  %v4668_v29 = vadd.f32 %v4667_v49, %v4555_v56 }
 0x9ea   :  { %v4876_v48 = vadd.f32 %v4875_v41, %v4763_v21 }
 0x9ec   :  { %4939 = vst [vmem:[#allocation2 + $0x80] sm:$0xff] %v4876_v48 }
 0x9ee   :  { %v4780_v57 = vpop.f32.mrf.mxu2  ;;  %v4557_v20 = vpop.f32.mrf.mxu0 }
 0x9ef   :  { %v4781_v26 = vadd.f32 %v4780_v57, %v4668_v29  ;;  %v4558_v8 = vadd.f32 %v4557_v20, %v10951_v46  ;;  %v4676_v40 = vpop.f32.mrf.mxu1 }
 0x9f1   :  { %v4878_v43 = vpop.f32.mrf.mxu3  ;;  %v4671_v55 = vadd.f32 %v4670_v37, %v4558_v8 }
 0x9f2   :  { %v4879_v35 = vadd.f32 %v4878_v43, %v4766_v4 }
 0x9f4   :  { %4940 = vst [vmem:[#allocation2 + $0x88] sm:$0xff] %v4879_v35 }
 0x9f6   :  { %v4783_v22 = vpop.f32.mrf.mxu2  ;;  %v4560_v3 = vpop.f32.mrf.mxu0 }
 0x9f7   :  { %v4784_v51 = vadd.f32 %v4783_v22, %v4671_v55  ;;  %v4561_v32 = vadd.f32 %v4560_v3, %v10966_v24  ;;  %v4679_v54 = vpop.f32.mrf.mxu1 }
 0x9f9   :  { %v4881_v50 = vpop.f32.mrf.mxu3  ;;  %v4674_v47 = vadd.f32 %v4673_v19, %v4561_v32 }
 0x9fa   :  { %v4882_v12 = vadd.f32 %v4881_v50, %v4769_v28 }
 0x9fc   :  { %4941 = vst [vmem:[#allocation2 + $0x90] sm:$0xff] %v4882_v12 }
 0x9fe   :  { %v4786_v15 = vpop.f32.mrf.mxu2  ;;  %v4563_v9 = vpop.f32.mrf.mxu0 }
 0x9ff   :  { %v4787_v48 = vadd.f32 %v4786_v15, %v4674_v47  ;;  %v4564_v30 = vadd.f32 %v4563_v9, %v10979_v53  ;;  %v4682_v24 = vpop.f32.mrf.mxu1 }
 0xa01   :  { %v4884_v10 = vpop.f32.mrf.mxu3  ;;  %v4677_v43 = vadd.f32 %v4676_v40, %v4564_v30 }
 0xa02   :  { %v4885_v11 = vadd.f32 %v4884_v10, %v4772_v34 }
 0xa04   :  { %4942 = vst [vmem:[#allocation2 + $0x98] sm:$0xff] %v4885_v11 }
 0xa06   :  { %v4789_v17 = vpop.f32.mrf.mxu2  ;;  %v4566_v41 = vpop.f32.mrf.mxu0 }
 0xa07   :  { %v4790_v35 = vadd.f32 %v4789_v17, %v4677_v43  ;;  %v4567_v23 = vadd.f32 %v4566_v41, %v10993_v45  ;;  %v4685_v34 = vpop.f32.mrf.mxu1 }
 0xa09   :  { %v4887_v52 = vpop.f32.mrf.mxu3  ;;  %v4680_v14 = vadd.f32 %v4679_v54, %v4567_v23 }
 0xa0a   :  { %v4888_v60 = vadd.f32 %v4887_v52, %v4775_v5 }
 0xa0c   :  { %4943 = vst [vmem:[#allocation2 + $0xa0] sm:$0xff] %v4888_v60 }
 0xa0e   :  { %v4792_v4 = vpop.f32.mrf.mxu2  ;;  %v4569_v0 = vpop.f32.mrf.mxu0 }
 0xa0f   :  { %v4793_v50 = vadd.f32 %v4792_v4, %v4680_v14  ;;  %v4570_v53 = vadd.f32 %v4569_v0, %v11009_v42  ;;  %v4688_v20 = vpop.f32.mrf.mxu1 }
 0xa11   :  { %v4890_v62 = vpop.f32.mrf.mxu3  ;;  %v4683_v27 = vadd.f32 %v4682_v24, %v4570_v53 }
 0xa12   :  { %v4891_v59 = vadd.f32 %v4890_v62, %v4778_v61 }
 0xa14   :  { %4944 = vst [vmem:[#allocation2 + $0xa8] sm:$0xff] %v4891_v59 }
 0xa16   :  { %v4795_v33 = vpop.f32.mrf.mxu2  ;;  %v4572_v63 = vpop.f32.mrf.mxu0 }
 0xa17   :  { %v4796_v39 = vadd.f32 %v4795_v33, %v4683_v27  ;;  %v4573_v11 = vadd.f32 %v4572_v63, %v11025_v25  ;;  %v4691_v25 = vpop.f32.mrf.mxu1 }
 0xa19   :  { %v4893_v2 = vpop.f32.mrf.mxu3  ;;  %v4686_v36 = vadd.f32 %v4685_v34, %v4573_v11 }
 0xa1a   :  { %v4894_v58 = vadd.f32 %v4893_v2, %v4781_v26 }
 0xa1c   :  { %4945 = vst [vmem:[#allocation2 + $0xb0] sm:$0xff] %v4894_v58 }
 0xa1e   :  { %v4798_v10 = vpop.f32.mrf.mxu2  ;;  %v4575_v57 = vpop.f32.mrf.mxu0 }
 0xa1f   :  { %v4799_v5 = vadd.f32 %v4798_v10, %v4686_v36  ;;  %v4576_v60 = vadd.f32 %v4575_v57, %v11038_v7  ;;  %v4694_v7 = vpop.f32.mrf.mxu1 }
 0xa21   :  { %v4896_v21 = vpop.f32.mrf.mxu3  ;;  %v4689_v22 = vadd.f32 %v4688_v20, %v4576_v60 }
 0xa22   :  { %v4897_v13 = vadd.f32 %v4896_v21, %v4784_v51 }
 0xa24   :  { %4946 = vst [vmem:[#allocation2 + $0xb8] sm:$0xff] %v4897_v13 }
 0xa26   :  { %v4801_v52 = vpop.f32.mrf.mxu2  ;;  %v4578_v37 = vpop.f32.mrf.mxu0 }
 0xa27   :  { %v4802_v44 = vadd.f32 %v4801_v52, %v4689_v22  ;;  %v4579_v3 = vadd.f32 %v4578_v37, %v11051_v1 }
 0xa29   :  { %v4899_v38 = vpop.f32.mrf.mxu3  ;;  %v4692_v59 = vadd.f32 %v4691_v25, %v4579_v3 }
 0xa2a   :  { %v4900_v46 = vadd.f32 %v4899_v38, %v4787_v48 }
 0xa2c   :  { %4947 = vst [vmem:[#allocation2 + $0xc0] sm:$0xff] %v4900_v46 }
 0xa2e   :  { %v4804_v56 = vpop.f32.mrf.mxu2  ;;  %v4581_v29 = vpop.f32.mrf.mxu0 }
 0xa2f   :  { %v4805_v19 = vadd.f32 %v4804_v56, %v4692_v59  ;;  %v4582_v26 = vadd.f32 %v4581_v29, %v11062_v16 }
 0xa31   :  { %v4902_v6 = vpop.f32.mrf.mxu3  ;;  %v4695_v58 = vadd.f32 %v4694_v7, %v4582_v26 }
 0xa32   :  { %v4903_v28 = vadd.f32 %v4902_v6, %v4790_v35 }
 0xa34   :  { %4948 = vst [vmem:[#allocation2 + $0xc8] sm:$0xff] %v4903_v28 }
 0xa36   :  { %v4807_v8 = vpop.f32.mrf.mxu2 }
 0xa37   :  { %v4808_v1 = vadd.f32 %v4807_v8, %v4695_v58 }
 0xa39   :  { %v4905_v12 = vpop.f32.mrf.mxu3 }
 0xa3a   :  { %v4906_v31 = vadd.f32 %v4905_v12, %v4793_v50 }
 0xa3c   :  { %4949 = vst [vmem:[#allocation2 + $0xd0] sm:$0xff] %v4906_v31 }
 0xa41   :  { %v4908_v49 = vpop.f32.mrf.mxu3 }
 0xa42   :  { %v4909_v45 = vadd.f32 %v4908_v49, %v4796_v39 }
 0xa44   :  { %4950 = vst [vmem:[#allocation2 + $0xd8] sm:$0xff] %v4909_v45 }
 0xa49   :  { %v4911_v18 = vpop.f32.mrf.mxu3 }
 0xa4a   :  { %v4912_v42 = vadd.f32 %v4911_v18, %v4799_v5 }
 0xa4c   :  { %4951 = vst [vmem:[#allocation2 + $0xe0] sm:$0xff] %v4912_v42 }
 0xa51   :  { %v4914_v61 = vpop.f32.mrf.mxu3 }
 0xa52   :  { %v4915_v62 = vadd.f32 %v4914_v61, %v4802_v44 }
 0xa54   :  { %4952 = vst [vmem:[#allocation2 + $0xe8] sm:$0xff] %v4915_v62 }
 0xa59   :  { %v4917_v15 = vpop.f32.mrf.mxu3 }
 0xa5a   :  { %v4918_v2 = vadd.f32 %v4917_v15, %v4805_v19 }
 0xa5c   :  { %4953 = vst [vmem:[#allocation2 + $0xf0] sm:$0xff] %v4918_v2 }
 0xa61   :  { %v4920_v9 = vpop.f32.mrf.mxu3 }
 0xa62   :  { %v4921_v55 = vadd.f32 %v4920_v9, %v4808_v1 }
 0xa64   :  { %4954 = vst [vmem:[#allocation2 + $0xf8] sm:$0xff] %v4921_v55 }
 0xa65   :  { %4967 = dma.vmem_to_hbm [thread:$0]  %s4960_s16, 4096, %s4962_s25, [#allocation3], %s5788_s26, %s5788_s26, %s5789_s29  }
 0xa66   :  { %5749 = dma.done.wait [#allocation3], 4096  }
 0xa67   :  { %5750 = vsyncadd [#allocation3], 4294963200 }
 0xa68   :  { %4972 = vsyncpa [#allocation3], 1 }

</bundles_post_ra>
